<compile_context>
chip_gen: v6e
topology: v6e:2x2x1
jax: 0.10.0
libtpu: 0.0.40
codegen_flags: <defaults>
</compile_context>

<pallas_src>
import functools
import math

import jax
import jax.numpy as jnp
import numpy as np
from jax.experimental import pallas as pl
from jax.experimental.pallas import tpu as pltpu


def _round_up(n, m):
    return ((n + m - 1) // m) * m


def _sinusoidal_kernel(inv_freq_ref, phase_ref, o_ref):
    """One (tile_s, d_pad) row-tile of the sin/cos table.

    inv_freq_ref, phase_ref: (1, d_pad) precomputed per-column constants.
    cos is folded as sin(x + pi/2), so there is exactly one EUP
    transcendental per output element and no per-step column work.
    """
    tile_s = o_ref.shape[0]
    row0 = pl.program_id(0) * tile_s
    pos = (jax.lax.broadcasted_iota(jnp.int32, (tile_s, 1), 0) + row0
           ).astype(jnp.float32)
    # (tile_s,1) * (1,d_pad) + (1,d_pad) -> (tile_s,d_pad); 1 sin / element.
    o_ref[...] = jnp.sin(pos * inv_freq_ref[...] + phase_ref[...])


@functools.lru_cache(maxsize=None)
def _pos_embed_table(max_len, d_model):
    """Build the full (max_len, d_model) float32 table once with Pallas."""
    if d_model % 2 != 0:
        # The PyTorch reference itself breaks for odd d_model (shape mismatch
        # in pe[:, 1::2]); fail loudly instead of silently diverging.
        raise ValueError("d_model must be even")

    # Lane-dense output: pad feature dim up to a multiple of 128 only if
    # needed (lane-aligned d_model skips the post-kernel slice entirely).
    d_pad = _round_up(d_model, 128)

    # ---- tile sizing from an explicit VMEM budget --------------------------
    # Double-buffered f32 output block must stay within v5e's 16 MiB default
    # scoped VMEM (the smallest of v5e/v6e/v7x defaults); inputs are a few KiB.
    VMEM_BUDGET_BYTES = 12 * 1024 * 1024
    budget_rows = max(8, (VMEM_BUDGET_BYTES // (2 * d_pad * 4)) // 8 * 8)
    s_pad_8 = _round_up(max_len, 8)
    single_block_cap = min(budget_rows, 1024)   # >=512 rows ~ writeback roofline

    if s_pad_8 <= single_block_cap:
        tile_s = s_pad_8                        # whole table in one block
    else:
        tile_s = single_block_cap
        # Give v7x's 2 TensorCores several pipelined steps each, but never
        # shrink below 512 rows (~85% of HBM writeback roofline).
        while pl.cdiv(s_pad_8, tile_s) < 8 and tile_s >= 1024:
            tile_s //= 2
        tile_s = max(8, (tile_s // 8) * 8)

    s_pad = _round_up(max_len, tile_s)
    grid = (s_pad // tile_s,)

    # ---- per-column constants, hoisted to host (computed once per table) ---
    j = np.arange(d_pad)
    two_i = (j // 2) * 2
    inv_freq = 1.0 / np.power(10000.0, two_i.astype(np.float64) / d_model)
    inv_freq = np.where(j < d_model, inv_freq, 0.0).astype(np.float32)[None, :]
    phase = np.where(j < d_model, (j & 1) * (math.pi / 2.0), 0.0
                     ).astype(np.float32)[None, :]          # cos = sin(x+pi/2)

    table = pl.pallas_call(
        _sinusoidal_kernel,
        out_shape=jax.ShapeDtypeStruct((s_pad, d_pad), jnp.float32),
        grid=grid,
        in_specs=[pl.BlockSpec((1, d_pad), lambda i: (0, 0)),
                  pl.BlockSpec((1, d_pad), lambda i: (0, 0))],
        out_specs=pl.BlockSpec((tile_s, d_pad), lambda i: (i, 0)),
        compiler_params=pltpu.CompilerParams(
            dimension_semantics=("parallel",)),
    )(jnp.asarray(inv_freq), jnp.asarray(phase))

    if s_pad != max_len or d_pad != d_model:
        # Only non-aligned shapes pay the HBM->HBM slice.
        table = table[:max_len, :d_model]
    return table


@functools.lru_cache(maxsize=None)
def _pos_embed_slice(max_len, d_model, seq_len):
    """Cached (1, seq_len, d_model) view of the table (one slice per seq_len)."""
    table = _pos_embed_table(max_len, d_model)
    return table[None, :seq_len, :]


def sinusoidal_positional_embedding(x, d_model, max_len=512):
    """Forward pass: returns pos_embed[:, :x.shape[1]] as (1, S, d_model) f32."""
    seq_len = int(x.shape[1])
    if seq_len > max_len:
        raise ValueError(f"seq_len={seq_len} exceeds max_len={max_len}")
    # TODO(synk): downstream users should fuse the `x + pe` add (or consume a
    # bf16 copy) — that HBM read, not this cached slice, is the steady-state cost.
    return _pos_embed_slice(max_len, d_model, seq_len)


def _reference(seq_len, d_model):
    """Pure-numpy replica of the PyTorch buffer construction, for checking."""
    pe = np.zeros((seq_len, d_model), dtype=np.float32)
    pos = np.arange(seq_len, dtype=np.float32)[:, None]
    _2i = np.arange(0, d_model, 2, dtype=np.float32)
    pe[:, 0::2] = np.sin(pos / np.power(10000.0, _2i / d_model))
    pe[:, 1::2] = np.cos(pos / np.power(10000.0, _2i / d_model))
    return pe[None]


if __name__ == "__main__":
    key = jax.random.PRNGKey(0)
    B, S, D_MODEL, MAX_LEN = 2, 8, 32, 512
    # x contents are irrelevant (only its seq length is used), but build it
    # deterministically anyway.
    x = jax.random.normal(key, (B, S, D_MODEL), dtype=jnp.float32)

    out = jax.block_until_ready(
        sinusoidal_positional_embedding(x, d_model=D_MODEL, max_len=MAX_LEN))
    assert out.shape == (1, S, D_MODEL), out.shape
    assert out.dtype == jnp.float32
    np.testing.assert_allclose(np.asarray(out), _reference(S, D_MODEL),
                               rtol=1e-5, atol=1e-5)

    # Full-length validation.  Angles reach ~max_len rad, so the cos=sin(x+pi/2)
    # fold and mul-by-inv_freq vs. the reference's division differ by a few ulps
    # of the angle; the absolute tolerance scales with max_len accordingly.
    x_full = jnp.zeros((1, MAX_LEN, D_MODEL), dtype=jnp.float32)
    out_full = jax.block_until_ready(
        sinusoidal_positional_embedding(x_full, d_model=D_MODEL, max_len=MAX_LEN))
    np.testing.assert_allclose(np.asarray(out_full),
                               _reference(MAX_LEN, D_MODEL),
                               rtol=1e-5, atol=2e-4)

    # A different seq_len must reuse the cached table (no pallas recompilation).
    out2 = jax.block_until_ready(
        sinusoidal_positional_embedding(x[:, :5], d_model=D_MODEL, max_len=MAX_LEN))
    np.testing.assert_allclose(np.asarray(out2), _reference(5, D_MODEL),
                               rtol=1e-5, atol=1e-5)

    # Exercise the multi-step grid path and the lane-aligned no-slice path
    # (d_model % 128 == 0, max_len % tile_s == 0 -> exact out_shape, grid=(4,)).
    ML2, D2 = 2048, 256
    x2 = jnp.zeros((1, 64, D2), dtype=jnp.float32)
    out3 = jax.block_until_ready(
        sinusoidal_positional_embedding(x2, d_model=D2, max_len=ML2))
    np.testing.assert_allclose(np.asarray(out3), _reference(64, D2),
                               rtol=1e-5, atol=5e-5)
    full2 = jax.block_until_ready(_pos_embed_table(ML2, D2))
    np.testing.assert_allclose(np.asarray(full2), _reference(ML2, D2)[0],
                               rtol=1e-5, atol=1e-3)

    print("KERNEL_OK")
</pallas_src>

<mosaic_0001>
module attributes {stable_mosaic.version = 11 : i64} {
  func.func @_sinusoidal_kernel(%arg0: i32, %arg1: memref<1x128xf32, #tpu.memory_space<vmem>>, %arg2: memref<1x128xf32, #tpu.memory_space<vmem>>, %arg3: memref<512x128xf32, #tpu.memory_space<vmem>>) attributes {dimension_semantics = [#tpu.dimension_semantics<parallel>], iteration_bounds = array<i64: 1>, scalar_prefetch = 0 : i64, scratch_operands = 0 : i64, tpu.core_type = #tpu.core_type<tc>, window_params = [{pipeline_mode = #tpu.pipeline_mode<synchronous>, transform_indices = @transform_0, window_bounds = array<i64: 1, 128>}, {pipeline_mode = #tpu.pipeline_mode<synchronous>, transform_indices = @transform_1, window_bounds = array<i64: 1, 128>}, {transform_indices = @transform_2, window_bounds = array<i64: 512, 128>}]} {
    %c512_i32 = arith.constant 512 : i32
    %0 = arith.muli %arg0, %c512_i32 : i32
    %1 = tpu.iota {dimensions = array<i32: 0>} : vector<512x1xi32>
    %2 = vector.broadcast %0 : i32 to vector<512x1xi32>
    %3 = arith.addi %1, %2 : vector<512x1xi32>
    %4 = arith.sitofp %3 : vector<512x1xi32> to vector<512x1xf32>
    %c0 = arith.constant 0 : index
    %c0_0 = arith.constant 0 : index
    %5 = vector.load %arg1[%c0, %c0_0] : memref<1x128xf32, #tpu.memory_space<vmem>>, vector<1x128xf32>
    %6 = vector.broadcast %4 : vector<512x1xf32> to vector<512x128xf32>
    %7 = vector.broadcast %5 : vector<1x128xf32> to vector<512x128xf32>
    %8 = arith.mulf %6, %7 : vector<512x128xf32>
    %c0_1 = arith.constant 0 : index
    %c0_2 = arith.constant 0 : index
    %9 = vector.load %arg2[%c0_1, %c0_2] : memref<1x128xf32, #tpu.memory_space<vmem>>, vector<1x128xf32>
    %10 = vector.broadcast %9 : vector<1x128xf32> to vector<512x128xf32>
    %11 = arith.addf %8, %10 : vector<512x128xf32>
    %12 = math.sin %11 : vector<512x128xf32>
    %c0_3 = arith.constant 0 : index
    %c0_4 = arith.constant 0 : index
    %13 = vector.load %arg3[%c0_3, %c0_4] : memref<512x128xf32, #tpu.memory_space<vmem>>, vector<512x128xf32>
    tpu.vector_store %arg3[%c0_3, %c0_4], %12 {strides = array<i32>} : memref<512x128xf32, #tpu.memory_space<vmem>>, vector<512x128xf32>,
    return
  }
  func.func @transform_0(%arg0: i32) -> (i32, i32) {
    %c0_i32 = arith.constant 0 : i32
    %c0_i32_0 = arith.constant 0 : i32
    %c0_i32_1 = arith.constant 0 : i32
    return %c0_i32, %c0_i32_0 : i32, i32
  }
  func.func @transform_1(%arg0: i32) -> (i32, i32) {
    %c0_i32 = arith.constant 0 : i32
    %c0_i32_0 = arith.constant 0 : i32
    %c0_i32_1 = arith.constant 0 : i32
    return %c0_i32, %c0_i32_0 : i32, i32
  }
  func.func @transform_2(%arg0: i32) -> (i32, i32) {
    %c0_i32 = arith.constant 0 : i32
    %c0_i32_0 = arith.constant 0 : i32
    return %arg0, %c0_i32 : i32, i32
  }
}

</mosaic_0001>

<bundles_post_ra>
// kernel: tpu_custom_call.1
= control target key start
LH: loop header
LB: loop body
LE: loop exit
PB: predicated region body
PF: predicated region fallthrough
CT: control target
= control target key end

     0   :  { %7 = vsyncpa [#allocation3], 0  ;;  %s13404_s0 = inlined_call_operand.hbm [shape: f32[1,128], index: 0, kind: input, shape index: {}]   ;;  %s13405_s1 = inlined_call_operand.vmem [shape: f32[1,128], index: 1, kind: input, shape index: {}]   ;;  %s13406_s2 = inlined_call_operand.hbm [shape: f32[512,128], index: 2, kind: output, shape index: {}]  }
   0x1   :  { %8 = vsyncpa [#allocation4], 0  ;;  %s7922_s9 = smov [#allocation2]  }
   0x2   :  { %s15_s10 = sshll.u32 %s7922_s9, 4  ;;  %s16_s10 = int_to_ptr.vmem [resolvable:$true] %s15_s10 }
   0x3   :  { %s7886_s11 = scalar_lea.vmem %s16_s10, 16  ;;  %s7890_s12 = scalar_lea.vmem %s16_s10, 32 }
   0x4   :  { %p7887_p0 = scmp.ne.s32.totalorder %s16_s10, %s7886_s11  ;;  %p7891_p1 = scmp.lt.s32.totalorder %s16_s10, %s16_s10 }
   0x5   :  { %p7892_p2 = scmp.lt.s32.totalorder %s7890_s12, %s7886_s11 }
   0x7   :  { %p7893_p3 = por %p7892_p2, %p7891_p1 }
   0x9   :  { %p7894_p4 = pnand %p7893_p3, %p7887_p0 }
   0xb   :  { %7897 = shalt.err (!%p7894_p4)
}
   0xc   :  { %18 = dma.hbm_to_vmem [thread:$0]  %s13404_s0, 16, %s16_s10, [#allocation3]  }
   0xd   :  { %7918 = dma.done.wait [#allocation3], 16  }
   0xe   :  { %7919 = vsyncadd [#allocation3], 4294967280  ;;  %v25_v0 = vlaneseq }
  0x10   :  { %v7950_v1 = vshrl.u32 %v25_v0, 7 }
  0x12   :  { %v7953_v2 = vadd.s32 8, %v7950_v1  ;;  %v7956_v3 = vadd.s32 16, %v7950_v1  ;;  %v7959_v4 = vadd.s32 32, %v7950_v1  ;;  %v7962_v5 = vadd.s32 40, %v7950_v1 }
  0x13   :  { %v7965_v6 = vadd.s32 48, %v7950_v1  ;;  %v7968_v7 = vadd.s32 56, %v7950_v1  ;;  %v7971_v8 = vadd.s32 64, %v7950_v1  ;;  %v7974_v9 = vadd.s32 72, %v7950_v1 }
  0x14   :  { %13484 = vst [vmem:[#allocation8_spill] sm:$0xff] %v7956_v3  ;;  %v7977_v10 = vadd.s32 80, %v7950_v1  ;;  %v7980_v11 = vadd.s32 88, %v7950_v1  ;;  %v7983_v12 = vadd.s32 96, %v7950_v1  ;;  %v7986_v13 = vadd.s32 104, %v7950_v1 }
  0x15   :  { %v7989_v14 = vadd.s32 112, %v7950_v1  ;;  %v7992_v15 = vadd.s32 120, %v7950_v1  ;;  %v7995_v16 = vadd.s32 128, %v7950_v1  ;;  %v7998_v17 = vadd.s32 136, %v7950_v1  ;;  %v8192_v3 = vld [vmem:[#allocation2] ss:$0 sm:$0xff] }
  0x16   :  { %v8001_v18 = vadd.s32 144, %v7950_v1  ;;  %v8004_v19 = vadd.s32 152, %v7950_v1  ;;  %v8007_v20 = vadd.s32 160, %v7950_v1  ;;  %v8010_v21 = vadd.s32 168, %v7950_v1 }
  0x17   :  { %v8013_v22 = vadd.s32 176, %v7950_v1  ;;  %v8016_v23 = vadd.s32 184, %v7950_v1  ;;  %v8019_v24 = vadd.s32 192, %v7950_v1  ;;  %v8022_v25 = vadd.s32 200, %v7950_v1 }
  0x18   :  { %v8025_v26 = vadd.s32 208, %v7950_v1  ;;  %v8028_v27 = vadd.s32 216, %v7950_v1  ;;  %v8031_v28 = vadd.s32 224, %v7950_v1  ;;  %v8034_v29 = vadd.s32 232, %v7950_v1 }
  0x19   :  { %v8037_v30 = vadd.s32 240, %v7950_v1  ;;  %v8040_v31 = vadd.s32 248, %v7950_v1  ;;  %v8043_v32 = vadd.s32 256, %v7950_v1  ;;  %v8046_v33 = vadd.s32 264, %v7950_v1 }
  0x1a   :  { %v8049_v34 = vadd.s32 272, %v7950_v1  ;;  %v8052_v35 = vadd.s32 280, %v7950_v1  ;;  %v8055_v36 = vadd.s32 288, %v7950_v1  ;;  %v8058_v37 = vadd.s32 296, %v7950_v1 }
  0x1b   :  { %v8061_v38 = vadd.s32 304, %v7950_v1  ;;  %v8064_v39 = vadd.s32 312, %v7950_v1  ;;  %v8067_v40 = vadd.s32 320, %v7950_v1  ;;  %v8070_v41 = vadd.s32 328, %v7950_v1 }
  0x1c   :  { %v8073_v42 = vadd.s32 336, %v7950_v1  ;;  %v8076_v43 = vadd.s32 344, %v7950_v1  ;;  %v8079_v44 = vadd.s32 352, %v7950_v1  ;;  %v8082_v45 = vadd.s32 360, %v7950_v1 }
  0x1d   :  { %v8085_v46 = vadd.s32 368, %v7950_v1  ;;  %v8088_v47 = vadd.s32 376, %v7950_v1  ;;  %v8091_v48 = vadd.s32 384, %v7950_v1  ;;  %v8094_v49 = vadd.s32 392, %v7950_v1 }
  0x1e   :  { %v8097_v50 = vadd.s32 400, %v7950_v1  ;;  %v8100_v51 = vadd.s32 408, %v7950_v1  ;;  %v8103_v52 = vadd.s32 416, %v7950_v1  ;;  %v8106_v53 = vadd.s32 424, %v7950_v1 }
  0x1f   :  { %13485 = vst [vmem:[#allocation9_spill] sm:$0xff] %v8085_v46  ;;  %13486 = vst [vmem:[#allocation10_spill] sm:$0xff] %v8088_v47  ;;  %v8109_v54 = vadd.s32 432, %v7950_v1  ;;  %v8112_v55 = vadd.s32 440, %v7950_v1  ;;  %v8115_v56 = vadd.s32 448, %v7950_v1  ;;  %v8118_v57 = vadd.s32 456, %v7950_v1 }
  0x20   :  { %13487 = vst [vmem:[#allocation11_spill] sm:$0xff] %v8091_v48  ;;  %13488 = vst [vmem:[#allocation12_spill] sm:$0xff] %v8094_v49  ;;  %v8121_v58 = vadd.s32 464, %v7950_v1  ;;  %v8124_v59 = vadd.s32 472, %v7950_v1  ;;  %v8127_v60 = vadd.s32 480, %v7950_v1  ;;  %v8130_v61 = vadd.s32 488, %v7950_v1 }
  0x21   :  { %13489 = vst [vmem:[#allocation13_spill] sm:$0xff] %v8097_v50  ;;  %13490 = vst [vmem:[#allocation14_spill] sm:$0xff] %v8100_v51  ;;  %v8133_v62 = vadd.s32 496, %v7950_v1  ;;  %v8136_v63 = vadd.s32 504, %v7950_v1  ;;  %v13505_v47 = vmov %v8118_v57 }
  0x22   :  { %13491 = vst [vmem:[#allocation15_spill] sm:$0xff] %v8103_v52  ;;  %13492 = vst [vmem:[#allocation16_spill] sm:$0xff] %v8106_v53  ;;  %v13506_v48 = vmov %v8121_v58  ;;  %v13507_v49 = vmov %v8124_v59 }
  0x23   :  { %13493 = vst [vmem:[#allocation17_spill] sm:$0xff] %v8109_v54  ;;  %13494 = vst [vmem:[#allocation18_spill] sm:$0xff] %v8112_v55  ;;  %v13510_v52 = vmov %v8133_v62  ;;  %v13511_v53 = vmov %v8136_v63  ;;  %v13512_v54 = vcvt.s32.f32 %v7950_v1 }
  0x24   :  { %13495 = vst [vmem:[#allocation19_spill] sm:$0xff] %v8115_v56  ;;  %13496 = vst [vmem:[#allocation20_spill] sm:$0xff] %v8118_v57  ;;  %v13503_v56 = vmov %v8112_v55  ;;  %v13515_v57 = vcvt.s32.f32 %v7962_v5  ;;  %v13519_v5 = vcvt.s32.f32 %v7974_v9  ;;  %v13523_v9 = vcvt.s32.f32 %v7986_v13 }
  0x25   :  { %13497 = vst [vmem:[#allocation21_spill] sm:$0xff] %v8121_v58  ;;  %13498 = vst [vmem:[#allocation22_spill] sm:$0xff] %v8124_v59  ;;  %v13516_v59 = vcvt.s32.f32 %v7965_v6  ;;  %v13520_v6 = vcvt.s32.f32 %v7977_v10  ;;  %v13524_v10 = vcvt.s32.f32 %v7989_v14  ;;  %v13527_v13 = vcvt.s32.f32 %v7998_v17 }
  0x26   :  { %13499 = vst [vmem:[#allocation23_spill] sm:$0xff] %v8127_v60  ;;  %13500 = vst [vmem:[#allocation24_spill] sm:$0xff] %v8130_v61  ;;  %v210_v60 = vcvt.s32.f32 %v13503_v56  ;;  %v8206_v56 = vmul.f32 %v8192_v3, %v13512_v54  ;;  %v8221_v58 = vmul.f32 %v8192_v3, %v13515_v57  ;;  %v8241_v57 = vmul.f32 %v8192_v3, %v13519_v5 }
  0x27   :  { %13501 = vst [vmem:[#allocation25_spill] sm:$0xff] %v8133_v62  ;;  %13502 = vst [vmem:[#allocation26_spill] sm:$0xff] %v8136_v63  ;;  %v13514_v63 = vcvt.s32.f32 %v7959_v4  ;;  %v8226_v54 = vmul.f32 %v8192_v3, %v13516_v59  ;;  %v13518_v4 = vcvt.s32.f32 %v7971_v8  ;;  %v8246_v59 = vmul.f32 %v8192_v3, %v13520_v6  ;;  %v13560_v62 = vld [vmem:[#allocation9_spill] sm:$0xff] }
  0x28   :  { %v13522_v8 = vcvt.s32.f32 %v7983_v12  ;;  %v8261_v5 = vmul.f32 %v8192_v3, %v13523_v9  ;;  %v8266_v6 = vmul.f32 %v8192_v3, %v13524_v10  ;;  %v13526_v12 = vcvt.s32.f32 %v7995_v16 }
  0x29   :  { %v8216_v0 = vmul.f32 %v8192_v3, %v13514_v63  ;;  %v8236_v63 = vmul.f32 %v8192_v3, %v13518_v4  ;;  %v8281_v9 = vmul.f32 %v8192_v3, %v13527_v13  ;;  %v13528_v14 = vcvt.s32.f32 %v8001_v18 }
  0x2a   :  { %v8256_v4 = vmul.f32 %v8192_v3, %v13522_v8  ;;  %v8276_v8 = vmul.f32 %v8192_v3, %v13526_v12  ;;  %v13530_v16 = vcvt.s32.f32 %v8007_v20  ;;  %v13531_v17 = vcvt.s32.f32 %v8010_v21 }
  0x2b   :  { %v13504_v46 = vld [vmem:[#allocation19_spill] sm:$0xff]  ;;  %v8286_v10 = vmul.f32 %v8192_v3, %v13528_v14  ;;  %v13532_v18 = vcvt.s32.f32 %v8013_v22  ;;  %v13534_v20 = vcvt.s32.f32 %v8019_v24  ;;  %v13535_v21 = vcvt.s32.f32 %v8022_v25 }
  0x2c   :  { %v211_v61 = vcvt.s32.f32 %v13504_v46  ;;  %v13513_v46 = vcvt.s32.f32 %v7953_v2  ;;  %v13517_v2 = vcvt.s32.f32 %v7968_v7  ;;  %v13521_v7 = vcvt.s32.f32 %v7980_v11 }
  0x2d   :  { %v13508_v50 = vld [vmem:[#allocation23_spill] sm:$0xff]  ;;  %v13509_v51 = vld [vmem:[#allocation24_spill] sm:$0xff]  ;;  %v13525_v11 = vcvt.s32.f32 %v7992_v15  ;;  %v13529_v15 = vcvt.s32.f32 %v8004_v19  ;;  %v8296_v12 = vmul.f32 %v8192_v3, %v13530_v16  ;;  %v8301_v13 = vmul.f32 %v8192_v3, %v13531_v17 }
  0x2e   :  { %v8211_v55 = vmul.f32 %v8192_v3, %v13513_v46  ;;  %v8231_v46 = vmul.f32 %v8192_v3, %v13517_v2  ;;  %v8251_v2 = vmul.f32 %v8192_v3, %v13521_v7  ;;  %v8306_v14 = vmul.f32 %v8192_v3, %v13532_v18 }
  0x2f   :  { %v8271_v7 = vmul.f32 %v8192_v3, %v13525_v11  ;;  %v8291_v11 = vmul.f32 %v8192_v3, %v13529_v15  ;;  %v13533_v19 = vcvt.s32.f32 %v8016_v23  ;;  %v8316_v16 = vmul.f32 %v8192_v3, %v13534_v20 }
  0x30   :  { %v8321_v17 = vmul.f32 %v8192_v3, %v13535_v21  ;;  %v13536_v22 = vcvt.s32.f32 %v8025_v26  ;;  %v13537_v23 = vcvt.s32.f32 %v8028_v27  ;;  %v13538_v24 = vcvt.s32.f32 %v8031_v28 }
  0x31   :  { %v8311_v15 = vmul.f32 %v8192_v3, %v13533_v19  ;;  %v13539_v25 = vcvt.s32.f32 %v8034_v29  ;;  %v13540_v26 = vcvt.s32.f32 %v8037_v30  ;;  %v13541_v27 = vcvt.s32.f32 %v8040_v31 }
  0x32   :  { %v8326_v18 = vmul.f32 %v8192_v3, %v13536_v22  ;;  %v8331_v19 = vmul.f32 %v8192_v3, %v13537_v23  ;;  %v8336_v20 = vmul.f32 %v8192_v3, %v13538_v24  ;;  %v13542_v28 = vcvt.s32.f32 %v8043_v32 }
  0x33   :  { %v8341_v21 = vmul.f32 %v8192_v3, %v13539_v25  ;;  %v8346_v22 = vmul.f32 %v8192_v3, %v13540_v26  ;;  %v8351_v23 = vmul.f32 %v8192_v3, %v13541_v27  ;;  %v13543_v29 = vcvt.s32.f32 %v8046_v33 }
  0x34   :  { %v8356_v24 = vmul.f32 %v8192_v3, %v13542_v28  ;;  %v13544_v30 = vcvt.s32.f32 %v8049_v34  ;;  %v13545_v31 = vcvt.s32.f32 %v8052_v35  ;;  %v13546_v32 = vcvt.s32.f32 %v8055_v36 }
  0x35   :  { %v8361_v25 = vmul.f32 %v8192_v3, %v13543_v29  ;;  %v13547_v33 = vcvt.s32.f32 %v8058_v37  ;;  %v13548_v34 = vcvt.s32.f32 %v8061_v38  ;;  %v13549_v35 = vcvt.s32.f32 %v8064_v39 }
  0x36   :  { %v8366_v26 = vmul.f32 %v8192_v3, %v13544_v30  ;;  %v8371_v27 = vmul.f32 %v8192_v3, %v13545_v31  ;;  %v8376_v28 = vmul.f32 %v8192_v3, %v13546_v32  ;;  %v13550_v36 = vcvt.s32.f32 %v8067_v40 }
  0x37   :  { %v8381_v29 = vmul.f32 %v8192_v3, %v13547_v33  ;;  %v8386_v30 = vmul.f32 %v8192_v3, %v13548_v34  ;;  %v8391_v31 = vmul.f32 %v8192_v3, %v13549_v35  ;;  %v13551_v37 = vcvt.s32.f32 %v8070_v41 }
  0x38   :  { %v8396_v32 = vmul.f32 %v8192_v3, %v13550_v36  ;;  %v13552_v38 = vcvt.s32.f32 %v8073_v42  ;;  %v13554_v39 = vcvt.s32.f32 %v8076_v43  ;;  %v13556_v40 = vcvt.s32.f32 %v8079_v44 }
  0x39   :  { %v8401_v33 = vmul.f32 %v8192_v3, %v13551_v37  ;;  %v13558_v41 = vcvt.s32.f32 %v8082_v45  ;;  %v13561_v42 = vcvt.s32.f32 %v13560_v62 }
  0x3a   :  { %v8406_v34 = vmul.f32 %v8192_v3, %v13552_v38  ;;  %v8411_v35 = vmul.f32 %v8192_v3, %v13554_v39  ;;  %v8416_v36 = vmul.f32 %v8192_v3, %v13556_v40 }
  0x3b   :  { %v8421_v37 = vmul.f32 %v8192_v3, %v13558_v41  ;;  %v8426_v38 = vmul.f32 %v8192_v3, %v13561_v42 }
  0x3c   :  { %13553 = vst [vmem:[#allocation18_spill] sm:$0xff] %v8406_v34  ;;  %13555 = vst [vmem:[#allocation19_spill] sm:$0xff] %v8411_v35  ;;  %v13563_v34 = vld [vmem:[#allocation10_spill] sm:$0xff]  ;;  %v13566_v35 = vld [vmem:[#allocation11_spill] sm:$0xff] }
  0x3d   :  { %13557 = vst [vmem:[#allocation20_spill] sm:$0xff] %v8416_v36  ;;  %13559 = vst [vmem:[#allocation21_spill] sm:$0xff] %v8421_v37  ;;  %v13564_v43 = vcvt.s32.f32 %v13563_v34  ;;  %v13567_v44 = vcvt.s32.f32 %v13566_v35  ;;  %v13569_v36 = vld [vmem:[#allocation12_spill] sm:$0xff]  ;;  %v13572_v37 = vld [vmem:[#allocation13_spill] sm:$0xff] }
  0x3e   :  { %13562 = vst [vmem:[#allocation22_spill] sm:$0xff] %v8426_v38  ;;  %v13570_v45 = vcvt.s32.f32 %v13569_v36  ;;  %v13573_v62 = vcvt.s32.f32 %v13572_v37  ;;  %v13574_v38 = vld [vmem:[#allocation14_spill] sm:$0xff] }
  0x3f   :  { %v8431_v39 = vmul.f32 %v8192_v3, %v13564_v43  ;;  %v8436_v40 = vmul.f32 %v8192_v3, %v13567_v44  ;;  %v13575_v34 = vcvt.s32.f32 %v13574_v38  ;;  %v8469_v38 = vmul.f32 %v8192_v3, %v210_v60 }
  0x40   :  { %v8441_v41 = vmul.f32 %v8192_v3, %v13570_v45  ;;  %v8446_v42 = vmul.f32 %v8192_v3, %v13573_v62  ;;  %v13585_v60 = vcvt.s32.f32 %v13507_v49 }
  0x41   :  { %13565 = vst [vmem:[#allocation23_spill] sm:$0xff] %v8431_v39  ;;  %13568 = vst [vmem:[#allocation24_spill] sm:$0xff] %v8436_v40  ;;  %v8451_v43 = vmul.f32 %v8192_v3, %v13575_v34  ;;  %v13576_v39 = vld [vmem:[#allocation15_spill] sm:$0xff]  ;;  %v13578_v40 = vld [vmem:[#allocation16_spill] sm:$0xff]  ;;  %v8472_v34 = vmul.f32 %v8192_v3, %v211_v61 }
  0x42   :  { %13571 = vst [vmem:[#allocation25_spill] sm:$0xff] %v8441_v41  ;;  %v13577_v35 = vcvt.s32.f32 %v13576_v39  ;;  %v13579_v36 = vcvt.s32.f32 %v13578_v40  ;;  %v13580_v41 = vld [vmem:[#allocation17_spill] sm:$0xff]  ;;  %v8477_v39 = vld [vmem:[%s13405_s1] ss:$0 sm:$0xff]  ;;  %v13583_v40 = vcvt.s32.f32 %v13505_v47  ;;  %v8492_v61 = vmul.f32 %v8192_v3, %v13585_v60  ;;  %s7929_s1 = smov [#allocation5]  }
  0x43   :  { %v13581_v37 = vcvt.s32.f32 %v13580_v41  ;;  %13582 = vst [vmem:[#allocation26_spill] sm:$0xff] %v8472_v34  ;;  %v13584_v41 = vcvt.s32.f32 %v13506_v48  ;;  %v8500_v47 = vadd.s32 24, %v7950_v1  ;;  %v13590_v60 = vcvt.s32.f32 %v13511_v53  ;;  %s7086_s16 = sshll.u32 %s7929_s1, 4  ;;  %s7087_s16 = int_to_ptr.vmem [resolvable:$true] %s7086_s16 }
  0x44   :  { %v8456_v44 = vmul.f32 %v8192_v3, %v13577_v35  ;;  %v8461_v45 = vmul.f32 %v8192_v3, %v13579_v36  ;;  %v8482_v35 = vmul.f32 %v8192_v3, %v13583_v40  ;;  %v13588_v40 = vcvt.s32.f32 %v13509_v51  ;;  %s7898_s17 = scalar_lea.vmem %s7087_s16, 8192  ;;  %p7903_p6 = scmp.lt.s32.totalorder %s7087_s16, %s7087_s16 }
  0x45   :  { %v8466_v62 = vmul.f32 %v8192_v3, %v13581_v37  ;;  %v8487_v36 = vmul.f32 %v8192_v3, %v13584_v41  ;;  %v13586_v37 = vcvt.s32.f32 %v13508_v50  ;;  %v13589_v41 = vcvt.s32.f32 %v13510_v52  ;;  %p7899_p5 = scmp.ne.s32.totalorder %s7087_s16, %s7898_s17  ;;  %p7904_p7 = scmp.lt.s32.totalorder %s7898_s17, %s7898_s17 }
  0x46   :  { %v8505_v48 = vmul.f32 %v8192_v3, %v13588_v40  ;;  %v8515_v50 = vmul.f32 %v8192_v3, %v13590_v60  ;;  %v8524_v51 = vadd.f32 %v8477_v39, %v8206_v56  ;;  %v8528_v52 = vadd.f32 %v8477_v39, %v8211_v55  ;;  %v13618_v60 = vld [vmem:[#allocation19_spill] sm:$0xff] }
  0x47   :  { %v8497_v34 = vmul.f32 %v8192_v3, %v13586_v37  ;;  %v8510_v49 = vmul.f32 %v8192_v3, %v13589_v41  ;;  %v13591_v37 = vld [vmem:[#allocation8_spill] sm:$0xff]  ;;  %v8532_v40 = vadd.f32 %v8477_v39, %v8216_v0  ;;  %v8536_v53 = vadd.f32 %v8477_v39, %v8221_v58  ;;  %v13616_v41 = vld [vmem:[#allocation18_spill] sm:$0xff]  ;;  %p7905_p8 = por %p7904_p7, %p7903_p6 }
  0x48   :  { %v8544_v56 = vadd.f32 %v8477_v39, %v8231_v46  ;;  %v8548_v55 = vadd.f32 %v8477_v39, %v8236_v63  ;;  %v8552_v0 = vadd.f32 %v8477_v39, %v8241_v57  ;;  %v8556_v58 = vadd.f32 %v8477_v39, %v8246_v59 }
  0x49   :  { %13587 = vst [vmem:[#allocation9_spill] sm:$0xff] %v8497_v34  ;;  %v13592_v34 = vcvt.s32.f32 %v13591_v37  ;;  %v8564_v46 = vadd.f32 %v8477_v39, %v8256_v4  ;;  %v8568_v63 = vadd.f32 %v8477_v39, %v8261_v5  ;;  %v8572_v57 = vadd.f32 %v8477_v39, %v8266_v6  ;;  %v13620_v37 = vld [vmem:[#allocation20_spill] sm:$0xff]  ;;  %p7906_p9 = pnand %p7905_p8, %p7899_p5 }
  0x4a   :  { %v8576_v59 = vadd.f32 %v8477_v39, %v8271_v7  ;;  %v8584_v4 = vadd.f32 %v8477_v39, %v8281_v9  ;;  %v8588_v5 = vadd.f32 %v8477_v39, %v8286_v10  ;;  %v8592_v6 = vadd.f32 %v8477_v39, %v8291_v11 }
  0x4b   :  { %v8520_v1 = vmul.f32 %v8192_v3, %v13592_v34  ;;  %v8540_v34 = vadd.f32 %v8477_v39, %v8226_v54  ;;  %v8560_v54 = vadd.f32 %v8477_v39, %v8251_v2  ;;  %v8580_v2 = vadd.f32 %v8477_v39, %v8276_v8 }
  0x4c   :  { %13593 = vst [vmem:[#allocation10_spill] sm:$0xff] %v8592_v6  ;;  %v8596_v7 = vadd.f32 %v8477_v39, %v8296_v12  ;;  %v8600_v8 = vadd.f32 %v8477_v39, %v8301_v13  ;;  %v8604_v9 = vadd.f32 %v8477_v39, %v8306_v14  ;;  %v8608_v10 = vadd.f32 %v8477_v39, %v8311_v15 }
  0x4d   :  { %v8612_v11 = vadd.f32 %v8477_v39, %v8316_v16  ;;  %v8616_v12 = vadd.f32 %v8477_v39, %v8321_v17  ;;  %v8620_v13 = vadd.f32 %v8477_v39, %v8326_v18  ;;  %v8624_v14 = vadd.f32 %v8477_v39, %v8331_v19 }
  0x4e   :  { %13594 = vst [vmem:[#allocation11_spill] sm:$0xff] %v8596_v7  ;;  %13595 = vst [vmem:[#allocation12_spill] sm:$0xff] %v8600_v8  ;;  %v8628_v15 = vadd.f32 %v8477_v39, %v8336_v20  ;;  %v8632_v16 = vadd.f32 %v8477_v39, %v8341_v21  ;;  %v8636_v17 = vadd.f32 %v8477_v39, %v8346_v22  ;;  %vm363_vm13 = vcmp.lt.s32.totalorder %v8524_v51, 0 }
  0x4f   :  { %13596 = vst [vmem:[#allocation13_spill] sm:$0xff] %v8604_v9  ;;  %13597 = vst [vmem:[#allocation14_spill] sm:$0xff] %v8608_v10  ;;  %v8640_v18 = vadd.f32 %v8477_v39, %v8351_v23  ;;  %v8644_v19 = vadd.f32 %v8477_v39, %v8356_v24  ;;  %v8648_v20 = vadd.f32 %v8477_v39, %v8361_v25 }
  0x50   :  { %13598 = vst [vmem:[#allocation15_spill] sm:$0xff] %v8612_v11  ;;  %13599 = vst [vmem:[#allocation16_spill] sm:$0xff] %v8616_v12  ;;  %v8652_v21 = vadd.f32 %v8477_v39, %v8366_v26  ;;  %v8656_v22 = vadd.f32 %v8477_v39, %v8371_v27  ;;  %v8660_v23 = vadd.f32 %v8477_v39, %v8376_v28 }
  0x51   :  { %13600 = vst [vmem:[#allocation17_spill] sm:$0xff] %v8620_v13  ;;  %13601 = vst [vmem:[#allocation8_spill] sm:$0xff] %v8624_v14  ;;  %v8664_v24 = vadd.f32 %v8477_v39, %v8381_v29  ;;  %v8668_v25 = vadd.f32 %v8477_v39, %v8386_v30  ;;  %v8672_v26 = vadd.f32 %v8477_v39, %v8391_v31 }
  0x52   :  { %13602 = vst [vmem:[#allocation27_spill] sm:$0xff] %v8628_v15  ;;  %13603 = vst [vmem:[#allocation28_spill] sm:$0xff] %v8632_v16  ;;  %v8676_v27 = vadd.f32 %v8477_v39, %v8396_v32  ;;  %v8680_v28 = vadd.f32 %v8477_v39, %v8401_v33  ;;  %v8684_v29 = vadd.f32 %v8477_v39, %v13616_v41  ;;  %v13655_v16 = vand.u32 2147483647, %v8524_v51 }
  0x53   :  { %13604 = vst [vmem:[#allocation29_spill] sm:$0xff] %v8636_v17  ;;  %13605 = vst [vmem:[#allocation30_spill] sm:$0xff] %v8640_v18  ;;  %v8688_v30 = vadd.f32 %v8477_v39, %v13618_v60  ;;  %v8692_v31 = vadd.f32 %v8477_v39, %v13620_v37  ;;  %v13648_v18 = vmov 2475754826  }
  0x54   :  { %13606 = vst [vmem:[#allocation31_spill] sm:$0xff] %v8644_v19  ;;  %13607 = vst [vmem:[#allocation32_spill] sm:$0xff] %v8648_v20  ;;  %vm8894_vm14 = vcmp.le.f32.partialorder %v13655_v16, 0.7853982 }
  0x55   :  { %13608 = vst [vmem:[#allocation33_spill] sm:$0xff] %v8652_v21  ;;  %13609 = vst [vmem:[#allocation34_spill] sm:$0xff] %v8656_v22 }
  0x56   :  { %13610 = vst [vmem:[#allocation35_spill] sm:$0xff] %v8660_v23  ;;  %13611 = vst [vmem:[#allocation36_spill] sm:$0xff] %v8664_v24 }
  0x57   :  { %13612 = vst [vmem:[#allocation37_spill] sm:$0xff] %v8668_v25  ;;  %13613 = vst [vmem:[#allocation38_spill] sm:$0xff] %v8672_v26  ;;  %v13622_v26 = vld [vmem:[#allocation21_spill] sm:$0xff] }
  0x58   :  { %13614 = vst [vmem:[#allocation39_spill] sm:$0xff] %v8676_v27  ;;  %13615 = vst [vmem:[#allocation40_spill] sm:$0xff] %v8680_v28  ;;  %v8696_v32 = vadd.f32 %v8477_v39, %v13622_v26  ;;  %v13624_v27 = vld [vmem:[#allocation22_spill] sm:$0xff]  ;;  %v13626_v28 = vld [vmem:[#allocation23_spill] sm:$0xff]  ;;  %v8716_v26 = vadd.f32 %v8477_v39, %v8446_v42  ;;  %v8736_v42 = vadd.f32 %v8477_v39, %v8469_v38 }
  0x59   :  { %13617 = vst [vmem:[#allocation18_spill] sm:$0xff] %v8684_v29  ;;  %13619 = vst [vmem:[#allocation19_spill] sm:$0xff] %v8688_v30  ;;  %v8700_v33 = vadd.f32 %v8477_v39, %v13624_v27  ;;  %v8704_v41 = vadd.f32 %v8477_v39, %v13626_v28  ;;  %v13628_v29 = vld [vmem:[#allocation24_spill] sm:$0xff]  ;;  %v13630_v30 = vld [vmem:[#allocation25_spill] sm:$0xff]  ;;  %v8720_v27 = vadd.f32 %v8477_v39, %v8451_v43 }
  0x5a   :  { %13621 = vst [vmem:[#allocation20_spill] sm:$0xff] %v8692_v31  ;;  %13623 = vst [vmem:[#allocation21_spill] sm:$0xff] %v8696_v32  ;;  %v8708_v60 = vadd.f32 %v8477_v39, %v13628_v29  ;;  %v8712_v37 = vadd.f32 %v8477_v39, %v13630_v30  ;;  %v8724_v28 = vadd.f32 %v8477_v39, %v8456_v44  ;;  %v13466_v31 = vmov 1326507024  }
  0x5b   :  { %13625 = vst [vmem:[#allocation22_spill] sm:$0xff] %v8700_v33  ;;  %13627 = vst [vmem:[#allocation23_spill] sm:$0xff] %v8704_v41  ;;  %v8728_v29 = vadd.f32 %v8477_v39, %v8461_v45  ;;  %v8732_v30 = vadd.f32 %v8477_v39, %v8466_v62  ;;  %v8744_v44 = vadd.f32 %v8477_v39, %v8482_v35 }
  0x5c   :  { %13629 = vst [vmem:[#allocation24_spill] sm:$0xff] %v8708_v60  ;;  %13631 = vst [vmem:[#allocation25_spill] sm:$0xff] %v8712_v37  ;;  %v8748_v45 = vadd.f32 %v8477_v39, %v8487_v36  ;;  %v8752_v62 = vadd.f32 %v8477_v39, %v8492_v61  ;;  %v8764_v35 = vadd.f32 %v8477_v39, %v8510_v49 }
  0x5d   :  { %13632 = vst [vmem:[#allocation41_spill] sm:$0xff] %v8716_v26  ;;  %13633 = vst [vmem:[#allocation42_spill] sm:$0xff] %v8720_v27  ;;  %v13638_v26 = vld [vmem:[#allocation26_spill] sm:$0xff]  ;;  %v8768_v36 = vadd.f32 %v8477_v39, %v8515_v50  ;;  %v8773_v61 = vadd.f32 %v8477_v39, %v8520_v1 }
  0x5e   :  { %13634 = vst [vmem:[#allocation43_spill] sm:$0xff] %v8724_v28  ;;  %13635 = vst [vmem:[#allocation44_spill] sm:$0xff] %v8728_v29  ;;  %v8740_v43 = vadd.f32 %v8477_v39, %v13638_v26  ;;  %v8760_v26 = vadd.f32 %v8477_v39, %v8505_v48  ;;  %v158_v48 = vcvt.s32.f32 %v8500_v47 }
  0x5f   :  { %13636 = vst [vmem:[#allocation45_spill] sm:$0xff] %v8732_v30  ;;  %13637 = vst [vmem:[#allocation46_spill] sm:$0xff] %v8736_v42  ;;  %v13643_v30 = vld [vmem:[#allocation9_spill] sm:$0xff]  ;;  %v572_v1 = vand.u32 2139095040, %v8773_v61 }
  0x60   :  { %13639 = vst [vmem:[#allocation26_spill] sm:$0xff] %v8740_v43  ;;  %13640 = vst [vmem:[#allocation47_spill] sm:$0xff] %v8744_v44  ;;  %v8756_v38 = vadd.f32 %v8477_v39, %v13643_v30  ;;  %v364_v30 = vand.u32 2139095040, %v8524_v51  ;;  %v229_v44 = vmul.f32 %v8192_v3, %v158_v48 }
  0x61   :  { %13641 = vst [vmem:[#allocation48_spill] sm:$0xff] %v8748_v45  ;;  %13642 = vst [vmem:[#allocation49_spill] sm:$0xff] %v8752_v62  ;;  %v13444_v45 = vand.u32 2147483647, %v8524_v51  ;;  %v573_v29 = vshrl.u32 %v572_v1, 23 }
  0x62   :  { %13644 = vst [vmem:[#allocation9_spill] sm:$0xff] %v8756_v38  ;;  %13645 = vst [vmem:[#allocation50_spill] sm:$0xff] %v8760_v26  ;;  %v13445_v38 = vand.u32 2147483647, %v8528_v52  ;;  %v468_v26 = vand.u32 2139095040, %v8528_v52  ;;  %v365_v49 = vshrl.u32 %v364_v30, 23  ;;  %v8786_v37 = vadd.f32 %v8477_v39, %v229_v44 }
  0x63   :  { %13646 = vst [vmem:[#allocation51_spill] sm:$0xff] %v8764_v35  ;;  %13647 = vst [vmem:[#allocation52_spill] sm:$0xff] %v8768_v36  ;;  %v368_v35 = vand.u32 8388607, %v13444_v45  ;;  %v7108_v30 = vadd.s32 4294967169, %v573_v29 }
  0x64   :  { %v469_v50 = vshrl.u32 %v468_v26, 23  ;;  %v472_v36 = vand.u32 8388607, %v13445_v38  ;;  %v7100_v62 = vadd.s32 4294967169, %v365_v49  ;;  %v13456_v39 = vmov 2475754826  }
  0x65   :  { %v369_v28 = vor.u32 8388608, %v368_v35  ;;  %v8793_v35 = vadd.s32 1, %v7108_v30  ;;  %v13458_v44 = vmov 2131351028  }
  0x66   :  { %v7104_v43 = vadd.s32 4294967169, %v469_v50  ;;  %v371_v42 = vadd.s32 1, %v7100_v62  ;;  %v473_v47 = vor.u32 8388608, %v472_v36  ;;  %v13469_v36 = vmov 683565275  }
  0x67   :  { %v8789_v41 = vshll.u32 %v369_v28, 8  ;;  %v13463_v28 = vmov 920167782   ;;  %vm580_vm11 = vcmp.gt.s32.totalorder %v8793_v35, 0 }
  0x68   :  { %v475_v27 = vadd.s32 1, %v7104_v43  ;;  %vm372_vm0 = vcmp.gt.s32.totalorder %v371_v42, 0  ;;  %v8791_v62 = vshll.u32 %v473_v47, 8 }
  0x69   :  { %v373_v26 = vsel %vm372_vm0, %v371_v42, 0 }
  0x6a   :  { %vm476_vm1 = vcmp.gt.s32.totalorder %v475_v27, 0  ;;  %v374_v45 = vshrl.u32 %v373_v26, 5  ;;  %v375_v38 = vand.u32 31, %v373_v26 }
  0x6b   :  { %v477_v49 = vsel %vm476_vm1, %v475_v27, 0  ;;  %v13461_v27 = vmov 2102212464  }
  0x6c   :  { %v479_v3 = vand.u32 31, %v477_v49  ;;  %v376_v43 = vsub.s32 32, %v375_v38  ;;  %v378_v29 = vshll.u32 %v13469_v36, %v375_v38  ;;  %v381_v42 = vshll.u32 %v13456_v39, %v375_v38 }
  0x6d   :  { %v384_v48 = vshll.u32 %v13458_v44, %v375_v38  ;;  %v387_v50 = vshll.u32 %v13461_v27, %v375_v38  ;;  %v390_v1 = vshll.u32 %v13463_v28, %v375_v38  ;;  %vm393_vm2 = vcmp.lt.s32.totalorder %v374_v45, 1 }
  0x6e   :  { %v8800_v47 = vshrl.u32 %v477_v49, 5  ;;  %v377_v30 = vshrl.u32 %v13469_v36, %v376_v43  ;;  %v379_v26 = vshrl.u32 %v13456_v39, %v376_v43  ;;  %v382_v60 = vshrl.u32 %v13458_v44, %v376_v43 }
  0x6f   :  { %v385_v33 = vshrl.u32 %v13461_v27, %v376_v43  ;;  %v388_v32 = vshrl.u32 %v13463_v28, %v376_v43  ;;  %v391_v25 = vshrl.u32 %v13466_v31, %v376_v43  ;;  %vm394_vm3 = vcmp.lt.s32.totalorder %v374_v45, 2 }
  0x70   :  { %vm396_vm4 = vcmp.lt.s32.totalorder %v374_v45, 4  ;;  %v380_v24 = vor.u32 %v379_v26, %v378_v29  ;;  %v383_v38 = vor.u32 %v382_v60, %v381_v42  ;;  %v480_v49 = vsub.s32 32, %v479_v3 }
  0x71   :  { %v386_v23 = vor.u32 %v385_v33, %v384_v48  ;;  %v389_v22 = vor.u32 %v388_v32, %v387_v50  ;;  %v392_v21 = vor.u32 %v391_v25, %v390_v1  ;;  %vm395_vm5 = vcmp.lt.s32.totalorder %v374_v45, 3 }
  0x72   :  { %v482_v39 = vshll.u32 %v13469_v36, %v479_v3  ;;  %v397_v44 = vsel %vm393_vm2, %v377_v30, %v380_v24  ;;  %v401_v27 = vsel %vm393_vm2, %v380_v24, %v383_v38  ;;  %v485_v29 = vshll.u32 %v13648_v18, %v479_v3 }
  0x73   :  { %v398_v20 = vsel %vm396_vm4, %v386_v23, 2102212464  ;;  %v405_v28 = vsel %vm393_vm2, %v383_v38, %v386_v23  ;;  %v402_v43 = vsel %vm396_vm4, %v389_v22, 920167782  ;;  %v406_v31 = vsel %vm396_vm4, %v392_v21, 1326507024 }
  0x74   :  { %v399_v19 = vsel %vm395_vm5, %v383_v38, %v398_v20  ;;  %v403_v60 = vsel %vm395_vm5, %v386_v23, %v402_v43  ;;  %v407_v33 = vsel %vm395_vm5, %v389_v22, %v406_v31  ;;  %v481_v32 = vshrl.u32 %v13469_v36, %v480_v49 }
  0x75   :  { %v483_v25 = vshrl.u32 %v13648_v18, %v480_v49  ;;  %v400_v42 = vsel %vm394_vm3, %v397_v44, %v399_v19  ;;  %v404_v48 = vsel %vm394_vm3, %v401_v27, %v403_v60  ;;  %v408_v50 = vsel %vm394_vm3, %v405_v28, %v407_v33 }
  0x76   :  { %v13649_v24 = vmov 2131351028   ;;  %v8820_v20 = vmul.u32.u64.low %v8789_v41, %v408_v50  ;;  %v8821_v30 = vmul.u32.u64.high %v8789_v41, %v408_v50, %v8820_v20  ;;  %v13650_v19 = vmov 2102212464  }
  0x77   :  { %v486_v1 = vshrl.u32 %v13649_v24, %v480_v49  ;;  %v8824_v21 = vmul.u32.u64.low %v8789_v41, %v404_v48  ;;  %v8825_v23 = vmul.u32.u64.high %v8789_v41, %v404_v48, %v8824_v21  ;;  %v484_v22 = vor.u32 %v483_v25, %v482_v39 }
  0x78   :  { %v488_v26 = vshll.u32 %v13649_v24, %v479_v3  ;;  %v489_v44 = vshrl.u32 %v13650_v19, %v480_v49  ;;  %v491_v45 = vshll.u32 %v13650_v19, %v479_v3  ;;  %v13651_v27 = vmov 920167782  }
  0x79   :  { %v487_v31 = vor.u32 %v486_v1, %v485_v29  ;;  %v492_v28 = vshrl.u32 %v13651_v27, %v480_v49  ;;  %v494_v38 = vshll.u32 %v13651_v27, %v479_v3  ;;  %v13652_v43 = vmov 1326507024  }
  0x7a   :  { %v495_v60 = vshrl.u32 %v13652_v43, %v480_v49  ;;  %v416_v33 = vmul.u32 %v8789_v41, %v400_v42  ;;  %v490_v50 = vor.u32 %v489_v44, %v488_v26  ;;  %vm497_vm6 = vcmp.lt.s32.totalorder %v8800_v47, 1 }
  0x7b   :  { %vm498_vm7 = vcmp.lt.s32.totalorder %v8800_v47, 2  ;;  %vm418_vm8 = vc.u32 %v8821_v30, %v8824_v21  ;;  %v419_v39 = vadd.s32 1, %v8825_v23  ;;  %v493_v29 = vor.u32 %v492_v28, %v491_v45 }
  0x7c   :  { %vm499_vm9 = vcmp.lt.s32.totalorder %v8800_v47, 3  ;;  %v496_v25 = vor.u32 %v495_v60, %v494_v38  ;;  %vm500_vm10 = vcmp.lt.s32.totalorder %v8800_v47, 4  ;;  %v501_v3 = vsel %vm497_vm6, %v481_v32, %v484_v22 }
  0x7d   :  { %v505_v49 = vsel %vm497_vm6, %v484_v22, %v487_v31  ;;  %v420_v41 = vsel %vm418_vm8, %v419_v39, %v8825_v23  ;;  %v502_v42 = vsel %vm500_vm10, %v490_v50, 2102212464  ;;  %v506_v48 = vsel %vm500_vm10, %v493_v29, 920167782 }
  0x7e   :  { %v509_v1 = vsel %vm497_vm6, %v487_v31, %v490_v50  ;;  %v421_v20 = vadd.s32 %v420_v41, %v416_v33  ;;  %v503_v26 = vsel %vm499_vm9, %v487_v31, %v502_v42  ;;  %v507_v44 = vsel %vm499_vm9, %v490_v50, %v506_v48 }
  0x7f   :  { %v510_v36 = vsel %vm500_vm10, %v496_v25, 1326507024  ;;  %v504_v17 = vsel %vm498_vm7, %v501_v3, %v503_v26  ;;  %v508_v45 = vsel %vm498_vm7, %v505_v49, %v507_v44  ;;  %v581_v33 = vsel %vm580_vm11, %v8793_v35, 0 }
  0x80   :  { %v511_v28 = vsel %vm499_vm9, %v493_v29, %v510_v36  ;;  %v422_v32 = vadd.s32 536870912, %v421_v20  ;;  %v8851_v22 = vmul.u32.u64.low %v8791_v62, %v508_v45  ;;  %v8852_v38 = vmul.u32.u64.high %v8791_v62, %v508_v45, %v8851_v22 }
  0x81   :  { %v512_v23 = vsel %vm498_vm7, %v509_v1, %v511_v28  ;;  %v583_v39 = vand.u32 31, %v581_v33  ;;  %v520_v36 = vmul.u32 %v8791_v62, %v504_v17  ;;  %v13653_v29 = vand.u32 2147483647, %v8773_v61 }
  0x82   :  { %v8856_v31 = vmul.u32.u64.low %v8791_v62, %v512_v23  ;;  %v8857_v60 = vmul.u32.u64.high %v8791_v62, %v512_v23, %v8856_v31  ;;  %v423_v50 = vshrl.u32 %v422_v32, 30  ;;  %v13472_v47 = vand.u32 2147483647, %v8786_v37 }
  0x83   :  { %v576_v25 = vand.u32 8388607, %v13653_v29  ;;  %v676_v3 = vand.u32 2139095040, %v8786_v37  ;;  %v523_v41 = vadd.s32 1, %v8852_v38  ;;  %v584_v42 = vsub.s32 32, %v583_v39 }
  0x84   :  { %v424_v49 = vshll.u32 %v423_v50, 30  ;;  %vm522_vm12 = vc.u32 %v8857_v60, %v8851_v22  ;;  %v8874_v26 = vand.u32 8388607, %v13472_v47  ;;  %v8877_v45 = vshrl.u32 %v581_v33, 5 }
  0x85   :  { %v524_v17 = vsel %vm522_vm12, %v523_v41, %v8852_v38  ;;  %v577_v48 = vor.u32 8388608, %v576_v25  ;;  %v677_v1 = vshrl.u32 %v676_v3, 23  ;;  %v13654_v28 = vmov 683565275  }
  0x86   :  { %v8869_v35 = vsub.s32 %v421_v20, %v424_v49  ;;  %v525_v62 = vadd.s32 %v524_v17, %v520_v36  ;;  %v586_v32 = vshll.u32 %v13654_v28, %v583_v39  ;;  %v589_v23 = vshll.u32 %v13648_v18, %v583_v39 }
  0x87   :  { %v587_v20 = vshrl.u32 %v13648_v18, %v584_v42  ;;  %v590_v38 = vshrl.u32 %v13649_v24, %v584_v42  ;;  %v592_v36 = vshll.u32 %v13649_v24, %v583_v39  ;;  %v593_v25 = vshrl.u32 %v13650_v19, %v584_v42 }
  0x88   :  { %v427_v44 = vsub.s32 0, %v8869_v35  ;;  %v526_v31 = vadd.s32 536870912, %v525_v62  ;;  %v595_v3 = vshll.u32 %v13650_v19, %v583_v39  ;;  %v596_v33 = vshrl.u32 %v13651_v27, %v584_v42 }
  0x89   :  { %v447_v49 = vsub.s32 4, %v423_v50  ;;  %v598_v17 = vshll.u32 %v13651_v27, %v583_v39  ;;  %v599_v47 = vshrl.u32 %v13652_v43, %v584_v42  ;;  %v8900_v13 = vshll.u32 %v577_v48, 8 }
  0x8a   :  { %v7101_v29 = vmin.u32 %v427_v44, %v8869_v35  ;;  %v8888_v41 = vshrl.u32 %v526_v31, 30  ;;  %v417_v44 = vadd.s32 %v8824_v21, %v8821_v30  ;;  %v7112_v12 = vadd.s32 4294967169, %v677_v1 }
  0x8b   :  { %v585_v11 = vshrl.u32 %v13654_v28, %v584_v42  ;;  %v588_v39 = vor.u32 %v587_v20, %v586_v32  ;;  %v591_v10 = vor.u32 %v590_v38, %v589_v23  ;;  %v594_v8 = vor.u32 %v593_v25, %v592_v36 }
  0x8c   :  { %v429_v14 = vclz %v7101_v29  ;;  %v528_v31 = vshll.u32 %v8888_v41, 30  ;;  %v597_v7 = vor.u32 %v596_v33, %v595_v3  ;;  %vm601_vm15 = vcmp.lt.s32.totalorder %v8877_v45, 1 }
  0x8d   :  { %v448_v16 = vsel %vm363_vm13, %v447_v49, %v423_v50  ;;  %v600_v30 = vor.u32 %v599_v47, %v598_v17  ;;  %vm604_vm0 = vcmp.lt.s32.totalorder %v8877_v45, 4  ;;  %vm602_vm2 = vcmp.lt.s32.totalorder %v8877_v45, 2 }
  0x8e   :  { %v7102_v9 = vadd.s32 4294967294, %v429_v14  ;;  %v8907_v6 = vsub.s32 %v525_v62, %v528_v31  ;;  %vm603_vm3 = vcmp.lt.s32.totalorder %v8877_v45, 3  ;;  %v606_v14 = vsel %vm604_vm0, %v594_v8, 2102212464 }
  0x8f   :  { %v605_v48 = vsel %vm601_vm15, %v585_v11, %v588_v39  ;;  %v609_v50 = vsel %vm601_vm15, %v588_v39, %v591_v10  ;;  %v610_v32 = vsel %vm604_vm0, %v597_v7, 920167782  ;;  %v613_v11 = vsel %vm601_vm15, %v591_v10, %v594_v8 }
  0x90   :  { %vm7103_vm1 = vcmp.lt.s32.totalorder %v7102_v9, 0  ;;  %v531_v42 = vsub.s32 0, %v8907_v6  ;;  %v611_v20 = vsel %vm603_vm3, %v594_v8, %v610_v32  ;;  %v614_v29 = vsel %vm604_vm0, %v600_v30, 1326507024 }
  0x91   :  { %v432_v21 = vsel %vm7103_vm1, 0, %v7102_v9  ;;  %v607_v9 = vsel %vm603_vm3, %v591_v10, %v606_v14  ;;  %v450_v25 = vsel %vm8894_vm14, 0, %v448_v16  ;;  %v681_v33 = vor.u32 8388608, %v8874_v26 }
  0x92   :  { %v433_v47 = vsub.s32 32, %v432_v21  ;;  %v434_v62 = vshll.u32 %v8869_v35, %v432_v21  ;;  %v437_v1 = vsub.s32 4294967266, %v432_v21  ;;  %v7105_v23 = vmin.u32 %v531_v42, %v8907_v6 }
  0x93   :  { %v612_v35 = vsel %vm602_vm2, %v609_v50, %v611_v20  ;;  %v683_v49 = vadd.s32 1, %v7112_v12  ;;  %v608_v8 = vsel %vm602_vm2, %v605_v48, %v607_v9  ;;  %v615_v10 = vsel %vm603_vm3, %v597_v7, %v614_v29 }
  0x94   :  { %v435_v38 = vshrl.u32 %v417_v44, %v433_v47  ;;  %v438_v36 = vadd.s32 127, %v437_v1  ;;  %v533_v3 = vclz %v7105_v23  ;;  %v616_v39 = vsel %vm602_vm2, %v613_v11, %v615_v10 }
  0x95   :  { %v8943_v30 = vmul.u32.u64.low %v8900_v13, %v612_v35  ;;  %v8944_v14 = vmul.u32.u64.high %v8900_v13, %v612_v35, %v8943_v30  ;;  %v8948_v12 = vmul.u32.u64.low %v8900_v13, %v616_v39  ;;  %v8949_v21 = vmul.u32.u64.high %v8900_v13, %v616_v39, %v8948_v12 }
  0x96   :  { %v436_v17 = vor.u32 %v435_v38, %v434_v62  ;;  %v439_v31 = vshll.u32 %v438_v36, 23  ;;  %v7106_v44 = vadd.s32 4294967294, %v533_v3  ;;  %v454_v42 = vadd.s32 3, %v450_v25 }
  0x97   :  { %v521_v48 = vadd.s32 %v8851_v22, %v8857_v60  ;;  %vm684_vm5 = vcmp.gt.s32.totalorder %v683_v49, 0  ;;  %v624_v50 = vmul.u32 %v8900_v13, %v608_v8  ;;  %v627_v23 = vadd.s32 1, %v8944_v14 }
  0x98   :  { %v440_v16 = vor.u32 4788187, %v439_v31  ;;  %v443_v26 = vcvt.s32.f32 %v436_v17  ;;  %vm7107_vm4 = vcmp.lt.s32.totalorder %v7106_v44, 0  ;;  %v685_v47 = vsel %vm684_vm5, %v683_v49, 0 }
  0x99   :  { %v536_v45 = vsel %vm7107_vm4, 0, %v7106_v44  ;;  %vm467_vm6 = vcmp.lt.s32.totalorder %v8528_v52, 0  ;;  %vm626_vm7 = vc.u32 %v8949_v21, %v8943_v30  ;;  %v8959_v22 = vshll.u32 %v681_v33, 8 }
  0x9a   :  { %v441_v7 = vand.u32 2147483647, %v440_v16  ;;  %v537_v62 = vsub.s32 32, %v536_v45  ;;  %v538_v1 = vshll.u32 %v8907_v6, %v536_v45  ;;  %v541_v32 = vsub.s32 4294967266, %v536_v45 }
  0x9b   :  { %v628_v11 = vsel %vm626_vm7, %v627_v23, %v8944_v14  ;;  %v687_v13 = vand.u32 31, %v685_v47  ;;  %v8962_v36 = vand.u32 3, %v454_v42  ;;  %v551_v6 = vsub.s32 4, %v8888_v41 }
  0x9c   :  { %v444_v9 = vmul.f32 %v443_v26, %v441_v7  ;;  %v539_v60 = vshrl.u32 %v521_v48, %v537_v62  ;;  %v542_v20 = vadd.s32 127, %v541_v32  ;;  %v629_v35 = vadd.s32 %v628_v11, %v624_v50 }
  0x9d   :  { %v13658_v29 = vand.u32 2147483647, %v8528_v52  ;;  %v8971_v49 = vshrl.u32 %v685_v47, 5  ;;  %v688_v17 = vsub.s32 32, %v687_v13  ;;  %v690_v10 = vshll.u32 %v13654_v28, %v687_v13 }
  0x9e   :  { %v445_v38 = vxor.u32 2147483648, %v444_v9  ;;  %v540_v3 = vor.u32 %v539_v60, %v538_v1  ;;  %v543_v33 = vshll.u32 %v542_v20, 23  ;;  %v630_v8 = vadd.s32 536870912, %v629_v35 }
  0x9f   :  { %vm8967_vm8 = vcmp.le.f32.partialorder %v13658_v29, 0.7853982  ;;  %v693_v44 = vshll.u32 %v13648_v18, %v687_v13  ;;  %v696_v26 = vshll.u32 %v13649_v24, %v687_v13  ;;  %v691_v42 = vshrl.u32 %v13648_v18, %v688_v17 }
  0xa0   :  { %v446_v31 = vsel %vm363_vm13, %v445_v38, %v444_v9  ;;  %v544_v14 = vor.u32 4788187, %v543_v33  ;;  %v547_v16 = vcvt.s32.f32 %v540_v3  ;;  %v631_v12 = vshrl.u32 %v630_v8, 30 }
  0xa1   :  { %v449_v39 = vsel %vm8894_vm14, %v8524_v51, %v446_v31  ;;  %v694_v48 = vshrl.u32 %v13649_v24, %v688_v17  ;;  %v697_v45 = vshrl.u32 %v13650_v19, %v688_v17  ;;  %v699_v50 = vshll.u32 %v13650_v19, %v687_v13 }
  0xa2   :  { %7622 = vcosq.f32 %v449_v39  ;;  %v545_v7 = vand.u32 2147483647, %v544_v14  ;;  %v552_v15 = vsel %vm467_vm6, %v551_v6, %v8888_v41  ;;  %vm571_vm9 = vcmp.lt.s32.totalorder %v8773_v61, 0 }
  0xa3   :  { %7624 = vsinq.f32 %v449_v39  ;;  %v632_v47 = vshll.u32 %v631_v12, 30  ;;  %vm705_vm10 = vcmp.lt.s32.totalorder %v8971_v49, 1  ;;  %v777_v62 = vand.u32 2147483647, %v8532_v40 }
  0xa4   :  { %v548_v1 = vmul.f32 %v547_v16, %v545_v7  ;;  %v689_v32 = vshrl.u32 %v13654_v28, %v688_v17  ;;  %v700_v23 = vshrl.u32 %v13651_v27, %v688_v17  ;;  %v702_v9 = vshll.u32 %v13651_v27, %v687_v13 }
  0xa5   :  { %v8994_v60 = vsub.s32 %v629_v35, %v632_v47  ;;  %v692_v20 = vor.u32 %v691_v42, %v690_v10  ;;  %v695_v11 = vor.u32 %v694_v48, %v693_v44  ;;  %v703_v41 = vshrl.u32 %v13652_v43, %v688_v17 }
  0xa6   :  { %vm460_vm11 = vcmp.eq.s32.totalorder %v8962_v36, 2  ;;  %v549_v38 = vxor.u32 2147483648, %v548_v1  ;;  %v698_v6 = vor.u32 %v697_v45, %v696_v26  ;;  %v701_v29 = vor.u32 %v700_v23, %v699_v50 }
  0xa7   :  { %vm708_vm12 = vcmp.lt.s32.totalorder %v8971_v49, 4  ;;  %vm457_vm13 = vcmp.eq.s32.totalorder %v8962_v36, 0  ;;  %v554_v3 = vsel %vm8967_vm8, 0, %v552_v15  ;;  %v13661_v13 = vand.u32 2147483647, %v8773_v61 }
  0xa8   :  { %v635_v33 = vsub.s32 0, %v8994_v60  ;;  %v655_v17 = vsub.s32 4, %v631_v12  ;;  %vm707_vm15 = vcmp.lt.s32.totalorder %v8971_v49, 3  ;;  %vm456_vm0 = vcmp.lt.s32.totalorder %v8962_v36, 2 }
  0xa9   :  { %vm9004_vm14 = vcmp.le.f32.partialorder %v13661_v13, 0.7853982  ;;  %v550_v31 = vsel %vm467_vm6, %v549_v38, %v548_v1  ;;  %v704_v8 = vor.u32 %v703_v41, %v702_v9  ;;  %v710_v10 = vsel %vm708_vm12, %v698_v6, 2102212464 }
  0xaa   :  { %v714_v44 = vsel %vm708_vm12, %v701_v29, 920167782  ;;  %vm453_vm1 = vweird.f32 %v8524_v51  ;;  %v553_v39 = vsel %vm8967_vm8, %v8528_v52, %v550_v31  ;;  %v7109_v14 = vmin.u32 %v635_v33, %v8994_v60 }
  0xab   :  { %vm706_vm2 = vcmp.lt.s32.totalorder %v8971_v49, 2  ;;  %v713_v16 = vsel %vm705_vm10, %v692_v20, %v695_v11  ;;  %7626 = vcosq.f32 %v553_v39  ;;  %v709_v26 = vsel %vm705_vm10, %v689_v32, %v692_v20 }
  0xac   :  { %v715_v42 = vsel %vm707_vm15, %v698_v6, %v714_v44  ;;  %v780_v48 = vand.u32 2139095040, %v8532_v40  ;;  %7628 = vsinq.f32 %v553_v39  ;;  %v637_v7 = vclz %v7109_v14 }
  0xad   :  { %v711_v25 = vsel %vm707_vm15, %v695_v11, %v710_v10  ;;  %v717_v45 = vsel %vm705_vm10, %v695_v11, %v698_v6  ;;  %v558_v50 = vadd.s32 3, %v554_v3  ;;  %v656_v15 = vsel %vm571_vm9, %v655_v17, %v631_v12 }
  0xae   :  { %v716_v47 = vsel %vm706_vm2, %v713_v16, %v715_v42  ;;  %v718_v1 = vsel %vm708_vm12, %v704_v8, 1326507024  ;;  %v7110_v32 = vadd.s32 4294967294, %v637_v7  ;;  %v625_v41 = vadd.s32 %v8943_v30, %v8949_v21 }
  0xaf   :  { %v719_v23 = vsel %vm707_vm15, %v701_v29, %v718_v1  ;;  %v9043_v9 = vmul.u32.u64.low %v8959_v22, %v716_v47  ;;  %v9044_v20 = vmul.u32.u64.high %v8959_v22, %v716_v47, %v9043_v9  ;;  %v7623_v11 = vpop.eup %7622  ;;  %v712_v12 = vsel %vm706_vm2, %v709_v26, %v711_v25 }
  0xb0   :  { %v720_v38 = vsel %vm706_vm2, %v717_v45, %v719_v23  ;;  %v781_v6 = vshrl.u32 %v780_v48, 23  ;;  %v7625_v3 = vpop.eup %7624  ;;  %v461_v13 = vxor.u32 2147483648, %v7623_v11  ;;  %vm7111_vm3 = vcmp.lt.s32.totalorder %v7110_v32, 0 }
  0xb1   :  { %v9054_v29 = vmul.u32.u64.low %v8959_v22, %v720_v38  ;;  %v9055_v33 = vmul.u32.u64.high %v8959_v22, %v720_v38, %v9054_v29  ;;  %v458_v17 = vxor.u32 2147483648, %v7625_v3  ;;  %v640_v31 = vsel %vm7111_vm3, 0, %v7110_v32 }
  0xb2   :  { %v658_v8 = vsel %vm9004_vm14, 0, %v656_v15  ;;  %v7116_v30 = vadd.s32 4294967169, %v781_v6  ;;  %v462_v21 = vsel %vm460_vm11, %v461_v13, %v7625_v3  ;;  %v641_v10 = vsub.s32 32, %v640_v31 }
  0xb3   :  { %v642_v49 = vshll.u32 %v8994_v60, %v640_v31  ;;  %v645_v44 = vsub.s32 4294967266, %v640_v31  ;;  %v459_v39 = vsel %vm457_vm13, %v7623_v11, %v458_v17  ;;  %v728_v14 = vmul.u32 %v8959_v22, %v712_v12 }
  0xb4   :  { %v731_v16 = vadd.s32 1, %v9044_v20  ;;  %v787_v26 = vadd.s32 1, %v7116_v30  ;;  %v463_v42 = vsel %vm456_vm0, %v459_v39, %v462_v21  ;;  %v559_v48 = vand.u32 3, %v558_v50 }
  0xb5   :  { %v643_v7 = vshrl.u32 %v625_v41, %v641_v10  ;;  %v646_v25 = vadd.s32 127, %v645_v44  ;;  %v464_v45 = vsel %vm453_vm1, nan, %v463_v42  ;;  %v662_v15 = vadd.s32 3, %v658_v8 }
  0xb6   :  { %vm730_vm4 = vc.u32 %v9055_v33, %v9043_v9  ;;  %vm788_vm5 = vcmp.gt.s32.totalorder %v787_v26, 0  ;;  %7017 = vst [vmem:[#allocation5] sm:$0xff] %v464_v45  ;;  %vm557_vm6 = vweird.f32 %v8528_v52  ;;  %vm560_vm7 = vcmp.lt.s32.totalorder %v559_v48, 2 }
  0xb7   :  { %v644_v60 = vor.u32 %v643_v7, %v642_v49  ;;  %v647_v47 = vshll.u32 %v646_v25, 23  ;;  %v732_v22 = vsel %vm730_vm4, %v731_v16, %v9044_v20  ;;  %v789_v1 = vsel %vm788_vm5, %v787_v26, 0 }
  0xb8   :  { %v733_v36 = vadd.s32 %v732_v22, %v728_v14  ;;  %v791_v50 = vand.u32 31, %v789_v1  ;;  %v7627_v32 = vpop.eup %7626  ;;  %vm564_vm8 = vcmp.eq.s32.totalorder %v559_v48, 2  ;;  %vm561_vm10 = vcmp.eq.s32.totalorder %v559_v48, 0 }
  0xb9   :  { %v648_v51 = vor.u32 4788187, %v647_v47  ;;  %v651_v23 = vcvt.s32.f32 %v644_v60  ;;  %v7629_v11 = vpop.eup %7628  ;;  %v565_v41 = vxor.u32 2147483648, %v7627_v32  ;;  %v9074_v13 = vand.u32 3, %v662_v15 }
  0xba   :  { %v734_v12 = vadd.s32 536870912, %v733_v36  ;;  %v792_v38 = vsub.s32 32, %v791_v50  ;;  %v562_v6 = vxor.u32 2147483648, %v7629_v11  ;;  %v784_v20 = vand.u32 8388607, %v777_v62 }
  0xbb   :  { %v649_v3 = vand.u32 2147483647, %v648_v51  ;;  %v566_v29 = vsel %vm564_vm8, %v565_v41, %v7629_v11  ;;  %v794_v31 = vshll.u32 %v13654_v28, %v791_v50  ;;  %v797_v8 = vshll.u32 %v13648_v18, %v791_v50 }
  0xbc   :  { %v9078_v17 = vshrl.u32 %v734_v12, 30  ;;  %v563_v30 = vsel %vm561_vm10, %v7627_v32, %v562_v6  ;;  %v795_v10 = vshrl.u32 %v13648_v18, %v792_v38  ;;  %v800_v49 = vshll.u32 %v13649_v24, %v791_v50 }
  0xbd   :  { %v652_v21 = vmul.f32 %v651_v23, %v649_v3  ;;  %v567_v44 = vsel %vm560_vm7, %v563_v30, %v566_v29  ;;  %v798_v14 = vshrl.u32 %v13649_v24, %v792_v38  ;;  %v801_v16 = vshrl.u32 %v13650_v19, %v792_v38 }
  0xbe   :  { %v736_v39 = vshll.u32 %v9078_v17, 30  ;;  %v568_v26 = vsel %vm557_vm6, nan, %v567_v44  ;;  %v785_v7 = vor.u32 8388608, %v784_v20  ;;  %v790_v25 = vshrl.u32 %v789_v1, 5 }
  0xbf   :  { %v653_v42 = vxor.u32 2147483648, %v652_v21  ;;  %v793_v15 = vshrl.u32 %v13654_v28, %v792_v38  ;;  %v803_v60 = vshll.u32 %v13650_v19, %v791_v50  ;;  %v804_v48 = vshrl.u32 %v13651_v27, %v792_v38  ;;  %7018 = vst [vmem:[#allocation5 + $0x8] sm:$0xff] %v568_v26 }
  0xc0   :  { %v9090_v45 = vsub.s32 %v733_v36, %v736_v39  ;;  %v796_v22 = vor.u32 %v795_v10, %v794_v31  ;;  %v806_v32 = vshll.u32 %v13651_v27, %v791_v50  ;;  %v807_v52 = vshrl.u32 %v13652_v43, %v792_v38 }
  0xc1   :  { %v654_v47 = vsel %vm571_vm9, %v653_v42, %v652_v21  ;;  %v799_v51 = vor.u32 %v798_v14, %v797_v8  ;;  %v802_v23 = vor.u32 %v801_v16, %v800_v49  ;;  %v805_v11 = vor.u32 %v804_v48, %v803_v60 }
  0xc2   :  { %v657_v1 = vsel %vm9004_vm14, %v8773_v61, %v654_v47  ;;  %v739_v36 = vsub.s32 0, %v9090_v45  ;;  %v808_v41 = vor.u32 %v807_v52, %v806_v32  ;;  %vm809_vm11 = vcmp.lt.s32.totalorder %v790_v25, 1 }
  0xc3   :  { %7630 = vcosq.f32 %v657_v1  ;;  %v825_v6 = vshll.u32 %v785_v7, 8  ;;  %v881_v50 = vand.u32 2147483647, %v8536_v53  ;;  %v729_v38 = vadd.s32 %v9043_v9, %v9055_v33 }
  0xc4   :  { %7632 = vsinq.f32 %v657_v1  ;;  %v7113_v12 = vmin.u32 %v739_v36, %v9090_v45  ;;  %vm811_vm9 = vcmp.lt.s32.totalorder %v790_v25, 3  ;;  %vm812_vm12 = vcmp.lt.s32.totalorder %v790_v25, 4 }
  0xc5   :  { %v884_v35 = vand.u32 2139095040, %v8536_v53  ;;  %vm810_vm13 = vcmp.lt.s32.totalorder %v790_v25, 2  ;;  %v817_v20 = vsel %vm809_vm11, %v796_v22, %v799_v51  ;;  %v821_v29 = vsel %vm809_vm11, %v799_v51, %v802_v23 }
  0xc6   :  { %v741_v3 = vclz %v7113_v12  ;;  %v813_v31 = vsel %vm809_vm11, %v793_v15, %v796_v22  ;;  %v814_v8 = vsel %vm812_vm12, %v802_v23, 2102212464  ;;  %v818_v30 = vsel %vm812_vm12, %v805_v11, 920167782 }
  0xc7   :  { %v822_v21 = vsel %vm812_vm12, %v808_v41, 1326507024  ;;  %v815_v49 = vsel %vm811_vm9, %v799_v51, %v814_v8  ;;  %v819_v44 = vsel %vm811_vm9, %v802_v23, %v818_v30  ;;  %v759_v14 = vsub.s32 4, %v9078_v17 }
  0xc8   :  { %v7114_v10 = vadd.s32 4294967294, %v741_v3  ;;  %v823_v39 = vsel %vm811_vm9, %v805_v11, %v822_v21  ;;  %v820_v9 = vsel %vm810_vm13, %v817_v20, %v819_v44  ;;  %v885_v16 = vshrl.u32 %v884_v35, 23 }
  0xc9   :  { %v824_v33 = vsel %vm810_vm13, %v821_v29, %v823_v39  ;;  %v816_v26 = vsel %vm810_vm13, %v813_v31, %v815_v49  ;;  %vm661_vm15 = vweird.f32 %v8773_v61  ;;  %vm675_vm0 = vcmp.lt.s32.totalorder %v8786_v37, 0 }
  0xca   :  { %vm7115_vm14 = vcmp.lt.s32.totalorder %v7114_v10, 0  ;;  %v9112_v42 = vmul.u32.u64.low %v825_v6, %v824_v33  ;;  %v9113_v7 = vmul.u32.u64.high %v825_v6, %v824_v33, %v9112_v42  ;;  %v7120_v47 = vadd.s32 4294967169, %v885_v16 }
  0xcb   :  { %v744_v15 = vsel %vm7115_vm14, 0, %v7114_v10  ;;  %v9116_v60 = vmul.u32.u64.low %v825_v6, %v820_v9  ;;  %v9117_v48 = vmul.u32.u64.high %v825_v6, %v820_v9, %v9116_v60  ;;  %vm664_vm1 = vcmp.lt.s32.totalorder %v9074_v13, 2 }
  0xcc   :  { %v745_v22 = vsub.s32 32, %v744_v15  ;;  %v746_v32 = vshll.u32 %v9090_v45, %v744_v15  ;;  %v749_v52 = vsub.s32 4294967266, %v744_v15  ;;  %v13664_v25 = vand.u32 2147483647, %v8786_v37 }
  0xcd   :  { %v9132_v36 = vsel %vm675_vm0, %v759_v14, %v9078_v17  ;;  %v891_v51 = vadd.s32 1, %v7120_v47  ;;  %v832_v41 = vmul.u32 %v825_v6, %v816_v26  ;;  %vm834_vm3 = vc.u32 %v9113_v7, %v9116_v60 }
  0xce   :  { %vm9125_vm2 = vcmp.le.f32.partialorder %v13664_v25, 0.7853982  ;;  %v747_v23 = vshrl.u32 %v729_v38, %v745_v22  ;;  %v750_v11 = vadd.s32 127, %v749_v52  ;;  %vm665_vm4 = vcmp.eq.s32.totalorder %v9074_v13, 0 }
  0xcf   :  { %v835_v45 = vadd.s32 1, %v9117_v48  ;;  %v888_v12 = vand.u32 8388607, %v881_v50  ;;  %vm892_vm5 = vcmp.gt.s32.totalorder %v891_v51, 0  ;;  %vm668_vm6 = vcmp.eq.s32.totalorder %v9074_v13, 2 }
  0xd0   :  { %v7631_v35 = vpop.eup %7630  ;;  %v748_v17 = vor.u32 %v747_v23, %v746_v32  ;;  %v751_v3 = vshll.u32 %v750_v11, 23  ;;  %v893_v20 = vsel %vm892_vm5, %v891_v51, 0  ;;  %v762_v6 = vsel %vm9125_vm2, 0, %v9132_v36 }
  0xd1   :  { %v7633_v38 = vpop.eup %7632  ;;  %v669_v29 = vxor.u32 2147483648, %v7631_v35  ;;  %v836_v31 = vsel %vm834_vm3, %v835_v45, %v9117_v48  ;;  %v895_v8 = vand.u32 31, %v893_v20  ;;  %v889_v39 = vor.u32 8388608, %v888_v12 }
  0xd2   :  { %v666_v30 = vxor.u32 2147483648, %v7633_v38  ;;  %v752_v21 = vor.u32 4788187, %v751_v3  ;;  %v755_v10 = vcvt.s32.f32 %v748_v17  ;;  %v837_v49 = vadd.s32 %v836_v31, %v832_v41 }
  0xd3   :  { %v670_v44 = vsel %vm668_vm6, %v669_v29, %v7633_v38  ;;  %v896_v14 = vsub.s32 32, %v895_v8  ;;  %v988_v9 = vand.u32 2139095040, %v8540_v34  ;;  %v894_v42 = vshrl.u32 %v893_v20, 5 }
  0xd4   :  { %v667_v33 = vsel %vm665_vm4, %v7631_v35, %v666_v30  ;;  %v753_v16 = vand.u32 2147483647, %v752_v21  ;;  %v838_v26 = vadd.s32 536870912, %v837_v49  ;;  %v898_v48 = vshll.u32 %v13654_v28, %v895_v8 }
  0xd5   :  { %v671_v15 = vsel %vm664_vm1, %v667_v33, %v670_v44  ;;  %v899_v47 = vshrl.u32 %v13648_v18, %v896_v14  ;;  %v901_v22 = vshll.u32 %v13648_v18, %v895_v8  ;;  %v902_v36 = vshrl.u32 %v13649_v24, %v896_v14 }
  0xd6   :  { %v672_v32 = vsel %vm661_vm15, nan, %v671_v15  ;;  %v756_v52 = vmul.f32 %v755_v10, %v753_v16  ;;  %v9155_v25 = vshrl.u32 %v838_v26, 30  ;;  %v904_v51 = vshll.u32 %v13649_v24, %v895_v8 }
  0xd7   :  { %v905_v23 = vshrl.u32 %v13650_v19, %v896_v14  ;;  %v907_v13 = vshll.u32 %v13650_v19, %v895_v8  ;;  %v908_v11 = vshrl.u32 %v13651_v27, %v896_v14  ;;  %7019 = vst [vmem:[#allocation5 + $0x10] sm:$0xff] %v672_v32  ;;  %v9163_v12 = vshll.u32 %v889_v39, 8 }
  0xd8   :  { %v757_v41 = vxor.u32 2147483648, %v756_v52  ;;  %v840_v45 = vshll.u32 %v9155_v25, 30  ;;  %v989_v61 = vshrl.u32 %v988_v9, 23  ;;  %v897_v35 = vshrl.u32 %v13654_v28, %v896_v14 }
  0xd9   :  { %v900_v17 = vor.u32 %v899_v47, %v898_v48  ;;  %v910_v3 = vshll.u32 %v13651_v27, %v895_v8  ;;  %v911_v20 = vshrl.u32 %v13652_v43, %v896_v14  ;;  %v903_v31 = vor.u32 %v902_v36, %v901_v22 }
  0xda   :  { %v758_v38 = vsel %vm675_vm0, %v757_v41, %v756_v52  ;;  %v9170_v29 = vsub.s32 %v837_v49, %v840_v45  ;;  %v909_v30 = vor.u32 %v908_v11, %v907_v13  ;;  %v906_v10 = vor.u32 %v905_v23, %v904_v51 }
  0xdb   :  { %v761_v21 = vsel %vm9125_vm2, %v8786_v37, %v758_v38  ;;  %v912_v44 = vor.u32 %v911_v20, %v910_v3  ;;  %vm913_vm7 = vcmp.lt.s32.totalorder %v894_v42, 1  ;;  %vm915_vm8 = vcmp.lt.s32.totalorder %v894_v42, 3 }
  0xdc   :  { %7634 = vcosq.f32 %v761_v21  ;;  %v843_v39 = vsub.s32 0, %v9170_v29  ;;  %vm916_vm10 = vcmp.lt.s32.totalorder %v894_v42, 4  ;;  %vm914_vm11 = vcmp.lt.s32.totalorder %v894_v42, 2 }
  0xdd   :  { %7636 = vsinq.f32 %v761_v21  ;;  %v917_v8 = vsel %vm913_vm7, %v897_v35, %v900_v17  ;;  %v918_v14 = vsel %vm916_vm10, %v906_v10, 2102212464  ;;  %v921_v33 = vsel %vm913_vm7, %v900_v17, %v903_v31 }
  0xde   :  { %v7117_v49 = vmin.u32 %v843_v39, %v9170_v29  ;;  %v919_v9 = vsel %vm915_vm8, %v903_v31, %v918_v14  ;;  %v922_v16 = vsel %vm916_vm10, %v909_v30, 920167782  ;;  %v925_v26 = vsel %vm913_vm7, %v903_v31, %v906_v10 }
  0xdf   :  { %v923_v1 = vsel %vm915_vm8, %v906_v10, %v922_v16  ;;  %v926_v15 = vsel %vm916_vm10, %v912_v44, 1326507024  ;;  %v766_v48 = vadd.s32 3, %v762_v6  ;;  %v920_v22 = vsel %vm914_vm11, %v917_v8, %v919_v9 }
  0xe0   :  { %v845_v47 = vclz %v7117_v49  ;;  %v924_v32 = vsel %vm914_vm11, %v921_v33, %v923_v1  ;;  %v927_v52 = vsel %vm915_vm8, %v909_v30, %v926_v15  ;;  %v7124_v36 = vadd.s32 4294967169, %v989_v61 }
  0xe1   :  { %v928_v23 = vsel %vm914_vm11, %v925_v26, %v927_v52  ;;  %v9184_v13 = vmul.u32.u64.low %v9163_v12, %v924_v32  ;;  %v9185_v11 = vmul.u32.u64.high %v9163_v12, %v924_v32, %v9184_v13  ;;  %v863_v41 = vsub.s32 4, %v9155_v25 }
  0xe2   :  { %v7118_v51 = vadd.s32 4294967294, %v845_v47  ;;  %v9190_v6 = vmul.u32.u64.low %v9163_v12, %v928_v23  ;;  %v9191_v45 = vmul.u32.u64.high %v9163_v12, %v928_v23, %v9190_v6  ;;  %v995_v35 = vadd.s32 1, %v7124_v36 }
  0xe3   :  { %vm765_vm9 = vweird.f32 %v8786_v37  ;;  %vm779_vm12 = vcmp.lt.s32.totalorder %v8532_v40, 0  ;;  %v833_v42 = vadd.s32 %v9116_v60, %v9113_v7  ;;  %v985_v61 = vand.u32 2147483647, %v8540_v34 }
  0xe4   :  { %vm7119_vm13 = vcmp.lt.s32.totalorder %v7118_v51, 0  ;;  %v767_v17 = vand.u32 3, %v766_v48  ;;  %v936_v20 = vmul.u32 %v9163_v12, %v920_v22  ;;  %vm996_vm14 = vcmp.gt.s32.totalorder %v995_v35, 0 }
  0xe5   :  { %v848_v3 = vsel %vm7119_vm13, 0, %v7118_v51  ;;  %v939_v21 = vadd.s32 1, %v9185_v11  ;;  %vm9203_vm15 = vcmp.le.f32.partialorder %v777_v62, 0.7853982  ;;  %v9210_v7 = vsel %vm779_vm12, %v863_v41, %v9155_v25 }
  0xe6   :  { %v849_v38 = vsub.s32 32, %v848_v3  ;;  %v850_v31 = vshll.u32 %v9170_v29, %v848_v3  ;;  %v853_v30 = vsub.s32 4294967266, %v848_v3  ;;  %vm938_vm0 = vc.u32 %v9191_v45, %v9184_v13 }
  0xe7   :  { %v997_v60 = vsel %vm996_vm14, %v995_v35, 0  ;;  %v940_v44 = vsel %vm938_vm0, %v939_v21, %v9185_v11  ;;  %v992_v39 = vand.u32 8388607, %v985_v61  ;;  %vm768_vm1 = vcmp.lt.s32.totalorder %v767_v17, 2 }
  0xe8   :  { %v851_v12 = vshrl.u32 %v833_v42, %v849_v38  ;;  %v854_v29 = vadd.s32 127, %v853_v30  ;;  %vm772_vm2 = vcmp.eq.s32.totalorder %v767_v17, 2  ;;  %v941_v8 = vadd.s32 %v940_v44, %v936_v20 }
  0xe9   :  { %v7635_v62 = vpop.eup %7634  ;;  %v999_v14 = vand.u32 31, %v997_v60  ;;  %vm769_vm3 = vcmp.eq.s32.totalorder %v767_v17, 0  ;;  %v866_v1 = vsel %vm9203_vm15, 0, %v9210_v7  ;;  %v993_v32 = vor.u32 8388608, %v992_v39 }
  0xea   :  { %v7637_v49 = vpop.eup %7636  ;;  %v773_v25 = vxor.u32 2147483648, %v7635_v62  ;;  %v852_v9 = vor.u32 %v851_v12, %v850_v31  ;;  %v855_v33 = vshll.u32 %v854_v29, 23  ;;  %v942_v26 = vadd.s32 536870912, %v941_v8 }
  0xeb   :  { %v770_v16 = vxor.u32 2147483648, %v7637_v49  ;;  %v1000_v15 = vsub.s32 32, %v999_v14  ;;  %v1002_v51 = vshll.u32 %v13654_v28, %v999_v14  ;;  %v1005_v23 = vshll.u32 %v13648_v18, %v999_v14 }
  0xec   :  { %v774_v48 = vsel %vm772_vm2, %v773_v25, %v7637_v49  ;;  %v856_v47 = vor.u32 4788187, %v855_v33  ;;  %v859_v22 = vcvt.s32.f32 %v852_v9  ;;  %v9220_v36 = vshrl.u32 %v942_v26, 30 }
  0xed   :  { %v771_v52 = vsel %vm769_vm3, %v7635_v62, %v770_v16  ;;  %v1003_v6 = vshrl.u32 %v13648_v18, %v1000_v15  ;;  %v1006_v35 = vshrl.u32 %v13649_v24, %v1000_v15  ;;  %v998_v20 = vshrl.u32 %v997_v60, 5 }
  0xee   :  { %v775_v11 = vsel %vm768_vm1, %v771_v52, %v774_v48  ;;  %v857_v41 = vand.u32 2147483647, %v856_v47  ;;  %v944_v3 = vshll.u32 %v9220_v36, 30  ;;  %v1092_v38 = vand.u32 2139095040, %v8544_v56 }
  0xef   :  { %v776_v42 = vsel %vm765_vm9, nan, %v775_v11  ;;  %v1008_v30 = vshll.u32 %v13649_v24, %v999_v14  ;;  %v1009_v21 = vshrl.u32 %v13650_v19, %v1000_v15  ;;  %v1011_v17 = vshll.u32 %v13650_v19, %v999_v14 }
  0xf0   :  { %v860_v31 = vmul.f32 %v859_v22, %v857_v41  ;;  %7020 = vst [vmem:[#allocation5 + $0x18] sm:$0xff] %v776_v42  ;;  %v9234_v7 = vsub.s32 %v941_v8, %v944_v3  ;;  %v1012_v12 = vshrl.u32 %v13651_v27, %v1000_v15  ;;  %v1014_v37 = vshll.u32 %v13651_v27, %v999_v14 }
  0xf1   :  { %v9238_v29 = vshll.u32 %v993_v32, 8  ;;  %v1004_v60 = vor.u32 %v1003_v6, %v1002_v51  ;;  %v1007_v39 = vor.u32 %v1006_v35, %v1005_v23  ;;  %v1015_v62 = vshrl.u32 %v13652_v43, %v1000_v15 }
  0xf2   :  { %v861_v44 = vxor.u32 2147483648, %v860_v31  ;;  %v947_v49 = vsub.s32 0, %v9234_v7  ;;  %v1001_v25 = vshrl.u32 %v13654_v28, %v1000_v15  ;;  %v1013_v9 = vor.u32 %v1012_v12, %v1011_v17 }
  0xf3   :  { %vm1017_vm4 = vcmp.lt.s32.totalorder %v998_v20, 1  ;;  %v1010_v33 = vor.u32 %v1009_v21, %v1008_v30  ;;  %vm1018_vm5 = vcmp.lt.s32.totalorder %v998_v20, 2  ;;  %vm1020_vm6 = vcmp.lt.s32.totalorder %v998_v20, 4 }
  0xf4   :  { %v862_v8 = vsel %vm779_vm12, %v861_v44, %v860_v31  ;;  %v7121_v16 = vmin.u32 %v947_v49, %v9234_v7  ;;  %v1016_v26 = vor.u32 %v1015_v62, %v1014_v37  ;;  %vm1019_vm7 = vcmp.lt.s32.totalorder %v998_v20, 3 }
  0xf5   :  { %v865_v14 = vsel %vm9203_vm15, %v8532_v40, %v862_v8  ;;  %v1022_v48 = vsel %vm1020_vm6, %v1010_v33, 2102212464  ;;  %v1025_v15 = vsel %vm1017_vm4, %v1004_v60, %v1007_v39  ;;  %v1026_v47 = vsel %vm1020_vm6, %v1013_v9, 920167782 }
  0xf6   :  { %7638 = vcosq.f32 %v865_v14  ;;  %v870_v22 = vadd.s32 3, %v866_v1  ;;  %v949_v32 = vclz %v7121_v16  ;;  %v1093_v52 = vshrl.u32 %v1092_v38, 23 }
  0xf7   :  { %7640 = vsinq.f32 %v865_v14  ;;  %v1021_v51 = vsel %vm1017_vm4, %v1001_v25, %v1004_v60  ;;  %v1023_v10 = vsel %vm1019_vm7, %v1007_v39, %v1022_v48  ;;  %v1027_v23 = vsel %vm1019_vm7, %v1010_v33, %v1026_v47 }
  0xf8   :  { %v1029_v11 = vsel %vm1017_vm4, %v1007_v39, %v1010_v33  ;;  %v937_v41 = vadd.s32 %v9184_v13, %v9191_v45  ;;  %v7122_v6 = vadd.s32 4294967294, %v949_v32  ;;  %v1028_v35 = vsel %vm1018_vm5, %v1025_v15, %v1027_v23 }
  0xf9   :  { %v1030_v42 = vsel %vm1020_vm6, %v1016_v26, 1326507024  ;;  %v967_v1 = vsub.s32 4, %v9220_v36  ;;  %v9263_v38 = vmul.u32.u64.low %v9238_v29, %v1028_v35  ;;  %v9264_v31 = vmul.u32.u64.high %v9238_v29, %v1028_v35, %v9263_v38 }
  0xfa   :  { %v1031_v3 = vsel %vm1019_vm7, %v1013_v9, %v1030_v42  ;;  %vm7123_vm8 = vcmp.lt.s32.totalorder %v7122_v6, 0  ;;  %v1024_v30 = vsel %vm1018_vm5, %v1021_v51, %v1023_v10  ;;  %v7128_v13 = vadd.s32 4294967169, %v1093_v52 }
  0xfb   :  { %v1032_v21 = vsel %vm1018_vm5, %v1029_v11, %v1031_v3  ;;  %v952_v45 = vsel %vm7123_vm8, 0, %v7122_v6  ;;  %v1089_v37 = vand.u32 2147483647, %v8544_v56  ;;  %vm883_vm10 = vcmp.lt.s32.totalorder %v8536_v53, 0 }
  0xfc   :  { %v9270_v17 = vmul.u32.u64.low %v9238_v29, %v1032_v21  ;;  %v9271_v12 = vmul.u32.u64.high %v9238_v29, %v1032_v21, %v9270_v17  ;;  %v953_v44 = vsub.s32 32, %v952_v45  ;;  %v954_v60 = vshll.u32 %v9234_v7, %v952_v45 }
  0xfd   :  { %v957_v39 = vsub.s32 4294967266, %v952_v45  ;;  %v1040_v62 = vmul.u32 %v9238_v29, %v1024_v30  ;;  %v1043_v49 = vadd.s32 1, %v9264_v31  ;;  %v1099_v20 = vadd.s32 1, %v7128_v13 }
  0xfe   :  { %v871_v25 = vand.u32 3, %v870_v22  ;;  %v955_v9 = vshrl.u32 %v937_v41, %v953_v44  ;;  %v968_v33 = vsel %vm883_vm10, %v967_v1, %v9220_v36  ;;  %vm9283_vm11 = vcmp.le.f32.partialorder %v881_v50, 0.7853982 }
  0xff   :  { %v958_v8 = vadd.s32 127, %v957_v39  ;;  %vm1042_vm9 = vc.u32 %v9271_v12, %v9263_v38  ;;  %v9291_v7 = vand.u32 8388607, %v1089_v37  ;;  %vm1100_vm12 = vcmp.gt.s32.totalorder %v1099_v20, 0 }
 0x100   :  { %v956_v29 = vor.u32 %v955_v9, %v954_v60  ;;  %v1044_v26 = vsel %vm1042_vm9, %v1043_v49, %v9264_v31  ;;  %v1101_v48 = vsel %vm1100_vm12, %v1099_v20, 0  ;;  %vm869_vm13 = vweird.f32 %v8532_v40 }
 0x101   :  { %v959_v16 = vshll.u32 %v958_v8, 23  ;;  %v970_v50 = vsel %vm9283_vm11, 0, %v968_v33  ;;  %v1045_v36 = vadd.s32 %v1044_v26, %v1040_v62  ;;  %v1103_v15 = vand.u32 31, %v1101_v48 }
 0x102   :  { %vm872_vm14 = vcmp.lt.s32.totalorder %v871_v25, 2  ;;  %vm876_vm15 = vcmp.eq.s32.totalorder %v871_v25, 2  ;;  %v963_v32 = vcvt.s32.f32 %v956_v29  ;;  %vm873_vm0 = vcmp.eq.s32.totalorder %v871_v25, 0 }
 0x103   :  { %v7639_v47 = vpop.eup %7638  ;;  %v960_v22 = vor.u32 4788187, %v959_v16  ;;  %v1046_v10 = vadd.s32 536870912, %v1045_v36  ;;  %v1104_v23 = vsub.s32 32, %v1103_v15  ;;  %v974_v6 = vadd.s32 3, %v970_v50 }
 0x104   :  { %v7641_v52 = vpop.eup %7640  ;;  %v877_v51 = vxor.u32 2147483648, %v7639_v47  ;;  %v1097_v35 = vor.u32 8388608, %v9291_v7  ;;  %v1106_v3 = vshll.u32 %v13654_v28, %v1103_v15  ;;  %v1109_v31 = vshll.u32 %v13648_v18, %v1103_v15 }
 0x105   :  { %v874_v11 = vxor.u32 2147483648, %v7641_v52  ;;  %v961_v41 = vand.u32 2147483647, %v960_v22  ;;  %v9298_v1 = vshrl.u32 %v1046_v10, 30  ;;  %v1107_v13 = vshrl.u32 %v13648_v18, %v1104_v23 }
 0x106   :  { %v878_v42 = vsel %vm876_vm15, %v877_v51, %v7641_v52  ;;  %v1112_v45 = vshll.u32 %v13649_v24, %v1103_v15  ;;  %v1110_v60 = vshrl.u32 %v13649_v24, %v1104_v23  ;;  %v1113_v39 = vshrl.u32 %v13650_v19, %v1104_v23 }
 0x107   :  { %v875_v30 = vsel %vm873_vm0, %v7639_v47, %v874_v11  ;;  %v964_v21 = vmul.f32 %v963_v32, %v961_v41  ;;  %v1048_v44 = vshll.u32 %v9298_v1, 30  ;;  %v1102_v20 = vshrl.u32 %v1101_v48, 5 }
 0x108   :  { %v879_v17 = vsel %vm872_vm14, %v875_v30, %v878_v42  ;;  %v1196_v9 = vand.u32 2139095040, %v8548_v55  ;;  %v1105_v33 = vshrl.u32 %v13654_v28, %v1104_v23  ;;  %v1115_v25 = vshll.u32 %v13650_v19, %v1103_v15 }
 0x109   :  { %v880_v62 = vsel %vm869_vm13, nan, %v879_v17  ;;  %v965_v49 = vxor.u32 2147483648, %v964_v21  ;;  %v9311_v8 = vsub.s32 %v1045_v36, %v1048_v44  ;;  %v1116_v7 = vshrl.u32 %v13651_v27, %v1104_v23 }
 0x10a   :  { %7021 = vst [vmem:[#allocation5 + $0x20] sm:$0xff] %v880_v62  ;;  %v1108_v16 = vor.u32 %v1107_v13, %v1106_v3  ;;  %v1118_v40 = vshll.u32 %v13651_v27, %v1103_v15  ;;  %v1119_v26 = vshrl.u32 %v13652_v43, %v1104_v23  ;;  %v1111_v36 = vor.u32 %v1110_v60, %v1109_v31 }
 0x10b   :  { %v966_v29 = vsel %vm883_vm10, %v965_v49, %v964_v21  ;;  %v1051_v50 = vsub.s32 0, %v9311_v8  ;;  %v1114_v47 = vor.u32 %v1113_v39, %v1112_v45  ;;  %v1117_v22 = vor.u32 %v1116_v7, %v1115_v25 }
 0x10c   :  { %v969_v48 = vsel %vm9283_vm11, %v8536_v53, %v966_v29  ;;  %v1120_v32 = vor.u32 %v1119_v26, %v1118_v40  ;;  %vm1121_vm1 = vcmp.lt.s32.totalorder %v1102_v20, 1  ;;  %v9324_v52 = vand.u32 3, %v974_v6 }
 0x10d   :  { %7642 = vcosq.f32 %v969_v48  ;;  %vm987_vm2 = vcmp.lt.s32.totalorder %v8540_v34, 0  ;;  %v7125_v15 = vmin.u32 %v1051_v50, %v9311_v8  ;;  %v1193_v51 = vand.u32 2147483647, %v8548_v55 }
 0x10e   :  { %7644 = vsinq.f32 %v969_v48  ;;  %vm1123_vm3 = vcmp.lt.s32.totalorder %v1102_v20, 3  ;;  %vm1124_vm4 = vcmp.lt.s32.totalorder %v1102_v20, 4  ;;  %v1137_v14 = vshll.u32 %v1097_v35, 8 }
 0x10f   :  { %v1197_v10 = vshrl.u32 %v1196_v9, 23  ;;  %v1053_v23 = vclz %v7125_v15  ;;  %vm1122_vm5 = vcmp.lt.s32.totalorder %v1102_v20, 2  ;;  %v1129_v11 = vsel %vm1121_vm1, %v1108_v16, %v1111_v36 }
 0x110   :  { %v1133_v41 = vsel %vm1121_vm1, %v1111_v36, %v1114_v47  ;;  %v1125_v42 = vsel %vm1121_vm1, %v1105_v33, %v1108_v16  ;;  %v1126_v3 = vsel %vm1124_vm4, %v1114_v47, 2102212464  ;;  %v1130_v31 = vsel %vm1124_vm4, %v1117_v22, 920167782 }
 0x111   :  { %v1134_v30 = vsel %vm1124_vm4, %v1120_v32, 1326507024  ;;  %v7126_v6 = vadd.s32 4294967294, %v1053_v23  ;;  %v1127_v21 = vsel %vm1123_vm3, %v1111_v36, %v1126_v3  ;;  %v1131_v13 = vsel %vm1123_vm3, %v1114_v47, %v1130_v31 }
 0x112   :  { %v1135_v45 = vsel %vm1123_vm3, %v1117_v22, %v1134_v30  ;;  %v1071_v17 = vsub.s32 4, %v9298_v1  ;;  %v1132_v44 = vsel %vm1122_vm5, %v1129_v11, %v1131_v13  ;;  %v7132_v35 = vadd.s32 4294967169, %v1197_v10 }
 0x113   :  { %v1136_v60 = vsel %vm1122_vm5, %v1133_v41, %v1135_v45  ;;  %v1041_v39 = vadd.s32 %v9263_v38, %v9271_v12  ;;  %vm7127_vm6 = vcmp.lt.s32.totalorder %v7126_v6, 0  ;;  %v1128_v33 = vsel %vm1122_vm5, %v1125_v42, %v1127_v21 }
 0x114   :  { %v9334_v62 = vmul.u32.u64.low %v1137_v14, %v1136_v60  ;;  %v9335_v49 = vmul.u32.u64.high %v1137_v14, %v1136_v60, %v9334_v62  ;;  %v1056_v9 = vsel %vm7127_vm6, 0, %v7126_v6  ;;  %v1203_v26 = vadd.s32 1, %v7132_v35 }
 0x115   :  { %v9338_v25 = vmul.u32.u64.low %v1137_v14, %v1132_v44  ;;  %v9339_v7 = vmul.u32.u64.high %v1137_v14, %v1132_v44, %v9338_v25  ;;  %v1057_v29 = vsub.s32 32, %v1056_v9  ;;  %v1058_v16 = vshll.u32 %v9311_v8, %v1056_v9 }
 0x116   :  { %v1061_v40 = vsub.s32 4294967266, %v1056_v9  ;;  %vm973_vm7 = vweird.f32 %v8536_v53  ;;  %vm976_vm8 = vcmp.lt.s32.totalorder %v9324_v52, 2  ;;  %vm9347_vm10 = vcmp.le.f32.partialorder %v985_v61, 0.7853982 }
 0x117   :  { %v9354_v12 = vsel %vm987_vm2, %v1071_v17, %v9298_v1  ;;  %v1059_v20 = vshrl.u32 %v1041_v39, %v1057_v29  ;;  %v1144_v8 = vmul.u32 %v1137_v14, %v1128_v33  ;;  %vm1146_vm11 = vc.u32 %v9335_v49, %v9338_v25 }
 0x118   :  { %v1062_v48 = vadd.s32 127, %v1061_v40  ;;  %vm977_vm9 = vcmp.eq.s32.totalorder %v9324_v52, 0  ;;  %v1147_v50 = vadd.s32 1, %v9339_v7  ;;  %v1200_v61 = vand.u32 8388607, %v1193_v51 }
 0x119   :  { %vm1204_vm12 = vcmp.gt.s32.totalorder %v1203_v26, 0  ;;  %vm980_vm13 = vcmp.eq.s32.totalorder %v9324_v52, 2  ;;  %v1060_v47 = vor.u32 %v1059_v20, %v1058_v16  ;;  %v1074_v14 = vsel %vm9347_vm10, 0, %v9354_v12 }
 0x11a   :  { %v7643_v36 = vpop.eup %7642  ;;  %v1063_v1 = vshll.u32 %v1062_v48, 23  ;;  %v1205_v22 = vsel %vm1204_vm12, %v1203_v26, 0  ;;  %v1148_v10 = vsel %vm1146_vm11, %v1147_v50, %v9339_v7  ;;  %v1201_v30 = vor.u32 8388608, %v1200_v61 }
 0x11b   :  { %v7645_v32 = vpop.eup %7644  ;;  %v981_v15 = vxor.u32 2147483648, %v7643_v36  ;;  %v1207_v23 = vand.u32 31, %v1205_v22  ;;  %v1067_v42 = vcvt.s32.f32 %v1060_v47  ;;  %v1149_v3 = vadd.s32 %v1148_v10, %v1144_v8 }
 0x11c   :  { %v978_v11 = vxor.u32 2147483648, %v7645_v32  ;;  %v1064_v41 = vor.u32 4788187, %v1063_v1  ;;  %v1300_v21 = vand.u32 2139095040, %v8552_v0  ;;  %v1206_v44 = vshrl.u32 %v1205_v22, 5 }
 0x11d   :  { %v982_v31 = vsel %vm980_vm13, %v981_v15, %v7645_v32  ;;  %v1208_v6 = vsub.s32 32, %v1207_v23  ;;  %v1150_v17 = vadd.s32 536870912, %v1149_v3  ;;  %v1210_v35 = vshll.u32 %v13654_v28, %v1207_v23 }
 0x11e   :  { %v979_v13 = vsel %vm977_vm9, %v7643_v36, %v978_v11  ;;  %v1065_v45 = vand.u32 2147483647, %v1064_v41  ;;  %v1213_v62 = vshll.u32 %v13648_v18, %v1207_v23  ;;  %v1216_v16 = vshll.u32 %v13649_v24, %v1207_v23 }
 0x11f   :  { %v983_v60 = vsel %vm976_vm8, %v979_v13, %v982_v31  ;;  %v1211_v39 = vshrl.u32 %v13648_v18, %v1208_v6  ;;  %v1151_v7 = vshrl.u32 %v1150_v17, 30  ;;  %v1214_v29 = vshrl.u32 %v13649_v24, %v1208_v6 }
 0x120   :  { %v984_v9 = vsel %vm973_vm7, nan, %v983_v60  ;;  %v1068_v33 = vmul.f32 %v1067_v42, %v1065_v45  ;;  %v1217_v40 = vshrl.u32 %v13650_v19, %v1208_v6  ;;  %v1219_v52 = vshll.u32 %v13650_v19, %v1207_v23 }
 0x121   :  { %v1220_v26 = vshrl.u32 %v13651_v27, %v1208_v6  ;;  %7022 = vst [vmem:[#allocation5 + $0x28] sm:$0xff] %v984_v9  ;;  %v1152_v20 = vshll.u32 %v1151_v7, 30  ;;  %v9382_v48 = vshll.u32 %v1201_v30, 8  ;;  %v1301_v8 = vshrl.u32 %v1300_v21, 23 }
 0x122   :  { %v1069_v12 = vxor.u32 2147483648, %v1068_v33  ;;  %v1209_v53 = vshrl.u32 %v13654_v28, %v1208_v6  ;;  %v1212_v50 = vor.u32 %v1211_v39, %v1210_v35  ;;  %v1222_v61 = vshll.u32 %v13651_v27, %v1207_v23 }
 0x123   :  { %v1223_v36 = vshrl.u32 %v13652_v43, %v1208_v6  ;;  %v9389_v1 = vsub.s32 %v1149_v3, %v1152_v20  ;;  %v1215_v22 = vor.u32 %v1214_v29, %v1213_v62  ;;  %v1221_v32 = vor.u32 %v1220_v26, %v1219_v52 }
 0x124   :  { %v1070_v47 = vsel %vm987_vm2, %v1069_v12, %v1068_v33  ;;  %v1218_v10 = vor.u32 %v1217_v40, %v1216_v16  ;;  %vm1225_vm14 = vcmp.lt.s32.totalorder %v1206_v44, 1  ;;  %vm1227_vm15 = vcmp.lt.s32.totalorder %v1206_v44, 3 }
 0x125   :  { %v1073_v15 = vsel %vm9347_vm10, %v8540_v34, %v1070_v47  ;;  %v1224_v11 = vor.u32 %v1223_v36, %v1222_v61  ;;  %v1155_v41 = vsub.s32 0, %v9389_v1  ;;  %vm1228_vm0 = vcmp.lt.s32.totalorder %v1206_v44, 4 }
 0x126   :  { %7646 = vcosq.f32 %v1073_v15  ;;  %vm1226_vm1 = vcmp.lt.s32.totalorder %v1206_v44, 2  ;;  %v1229_v23 = vsel %vm1225_vm14, %v1209_v53, %v1212_v50  ;;  %v1230_v42 = vsel %vm1228_vm0, %v1218_v10, 2102212464 }
 0x127   :  { %7648 = vsinq.f32 %v1073_v15  ;;  %v7129_v3 = vmin.u32 %v1155_v41, %v9389_v1  ;;  %v1231_v31 = vsel %vm1227_vm15, %v1215_v22, %v1230_v42  ;;  %v1233_v30 = vsel %vm1225_vm14, %v1212_v50, %v1215_v22 }
 0x128   :  { %v1234_v6 = vsel %vm1228_vm0, %v1221_v32, 920167782  ;;  %v1237_v21 = vsel %vm1225_vm14, %v1215_v22, %v1218_v10  ;;  %v1238_v13 = vsel %vm1228_vm0, %v1224_v11, 1326507024  ;;  %v1078_v45 = vadd.s32 3, %v1074_v14 }
 0x129   :  { %v1235_v38 = vsel %vm1227_vm15, %v1218_v10, %v1234_v6  ;;  %vm1091_vm2 = vcmp.lt.s32.totalorder %v8544_v56, 0  ;;  %v1157_v17 = vclz %v7129_v3  ;;  %v1175_v60 = vsub.s32 4, %v1151_v7 }
 0x12a   :  { %v1232_v35 = vsel %vm1226_vm1, %v1229_v23, %v1231_v31  ;;  %v1236_v39 = vsel %vm1226_vm1, %v1233_v30, %v1235_v38  ;;  %v1239_v62 = vsel %vm1227_vm15, %v1221_v32, %v1238_v13  ;;  %v7136_v9 = vadd.s32 4294967169, %v1301_v8 }
 0x12b   :  { %v7130_v33 = vadd.s32 4294967294, %v1157_v17  ;;  %v1240_v29 = vsel %vm1226_vm1, %v1237_v21, %v1239_v62  ;;  %v9404_v16 = vmul.u32.u64.low %v9382_v48, %v1236_v39  ;;  %v9405_v40 = vmul.u32.u64.high %v9382_v48, %v1236_v39, %v9404_v16 }
 0x12c   :  { %v9409_v14 = vmul.u32.u64.low %v9382_v48, %v1240_v29  ;;  %v9410_v52 = vmul.u32.u64.high %v9382_v48, %v1240_v29, %v9409_v14  ;;  %v1297_v26 = vand.u32 2147483647, %v8552_v0  ;;  %v1307_v12 = vadd.s32 1, %v7136_v9 }
 0x12d   :  { %vm1077_vm3 = vweird.f32 %v8540_v34  ;;  %v1079_v20 = vand.u32 3, %v1078_v45  ;;  %v1145_v8 = vadd.s32 %v9338_v25, %v9335_v49  ;;  %vm7131_vm4 = vcmp.lt.s32.totalorder %v7130_v33, 0 }
 0x12e   :  { %v1176_v44 = vsel %vm1091_vm2, %v1175_v60, %v1151_v7  ;;  %vm9420_vm5 = vcmp.le.f32.partialorder %v1089_v37, 0.7853982  ;;  %v1160_v50 = vsel %vm7131_vm4, 0, %v7130_v33  ;;  %v1248_v61 = vmul.u32 %v9382_v48, %v1232_v35 }
 0x12f   :  { %vm1308_vm6 = vcmp.gt.s32.totalorder %v1307_v12, 0  ;;  %v1161_v36 = vsub.s32 32, %v1160_v50  ;;  %v1162_v47 = vshll.u32 %v9389_v1, %v1160_v50  ;;  %v1165_v22 = vsub.s32 4294967266, %v1160_v50 }
 0x130   :  { %v1251_v49 = vadd.s32 1, %v9405_v40  ;;  %v1178_v25 = vsel %vm9420_vm5, 0, %v1176_v44  ;;  %vm1250_vm7 = vc.u32 %v9410_v52, %v9404_v16  ;;  %v1304_v37 = vand.u32 8388607, %v1297_v26 }
 0x131   :  { %v1309_v7 = vsel %vm1308_vm6, %v1307_v12, 0  ;;  %vm1080_vm8 = vcmp.lt.s32.totalorder %v1079_v20, 2  ;;  %v1163_v32 = vshrl.u32 %v1145_v8, %v1161_v36  ;;  %v1166_v48 = vadd.s32 127, %v1165_v22 }
 0x132   :  { %v1252_v15 = vsel %vm1250_vm7, %v1251_v49, %v9405_v40  ;;  %vm1081_vm10 = vcmp.eq.s32.totalorder %v1079_v20, 0  ;;  %vm1084_vm11 = vcmp.eq.s32.totalorder %v1079_v20, 2  ;;  %v1311_v11 = vand.u32 31, %v1309_v7 }
 0x133   :  { %v7647_v10 = vpop.eup %7646  ;;  %v1253_v1 = vadd.s32 %v1252_v15, %v1248_v61  ;;  %v1164_v42 = vor.u32 %v1163_v32, %v1162_v47  ;;  %v1167_v3 = vshll.u32 %v1166_v48, 23  ;;  %v9434_v31 = vadd.s32 3, %v1178_v25 }
 0x134   :  { %v7649_v41 = vpop.eup %7648  ;;  %v1085_v23 = vxor.u32 2147483648, %v7647_v10  ;;  %v1305_v38 = vor.u32 8388608, %v1304_v37  ;;  %v1312_v21 = vsub.s32 32, %v1311_v11  ;;  %v1401_v60 = vand.u32 2147483647, %v8556_v58 }
 0x135   :  { %v1082_v30 = vxor.u32 2147483648, %v7649_v41  ;;  %v1254_v6 = vadd.s32 536870912, %v1253_v1  ;;  %v1168_v45 = vor.u32 4788187, %v1167_v3  ;;  %v1171_v17 = vcvt.s32.f32 %v1164_v42 }
 0x136   :  { %v1086_v13 = vsel %vm1084_vm11, %v1085_v23, %v7649_v41  ;;  %v1314_v62 = vshll.u32 %v13654_v28, %v1311_v11  ;;  %v1317_v9 = vshll.u32 %v13648_v18, %v1311_v11  ;;  %v1315_v40 = vshrl.u32 %v13648_v18, %v1312_v21 }
 0x137   :  { %v1083_v35 = vsel %vm1081_vm10, %v7647_v10, %v1082_v30  ;;  %v1255_v39 = vshrl.u32 %v1254_v6, 30  ;;  %v1169_v29 = vand.u32 2147483647, %v1168_v45  ;;  %v1318_v14 = vshrl.u32 %v13649_v24, %v1312_v21 }
 0x138   :  { %v1087_v33 = vsel %vm1080_vm8, %v1083_v35, %v1086_v13  ;;  %v1310_v44 = vshrl.u32 %v1309_v7, 5  ;;  %v1404_v50 = vand.u32 2139095040, %v8556_v58  ;;  %v1320_v36 = vshll.u32 %v13649_v24, %v1311_v11 }
 0x139   :  { %v1088_v12 = vsel %vm1077_vm3, nan, %v1087_v33  ;;  %v1256_v8 = vshll.u32 %v1255_v39, 30  ;;  %v1172_v61 = vmul.f32 %v1171_v17, %v1169_v29  ;;  %v1321_v47 = vshrl.u32 %v13650_v19, %v1312_v21 }
 0x13a   :  { %v1323_v20 = vshll.u32 %v13650_v19, %v1311_v11  ;;  %7023 = vst [vmem:[#allocation5 + $0x30] sm:$0xff] %v1088_v12  ;;  %v1324_v49 = vshrl.u32 %v13651_v27, %v1312_v21  ;;  %v1326_v25 = vshll.u32 %v13651_v27, %v1311_v11  ;;  %v9453_v34 = vshll.u32 %v1305_v38, 8 }
 0x13b   :  { %v9449_v22 = vsub.s32 %v1253_v1, %v1256_v8  ;;  %v1173_v37 = vxor.u32 2147483648, %v1172_v61  ;;  %v1316_v7 = vor.u32 %v1315_v40, %v1314_v62  ;;  %v1319_v32 = vor.u32 %v1318_v14, %v1317_v9 }
 0x13c   :  { %v1327_v48 = vshrl.u32 %v13652_v43, %v1312_v21  ;;  %vm1195_vm9 = vcmp.lt.s32.totalorder %v8548_v55, 0  ;;  %v1313_v10 = vshrl.u32 %v13654_v28, %v1312_v21  ;;  %v1325_v41 = vor.u32 %v1324_v49, %v1323_v20 }
 0x13d   :  { %v1259_v15 = vsub.s32 0, %v9449_v22  ;;  %vm1329_vm12 = vcmp.lt.s32.totalorder %v1310_v44, 1  ;;  %v1174_v1 = vsel %vm1091_vm2, %v1173_v37, %v1172_v61  ;;  %v1322_v23 = vor.u32 %v1321_v47, %v1320_v36 }
 0x13e   :  { %vm1330_vm13 = vcmp.lt.s32.totalorder %v1310_v44, 2  ;;  %vm1332_vm14 = vcmp.lt.s32.totalorder %v1310_v44, 4  ;;  %v1177_v11 = vsel %vm9420_vm5, %v8544_v56, %v1174_v1  ;;  %v1328_v3 = vor.u32 %v1327_v48, %v1326_v25 }
 0x13f   :  { %v7133_v42 = vmin.u32 %v1259_v15, %v9449_v22  ;;  %vm1331_vm15 = vcmp.lt.s32.totalorder %v1310_v44, 3  ;;  %7650 = vcosq.f32 %v1177_v11  ;;  %v1334_v30 = vsel %vm1332_vm14, %v1322_v23, 2102212464 }
 0x140   :  { %v1337_v6 = vsel %vm1329_vm12, %v1316_v7, %v1319_v32  ;;  %v1338_v38 = vsel %vm1332_vm14, %v1325_v41, 920167782  ;;  %7652 = vsinq.f32 %v1177_v11  ;;  %v1279_v13 = vsub.s32 4, %v1255_v39 }
 0x141   :  { %v1261_v21 = vclz %v7133_v42  ;;  %v1405_v45 = vshrl.u32 %v1404_v50, 23  ;;  %v1333_v17 = vsel %vm1329_vm12, %v1313_v10, %v1316_v7  ;;  %v1335_v53 = vsel %vm1331_vm15, %v1319_v32, %v1334_v30 }
 0x142   :  { %v1339_v35 = vsel %vm1331_vm15, %v1322_v23, %v1338_v38  ;;  %v1341_v62 = vsel %vm1329_vm12, %v1319_v32, %v1322_v23  ;;  %v1249_v9 = vadd.s32 %v9404_v16, %v9410_v52  ;;  %v1342_v40 = vsel %vm1332_vm14, %v1328_v3, 1326507024 }
 0x143   :  { %v7134_v33 = vadd.s32 4294967294, %v1261_v21  ;;  %v1340_v29 = vsel %vm1330_vm13, %v1337_v6, %v1339_v35  ;;  %v1343_v14 = vsel %vm1331_vm15, %v1325_v41, %v1342_v40  ;;  %v1408_v50 = vand.u32 8388607, %v1401_v60 }
 0x144   :  { %v9478_v12 = vmul.u32.u64.low %v9453_v34, %v1340_v29  ;;  %v9479_v8 = vmul.u32.u64.high %v9453_v34, %v1340_v29, %v9478_v12  ;;  %v1336_v61 = vsel %vm1330_vm13, %v1333_v17, %v1335_v53  ;;  %v1344_v16 = vsel %vm1330_vm13, %v1341_v62, %v1343_v14 }
 0x145   :  { %vm7135_vm0 = vcmp.lt.s32.totalorder %v7134_v33, 0  ;;  %v7140_v52 = vadd.s32 4294967169, %v1405_v45  ;;  %v1280_v47 = vsel %vm1195_vm9, %v1279_v13, %v1255_v39  ;;  %v1183_v48 = vand.u32 3, %v9434_v31 }
 0x146   :  { %v1264_v36 = vsel %vm7135_vm0, 0, %v7134_v33  ;;  %v9489_v20 = vmul.u32.u64.low %v9453_v34, %v1344_v16  ;;  %v9490_v49 = vmul.u32.u64.high %v9453_v34, %v1344_v16, %v9489_v20  ;;  %v1352_v15 = vmul.u32 %v9453_v34, %v1336_v61 }
 0x147   :  { %v1265_v25 = vsub.s32 32, %v1264_v36  ;;  %v1266_v37 = vshll.u32 %v9449_v22, %v1264_v36  ;;  %v1269_v7 = vsub.s32 4294967266, %v1264_v36  ;;  %v1411_v32 = vadd.s32 1, %v7140_v52 }
 0x148   :  { %v1355_v44 = vadd.s32 1, %v9479_v8  ;;  %vm9498_vm1 = vcmp.le.f32.partialorder %v1193_v51, 0.7853982  ;;  %vm1354_vm3 = vc.u32 %v9490_v49, %v9478_v12  ;;  %v1409_v31 = vor.u32 8388608, %v1408_v50 }
 0x149   :  { %v1267_v39 = vshrl.u32 %v1249_v9, %v1265_v25  ;;  %v1270_v41 = vadd.s32 127, %v1269_v7  ;;  %vm1412_vm2 = vcmp.gt.s32.totalorder %v1411_v32, 0  ;;  %v1282_v22 = vsel %vm9498_vm1, 0, %v1280_v47 }
 0x14a   :  { %v1413_v1 = vsel %vm1412_vm2, %v1411_v32, 0  ;;  %vm1181_vm4 = vweird.f32 %v8544_v56  ;;  %v1356_v51 = vsel %vm1354_vm3, %v1355_v44, %v9479_v8  ;;  %vm1184_vm5 = vcmp.lt.s32.totalorder %v1183_v48, 2 }
 0x14b   :  { %v1268_v34 = vor.u32 %v1267_v39, %v1266_v37  ;;  %v1271_v23 = vshll.u32 %v1270_v41, 23  ;;  %vm1185_vm6 = vcmp.eq.s32.totalorder %v1183_v48, 0  ;;  %v1357_v11 = vadd.s32 %v1356_v51, %v1352_v15 }
 0x14c   :  { %v1415_v42 = vand.u32 31, %v1413_v1  ;;  %v7651_v3 = vpop.eup %7650  ;;  %vm1188_vm7 = vcmp.eq.s32.totalorder %v1183_v48, 2  ;;  %v9508_v38 = vadd.s32 3, %v1282_v22  ;;  %v9510_v53 = vshll.u32 %v1409_v31, 8 }
 0x14d   :  { %v1272_v30 = vor.u32 4788187, %v1271_v23  ;;  %v1275_v6 = vcvt.s32.f32 %v1268_v34  ;;  %v7653_v21 = vpop.eup %7652  ;;  %v1189_v13 = vxor.u32 2147483648, %v7651_v3  ;;  %v1358_v45 = vadd.s32 536870912, %v1357_v11 }
 0x14e   :  { %v1416_v17 = vsub.s32 32, %v1415_v42  ;;  %v1186_v35 = vxor.u32 2147483648, %v7653_v21  ;;  %v1414_v9 = vshrl.u32 %v1413_v1, 5  ;;  %v1508_v33 = vand.u32 2139095040, %v8560_v54 }
 0x14f   :  { %v1273_v62 = vand.u32 2147483647, %v1272_v30  ;;  %v1190_v29 = vsel %vm1188_vm7, %v1189_v13, %v7653_v21  ;;  %v9513_v40 = vshrl.u32 %v1358_v45, 30  ;;  %v1418_v14 = vshll.u32 %v13654_v28, %v1415_v42 }
 0x150   :  { %v1419_v8 = vshrl.u32 %v13648_v18, %v1416_v17  ;;  %v1187_v50 = vsel %vm1185_vm6, %v7651_v3, %v1186_v35  ;;  %v1421_v16 = vshll.u32 %v13648_v18, %v1415_v42  ;;  %v1422_v52 = vshrl.u32 %v13649_v24, %v1416_v17 }
 0x151   :  { %v1276_v61 = vmul.f32 %v1275_v6, %v1273_v62  ;;  %v1191_v36 = vsel %vm1184_vm5, %v1187_v50, %v1190_v29  ;;  %v1360_v47 = vshll.u32 %v9513_v40, 30  ;;  %v1424_v20 = vshll.u32 %v13649_v24, %v1415_v42 }
 0x152   :  { %v1425_v25 = vshrl.u32 %v13650_v19, %v1416_v17  ;;  %v1192_v37 = vsel %vm1181_vm4, nan, %v1191_v36  ;;  %v1417_v32 = vshrl.u32 %v13654_v28, %v1416_v17  ;;  %vm1433_vm8 = vcmp.lt.s32.totalorder %v1414_v9, 1 }
 0x153   :  { %v1277_v7 = vxor.u32 2147483648, %v1276_v61  ;;  %v9527_v15 = vsub.s32 %v1357_v11, %v1360_v47  ;;  %v1420_v44 = vor.u32 %v1419_v8, %v1418_v14  ;;  %v1427_v39 = vshll.u32 %v13650_v19, %v1415_v42  ;;  %7024 = vst [vmem:[#allocation5 + $0x38] sm:$0xff] %v1192_v37 }
 0x154   :  { %v1428_v48 = vshrl.u32 %v13651_v27, %v1416_v17  ;;  %v1423_v22 = vor.u32 %v1422_v52, %v1421_v16  ;;  %v1430_v31 = vshll.u32 %v13651_v27, %v1415_v42  ;;  %v1431_v56 = vshrl.u32 %v13652_v43, %v1416_v17 }
 0x155   :  { %v1278_v41 = vsel %vm1195_vm9, %v1277_v7, %v1276_v61  ;;  %v1363_v34 = vsub.s32 0, %v9527_v15  ;;  %v1426_v23 = vor.u32 %v1425_v25, %v1424_v20  ;;  %vm1436_vm10 = vcmp.lt.s32.totalorder %v1414_v9, 4 }
 0x156   :  { %v1281_v1 = vsel %vm9498_vm1, %v8548_v55, %v1278_v41  ;;  %v1429_v51 = vor.u32 %v1428_v48, %v1427_v39  ;;  %v1432_v11 = vor.u32 %v1431_v56, %v1430_v31  ;;  %v1509_v3 = vshrl.u32 %v1508_v33, 23 }
 0x157   :  { %7654 = vcosq.f32 %v1281_v1  ;;  %v7137_v30 = vmin.u32 %v1363_v34, %v9527_v15  ;;  %vm1434_vm11 = vcmp.lt.s32.totalorder %v1414_v9, 2  ;;  %vm1435_vm9 = vcmp.lt.s32.totalorder %v1414_v9, 3 }
 0x158   :  { %7656 = vsinq.f32 %v1281_v1  ;;  %v1437_v42 = vsel %vm1433_vm8, %v1417_v32, %v1420_v44  ;;  %v1438_v6 = vsel %vm1436_vm10, %v1426_v23, 2102212464  ;;  %v1441_v10 = vsel %vm1433_vm8, %v1420_v44, %v1423_v22 }
 0x159   :  { %v1442_v21 = vsel %vm1436_vm10, %v1429_v51, 920167782  ;;  %v1353_v13 = vadd.s32 %v9478_v12, %v9490_v49  ;;  %v1365_v45 = vclz %v7137_v30  ;;  %v1445_v17 = vsel %vm1433_vm8, %v1423_v22, %v1426_v23 }
 0x15a   :  { %v1505_v35 = vand.u32 2147483647, %v8560_v54  ;;  %v1439_v62 = vsel %vm1435_vm9, %v1423_v22, %v1438_v6  ;;  %v1443_v33 = vsel %vm1435_vm9, %v1426_v23, %v1442_v21  ;;  %v1446_v29 = vsel %vm1436_vm10, %v1432_v11, 1326507024 }
 0x15b   :  { %v7144_v14 = vadd.s32 4294967169, %v1509_v3  ;;  %v7138_v8 = vadd.s32 4294967294, %v1365_v45  ;;  %v1440_v50 = vsel %vm1434_vm11, %v1437_v42, %v1439_v62  ;;  %v1444_v61 = vsel %vm1434_vm11, %v1441_v10, %v1443_v33 }
 0x15c   :  { %v1447_v16 = vsel %vm1435_vm9, %v1429_v51, %v1446_v29  ;;  %v1383_v12 = vsub.s32 4, %v9513_v40  ;;  %v9557_v52 = vmul.u32.u64.low %v9510_v53, %v1444_v61  ;;  %v9558_v36 = vmul.u32.u64.high %v9510_v53, %v1444_v61, %v9557_v52 }
 0x15d   :  { %v1448_v49 = vsel %vm1434_vm11, %v1445_v17, %v1447_v16  ;;  %vm7139_vm12 = vcmp.lt.s32.totalorder %v7138_v8, 0  ;;  %v1515_v25 = vadd.s32 1, %v7144_v14  ;;  %vm1285_vm13 = vweird.f32 %v8548_v55 }
 0x15e   :  { %v9562_v47 = vmul.u32.u64.low %v9510_v53, %v1448_v49  ;;  %v9563_v20 = vmul.u32.u64.high %v9510_v53, %v1448_v49, %v9562_v47  ;;  %v1287_v37 = vand.u32 3, %v9508_v38  ;;  %v1368_v7 = vsel %vm7139_vm12, 0, %v7138_v8 }
 0x15f   :  { %v1456_v32 = vmul.u32 %v9510_v53, %v1440_v50  ;;  %v1512_v9 = vand.u32 8388607, %v1505_v35  ;;  %v1369_v44 = vsub.s32 32, %v1368_v7  ;;  %v1370_v39 = vshll.u32 %v9527_v15, %v1368_v7 }
 0x160   :  { %v1373_v48 = vsub.s32 4294967266, %v1368_v7  ;;  %vm1516_vm14 = vcmp.gt.s32.totalorder %v1515_v25, 0  ;;  %vm9573_vm15 = vcmp.le.f32.partialorder %v1297_v26, 0.7853982  ;;  %vm1299_vm0 = vcmp.lt.s32.totalorder %v8552_v0, 0 }
 0x161   :  { %v1459_v38 = vadd.s32 1, %v9558_v36  ;;  %v1517_v22 = vsel %vm1516_vm14, %v1515_v25, 0  ;;  %v1371_v53 = vshrl.u32 %v1353_v13, %v1369_v44  ;;  %v9582_v56 = vsel %vm1299_vm0, %v1383_v12, %v9513_v40 }
 0x162   :  { %v1374_v31 = vadd.s32 127, %v1373_v48  ;;  %vm1458_vm1 = vc.u32 %v9563_v20, %v9557_v52  ;;  %vm1288_vm2 = vcmp.lt.s32.totalorder %v1287_v37, 2  ;;  %v1513_v15 = vor.u32 8388608, %v1512_v9 }
 0x163   :  { %v1460_v26 = vsel %vm1458_vm1, %v1459_v38, %v9558_v36  ;;  %v1519_v1 = vand.u32 31, %v1517_v22  ;;  %vm1292_vm3 = vcmp.eq.s32.totalorder %v1287_v37, 2  ;;  %v1372_v23 = vor.u32 %v1371_v53, %v1370_v39 }
 0x164   :  { %v7655_v34 = vpop.eup %7654  ;;  %v1375_v51 = vshll.u32 %v1374_v31, 23  ;;  %v1461_v11 = vadd.s32 %v1460_v26, %v1456_v32  ;;  %vm1289_vm4 = vcmp.eq.s32.totalorder %v1287_v37, 0  ;;  %v1386_v40 = vsel %vm9573_vm15, 0, %v9582_v56 }
 0x165   :  { %v7657_v3 = vpop.eup %7656  ;;  %v1293_v30 = vxor.u32 2147483648, %v7655_v34  ;;  %v1520_v42 = vsub.s32 32, %v1519_v1  ;;  %v1379_v21 = vcvt.s32.f32 %v1372_v23  ;;  %v1522_v17 = vshll.u32 %v13654_v28, %v1519_v1 }
 0x166   :  { %v1290_v6 = vxor.u32 2147483648, %v7657_v3  ;;  %v1376_v10 = vor.u32 4788187, %v1375_v51  ;;  %v1462_v13 = vadd.s32 536870912, %v1461_v11  ;;  %v1525_v62 = vshll.u32 %v13648_v18, %v1519_v1 }
 0x167   :  { %v1294_v45 = vsel %vm1292_vm3, %v1293_v30, %v7657_v3  ;;  %v9592_v33 = vshll.u32 %v1513_v15, 8  ;;  %v1523_v50 = vshrl.u32 %v13648_v18, %v1520_v42  ;;  %v1526_v16 = vshrl.u32 %v13649_v24, %v1520_v42 }
 0x168   :  { %v1291_v29 = vsel %vm1289_vm4, %v7655_v34, %v1290_v6  ;;  %v1377_v14 = vand.u32 2147483647, %v1376_v10  ;;  %v1463_v8 = vshrl.u32 %v1462_v13, 30  ;;  %v1528_v12 = vshll.u32 %v13649_v24, %v1519_v1 }
 0x169   :  { %v1295_v61 = vsel %vm1288_vm2, %v1291_v29, %v1294_v45  ;;  %v1529_v49 = vshrl.u32 %v13650_v19, %v1520_v42  ;;  %v1518_v7 = vshrl.u32 %v1517_v22, 5  ;;  %v1531_v32 = vshll.u32 %v13650_v19, %v1519_v1 }
 0x16a   :  { %v1296_v36 = vsel %vm1285_vm13, nan, %v1295_v61  ;;  %v1380_v47 = vmul.f32 %v1379_v21, %v1377_v14  ;;  %v1464_v25 = vshll.u32 %v1463_v8, 30  ;;  %v1532_v9 = vshrl.u32 %v13651_v27, %v1520_v42 }
 0x16b   :  { %v1534_v44 = vshll.u32 %v13651_v27, %v1519_v1  ;;  %v1612_v37 = vand.u32 2139095040, %v8564_v46  ;;  %7025 = vst [vmem:[#allocation5 + $0x40] sm:$0xff] %v1296_v36  ;;  %v1521_v38 = vshrl.u32 %v13654_v28, %v1520_v42  ;;  %v1535_v55 = vshrl.u32 %v13652_v43, %v1520_v42 }
 0x16c   :  { %v1381_v39 = vxor.u32 2147483648, %v1380_v47  ;;  %v9605_v48 = vsub.s32 %v1461_v11, %v1464_v25  ;;  %v1524_v53 = vor.u32 %v1523_v50, %v1522_v17  ;;  %v1527_v31 = vor.u32 %v1526_v16, %v1525_v62 }
 0x16d   :  { %v1530_v56 = vor.u32 %v1529_v49, %v1528_v12  ;;  %v1533_v22 = vor.u32 %v1532_v9, %v1531_v32  ;;  %vm1537_vm5 = vcmp.lt.s32.totalorder %v1518_v7, 1  ;;  %vm1538_vm6 = vcmp.lt.s32.totalorder %v1518_v7, 2 }
 0x16e   :  { %v1382_v26 = vsel %vm1299_vm0, %v1381_v39, %v1380_v47  ;;  %v1467_v15 = vsub.s32 0, %v9605_v48  ;;  %v1536_v34 = vor.u32 %v1535_v55, %v1534_v44  ;;  %vm1539_vm7 = vcmp.lt.s32.totalorder %v1518_v7, 3 }
 0x16f   :  { %v1385_v1 = vsel %vm9573_vm15, %v8552_v0, %v1382_v26  ;;  %vm1540_vm8 = vcmp.lt.s32.totalorder %v1518_v7, 4  ;;  %v1541_v51 = vsel %vm1537_vm5, %v1521_v38, %v1524_v53  ;;  %v1545_v30 = vsel %vm1537_vm5, %v1524_v53, %v1527_v31 }
 0x170   :  { %7658 = vcosq.f32 %v1385_v1  ;;  %v7141_v23 = vmin.u32 %v1467_v15, %v9605_v48  ;;  %v1542_v11 = vsel %vm1540_vm8, %v1530_v56, 2102212464  ;;  %v1546_v42 = vsel %vm1540_vm8, %v1533_v22, 920167782 }
 0x171   :  { %7660 = vsinq.f32 %v1385_v1  ;;  %v1543_v3 = vsel %vm1539_vm7, %v1527_v31, %v1542_v11  ;;  %v1390_v6 = vadd.s32 3, %v1386_v40  ;;  %vm1403_vm10 = vcmp.lt.s32.totalorder %v8556_v58, 0 }
 0x172   :  { %v1469_v41 = vclz %v7141_v23  ;;  %v1609_v10 = vand.u32 2147483647, %v8564_v46  ;;  %v1487_v21 = vsub.s32 4, %v1463_v8  ;;  %v1547_v13 = vsel %vm1539_vm7, %v1530_v56, %v1546_v42 }
 0x173   :  { %v1549_v45 = vsel %vm1537_vm5, %v1527_v31, %v1530_v56  ;;  %v1550_v17 = vsel %vm1540_vm8, %v1536_v34, 1326507024  ;;  %v1544_v29 = vsel %vm1538_vm6, %v1541_v51, %v1543_v3  ;;  %v1548_v14 = vsel %vm1538_vm6, %v1545_v30, %v1547_v13 }
 0x174   :  { %v7142_v62 = vadd.s32 4294967294, %v1469_v41  ;;  %v1551_v50 = vsel %vm1539_vm7, %v1533_v22, %v1550_v17  ;;  %v9631_v61 = vmul.u32.u64.low %v9592_v33, %v1548_v14  ;;  %v9632_v16 = vmul.u32.u64.high %v9592_v33, %v1548_v14, %v9631_v61 }
 0x175   :  { %v1552_v40 = vsel %vm1538_vm6, %v1549_v45, %v1551_v50  ;;  %v1613_v12 = vshrl.u32 %v1612_v37, 23  ;;  %v1457_v49 = vadd.s32 %v9557_v52, %v9563_v20  ;;  %v1488_v32 = vsel %vm1403_vm10, %v1487_v21, %v1463_v8 }
 0x176   :  { %vm7143_vm11 = vcmp.lt.s32.totalorder %v7142_v62, 0  ;;  %v9637_v36 = vmul.u32.u64.low %v9592_v33, %v1552_v40  ;;  %v9638_v47 = vmul.u32.u64.high %v9592_v33, %v1552_v40, %v9637_v36  ;;  %v1616_v7 = vand.u32 8388607, %v1609_v10 }
 0x177   :  { %v1472_v25 = vsel %vm7143_vm11, 0, %v7142_v62  ;;  %v7148_v9 = vadd.s32 4294967169, %v1613_v12  ;;  %v1560_v38 = vmul.u32 %v9592_v33, %v1544_v29  ;;  %vm1389_vm9 = vweird.f32 %v8552_v0 }
 0x178   :  { %v1473_v44 = vsub.s32 32, %v1472_v25  ;;  %v1474_v39 = vshll.u32 %v9605_v48, %v1472_v25  ;;  %v1477_v37 = vsub.s32 4294967266, %v1472_v25  ;;  %v1391_v52 = vand.u32 3, %v1390_v6 }
 0x179   :  { %v1563_v20 = vadd.s32 1, %v9632_v16  ;;  %v1619_v55 = vadd.s32 1, %v7148_v9  ;;  %vm9650_vm12 = vcmp.le.f32.partialorder %v1401_v60, 0.7853982  ;;  %vm1562_vm13 = vc.u32 %v9638_v47, %v9631_v61 }
 0x17a   :  { %v1475_v53 = vshrl.u32 %v1457_v49, %v1473_v44  ;;  %v1478_v31 = vadd.s32 127, %v1477_v37  ;;  %v1490_v48 = vsel %vm9650_vm12, 0, %v1488_v32  ;;  %v1617_v56 = vor.u32 8388608, %v1616_v7 }
 0x17b   :  { %v1564_v33 = vsel %vm1562_vm13, %v1563_v20, %v9632_v16  ;;  %vm1620_vm14 = vcmp.gt.s32.totalorder %v1619_v55, 0  ;;  %vm1392_vm15 = vcmp.lt.s32.totalorder %v1391_v52, 2  ;;  %vm1393_vm0 = vcmp.eq.s32.totalorder %v1391_v52, 0 }
 0x17c   :  { %v1476_v22 = vor.u32 %v1475_v53, %v1474_v39  ;;  %v1479_v26 = vshll.u32 %v1478_v31, 23  ;;  %v1565_v15 = vadd.s32 %v1564_v33, %v1560_v38  ;;  %v1621_v1 = vsel %vm1620_vm14, %v1619_v55, 0 }
 0x17d   :  { %v7659_v34 = vpop.eup %7658  ;;  %vm1396_vm1 = vcmp.eq.s32.totalorder %v1391_v52, 2  ;;  %v1623_v60 = vand.u32 31, %v1621_v1  ;;  %v9658_v6 = vadd.s32 3, %v1490_v48  ;;  %v1713_v21 = vand.u32 2147483647, %v8568_v63 }
 0x17e   :  { %v7661_v23 = vpop.eup %7660  ;;  %v1397_v51 = vxor.u32 2147483648, %v7659_v34  ;;  %v1480_v11 = vor.u32 4788187, %v1479_v26  ;;  %v1483_v3 = vcvt.s32.f32 %v1476_v22  ;;  %v1566_v30 = vadd.s32 536870912, %v1565_v15 }
 0x17f   :  { %v1394_v42 = vxor.u32 2147483648, %v7661_v23  ;;  %v1624_v41 = vsub.s32 32, %v1623_v60  ;;  %v9663_v62 = vshll.u32 %v1617_v56, 8  ;;  %v9667_v14 = vadd.s32 %v9631_v61, %v9638_v47 }
 0x180   :  { %v1398_v13 = vsel %vm1396_vm1, %v1397_v51, %v7661_v23  ;;  %v1481_v45 = vand.u32 2147483647, %v1480_v11  ;;  %v9661_v17 = vshrl.u32 %v1566_v30, 30  ;;  %v1626_v50 = vshll.u32 %v13654_v28, %v1623_v60 }
 0x181   :  { %v1395_v29 = vsel %vm1393_vm0, %v7659_v34, %v1394_v42  ;;  %v1629_v40 = vshll.u32 %v13648_v18, %v1623_v60  ;;  %v1627_v36 = vshrl.u32 %v13648_v18, %v1624_v41  ;;  %v1630_v32 = vshrl.u32 %v13649_v24, %v1624_v41 }
 0x182   :  { %v1399_v16 = vsel %vm1392_vm15, %v1395_v29, %v1398_v13  ;;  %v1484_v12 = vmul.f32 %v1483_v3, %v1481_v45  ;;  %v1568_v49 = vshll.u32 %v9661_v17, 30  ;;  %v1632_v9 = vshll.u32 %v13649_v24, %v1623_v60 }
 0x183   :  { %v1400_v25 = vsel %vm1389_vm9, nan, %v1399_v16  ;;  %v1633_v61 = vshrl.u32 %v13650_v19, %v1624_v41  ;;  %v1622_v44 = vshrl.u32 %v1621_v1, 5  ;;  %v1635_v39 = vshll.u32 %v13650_v19, %v1623_v60 }
 0x184   :  { %v1485_v47 = vxor.u32 2147483648, %v1484_v12  ;;  %v9679_v7 = vsub.s32 %v1565_v15, %v1568_v49  ;;  %7026 = vst [vmem:[#allocation5 + $0x48] sm:$0xff] %v1400_v25  ;;  %v1625_v37 = vshrl.u32 %v13654_v28, %v1624_v41  ;;  %v1636_v38 = vshrl.u32 %v13651_v27, %v1624_v41 }
 0x185   :  { %v1638_v0 = vshll.u32 %v13651_v27, %v1623_v60  ;;  %v1716_v52 = vand.u32 2139095040, %v8568_v63  ;;  %v1628_v53 = vor.u32 %v1627_v36, %v1626_v50  ;;  %v1639_v31 = vshrl.u32 %v13652_v43, %v1624_v41 }
 0x186   :  { %v1486_v20 = vsel %vm1403_vm10, %v1485_v47, %v1484_v12  ;;  %v1571_v55 = vsub.s32 0, %v9679_v7  ;;  %v1631_v33 = vor.u32 %v1630_v32, %v1629_v40  ;;  %v1634_v56 = vor.u32 %v1633_v61, %v1632_v9 }
 0x187   :  { %v1489_v48 = vsel %vm9650_vm12, %v8556_v58, %v1486_v20  ;;  %v1637_v22 = vor.u32 %v1636_v38, %v1635_v39  ;;  %vm1507_vm2 = vcmp.lt.s32.totalorder %v8560_v54, 0  ;;  %v1640_v15 = vor.u32 %v1639_v31, %v1638_v0 }
 0x188   :  { %7662 = vcosq.f32 %v1489_v48  ;;  %v7145_v26 = vmin.u32 %v1571_v55, %v9679_v7  ;;  %vm1641_vm3 = vcmp.lt.s32.totalorder %v1622_v44, 1  ;;  %vm1643_vm4 = vcmp.lt.s32.totalorder %v1622_v44, 3 }
 0x189   :  { %7664 = vsinq.f32 %v1489_v48  ;;  %vm1644_vm5 = vcmp.lt.s32.totalorder %v1622_v44, 4  ;;  %v1717_v1 = vshrl.u32 %v1716_v52, 23  ;;  %v1591_v60 = vsub.s32 4, %v9661_v17 }
 0x18a   :  { %v1573_v34 = vclz %v7145_v26  ;;  %vm1642_vm6 = vcmp.lt.s32.totalorder %v1622_v44, 2  ;;  %v1645_v8 = vsel %vm1641_vm3, %v1625_v37, %v1628_v53  ;;  %v1646_v23 = vsel %vm1644_vm5, %v1634_v56, 2102212464 }
 0x18b   :  { %v1649_v51 = vsel %vm1641_vm3, %v1628_v53, %v1631_v33  ;;  %v1650_v11 = vsel %vm1644_vm5, %v1637_v22, 920167782  ;;  %v1653_v3 = vsel %vm1641_vm3, %v1631_v33, %v1634_v56  ;;  %v1647_v42 = vsel %vm1643_vm4, %v1631_v33, %v1646_v23 }
 0x18c   :  { %v7146_v30 = vadd.s32 4294967294, %v1573_v34  ;;  %v1651_v41 = vsel %vm1643_vm4, %v1634_v56, %v1650_v11  ;;  %v1654_v13 = vsel %vm1644_vm5, %v1640_v15, 1326507024  ;;  %v1648_v45 = vsel %vm1642_vm6, %v1645_v8, %v1647_v42 }
 0x18d   :  { %v1652_v29 = vsel %vm1642_vm6, %v1649_v51, %v1651_v41  ;;  %v1655_v50 = vsel %vm1643_vm4, %v1637_v22, %v1654_v13  ;;  %v7152_v40 = vadd.s32 4294967169, %v1717_v1  ;;  %v1720_v9 = vand.u32 8388607, %v1713_v21 }
 0x18e   :  { %vm7147_vm7 = vcmp.lt.s32.totalorder %v7146_v30, 0  ;;  %v1656_v16 = vsel %vm1642_vm6, %v1653_v3, %v1655_v50  ;;  %v9700_v12 = vmul.u32.u64.low %v9663_v62, %v1652_v29  ;;  %v9701_v49 = vmul.u32.u64.high %v9663_v62, %v1652_v29, %v9700_v12 }
 0x18f   :  { %v1576_v36 = vsel %vm7147_vm7, 0, %v7146_v30  ;;  %v9705_v25 = vmul.u32.u64.low %v9663_v62, %v1656_v16  ;;  %v9706_v32 = vmul.u32.u64.high %v9663_v62, %v1656_v16, %v9705_v25  ;;  %v1723_v39 = vadd.s32 1, %v7152_v40 }
 0x190   :  { %v1577_v61 = vsub.s32 32, %v1576_v36  ;;  %v1578_v47 = vshll.u32 %v9679_v7, %v1576_v36  ;;  %v1581_v44 = vsub.s32 4294967266, %v1576_v36  ;;  %vm1493_vm8 = vweird.f32 %v8556_v58 }
 0x191   :  { %v1495_v37 = vand.u32 3, %v9658_v6  ;;  %v1592_v38 = vsel %vm1507_vm2, %v1591_v60, %v9661_v17  ;;  %v1664_v0 = vmul.u32 %v9663_v62, %v1648_v45  ;;  %v1667_v55 = vadd.s32 1, %v9701_v49 }
 0x192   :  { %v1579_v52 = vshrl.u32 %v9667_v14, %v1577_v61  ;;  %v1582_v20 = vadd.s32 127, %v1581_v44  ;;  %vm1724_vm10 = vcmp.gt.s32.totalorder %v1723_v39, 0  ;;  %vm9721_vm11 = vcmp.le.f32.partialorder %v1505_v35, 0.7853982 }
 0x193   :  { %vm1666_vm9 = vc.u32 %v9706_v32, %v9700_v12  ;;  %v1721_v6 = vor.u32 8388608, %v1720_v9  ;;  %v1725_v53 = vsel %vm1724_vm10, %v1723_v39, 0  ;;  %v1594_v62 = vsel %vm9721_vm11, 0, %v1592_v38 }
 0x194   :  { %v1580_v17 = vor.u32 %v1579_v52, %v1578_v47  ;;  %v1583_v31 = vshll.u32 %v1582_v20, 23  ;;  %v1668_v14 = vsel %vm1666_vm9, %v1667_v55, %v9701_v49  ;;  %vm1496_vm12 = vcmp.lt.s32.totalorder %v1495_v37, 2 }
 0x195   :  { %v7663_v48 = vpop.eup %7662  ;;  %vm1500_vm13 = vcmp.eq.s32.totalorder %v1495_v37, 2  ;;  %v1669_v33 = vadd.s32 %v1668_v14, %v1664_v0  ;;  %v1727_v35 = vand.u32 31, %v1725_v53  ;;  %vm1497_vm14 = vcmp.eq.s32.totalorder %v1495_v37, 0 }
 0x196   :  { %v7665_v56 = vpop.eup %7664  ;;  %v1501_v22 = vxor.u32 2147483648, %v7663_v48  ;;  %v1584_v26 = vor.u32 4788187, %v1583_v31  ;;  %v1587_v15 = vcvt.s32.f32 %v1580_v17  ;;  %v1598_v34 = vadd.s32 3, %v1594_v62 }
 0x197   :  { %v1498_v1 = vxor.u32 2147483648, %v7665_v56  ;;  %v1670_v60 = vadd.s32 536870912, %v1669_v33  ;;  %v1728_v8 = vsub.s32 32, %v1727_v35  ;;  %v1726_v11 = vshrl.u32 %v1725_v53, 5 }
 0x198   :  { %v1502_v23 = vsel %vm1500_vm13, %v1501_v22, %v7665_v56  ;;  %v1585_v51 = vand.u32 2147483647, %v1584_v26  ;;  %v9730_v3 = vshll.u32 %v1721_v6, 8  ;;  %v1730_v41 = vshll.u32 %v13654_v28, %v1727_v35 }
 0x199   :  { %v1499_v30 = vsel %vm1497_vm14, %v7663_v48, %v1498_v1  ;;  %v1671_v42 = vshrl.u32 %v1670_v60, 30  ;;  %v1733_v13 = vshll.u32 %v13648_v18, %v1727_v35  ;;  %vm1611_vm15 = vcmp.lt.s32.totalorder %v8564_v46, 0 }
 0x19a   :  { %v1503_v45 = vsel %vm1496_vm12, %v1499_v30, %v1502_v23  ;;  %v1588_v29 = vmul.f32 %v1587_v15, %v1585_v51  ;;  %v1731_v50 = vshrl.u32 %v13648_v18, %v1728_v8  ;;  %v1734_v40 = vshrl.u32 %v13649_v24, %v1728_v8 }
 0x19b   :  { %v1504_v16 = vsel %vm1493_vm8, nan, %v1503_v45  ;;  %v1672_v49 = vshll.u32 %v1671_v42, 30  ;;  %v1736_v36 = vshll.u32 %v13649_v24, %v1727_v35  ;;  %v1737_v25 = vshrl.u32 %v13650_v19, %v1728_v8 }
 0x19c   :  { %v1589_v9 = vxor.u32 2147483648, %v1588_v29  ;;  %v1729_v61 = vshrl.u32 %v13654_v28, %v1728_v8  ;;  %v1739_v47 = vshll.u32 %v13650_v19, %v1727_v35  ;;  %vm1745_vm0 = vcmp.lt.s32.totalorder %v1726_v11, 1  ;;  %7027 = vst [vmem:[#allocation5 + $0x50] sm:$0xff] %v1504_v16 }
 0x19d   :  { %v9744_v44 = vsub.s32 %v1669_v33, %v1672_v49  ;;  %v1695_v39 = vsub.s32 4, %v1671_v42  ;;  %v1740_v37 = vshrl.u32 %v13651_v27, %v1728_v8  ;;  %v1742_v58 = vshll.u32 %v13651_v27, %v1727_v35 }
 0x19e   :  { %v1590_v38 = vsel %vm1507_vm2, %v1589_v9, %v1588_v29  ;;  %v1732_v0 = vor.u32 %v1731_v50, %v1730_v41  ;;  %v1735_v52 = vor.u32 %v1734_v40, %v1733_v13  ;;  %v1743_v20 = vshrl.u32 %v13652_v43, %v1728_v8 }
 0x19f   :  { %v1593_v55 = vsel %vm9721_vm11, %v8560_v54, %v1590_v38  ;;  %vm9756_vm1 = vcmp.le.f32.partialorder %v1609_v10, 0.7853982  ;;  %v1675_v53 = vsub.s32 0, %v9744_v44  ;;  %v1738_v17 = vor.u32 %v1737_v25, %v1736_v36 }
 0x1a0   :  { %v1741_v31 = vor.u32 %v1740_v37, %v1739_v47  ;;  %7666 = vcosq.f32 %v1593_v55  ;;  %v1744_v62 = vor.u32 %v1743_v20, %v1742_v58  ;;  %vm1748_vm2 = vcmp.lt.s32.totalorder %v1726_v11, 4 }
 0x1a1   :  { %v1820_v14 = vand.u32 2139095040, %v8572_v57  ;;  %7668 = vsinq.f32 %v1593_v55  ;;  %v7149_v48 = vmin.u32 %v1675_v53, %v9744_v44  ;;  %vm1746_vm3 = vcmp.lt.s32.totalorder %v1726_v11, 2 }
 0x1a2   :  { %vm1747_vm4 = vcmp.lt.s32.totalorder %v1726_v11, 3  ;;  %v1749_v7 = vsel %vm1745_vm0, %v1729_v61, %v1732_v0  ;;  %v1750_v10 = vsel %vm1748_vm2, %v1738_v17, 2102212464  ;;  %v1753_v33 = vsel %vm1745_vm0, %v1732_v0, %v1735_v52 }
 0x1a3   :  { %v1754_v35 = vsel %vm1748_vm2, %v1741_v31, 920167782  ;;  %v1599_v56 = vand.u32 3, %v1598_v34  ;;  %v1677_v22 = vclz %v7149_v48  ;;  %v1696_v26 = vsel %vm1611_vm15, %v1695_v39, %v1671_v42 }
 0x1a4   :  { %v1757_v15 = vsel %vm1745_vm0, %v1735_v52, %v1738_v17  ;;  %v1751_v1 = vsel %vm1747_vm4, %v1735_v52, %v1750_v10  ;;  %v1755_v60 = vsel %vm1747_vm4, %v1738_v17, %v1754_v35  ;;  %v1758_v8 = vsel %vm1748_vm2, %v1744_v62, 1326507024 }
 0x1a5   :  { %v1821_v23 = vshrl.u32 %v1820_v14, 23  ;;  %v7150_v51 = vadd.s32 4294967294, %v1677_v22  ;;  %v1752_v30 = vsel %vm1746_vm3, %v1749_v7, %v1751_v1  ;;  %v1756_v41 = vsel %vm1746_vm3, %v1753_v33, %v1755_v60 }
 0x1a6   :  { %v1759_v34 = vsel %vm1747_vm4, %v1741_v31, %v1758_v8  ;;  %v1665_v13 = vadd.s32 %v9700_v12, %v9706_v32  ;;  %v9780_v45 = vmul.u32.u64.low %v9730_v3, %v1756_v41  ;;  %v9781_v29 = vmul.u32.u64.high %v9730_v3, %v1756_v41, %v9780_v45 }
 0x1a7   :  { %v1760_v42 = vsel %vm1746_vm3, %v1757_v15, %v1759_v34  ;;  %vm7151_vm5 = vcmp.lt.s32.totalorder %v7150_v51, 0  ;;  %v7156_v16 = vadd.s32 4294967169, %v1821_v23  ;;  %v1698_v36 = vsel %vm9756_vm1, 0, %v1696_v26 }
 0x1a8   :  { %v9785_v50 = vmul.u32.u64.low %v9730_v3, %v1760_v42  ;;  %v9786_v40 = vmul.u32.u64.high %v9730_v3, %v1760_v42, %v9785_v50  ;;  %v1680_v49 = vsel %vm7151_vm5, 0, %v7150_v51  ;;  %v1768_v25 = vmul.u32 %v9730_v3, %v1752_v30 }
 0x1a9   :  { %v1817_v12 = vand.u32 2147483647, %v8572_v57  ;;  %v1681_v32 = vsub.s32 32, %v1680_v49  ;;  %v1682_v11 = vshll.u32 %v9744_v44, %v1680_v49  ;;  %v1685_v9 = vsub.s32 4294967266, %v1680_v49 }
 0x1aa   :  { %v1827_v61 = vadd.s32 1, %v7156_v16  ;;  %vm1597_vm6 = vweird.f32 %v8560_v54  ;;  %v1771_v47 = vadd.s32 1, %v9781_v29  ;;  %vm1604_vm7 = vcmp.eq.s32.totalorder %v1599_v56, 2 }
 0x1ab   :  { %v1683_v39 = vshrl.u32 %v1665_v13, %v1681_v32  ;;  %v1686_v37 = vadd.s32 127, %v1685_v9  ;;  %vm1770_vm8 = vc.u32 %v9786_v40, %v9780_v45  ;;  %v1702_v58 = vadd.s32 3, %v1698_v36 }
 0x1ac   :  { %v1772_v3 = vsel %vm1770_vm8, %v1771_v47, %v9781_v29  ;;  %v1824_v38 = vand.u32 8388607, %v1817_v12  ;;  %vm1828_vm10 = vcmp.gt.s32.totalorder %v1827_v61, 0  ;;  %vm1600_vm11 = vcmp.lt.s32.totalorder %v1599_v56, 2 }
 0x1ad   :  { %v7667_v44 = vpop.eup %7666  ;;  %v1684_v0 = vor.u32 %v1683_v39, %v1682_v11  ;;  %v1687_v52 = vshll.u32 %v1686_v37, 23  ;;  %v1773_v20 = vadd.s32 %v1772_v3, %v1768_v25  ;;  %v1829_v55 = vsel %vm1828_vm10, %v1827_v61, 0 }
 0x1ae   :  { %v7669_v53 = vpop.eup %7668  ;;  %vm1601_vm9 = vcmp.eq.s32.totalorder %v1599_v56, 0  ;;  %v1605_v17 = vxor.u32 2147483648, %v7667_v44  ;;  %v1831_v31 = vand.u32 31, %v1829_v55  ;;  %v9801_v33 = vand.u32 3, %v1702_v58 }
 0x1af   :  { %v1602_v62 = vxor.u32 2147483648, %v7669_v53  ;;  %v1688_v14 = vor.u32 4788187, %v1687_v52  ;;  %v1691_v48 = vcvt.s32.f32 %v1684_v0  ;;  %v1774_v7 = vadd.s32 536870912, %v1773_v20 }
 0x1b0   :  { %v1606_v10 = vsel %vm1604_vm7, %v1605_v17, %v7669_v53  ;;  %v1825_v35 = vor.u32 8388608, %v1824_v38  ;;  %v1832_v22 = vsub.s32 32, %v1831_v31  ;;  %v1834_v60 = vshll.u32 %v13654_v28, %v1831_v31 }
 0x1b1   :  { %v1603_v26 = vsel %vm1601_vm9, %v7667_v44, %v1602_v62  ;;  %v1689_v15 = vand.u32 2147483647, %v1688_v14  ;;  %v1775_v1 = vshrl.u32 %v1774_v7, 30  ;;  %v1837_v51 = vshll.u32 %v13648_v18, %v1831_v31 }
 0x1b2   :  { %v1607_v8 = vsel %vm1600_vm11, %v1603_v26, %v1606_v10  ;;  %v1835_v23 = vshrl.u32 %v13648_v18, %v1832_v22  ;;  %v1840_v30 = vshll.u32 %v13649_v24, %v1831_v31  ;;  %v1838_v42 = vshrl.u32 %v13649_v24, %v1832_v22 }
 0x1b3   :  { %v1608_v41 = vsel %vm1597_vm6, nan, %v1607_v8  ;;  %v1692_v34 = vmul.f32 %v1691_v48, %v1689_v15  ;;  %v1776_v13 = vshll.u32 %v1775_v1, 30  ;;  %v1830_v29 = vshrl.u32 %v1829_v55, 5 }
 0x1b4   :  { %v1841_v50 = vshrl.u32 %v13650_v19, %v1832_v22  ;;  %v1843_v16 = vshll.u32 %v13650_v19, %v1831_v31  ;;  %v1921_v56 = vand.u32 2147483647, %v8576_v59  ;;  %7028 = vst [vmem:[#allocation5 + $0x58] sm:$0xff] %v1608_v41  ;;  %v1844_v25 = vshrl.u32 %v13651_v27, %v1832_v22 }
 0x1b5   :  { %v1693_v49 = vxor.u32 2147483648, %v1692_v34  ;;  %v9814_v36 = vsub.s32 %v1773_v20, %v1776_v13  ;;  %v1924_v54 = vand.u32 2139095040, %v8576_v59  ;;  %vm1715_vm12 = vcmp.lt.s32.totalorder %v8568_v63, 0 }
 0x1b6   :  { %v1833_v32 = vshrl.u32 %v13654_v28, %v1832_v22  ;;  %v1836_v11 = vor.u32 %v1835_v23, %v1834_v60  ;;  %v1846_v9 = vshll.u32 %v13651_v27, %v1831_v31  ;;  %v1847_v61 = vshrl.u32 %v13652_v43, %v1832_v22 }
 0x1b7   :  { %v1694_v47 = vsel %vm1611_vm15, %v1693_v49, %v1692_v34  ;;  %v1779_v39 = vsub.s32 0, %v9814_v36  ;;  %v1839_v37 = vor.u32 %v1838_v42, %v1837_v51  ;;  %v1842_v58 = vor.u32 %v1841_v50, %v1840_v30 }
 0x1b8   :  { %v1697_v3 = vsel %vm9756_vm1, %v8564_v46, %v1694_v47  ;;  %v1845_v38 = vor.u32 %v1844_v25, %v1843_v16  ;;  %v1848_v44 = vor.u32 %v1847_v61, %v1846_v9  ;;  %vm1849_vm13 = vcmp.lt.s32.totalorder %v1830_v29, 1 }
 0x1b9   :  { %7670 = vcosq.f32 %v1697_v3  ;;  %vm9830_vm14 = vcmp.le.f32.partialorder %v1713_v21, 0.7853982  ;;  %v7153_v52 = vmin.u32 %v1779_v39, %v9814_v36  ;;  %v1865_v20 = vshll.u32 %v1825_v35, 8 }
 0x1ba   :  { %v1925_v55 = vshrl.u32 %v1924_v54, 23  ;;  %7672 = vsinq.f32 %v1697_v3  ;;  %v1799_v53 = vsub.s32 4, %v1775_v1  ;;  %vm1851_vm15 = vcmp.lt.s32.totalorder %v1830_v29, 3 }
 0x1bb   :  { %vm1852_vm0 = vcmp.lt.s32.totalorder %v1830_v29, 4  ;;  %v1781_v6 = vclz %v7153_v52  ;;  %vm1850_vm1 = vcmp.lt.s32.totalorder %v1830_v29, 2  ;;  %v1853_v17 = vsel %vm1849_vm13, %v1833_v32, %v1836_v11 }
 0x1bc   :  { %v1857_v31 = vsel %vm1849_vm13, %v1836_v11, %v1839_v37  ;;  %v1854_v62 = vsel %vm1852_vm0, %v1842_v58, 2102212464  ;;  %v1858_v14 = vsel %vm1852_vm0, %v1845_v38, 920167782  ;;  %v1861_v21 = vsel %vm1849_vm13, %v1839_v37, %v1842_v58 }
 0x1bd   :  { %v1862_v48 = vsel %vm1852_vm0, %v1848_v44, 1326507024  ;;  %v7154_v7 = vadd.s32 4294967294, %v1781_v6  ;;  %v1855_v10 = vsel %vm1851_vm15, %v1839_v37, %v1854_v62  ;;  %v1859_v22 = vsel %vm1851_vm15, %v1842_v58, %v1858_v14 }
 0x1be   :  { %v1863_v35 = vsel %vm1851_vm15, %v1845_v38, %v1862_v48  ;;  %v1769_v26 = vadd.s32 %v9780_v45, %v9786_v40  ;;  %v1860_v15 = vsel %vm1850_vm1, %v1857_v31, %v1859_v22  ;;  %v7160_v8 = vadd.s32 4294967169, %v1925_v55 }
 0x1bf   :  { %v1864_v60 = vsel %vm1850_vm1, %v1861_v21, %v1863_v35  ;;  %vm7155_vm2 = vcmp.lt.s32.totalorder %v7154_v7, 0  ;;  %v1800_v23 = vsel %vm1715_vm12, %v1799_v53, %v1775_v1  ;;  %v1856_v34 = vsel %vm1850_vm1, %v1853_v17, %v1855_v10 }
 0x1c0   :  { %v9844_v51 = vmul.u32.u64.low %v1865_v20, %v1864_v60  ;;  %v9845_v30 = vmul.u32.u64.high %v1865_v20, %v1864_v60, %v9844_v51  ;;  %v1784_v41 = vsel %vm7155_vm2, 0, %v7154_v7  ;;  %v1931_v16 = vadd.s32 1, %v7160_v8 }
 0x1c1   :  { %v9848_v13 = vmul.u32.u64.low %v1865_v20, %v1860_v15  ;;  %v9849_v42 = vmul.u32.u64.high %v1865_v20, %v1860_v15, %v9848_v13  ;;  %v1785_v45 = vsub.s32 32, %v1784_v41  ;;  %v1786_v40 = vshll.u32 %v9814_v36, %v1784_v41 }
 0x1c2   :  { %v1789_v50 = vsub.s32 4294967266, %v1784_v41  ;;  %vm1701_vm3 = vweird.f32 %v8564_v46  ;;  %v1802_v1 = vsel %vm9830_vm14, 0, %v1800_v23  ;;  %v1872_v54 = vmul.u32 %v1865_v20, %v1856_v34 }
 0x1c3   :  { %v1787_v49 = vshrl.u32 %v1769_v26, %v1785_v45  ;;  %vm1874_vm4 = vc.u32 %v9845_v30, %v9848_v13  ;;  %vm1704_vm5 = vcmp.lt.s32.totalorder %v9801_v33, 2  ;;  %v1875_v29 = vadd.s32 1, %v9849_v42 }
 0x1c4   :  { %v1790_v25 = vadd.s32 127, %v1789_v50  ;;  %v1928_v36 = vand.u32 8388607, %v1921_v56  ;;  %vm1932_vm6 = vcmp.gt.s32.totalorder %v1931_v16, 0  ;;  %vm1705_vm7 = vcmp.eq.s32.totalorder %v9801_v33, 0 }
 0x1c5   :  { %v1788_v32 = vor.u32 %v1787_v49, %v1786_v40  ;;  %v1933_v9 = vsel %vm1932_vm6, %v1931_v16, 0  ;;  %vm1708_vm8 = vcmp.eq.s32.totalorder %v9801_v33, 2  ;;  %v1806_v47 = vadd.s32 3, %v1802_v1 }
 0x1c6   :  { %v1791_v11 = vshll.u32 %v1790_v25, 23  ;;  %v7671_v61 = vpop.eup %7670  ;;  %v1876_v39 = vsel %vm1874_vm4, %v1875_v29, %v9849_v42  ;;  %v1935_v37 = vand.u32 31, %v1933_v9  ;;  %v1929_v55 = vor.u32 8388608, %v1928_v36 }
 0x1c7   :  { %v7673_v58 = vpop.eup %7672  ;;  %v1709_v3 = vxor.u32 2147483648, %v7671_v61  ;;  %v1795_v44 = vcvt.s32.f32 %v1788_v32  ;;  %v1877_v52 = vadd.s32 %v1876_v39, %v1872_v54  ;;  %v1934_v8 = vshrl.u32 %v1933_v9, 5 }
 0x1c8   :  { %v1792_v38 = vor.u32 4788187, %v1791_v11  ;;  %v1706_v20 = vxor.u32 2147483648, %v7673_v58  ;;  %v1936_v53 = vsub.s32 32, %v1935_v37  ;;  %v1938_v6 = vshll.u32 %v13654_v28, %v1935_v37 }
 0x1c9   :  { %v1710_v17 = vsel %vm1708_vm8, %v1709_v3, %v7673_v58  ;;  %v1878_v62 = vadd.s32 536870912, %v1877_v52  ;;  %v1941_v14 = vshll.u32 %v13648_v18, %v1935_v37  ;;  %v1944_v10 = vshll.u32 %v13649_v24, %v1935_v37 }
 0x1ca   :  { %v1793_v31 = vand.u32 2147483647, %v1792_v38  ;;  %v1707_v21 = vsel %vm1705_vm7, %v7671_v61, %v1706_v20  ;;  %v1939_v48 = vshrl.u32 %v13648_v18, %v1936_v53  ;;  %v1942_v7 = vshrl.u32 %v13649_v24, %v1936_v53 }
 0x1cb   :  { %v1711_v22 = vsel %vm1704_vm5, %v1707_v21, %v1710_v17  ;;  %v1879_v26 = vshrl.u32 %v1878_v62, 30  ;;  %v1945_v15 = vshrl.u32 %v13650_v19, %v1936_v53  ;;  %v1947_v23 = vshll.u32 %v13650_v19, %v1935_v37 }
 0x1cc   :  { %v1796_v35 = vmul.f32 %v1795_v44, %v1793_v31  ;;  %v1712_v60 = vsel %vm1701_vm3, nan, %v1711_v22  ;;  %v9878_v51 = vshll.u32 %v1929_v55, 8  ;;  %v1937_v42 = vshrl.u32 %v13654_v28, %v1936_v53 }
 0x1cd   :  { %v1880_v34 = vshll.u32 %v1879_v26, 30  ;;  %v2028_v45 = vand.u32 2139095040, %v8580_v2  ;;  %7029 = vst [vmem:[#allocation5 + $0x60] sm:$0xff] %v1712_v60  ;;  %v1940_v33 = vor.u32 %v1939_v48, %v1938_v6  ;;  %v1948_v40 = vshrl.u32 %v13651_v27, %v1936_v53 }
 0x1ce   :  { %v1797_v41 = vxor.u32 2147483648, %v1796_v35  ;;  %v1950_v50 = vshll.u32 %v13651_v27, %v1935_v37  ;;  %v1951_v46 = vshrl.u32 %v13652_v43, %v1936_v53  ;;  %v1943_v49 = vor.u32 %v1942_v7, %v1941_v14 }
 0x1cf   :  { %v9887_v1 = vsub.s32 %v1877_v52, %v1880_v34  ;;  %v1946_v25 = vor.u32 %v1945_v15, %v1944_v10  ;;  %v1949_v29 = vor.u32 %v1948_v40, %v1947_v23  ;;  %vm1953_vm10 = vcmp.lt.s32.totalorder %v1934_v8, 1 }
 0x1d0   :  { %v1798_v16 = vsel %vm1715_vm12, %v1797_v41, %v1796_v35  ;;  %v1952_v36 = vor.u32 %v1951_v46, %v1950_v50  ;;  %vm1955_vm11 = vcmp.lt.s32.totalorder %v1934_v8, 3  ;;  %v2029_v11 = vshrl.u32 %v2028_v45, 23 }
 0x1d1   :  { %v1801_v54 = vsel %vm9830_vm14, %v8568_v63, %v1798_v16  ;;  %v1883_v32 = vsub.s32 0, %v9887_v1  ;;  %vm1954_vm9 = vcmp.lt.s32.totalorder %v1934_v8, 2  ;;  %vm1956_vm13 = vcmp.lt.s32.totalorder %v1934_v8, 4 }
 0x1d2   :  { %7674 = vcosq.f32 %v1801_v54  ;;  %v1957_v9 = vsel %vm1953_vm10, %v1937_v42, %v1940_v33  ;;  %v1958_v39 = vsel %vm1956_vm13, %v1946_v25, 2102212464  ;;  %v1961_v37 = vsel %vm1953_vm10, %v1940_v33, %v1943_v49 }
 0x1d3   :  { %7676 = vsinq.f32 %v1801_v54  ;;  %v7157_v61 = vmin.u32 %v1883_v32, %v9887_v1  ;;  %v1962_v58 = vsel %vm1956_vm13, %v1949_v29, 920167782  ;;  %v1959_v0 = vsel %vm1955_vm11, %v1943_v49, %v1958_v39 }
 0x1d4   :  { %v1963_v3 = vsel %vm1955_vm11, %v1946_v25, %v1962_v58  ;;  %v1965_v38 = vsel %vm1953_vm10, %v1943_v49, %v1946_v25  ;;  %v1966_v44 = vsel %vm1956_vm13, %v1952_v36, 1326507024  ;;  %v1807_v52 = vand.u32 3, %v1806_v47 }
 0x1d5   :  { %v1885_v20 = vclz %v7157_v61  ;;  %v1903_v55 = vsub.s32 4, %v1879_v26  ;;  %v1960_v53 = vsel %vm1954_vm9, %v1957_v9, %v1959_v0  ;;  %v1964_v6 = vsel %vm1954_vm9, %v1961_v37, %v1963_v3 }
 0x1d6   :  { %v1967_v17 = vsel %vm1955_vm11, %v1949_v29, %v1966_v44  ;;  %v7164_v31 = vadd.s32 4294967169, %v2029_v11  ;;  %v9901_v21 = vmul.u32.u64.low %v9878_v51, %v1964_v6  ;;  %v9902_v48 = vmul.u32.u64.high %v9878_v51, %v1964_v6, %v9901_v21 }
 0x1d7   :  { %v7158_v62 = vadd.s32 4294967294, %v1885_v20  ;;  %v1968_v14 = vsel %vm1954_vm9, %v1965_v38, %v1967_v17  ;;  %vm1819_vm12 = vcmp.lt.s32.totalorder %v8572_v57, 0  ;;  %v2025_v10 = vand.u32 2147483647, %v8580_v2 }
 0x1d8   :  { %v9907_v47 = vmul.u32.u64.low %v9878_v51, %v1968_v14  ;;  %v9908_v7 = vmul.u32.u64.high %v9878_v51, %v1968_v14, %v9907_v47  ;;  %vm1805_vm14 = vweird.f32 %v8568_v63  ;;  %v1873_v22 = vadd.s32 %v9848_v13, %v9845_v30 }
 0x1d9   :  { %vm7159_vm15 = vcmp.lt.s32.totalorder %v7158_v62, 0  ;;  %v1904_v35 = vsel %vm1819_vm12, %v1903_v55, %v1879_v26  ;;  %v2035_v15 = vadd.s32 1, %v7164_v31  ;;  %vm1808_vm0 = vcmp.lt.s32.totalorder %v1807_v52, 2 }
 0x1da   :  { %vm9918_vm1 = vcmp.le.f32.partialorder %v1817_v12, 0.7853982  ;;  %v1888_v8 = vsel %vm7159_vm15, 0, %v7158_v62  ;;  %v1976_v23 = vmul.u32 %v9878_v51, %v1960_v53  ;;  %v1979_v30 = vadd.s32 1, %v9902_v48 }
 0x1db   :  { %v1889_v41 = vsub.s32 32, %v1888_v8  ;;  %v1890_v34 = vshll.u32 %v9887_v1, %v1888_v8  ;;  %v1893_v42 = vsub.s32 4294967266, %v1888_v8  ;;  %v1906_v13 = vsel %vm9918_vm1, 0, %v1904_v35 }
 0x1dc   :  { %vm1978_vm2 = vc.u32 %v9908_v7, %v9901_v21  ;;  %v2032_v12 = vand.u32 8388607, %v2025_v10  ;;  %vm2036_vm3 = vcmp.gt.s32.totalorder %v2035_v15, 0  ;;  %vm1809_vm4 = vcmp.eq.s32.totalorder %v1807_v52, 0 }
 0x1dd   :  { %v1891_v26 = vshrl.u32 %v1873_v22, %v1889_v41  ;;  %v1894_v45 = vadd.s32 127, %v1893_v42  ;;  %v1980_v51 = vsel %vm1978_vm2, %v1979_v30, %v9902_v48  ;;  %v2037_v33 = vsel %vm2036_vm3, %v2035_v15, 0 }
 0x1de   :  { %vm1812_vm5 = vcmp.eq.s32.totalorder %v1807_v52, 2  ;;  %v1981_v50 = vadd.s32 %v1980_v51, %v1976_v23  ;;  %v2039_v46 = vand.u32 31, %v2037_v33  ;;  %v9932_v54 = vadd.s32 3, %v1906_v13 }
 0x1df   :  { %v7675_v40 = vpop.eup %7674  ;;  %v1892_v49 = vor.u32 %v1891_v26, %v1890_v34  ;;  %v1895_v25 = vshll.u32 %v1894_v45, 23  ;;  %v2033_v32 = vor.u32 8388608, %v2032_v12  ;;  %v2129_v37 = vand.u32 2147483647, %v8584_v4 }
 0x1e0   :  { %v7677_v16 = vpop.eup %7676  ;;  %v1813_v1 = vxor.u32 2147483648, %v7675_v40  ;;  %v1982_v36 = vadd.s32 536870912, %v1981_v50  ;;  %v2040_v11 = vsub.s32 32, %v2039_v46  ;;  %v2038_v3 = vshrl.u32 %v2037_v33, 5 }
 0x1e1   :  { %v1810_v29 = vxor.u32 2147483648, %v7677_v16  ;;  %v1896_v61 = vor.u32 4788187, %v1895_v25  ;;  %v1899_v39 = vcvt.s32.f32 %v1892_v49  ;;  %v2132_v38 = vand.u32 2139095040, %v8584_v4 }
 0x1e2   :  { %v1814_v9 = vsel %vm1812_vm5, %v1813_v1, %v7677_v16  ;;  %v1983_v0 = vshrl.u32 %v1982_v36, 30  ;;  %v2042_v55 = vshll.u32 %v13654_v28, %v2039_v46  ;;  %v2045_v53 = vshll.u32 %v13648_v18, %v2039_v46 }
 0x1e3   :  { %v1811_v58 = vsel %vm1809_vm4, %v7675_v40, %v1810_v29  ;;  %v1897_v20 = vand.u32 2147483647, %v1896_v61  ;;  %v2043_v31 = vshrl.u32 %v13648_v18, %v2040_v11  ;;  %v2046_v62 = vshrl.u32 %v13649_v24, %v2040_v11 }
 0x1e4   :  { %v1815_v44 = vsel %vm1808_vm0, %v1811_v58, %v1814_v9  ;;  %v1984_v17 = vshll.u32 %v1983_v0, 30  ;;  %v2048_v48 = vshll.u32 %v13649_v24, %v2039_v46  ;;  %v2049_v47 = vshrl.u32 %v13650_v19, %v2040_v11 }
 0x1e5   :  { %v1816_v6 = vsel %vm1805_vm14, nan, %v1815_v44  ;;  %v1900_v14 = vmul.f32 %v1899_v39, %v1897_v20  ;;  %v2051_v52 = vshll.u32 %v13650_v19, %v2039_v46  ;;  %v2052_v35 = vshrl.u32 %v13651_v27, %v2040_v11 }
 0x1e6   :  { %7030 = vst [vmem:[#allocation5 + $0x68] sm:$0xff] %v1816_v6  ;;  %v9947_v22 = vsub.s32 %v1981_v50, %v1984_v17  ;;  %v2054_v63 = vshll.u32 %v13651_v27, %v2039_v46  ;;  %v9951_v15 = vshll.u32 %v2033_v32, 8  ;;  %v1977_v23 = vadd.s32 %v9901_v21, %v9908_v7 }
 0x1e7   :  { %v1901_v8 = vxor.u32 2147483648, %v1900_v14  ;;  %v2055_v41 = vshrl.u32 %v13652_v43, %v2040_v11  ;;  %v2133_v34 = vshrl.u32 %v2132_v38, 23  ;;  %vm1923_vm6 = vcmp.lt.s32.totalorder %v8576_v59, 0 }
 0x1e8   :  { %v1987_v42 = vsub.s32 0, %v9947_v22  ;;  %v2041_v30 = vshrl.u32 %v13654_v28, %v2040_v11  ;;  %v2044_v13 = vor.u32 %v2043_v31, %v2042_v55  ;;  %v2047_v12 = vor.u32 %v2046_v62, %v2045_v53 }
 0x1e9   :  { %v1902_v26 = vsel %vm1819_vm12, %v1901_v8, %v1900_v14  ;;  %v2050_v45 = vor.u32 %v2049_v47, %v2048_v48  ;;  %v2053_v51 = vor.u32 %v2052_v35, %v2051_v52  ;;  %vm2057_vm7 = vcmp.lt.s32.totalorder %v2038_v3, 1 }
 0x1ea   :  { %v1905_v21 = vsel %vm9918_vm1, %v8572_v57, %v1902_v26  ;;  %v7161_v7 = vmin.u32 %v1987_v42, %v9947_v22  ;;  %v2056_v33 = vor.u32 %v2055_v41, %v2054_v63  ;;  %vm2060_vm8 = vcmp.lt.s32.totalorder %v2038_v3, 4 }
 0x1eb   :  { %7678 = vcosq.f32 %v1905_v21  ;;  %vm2058_vm10 = vcmp.lt.s32.totalorder %v2038_v3, 2  ;;  %vm2059_vm11 = vcmp.lt.s32.totalorder %v2038_v3, 3  ;;  %v2062_v40 = vsel %vm2060_vm8, %v2050_v45, 2102212464 }
 0x1ec   :  { %7680 = vsinq.f32 %v1905_v21  ;;  %v1989_v50 = vclz %v7161_v7  ;;  %v2061_v46 = vsel %vm2057_vm7, %v2041_v30, %v2044_v13  ;;  %v2065_v16 = vsel %vm2057_vm7, %v2044_v13, %v2047_v12 }
 0x1ed   :  { %v2007_v1 = vsub.s32 4, %v1983_v0  ;;  %v2063_v49 = vsel %vm2059_vm11, %v2047_v12, %v2062_v40  ;;  %v2066_v25 = vsel %vm2060_vm8, %v2053_v51, 920167782  ;;  %v2069_v60 = vsel %vm2057_vm7, %v2047_v12, %v2050_v45 }
 0x1ee   :  { %v7162_v29 = vadd.s32 4294967294, %v1989_v50  ;;  %v2067_v36 = vsel %vm2059_vm11, %v2050_v45, %v2066_v25  ;;  %v2070_v32 = vsel %vm2060_vm8, %v2056_v33, 1326507024  ;;  %v2136_v11 = vand.u32 8388607, %v2129_v37 }
 0x1ef   :  { %v2064_v9 = vsel %vm2058_vm10, %v2061_v46, %v2063_v49  ;;  %v2068_v61 = vsel %vm2058_vm10, %v2065_v16, %v2067_v36  ;;  %v2071_v39 = vsel %vm2059_vm11, %v2053_v51, %v2070_v32  ;;  %v7168_v58 = vadd.s32 4294967169, %v2133_v34 }
 0x1f0   :  { %vm7163_vm9 = vcmp.lt.s32.totalorder %v7162_v29, 0  ;;  %v2072_v38 = vsel %vm2058_vm10, %v2069_v60, %v2071_v39  ;;  %v9977_v44 = vmul.u32.u64.low %v9951_v15, %v2068_v61  ;;  %v9978_v20 = vmul.u32.u64.high %v9951_v15, %v2068_v61, %v9977_v44 }
 0x1f1   :  { %v1992_v55 = vsel %vm7163_vm9, 0, %v7162_v29  ;;  %v2008_v53 = vsel %vm1923_vm6, %v2007_v1, %v1983_v0  ;;  %v9984_v6 = vmul.u32.u64.low %v9951_v15, %v2072_v38  ;;  %v9985_v17 = vmul.u32.u64.high %v9951_v15, %v2072_v38, %v9984_v6 }
 0x1f2   :  { %v1993_v31 = vsub.s32 32, %v1992_v55  ;;  %v1994_v62 = vshll.u32 %v9947_v22, %v1992_v55  ;;  %v1997_v14 = vsub.s32 4294967266, %v1992_v55  ;;  %v2139_v48 = vadd.s32 1, %v7168_v58 }
 0x1f3   :  { %v1911_v3 = vand.u32 3, %v9932_v54  ;;  %vm9991_vm13 = vcmp.le.f32.partialorder %v1921_v56, 0.7853982  ;;  %v2080_v52 = vmul.u32 %v9951_v15, %v2064_v9  ;;  %v2083_v63 = vadd.s32 1, %v9978_v20 }
 0x1f4   :  { %v1995_v0 = vshrl.u32 %v1977_v23, %v1993_v31  ;;  %v1998_v35 = vadd.s32 127, %v1997_v14  ;;  %vm2140_vm12 = vcmp.gt.s32.totalorder %v2139_v48, 0  ;;  %v2010_v22 = vsel %vm9991_vm13, 0, %v2008_v53 }
 0x1f5   :  { %vm2082_vm14 = vc.u32 %v9985_v17, %v9977_v44  ;;  %v2137_v54 = vor.u32 8388608, %v2136_v11  ;;  %v2141_v8 = vsel %vm2140_vm12, %v2139_v48, 0  ;;  %vm1909_vm15 = vweird.f32 %v8572_v57 }
 0x1f6   :  { %v1996_v41 = vor.u32 %v1995_v0, %v1994_v62  ;;  %v1999_v56 = vshll.u32 %v1998_v35, 23  ;;  %v2084_v34 = vsel %vm2082_vm14, %v2083_v63, %v9978_v20  ;;  %v10002_v42 = vshrl.u32 %v2141_v8, 5 }
 0x1f7   :  { %vm1912_vm0 = vcmp.lt.s32.totalorder %v1911_v3, 2  ;;  %v2085_v15 = vadd.s32 %v2084_v34, %v2080_v52  ;;  %v2143_v23 = vand.u32 31, %v2141_v8  ;;  %vm1913_vm1 = vcmp.eq.s32.totalorder %v1911_v3, 0 }
 0x1f8   :  { %v7679_v30 = vpop.eup %7678  ;;  %vm1916_vm2 = vcmp.eq.s32.totalorder %v1911_v3, 2  ;;  %v2000_v13 = vor.u32 4788187, %v1999_v56  ;;  %v2003_v12 = vcvt.s32.f32 %v1996_v41  ;;  %v2014_v51 = vadd.s32 3, %v2010_v22 }
 0x1f9   :  { %v7681_v26 = vpop.eup %7680  ;;  %v1917_v45 = vxor.u32 2147483648, %v7679_v30  ;;  %v2086_v21 = vadd.s32 536870912, %v2085_v15  ;;  %v2144_v7 = vsub.s32 32, %v2143_v23  ;;  %vm2161_vm3 = vcmp.lt.s32.totalorder %v10002_v42, 1 }
 0x1fa   :  { %v1914_v33 = vxor.u32 2147483648, %v7681_v26  ;;  %v2001_v40 = vand.u32 2147483647, %v2000_v13  ;;  %v10006_v50 = vshll.u32 %v2137_v54, 8  ;;  %v2146_v1 = vshll.u32 %v13654_v28, %v2143_v23 }
 0x1fb   :  { %v1918_v46 = vsel %vm1916_vm2, %v1917_v45, %v7681_v26  ;;  %v2087_v16 = vshrl.u32 %v2086_v21, 30  ;;  %v2147_v49 = vshrl.u32 %v13648_v18, %v2144_v7  ;;  %vm2027_vm4 = vcmp.lt.s32.totalorder %v8580_v2, 0 }
 0x1fc   :  { %v1915_v25 = vsel %vm1913_vm1, %v7679_v30, %v1914_v33  ;;  %v2004_v60 = vmul.f32 %v2003_v12, %v2001_v40  ;;  %v2149_v29 = vshll.u32 %v13648_v18, %v2143_v23  ;;  %v2150_v36 = vshrl.u32 %v13649_v24, %v2144_v7 }
 0x1fd   :  { %v1919_v32 = vsel %vm1912_vm0, %v1915_v25, %v1918_v46  ;;  %v2088_v11 = vshll.u32 %v2087_v16, 30  ;;  %v2152_v9 = vshll.u32 %v13649_v24, %v2143_v23  ;;  %v2153_v61 = vshrl.u32 %v13650_v19, %v2144_v7 }
 0x1fe   :  { %v1920_v39 = vsel %vm1909_vm15, nan, %v1919_v32  ;;  %v2005_v58 = vxor.u32 2147483648, %v2004_v60  ;;  %v2111_v38 = vsub.s32 4, %v2087_v16  ;;  %v2145_v20 = vshrl.u32 %v13654_v28, %v2144_v7 }
 0x1ff   :  { %v10020_v55 = vsub.s32 %v2085_v15, %v2088_v11  ;;  %v2148_v53 = vor.u32 %v2147_v49, %v2146_v1  ;;  %v2155_v6 = vshll.u32 %v13650_v19, %v2143_v23  ;;  %v2156_v31 = vshrl.u32 %v13651_v27, %v2144_v7  ;;  %7031 = vst [vmem:[#allocation5 + $0x70] sm:$0xff] %v1920_v39 }
 0x200   :  { %v2006_v62 = vsel %vm1923_vm6, %v2005_v58, %v2004_v60  ;;  %v2151_v14 = vor.u32 %v2150_v36, %v2149_v29  ;;  %v2158_v48 = vshll.u32 %v13651_v27, %v2143_v23  ;;  %v2159_v57 = vshrl.u32 %v13652_v43, %v2144_v7 }
 0x201   :  { %v2009_v3 = vsel %vm9991_vm13, %v8576_v59, %v2006_v62  ;;  %vm10033_vm5 = vcmp.le.f32.partialorder %v2025_v10, 0.7853982  ;;  %v2091_v0 = vsub.s32 0, %v10020_v55  ;;  %v2154_v35 = vor.u32 %v2153_v61, %v2152_v9 }
 0x202   :  { %v2157_v63 = vor.u32 %v2156_v31, %v2155_v6  ;;  %7682 = vcosq.f32 %v2009_v3  ;;  %v2160_v22 = vor.u32 %v2159_v57, %v2158_v48  ;;  %vm2164_vm6 = vcmp.lt.s32.totalorder %v10002_v42, 4 }
 0x203   :  { %v2236_v54 = vand.u32 2139095040, %v8588_v5  ;;  %7684 = vsinq.f32 %v2009_v3  ;;  %v7165_v47 = vmin.u32 %v2091_v0, %v10020_v55  ;;  %vm2162_vm7 = vcmp.lt.s32.totalorder %v10002_v42, 2 }
 0x204   :  { %vm2163_vm8 = vcmp.lt.s32.totalorder %v10002_v42, 3  ;;  %v2165_v10 = vsel %vm2161_vm3, %v2145_v20, %v2148_v53  ;;  %v2166_v8 = vsel %vm2164_vm6, %v2154_v35, 2102212464  ;;  %v2169_v41 = vsel %vm2161_vm3, %v2148_v53, %v2151_v14 }
 0x205   :  { %v2170_v56 = vsel %vm2164_vm6, %v2157_v63, 920167782  ;;  %v2015_v34 = vand.u32 3, %v2014_v51  ;;  %v2093_v15 = vclz %v7165_v47  ;;  %v2112_v23 = vsel %vm2027_vm4, %v2111_v38, %v2087_v16 }
 0x206   :  { %v2173_v30 = vsel %vm2161_vm3, %v2151_v14, %v2154_v35  ;;  %v2167_v13 = vsel %vm2163_vm8, %v2151_v14, %v2166_v8  ;;  %v2171_v12 = vsel %vm2163_vm8, %v2154_v35, %v2170_v56  ;;  %v2174_v26 = vsel %vm2164_vm6, %v2160_v22, 1326507024 }
 0x207   :  { %v2237_v45 = vshrl.u32 %v2236_v54, 23  ;;  %v7166_v21 = vadd.s32 4294967294, %v2093_v15  ;;  %v2168_v51 = vsel %vm2162_vm7, %v2165_v10, %v2167_v13  ;;  %v2172_v7 = vsel %vm2162_vm7, %v2169_v41, %v2171_v12 }
 0x208   :  { %v2175_v33 = vsel %vm2163_vm8, %v2157_v63, %v2174_v26  ;;  %v2081_v40 = vadd.s32 %v9977_v44, %v9985_v17  ;;  %v10072_v16 = vmul.u32.u64.low %v10006_v50, %v2172_v7  ;;  %v10073_v1 = vmul.u32.u64.high %v10006_v50, %v2172_v7, %v10072_v16 }
 0x209   :  { %v2176_v46 = vsel %vm2162_vm7, %v2173_v30, %v2175_v33  ;;  %vm7167_vm10 = vcmp.lt.s32.totalorder %v7166_v21, 0  ;;  %v7172_v60 = vadd.s32 4294967169, %v2237_v45  ;;  %v2114_v36 = vsel %vm10033_vm5, 0, %v2112_v23 }
 0x20a   :  { %v10077_v49 = vmul.u32.u64.low %v10006_v50, %v2176_v46  ;;  %v10078_v25 = vmul.u32.u64.high %v10006_v50, %v2176_v46, %v10077_v49  ;;  %v2096_v29 = vsel %vm7167_vm10, 0, %v7166_v21  ;;  %v2184_v44 = vmul.u32 %v10006_v50, %v2168_v51 }
 0x20b   :  { %v2233_v17 = vand.u32 2147483647, %v8588_v5  ;;  %v2097_v42 = vsub.s32 32, %v2096_v29  ;;  %v2098_v32 = vshll.u32 %v10020_v55, %v2096_v29  ;;  %v2101_v11 = vsub.s32 4294967266, %v2096_v29 }
 0x20c   :  { %v2243_v9 = vadd.s32 1, %v7172_v60  ;;  %vm2013_vm11 = vweird.f32 %v8576_v59  ;;  %v2187_v61 = vadd.s32 1, %v10073_v1  ;;  %vm2020_vm9 = vcmp.eq.s32.totalorder %v2015_v34, 2 }
 0x20d   :  { %v2099_v39 = vshrl.u32 %v2081_v40, %v2097_v42  ;;  %v2102_v58 = vadd.s32 127, %v2101_v11  ;;  %vm2186_vm13 = vc.u32 %v10078_v25, %v10072_v16  ;;  %v2118_v38 = vadd.s32 3, %v2114_v36 }
 0x20e   :  { %v2188_v50 = vsel %vm2186_vm13, %v2187_v61, %v10073_v1  ;;  %v2240_v20 = vand.u32 8388607, %v2233_v17  ;;  %vm2244_vm12 = vcmp.gt.s32.totalorder %v2243_v9, 0  ;;  %vm2016_vm14 = vcmp.lt.s32.totalorder %v2015_v34, 2 }
 0x20f   :  { %v7683_v55 = vpop.eup %7682  ;;  %v2100_v53 = vor.u32 %v2099_v39, %v2098_v32  ;;  %v2103_v6 = vshll.u32 %v2102_v58, 23  ;;  %v2189_v31 = vadd.s32 %v2188_v50, %v2184_v44  ;;  %v2245_v62 = vsel %vm2244_vm12, %v2243_v9, 0 }
 0x210   :  { %v7685_v14 = vpop.eup %7684  ;;  %vm2017_vm15 = vcmp.eq.s32.totalorder %v2015_v34, 0  ;;  %v2021_v48 = vxor.u32 2147483648, %v7683_v55  ;;  %v2247_v57 = vand.u32 31, %v2245_v62  ;;  %v10093_v54 = vand.u32 3, %v2118_v38  ;;  %v13693_v34 = vld [vmem:[#allocation10_spill] sm:$0xff] }
 0x211   :  { %v2018_v3 = vxor.u32 2147483648, %v7685_v14  ;;  %v2104_v0 = vor.u32 4788187, %v2103_v6  ;;  %v2107_v35 = vcvt.s32.f32 %v2100_v53  ;;  %v2190_v63 = vadd.s32 536870912, %v2189_v31 }
 0x212   :  { %v2022_v22 = vsel %vm2020_vm9, %v2021_v48, %v7685_v14  ;;  %v2241_v47 = vor.u32 8388608, %v2240_v20  ;;  %v2248_v10 = vsub.s32 32, %v2247_v57  ;;  %v2250_v15 = vshll.u32 %v13654_v28, %v2247_v57 }
 0x213   :  { %v2019_v8 = vsel %vm2017_vm15, %v7683_v55, %v2018_v3  ;;  %v2105_v41 = vand.u32 2147483647, %v2104_v0  ;;  %v2191_v56 = vshrl.u32 %v2190_v63, 30  ;;  %v2253_v13 = vshll.u32 %v13648_v18, %v2247_v57 }
 0x214   :  { %v2023_v23 = vsel %vm2016_vm14, %v2019_v8, %v2022_v22  ;;  %v2251_v30 = vshrl.u32 %v13648_v18, %v2248_v10  ;;  %v2256_v12 = vshll.u32 %v13649_v24, %v2247_v57  ;;  %v2254_v51 = vshrl.u32 %v13649_v24, %v2248_v10 }
 0x215   :  { %v2024_v26 = vsel %vm2013_vm11, nan, %v2023_v23  ;;  %v2108_v45 = vmul.f32 %v2107_v35, %v2105_v41  ;;  %v2192_v21 = vshll.u32 %v2191_v56, 30  ;;  %v2246_v7 = vshrl.u32 %v2245_v62, 5 }
 0x216   :  { %v2257_v33 = vshrl.u32 %v13650_v19, %v2248_v10  ;;  %v2259_v40 = vshll.u32 %v13650_v19, %v2247_v57  ;;  %v2337_v46 = vand.u32 2147483647, %v13693_v34  ;;  %7032 = vst [vmem:[#allocation5 + $0x78] sm:$0xff] %v2024_v26  ;;  %v2260_v60 = vshrl.u32 %v13651_v27, %v2248_v10 }
 0x217   :  { %v2109_v1 = vxor.u32 2147483648, %v2108_v45  ;;  %v10106_v49 = vsub.s32 %v2189_v31, %v2192_v21  ;;  %v2340_v59 = vand.u32 2139095040, %v13693_v34  ;;  %vm2131_vm0 = vcmp.lt.s32.totalorder %v8584_v4, 0 }
 0x218   :  { %v2249_v29 = vshrl.u32 %v13654_v28, %v2248_v10  ;;  %v2252_v36 = vor.u32 %v2251_v30, %v2250_v15  ;;  %v2262_v44 = vshll.u32 %v13651_v27, %v2247_v57  ;;  %v2263_v42 = vshrl.u32 %v13652_v43, %v2248_v10 }
 0x219   :  { %v2110_v32 = vsel %vm2027_vm4, %v2109_v1, %v2108_v45  ;;  %v2195_v11 = vsub.s32 0, %v10106_v49  ;;  %v2255_v9 = vor.u32 %v2254_v51, %v2253_v13  ;;  %v2258_v61 = vor.u32 %v2257_v33, %v2256_v12 }
 0x21a   :  { %v2113_v39 = vsel %vm10033_vm5, %v8580_v2, %v2110_v32  ;;  %v2261_v58 = vor.u32 %v2260_v60, %v2259_v40  ;;  %v2264_v38 = vor.u32 %v2263_v42, %v2262_v44  ;;  %vm2265_vm1 = vcmp.lt.s32.totalorder %v2246_v7, 1 }
 0x21b   :  { %7686 = vcosq.f32 %v2113_v39  ;;  %vm10122_vm2 = vcmp.le.f32.partialorder %v2129_v37, 0.7853982  ;;  %v7169_v20 = vmin.u32 %v2195_v11, %v10106_v49  ;;  %v2281_v55 = vshll.u32 %v2241_v47, 8 }
 0x21c   :  { %v2341_v53 = vshrl.u32 %v2340_v59, 23  ;;  %7688 = vsinq.f32 %v2113_v39  ;;  %v2215_v6 = vsub.s32 4, %v2191_v56  ;;  %vm2267_vm3 = vcmp.lt.s32.totalorder %v2246_v7, 3 }
 0x21d   :  { %vm2268_vm4 = vcmp.lt.s32.totalorder %v2246_v7, 4  ;;  %v2197_v52 = vclz %v7169_v20  ;;  %vm2266_vm5 = vcmp.lt.s32.totalorder %v2246_v7, 2  ;;  %v2269_v31 = vsel %vm2265_vm1, %v2249_v29, %v2252_v36 }
 0x21e   :  { %v2273_v62 = vsel %vm2265_vm1, %v2252_v36, %v2255_v9  ;;  %v2270_v14 = vsel %vm2268_vm4, %v2258_v61, 2102212464  ;;  %v2274_v48 = vsel %vm2268_vm4, %v2261_v58, 920167782  ;;  %v2277_v37 = vsel %vm2265_vm1, %v2255_v9, %v2258_v61 }
 0x21f   :  { %v2278_v57 = vsel %vm2268_vm4, %v2264_v38, 1326507024  ;;  %v7170_v3 = vadd.s32 4294967294, %v2197_v52  ;;  %v2271_v0 = vsel %vm2267_vm3, %v2255_v9, %v2270_v14  ;;  %v2275_v35 = vsel %vm2267_vm3, %v2258_v61, %v2274_v48 }
 0x220   :  { %v2279_v63 = vsel %vm2267_vm3, %v2261_v58, %v2278_v57  ;;  %v2185_v22 = vadd.s32 %v10072_v16, %v10078_v25  ;;  %v2276_v47 = vsel %vm2266_vm5, %v2273_v62, %v2275_v35  ;;  %v7176_v8 = vadd.s32 4294967169, %v2341_v53 }
 0x221   :  { %v2280_v10 = vsel %vm2266_vm5, %v2277_v37, %v2279_v63  ;;  %vm7171_vm6 = vcmp.lt.s32.totalorder %v7170_v3, 0  ;;  %v2216_v41 = vsel %vm2131_vm0, %v2215_v6, %v2191_v56  ;;  %v2272_v13 = vsel %vm2266_vm5, %v2269_v31, %v2271_v0 }
 0x222   :  { %v10136_v15 = vmul.u32.u64.low %v2281_v55, %v2280_v10  ;;  %v10137_v23 = vmul.u32.u64.high %v2281_v55, %v2280_v10, %v10136_v15  ;;  %v2200_v30 = vsel %vm7171_vm6, 0, %v7170_v3  ;;  %v2347_v21 = vadd.s32 1, %v7176_v8 }
 0x223   :  { %v10140_v12 = vmul.u32.u64.low %v2281_v55, %v2276_v47  ;;  %v10141_v26 = vmul.u32.u64.high %v2281_v55, %v2276_v47, %v10140_v12  ;;  %v2201_v16 = vsub.s32 32, %v2200_v30  ;;  %v2202_v25 = vshll.u32 %v10106_v49, %v2200_v30 }
 0x224   :  { %v2205_v45 = vsub.s32 4294967266, %v2200_v30  ;;  %vm2117_vm7 = vweird.f32 %v8580_v2  ;;  %v2218_v56 = vsel %vm10122_vm2, 0, %v2216_v41  ;;  %v2288_v40 = vmul.u32 %v2281_v55, %v2272_v13  ;;  %v13696_v30 = vld [vmem:[#allocation11_spill] sm:$0xff] }
 0x225   :  { %v2203_v51 = vshrl.u32 %v2185_v22, %v2201_v16  ;;  %vm2290_vm8 = vc.u32 %v10137_v23, %v10140_v12  ;;  %vm2120_vm10 = vcmp.lt.s32.totalorder %v10093_v54, 2  ;;  %v2291_v7 = vadd.s32 1, %v10141_v26 }
 0x226   :  { %v2206_v33 = vadd.s32 127, %v2205_v45  ;;  %v2344_v1 = vand.u32 8388607, %v2337_v46  ;;  %vm2348_vm11 = vcmp.gt.s32.totalorder %v2347_v21, 0  ;;  %vm2121_vm9 = vcmp.eq.s32.totalorder %v10093_v54, 0 }
 0x227   :  { %v2204_v49 = vor.u32 %v2203_v51, %v2202_v25  ;;  %v2349_v59 = vsel %vm2348_vm11, %v2347_v21, 0  ;;  %vm2124_vm13 = vcmp.eq.s32.totalorder %v10093_v54, 2  ;;  %v2222_v36 = vadd.s32 3, %v2218_v56 }
 0x228   :  { %v2207_v60 = vshll.u32 %v2206_v33, 23  ;;  %v7687_v29 = vpop.eup %7686  ;;  %v2292_v44 = vsel %vm2290_vm8, %v2291_v7, %v10141_v26  ;;  %v2351_v42 = vand.u32 31, %v2349_v59  ;;  %v2345_v38 = vor.u32 8388608, %v2344_v1 }
 0x229   :  { %v7689_v32 = vpop.eup %7688  ;;  %v2125_v11 = vxor.u32 2147483648, %v7687_v29  ;;  %v2211_v61 = vcvt.s32.f32 %v2204_v49  ;;  %v2293_v39 = vadd.s32 %v2292_v44, %v2288_v40  ;;  %v2350_v22 = vshrl.u32 %v2349_v59, 5 }
 0x22a   :  { %v2208_v9 = vor.u32 4788187, %v2207_v60  ;;  %v2122_v58 = vxor.u32 2147483648, %v7689_v32  ;;  %v2352_v20 = vsub.s32 32, %v2351_v42  ;;  %v2354_v55 = vshll.u32 %v13654_v28, %v2351_v42 }
 0x22b   :  { %v2126_v53 = vsel %vm2124_vm13, %v2125_v11, %v7689_v32  ;;  %v2294_v52 = vadd.s32 536870912, %v2293_v39  ;;  %v2357_v31 = vshll.u32 %v13648_v18, %v2351_v42  ;;  %v2360_v37 = vshll.u32 %v13649_v24, %v2351_v42 }
 0x22c   :  { %v2209_v6 = vand.u32 2147483647, %v2208_v9  ;;  %v2123_v62 = vsel %vm2121_vm9, %v7687_v29, %v2122_v58  ;;  %v2355_v14 = vshrl.u32 %v13648_v18, %v2352_v20  ;;  %v2358_v48 = vshrl.u32 %v13649_v24, %v2352_v20 }
 0x22d   :  { %v2127_v57 = vsel %vm2120_vm10, %v2123_v62, %v2126_v53  ;;  %v2295_v0 = vshrl.u32 %v2294_v52, 30  ;;  %v2361_v35 = vshrl.u32 %v13650_v19, %v2352_v20  ;;  %v2363_v47 = vshll.u32 %v13650_v19, %v2351_v42 }
 0x22e   :  { %v2212_v3 = vmul.f32 %v2211_v61, %v2209_v6  ;;  %v2128_v63 = vsel %vm2117_vm7, nan, %v2127_v57  ;;  %v10170_v10 = vshll.u32 %v2345_v38, 8  ;;  %v2353_v15 = vshrl.u32 %v13654_v28, %v2352_v20 }
 0x22f   :  { %v2296_v41 = vshll.u32 %v2295_v0, 30  ;;  %v2444_v13 = vand.u32 2139095040, %v13696_v30  ;;  %7033 = vst [vmem:[#allocation5 + $0x80] sm:$0xff] %v2128_v63  ;;  %v2356_v54 = vor.u32 %v2355_v14, %v2354_v55  ;;  %v2364_v26 = vshrl.u32 %v13651_v27, %v2352_v20 }
 0x230   :  { %v2213_v8 = vxor.u32 2147483648, %v2212_v3  ;;  %v2366_v16 = vshll.u32 %v13651_v27, %v2351_v42  ;;  %v2367_v2 = vshrl.u32 %v13652_v43, %v2352_v20  ;;  %v2359_v21 = vor.u32 %v2358_v48, %v2357_v31 }
 0x231   :  { %v10179_v45 = vsub.s32 %v2293_v39, %v2296_v41  ;;  %v2362_v56 = vor.u32 %v2361_v35, %v2360_v37  ;;  %v2365_v33 = vor.u32 %v2364_v26, %v2363_v47  ;;  %vm2369_vm12 = vcmp.lt.s32.totalorder %v2350_v22, 1 }
 0x232   :  { %v2214_v25 = vsel %vm2131_vm0, %v2213_v8, %v2212_v3  ;;  %v2368_v40 = vor.u32 %v2367_v2, %v2366_v16  ;;  %vm2371_vm14 = vcmp.lt.s32.totalorder %v2350_v22, 3  ;;  %v2445_v1 = vshrl.u32 %v2444_v13, 23 }
 0x233   :  { %v2217_v51 = vsel %vm10122_vm2, %v8584_v4, %v2214_v25  ;;  %v2299_v7 = vsub.s32 0, %v10179_v45  ;;  %vm2370_vm15 = vcmp.lt.s32.totalorder %v2350_v22, 2  ;;  %vm2372_vm1 = vcmp.lt.s32.totalorder %v2350_v22, 4 }
 0x234   :  { %7690 = vcosq.f32 %v2217_v51  ;;  %v2373_v49 = vsel %vm2369_vm12, %v2353_v15, %v2356_v54  ;;  %v2374_v59 = vsel %vm2372_vm1, %v2362_v56, 2102212464  ;;  %v2377_v29 = vsel %vm2369_vm12, %v2356_v54, %v2359_v21 }
 0x235   :  { %7692 = vsinq.f32 %v2217_v51  ;;  %v7173_v60 = vmin.u32 %v2299_v7, %v10179_v45  ;;  %v2378_v44 = vsel %vm2372_vm1, %v2365_v33, 920167782  ;;  %v2375_v50 = vsel %vm2371_vm14, %v2359_v21, %v2374_v59 }
 0x236   :  { %v2379_v42 = vsel %vm2371_vm14, %v2362_v56, %v2378_v44  ;;  %v2381_v32 = vsel %vm2369_vm12, %v2359_v21, %v2362_v56  ;;  %v2382_v11 = vsel %vm2372_vm1, %v2368_v40, 1326507024  ;;  %v2223_v9 = vand.u32 3, %v2222_v36 }
 0x237   :  { %v2301_v61 = vclz %v7173_v60  ;;  %v2319_v39 = vsub.s32 4, %v2295_v0  ;;  %v2376_v58 = vsel %vm2370_vm15, %v2373_v49, %v2375_v50  ;;  %v2380_v38 = vsel %vm2370_vm15, %v2377_v29, %v2379_v42  ;;  %v13699_v60 = vld [vmem:[#allocation12_spill] sm:$0xff] }
 0x238   :  { %v2383_v20 = vsel %vm2371_vm14, %v2365_v33, %v2382_v11  ;;  %v7180_v55 = vadd.s32 4294967169, %v2445_v1  ;;  %v10193_v52 = vmul.u32.u64.low %v10170_v10, %v2380_v38  ;;  %v10194_v31 = vmul.u32.u64.high %v10170_v10, %v2380_v38, %v10193_v52 }
 0x239   :  { %v7174_v53 = vadd.s32 4294967294, %v2301_v61  ;;  %v2384_v6 = vsel %vm2370_vm15, %v2381_v32, %v2383_v20  ;;  %vm2235_vm0 = vcmp.lt.s32.totalorder %v8588_v5, 0  ;;  %v2441_v14 = vand.u32 2147483647, %v13696_v30 }
 0x23a   :  { %v10199_v36 = vmul.u32.u64.low %v10170_v10, %v2384_v6  ;;  %v10200_v62 = vmul.u32.u64.high %v10170_v10, %v2384_v6, %v10199_v36  ;;  %vm2221_vm2 = vweird.f32 %v8584_v4  ;;  %v2289_v48 = vadd.s32 %v10140_v12, %v10137_v23 }
 0x23b   :  { %vm7175_vm3 = vcmp.lt.s32.totalorder %v7174_v53, 0  ;;  %v2320_v37 = vsel %vm2235_vm0, %v2319_v39, %v2295_v0  ;;  %v2451_v57 = vadd.s32 1, %v7180_v55  ;;  %vm2224_vm4 = vcmp.lt.s32.totalorder %v2223_v9, 2 }
 0x23c   :  { %vm10210_vm5 = vcmp.le.f32.partialorder %v2233_v17, 0.7853982  ;;  %v2304_v35 = vsel %vm7175_vm3, 0, %v7174_v53  ;;  %v2392_v63 = vmul.u32 %v10170_v10, %v2376_v58  ;;  %v2395_v23 = vadd.s32 1, %v10194_v31 }
 0x23d   :  { %v2305_v22 = vsub.s32 32, %v2304_v35  ;;  %v2306_v47 = vshll.u32 %v10179_v45, %v2304_v35  ;;  %v2309_v8 = vsub.s32 4294967266, %v2304_v35  ;;  %v2322_v12 = vsel %vm10210_vm5, 0, %v2320_v37 }
 0x23e   :  { %vm2394_vm6 = vc.u32 %v10200_v62, %v10193_v52  ;;  %v2448_v17 = vand.u32 8388607, %v2441_v14  ;;  %vm2452_vm7 = vcmp.gt.s32.totalorder %v2451_v57, 0  ;;  %vm2225_vm8 = vcmp.eq.s32.totalorder %v2223_v9, 0 }
 0x23f   :  { %v2307_v0 = vshrl.u32 %v2289_v48, %v2305_v22  ;;  %v2310_v41 = vadd.s32 127, %v2309_v8  ;;  %v2396_v10 = vsel %vm2394_vm6, %v2395_v23, %v10194_v31  ;;  %v2453_v15 = vsel %vm2452_vm7, %v2451_v57, 0 }
 0x240   :  { %vm2228_vm10 = vcmp.eq.s32.totalorder %v2223_v9, 2  ;;  %v2397_v54 = vadd.s32 %v2396_v10, %v2392_v63  ;;  %v2455_v26 = vand.u32 31, %v2453_v15  ;;  %v10224_v21 = vadd.s32 3, %v2322_v12 }
 0x241   :  { %v7691_v13 = vpop.eup %7690  ;;  %v2308_v25 = vor.u32 %v2307_v0, %v2306_v47  ;;  %v2311_v45 = vshll.u32 %v2310_v41, 23  ;;  %v2449_v33 = vor.u32 8388608, %v2448_v17  ;;  %v2545_v59 = vand.u32 2147483647, %v13699_v60 }
 0x242   :  { %v7693_v16 = vpop.eup %7692  ;;  %v2229_v2 = vxor.u32 2147483648, %v7691_v13  ;;  %v2398_v51 = vadd.s32 536870912, %v2397_v54  ;;  %v2456_v40 = vsub.s32 32, %v2455_v26  ;;  %v2454_v50 = vshrl.u32 %v2453_v15, 5 }
 0x243   :  { %v2226_v56 = vxor.u32 2147483648, %v7693_v16  ;;  %v2312_v1 = vor.u32 4788187, %v2311_v45  ;;  %v2315_v49 = vcvt.s32.f32 %v2308_v25  ;;  %v2548_v42 = vand.u32 2139095040, %v13699_v60 }
 0x244   :  { %v2230_v7 = vsel %vm2228_vm10, %v2229_v2, %v7693_v16  ;;  %v2399_v44 = vshrl.u32 %v2398_v51, 30  ;;  %v2458_v61 = vshll.u32 %v13654_v28, %v2455_v26  ;;  %v2461_v39 = vshll.u32 %v13648_v18, %v2455_v26 }
 0x245   :  { %v2227_v29 = vsel %vm2225_vm8, %v7691_v13, %v2226_v56  ;;  %v2313_v11 = vand.u32 2147483647, %v2312_v1  ;;  %v2459_v20 = vshrl.u32 %v13648_v18, %v2456_v40  ;;  %v2462_v55 = vshrl.u32 %v13649_v24, %v2456_v40 }
 0x246   :  { %v2231_v32 = vsel %vm2224_vm4, %v2227_v29, %v2230_v7  ;;  %v2400_v38 = vshll.u32 %v2399_v44, 30  ;;  %v2464_v6 = vshll.u32 %v13649_v24, %v2455_v26  ;;  %v2465_v31 = vshrl.u32 %v13650_v19, %v2456_v40 }
 0x247   :  { %v2232_v58 = vsel %vm2221_vm2, nan, %v2231_v32  ;;  %v2316_v53 = vmul.f32 %v2315_v49, %v2313_v11  ;;  %v2467_v9 = vshll.u32 %v13650_v19, %v2455_v26  ;;  %v2468_v48 = vshrl.u32 %v13651_v27, %v2456_v40 }
 0x248   :  { %7034 = vst [vmem:[#allocation5 + $0x88] sm:$0xff] %v2232_v58  ;;  %v10239_v36 = vsub.s32 %v2397_v54, %v2400_v38  ;;  %v2470_v4 = vshll.u32 %v13651_v27, %v2455_v26  ;;  %v10243_v37 = vshll.u32 %v2449_v33, 8  ;;  %v2393_v35 = vadd.s32 %v10193_v52, %v10200_v62 }
 0x249   :  { %v2317_v57 = vxor.u32 2147483648, %v2316_v53  ;;  %v2471_v63 = vshrl.u32 %v13652_v43, %v2456_v40  ;;  %v2549_v22 = vshrl.u32 %v2548_v42, 23  ;;  %vm2339_vm11 = vcmp.lt.s32.totalorder %v13693_v34, 0 }
 0x24a   :  { %v2403_v47 = vsub.s32 0, %v10239_v36  ;;  %v2457_v8 = vshrl.u32 %v13654_v28, %v2456_v40  ;;  %v2460_v23 = vor.u32 %v2459_v20, %v2458_v61  ;;  %v2463_v12 = vor.u32 %v2462_v55, %v2461_v39 }
 0x24b   :  { %v2318_v17 = vsel %vm2235_vm0, %v2317_v57, %v2316_v53  ;;  %v2466_v0 = vor.u32 %v2465_v31, %v2464_v6  ;;  %v2469_v41 = vor.u32 %v2468_v48, %v2467_v9  ;;  %vm2473_vm9 = vcmp.lt.s32.totalorder %v2454_v50, 1 }
 0x24c   :  { %v2321_v52 = vsel %vm10210_vm5, %v8588_v5, %v2318_v17  ;;  %v7177_v62 = vmin.u32 %v2403_v47, %v10239_v36  ;;  %v2472_v10 = vor.u32 %v2471_v63, %v2470_v4  ;;  %vm2476_vm13 = vcmp.lt.s32.totalorder %v2454_v50, 4 }
 0x24d   :  { %7694 = vcosq.f32 %v2321_v52  ;;  %vm2474_vm12 = vcmp.lt.s32.totalorder %v2454_v50, 2  ;;  %vm2475_vm14 = vcmp.lt.s32.totalorder %v2454_v50, 3  ;;  %v2478_v15 = vsel %vm2476_vm13, %v2466_v0, 2102212464 }
 0x24e   :  { %7696 = vsinq.f32 %v2321_v52  ;;  %v2405_v13 = vclz %v7177_v62  ;;  %v2477_v54 = vsel %vm2473_vm9, %v2457_v8, %v2460_v23  ;;  %v2481_v26 = vsel %vm2473_vm9, %v2460_v23, %v2463_v12 }
 0x24f   :  { %v2423_v16 = vsub.s32 4, %v2399_v44  ;;  %v2479_v2 = vsel %vm2475_vm14, %v2463_v12, %v2478_v15  ;;  %v2482_v25 = vsel %vm2476_vm13, %v2469_v41, 920167782  ;;  %v2485_v3 = vsel %vm2473_vm9, %v2463_v12, %v2466_v0 }
 0x250   :  { %v7178_v45 = vadd.s32 4294967294, %v2405_v13  ;;  %v2483_v56 = vsel %vm2475_vm14, %v2466_v0, %v2482_v25  ;;  %v2486_v51 = vsel %vm2476_vm13, %v2472_v10, 1326507024  ;;  %v2552_v33 = vand.u32 8388607, %v2545_v59 }
 0x251   :  { %v2480_v40 = vsel %vm2474_vm12, %v2477_v54, %v2479_v2  ;;  %v2484_v7 = vsel %vm2474_vm12, %v2481_v26, %v2483_v56  ;;  %v2487_v1 = vsel %vm2475_vm14, %v2469_v41, %v2486_v51  ;;  %v7184_v49 = vadd.s32 4294967169, %v2549_v22 }
 0x252   :  { %vm7179_vm15 = vcmp.lt.s32.totalorder %v7178_v45, 0  ;;  %v2488_v29 = vsel %vm2474_vm12, %v2485_v3, %v2487_v1  ;;  %v10269_v42 = vmul.u32.u64.low %v10243_v37, %v2484_v7  ;;  %v10270_v32 = vmul.u32.u64.high %v10243_v37, %v2484_v7, %v10269_v42 }
 0x253   :  { %v2408_v11 = vsel %vm7179_vm15, 0, %v7178_v45  ;;  %v2424_v61 = vsel %vm2339_vm11, %v2423_v16, %v2399_v44  ;;  %v10276_v39 = vmul.u32.u64.low %v10243_v37, %v2488_v29  ;;  %v10277_v58 = vmul.u32.u64.high %v10243_v37, %v2488_v29, %v10276_v39 }
 0x254   :  { %v2409_v38 = vsub.s32 32, %v2408_v11  ;;  %v2410_v20 = vshll.u32 %v10239_v36, %v2408_v11  ;;  %v2413_v55 = vsub.s32 4294967266, %v2408_v11  ;;  %v2555_v53 = vadd.s32 1, %v7184_v49 }
 0x255   :  { %v2327_v50 = vand.u32 3, %v10224_v21  ;;  %vm10283_vm1 = vcmp.le.f32.partialorder %v2337_v46, 0.7853982  ;;  %v2496_v31 = vmul.u32 %v10243_v37, %v2480_v40  ;;  %v2499_v48 = vadd.s32 1, %v10270_v32 }
 0x256   :  { %v2411_v44 = vshrl.u32 %v2393_v35, %v2409_v38  ;;  %v2414_v9 = vadd.s32 127, %v2413_v55  ;;  %vm2556_vm0 = vcmp.gt.s32.totalorder %v2555_v53, 0  ;;  %v2426_v36 = vsel %vm10283_vm1, 0, %v2424_v61 }
 0x257   :  { %vm2498_vm2 = vc.u32 %v10277_v58, %v10269_v42  ;;  %v2553_v21 = vor.u32 8388608, %v2552_v33  ;;  %v2557_v4 = vsel %vm2556_vm0, %v2555_v53, 0  ;;  %vm2325_vm3 = vweird.f32 %v8588_v5 }
 0x258   :  { %v2412_v57 = vor.u32 %v2411_v44, %v2410_v20  ;;  %v2415_v46 = vshll.u32 %v2414_v9, 23  ;;  %v2500_v63 = vsel %vm2498_vm2, %v2499_v48, %v10270_v32  ;;  %v10294_v22 = vshrl.u32 %v2557_v4, 5 }
 0x259   :  { %vm2328_vm4 = vcmp.lt.s32.totalorder %v2327_v50, 2  ;;  %v2501_v37 = vadd.s32 %v2500_v63, %v2496_v31  ;;  %v2559_v35 = vand.u32 31, %v2557_v4  ;;  %vm2329_vm5 = vcmp.eq.s32.totalorder %v2327_v50, 0 }
 0x25a   :  { %v7695_v47 = vpop.eup %7694  ;;  %vm2332_vm6 = vcmp.eq.s32.totalorder %v2327_v50, 2  ;;  %v2416_v8 = vor.u32 4788187, %v2415_v46  ;;  %v2419_v23 = vcvt.s32.f32 %v2412_v57  ;;  %v2430_v0 = vadd.s32 3, %v2426_v36  ;;  %v13704_v36 = vld [vmem:[#allocation13_spill] sm:$0xff] }
 0x25b   :  { %v7697_v12 = vpop.eup %7696  ;;  %v2333_v17 = vxor.u32 2147483648, %v7695_v47  ;;  %v2502_v41 = vadd.s32 536870912, %v2501_v37  ;;  %v2560_v52 = vsub.s32 32, %v2559_v35  ;;  %vm2577_vm7 = vcmp.lt.s32.totalorder %v10294_v22, 1 }
 0x25c   :  { %v2330_v62 = vxor.u32 2147483648, %v7697_v12  ;;  %v2417_v10 = vand.u32 2147483647, %v2416_v8  ;;  %v10298_v15 = vshll.u32 %v2553_v21, 8  ;;  %v2562_v26 = vshll.u32 %v13654_v28, %v2559_v35 }
 0x25d   :  { %v2334_v13 = vsel %vm2332_vm6, %v2333_v17, %v7697_v12  ;;  %v2503_v54 = vshrl.u32 %v2502_v41, 30  ;;  %v2563_v16 = vshrl.u32 %v13648_v18, %v2560_v52  ;;  %vm2443_vm8 = vcmp.lt.s32.totalorder %v13696_v30, 0 }
 0x25e   :  { %v2331_v2 = vsel %vm2329_vm5, %v7695_v47, %v2330_v62  ;;  %v2420_v25 = vmul.f32 %v2419_v23, %v2417_v10  ;;  %v2565_v3 = vshll.u32 %v13648_v18, %v2559_v35  ;;  %v2566_v45 = vshrl.u32 %v13649_v24, %v2560_v52 }
 0x25f   :  { %v2335_v56 = vsel %vm2328_vm4, %v2331_v2, %v2334_v13  ;;  %v2504_v51 = vshll.u32 %v2503_v54, 30  ;;  %v2568_v33 = vshll.u32 %v13649_v24, %v2559_v35  ;;  %v2569_v40 = vshrl.u32 %v13650_v19, %v2560_v52 }
 0x260   :  { %v2336_v7 = vsel %vm2325_vm3, nan, %v2335_v56  ;;  %v2421_v1 = vxor.u32 2147483648, %v2420_v25  ;;  %v2527_v49 = vsub.s32 4, %v2503_v54  ;;  %v2561_v29 = vshrl.u32 %v13654_v28, %v2560_v52 }
 0x261   :  { %v10312_v32 = vsub.s32 %v2501_v37, %v2504_v51  ;;  %v2564_v11 = vor.u32 %v2563_v16, %v2562_v26  ;;  %v2571_v61 = vshll.u32 %v13650_v19, %v2559_v35  ;;  %v2572_v39 = vshrl.u32 %v13651_v27, %v2560_v52  ;;  %7035 = vst [vmem:[#allocation5 + $0x90] sm:$0xff] %v2336_v7 }
 0x262   :  { %v2422_v38 = vsel %vm2339_vm11, %v2421_v1, %v2420_v25  ;;  %v2567_v20 = vor.u32 %v2566_v45, %v2565_v3  ;;  %v2574_v55 = vshll.u32 %v13651_v27, %v2559_v35  ;;  %v2575_v5 = vshrl.u32 %v13652_v43, %v2560_v52 }
 0x263   :  { %v2425_v53 = vsel %vm10283_vm1, %v13693_v34, %v2422_v38  ;;  %vm10325_vm10 = vcmp.le.f32.partialorder %v2441_v14, 0.7853982  ;;  %v2507_v31 = vsub.s32 0, %v10312_v32  ;;  %v2570_v44 = vor.u32 %v2569_v40, %v2568_v33 }
 0x264   :  { %v2573_v9 = vor.u32 %v2572_v39, %v2571_v61  ;;  %7698 = vcosq.f32 %v2425_v53  ;;  %v2576_v48 = vor.u32 %v2575_v5, %v2574_v55  ;;  %vm2580_vm11 = vcmp.lt.s32.totalorder %v10294_v22, 4 }
 0x265   :  { %v2652_v21 = vand.u32 2139095040, %v13704_v36  ;;  %7700 = vsinq.f32 %v2425_v53  ;;  %v7181_v6 = vmin.u32 %v2507_v31, %v10312_v32  ;;  %vm2578_vm9 = vcmp.lt.s32.totalorder %v10294_v22, 2 }
 0x266   :  { %vm2579_vm13 = vcmp.lt.s32.totalorder %v10294_v22, 3  ;;  %v2581_v14 = vsel %vm2577_vm7, %v2561_v29, %v2564_v11  ;;  %v2582_v4 = vsel %vm2580_vm11, %v2570_v44, 2102212464  ;;  %v2585_v57 = vsel %vm2577_vm7, %v2564_v11, %v2567_v20 }
 0x267   :  { %v2586_v46 = vsel %vm2580_vm11, %v2573_v9, 920167782  ;;  %v2431_v63 = vand.u32 3, %v2430_v0  ;;  %v2509_v37 = vclz %v7181_v6  ;;  %v2528_v35 = vsel %vm2443_vm8, %v2527_v49, %v2503_v54 }
 0x268   :  { %v2589_v47 = vsel %vm2577_vm7, %v2567_v20, %v2570_v44  ;;  %v2583_v8 = vsel %vm2579_vm13, %v2567_v20, %v2582_v4  ;;  %v2587_v23 = vsel %vm2579_vm13, %v2570_v44, %v2586_v46  ;;  %v2590_v12 = vsel %vm2580_vm11, %v2576_v48, 1326507024 }
 0x269   :  { %v2653_v17 = vshrl.u32 %v2652_v21, 23  ;;  %v7182_v41 = vadd.s32 4294967294, %v2509_v37  ;;  %v2584_v0 = vsel %vm2578_vm9, %v2581_v14, %v2583_v8  ;;  %v2588_v52 = vsel %vm2578_vm9, %v2585_v57, %v2587_v23 }
 0x26a   :  { %v2591_v62 = vsel %vm2579_vm13, %v2573_v9, %v2590_v12  ;;  %v2497_v10 = vadd.s32 %v10269_v42, %v10277_v58  ;;  %v10364_v54 = vmul.u32.u64.low %v10298_v15, %v2588_v52  ;;  %v10365_v26 = vmul.u32.u64.high %v10298_v15, %v2588_v52, %v10364_v54 }
 0x26b   :  { %v2592_v13 = vsel %vm2578_vm9, %v2589_v47, %v2591_v62  ;;  %vm7183_vm12 = vcmp.lt.s32.totalorder %v7182_v41, 0  ;;  %v7188_v25 = vadd.s32 4294967169, %v2653_v17  ;;  %v2530_v45 = vsel %vm10325_vm10, 0, %v2528_v35 }
 0x26c   :  { %v10369_v16 = vmul.u32.u64.low %v10298_v15, %v2592_v13  ;;  %v10370_v2 = vmul.u32.u64.high %v10298_v15, %v2592_v13, %v10369_v16  ;;  %v2512_v3 = vsel %vm7183_vm12, 0, %v7182_v41  ;;  %v2600_v42 = vmul.u32 %v10298_v15, %v2584_v0 }
 0x26d   :  { %v2649_v58 = vand.u32 2147483647, %v13704_v36  ;;  %v2513_v22 = vsub.s32 32, %v2512_v3  ;;  %v2514_v56 = vshll.u32 %v10312_v32, %v2512_v3  ;;  %v2517_v51 = vsub.s32 4294967266, %v2512_v3 }
 0x26e   :  { %v2659_v33 = vadd.s32 1, %v7188_v25  ;;  %vm2429_vm14 = vweird.f32 %v13693_v34  ;;  %v2603_v40 = vadd.s32 1, %v10365_v26  ;;  %vm2436_vm15 = vcmp.eq.s32.totalorder %v2431_v63, 2 }
 0x26f   :  { %v2515_v7 = vshrl.u32 %v2497_v10, %v2513_v22  ;;  %v2518_v1 = vadd.s32 127, %v2517_v51  ;;  %vm2602_vm1 = vc.u32 %v10370_v2, %v10364_v54  ;;  %v2534_v49 = vadd.s32 3, %v2530_v45 }
 0x270   :  { %v2604_v15 = vsel %vm2602_vm1, %v2603_v40, %v10365_v26  ;;  %v2656_v29 = vand.u32 8388607, %v2649_v58  ;;  %vm2660_vm0 = vcmp.gt.s32.totalorder %v2659_v33, 0  ;;  %vm2432_vm2 = vcmp.lt.s32.totalorder %v2431_v63, 2 }
 0x271   :  { %v7699_v32 = vpop.eup %7698  ;;  %v2516_v11 = vor.u32 %v2515_v7, %v2514_v56  ;;  %v2519_v61 = vshll.u32 %v2518_v1, 23  ;;  %v2605_v39 = vadd.s32 %v2604_v15, %v2600_v42  ;;  %v2661_v38 = vsel %vm2660_vm0, %v2659_v33, 0 }
 0x272   :  { %v7701_v20 = vpop.eup %7700  ;;  %vm2433_vm3 = vcmp.eq.s32.totalorder %v2431_v63, 0  ;;  %v2437_v55 = vxor.u32 2147483648, %v7699_v32  ;;  %v2663_v5 = vand.u32 31, %v2661_v38  ;;  %v10385_v21 = vand.u32 3, %v2534_v49  ;;  %v13705_v63 = vld [vmem:[#allocation14_spill] sm:$0xff] }
 0x273   :  { %v2434_v53 = vxor.u32 2147483648, %v7701_v20  ;;  %v2520_v31 = vor.u32 4788187, %v2519_v61  ;;  %v2523_v44 = vcvt.s32.f32 %v2516_v11  ;;  %v2606_v9 = vadd.s32 536870912, %v2605_v39 }
 0x274   :  { %v2438_v48 = vsel %vm2436_vm15, %v2437_v55, %v7701_v20  ;;  %v2657_v6 = vor.u32 8388608, %v2656_v29  ;;  %v2664_v14 = vsub.s32 32, %v2663_v5  ;;  %v2666_v37 = vshll.u32 %v13654_v28, %v2663_v5 }
 0x275   :  { %v2435_v4 = vsel %vm2433_vm3, %v7699_v32, %v2434_v53  ;;  %v2521_v57 = vand.u32 2147483647, %v2520_v31  ;;  %v2607_v46 = vshrl.u32 %v2606_v9, 30  ;;  %v2669_v8 = vshll.u32 %v13648_v18, %v2663_v5 }
 0x276   :  { %v2439_v35 = vsel %vm2432_vm2, %v2435_v4, %v2438_v48  ;;  %v2667_v47 = vshrl.u32 %v13648_v18, %v2664_v14  ;;  %v2672_v23 = vshll.u32 %v13649_v24, %v2663_v5  ;;  %v2670_v0 = vshrl.u32 %v13649_v24, %v2664_v14 }
 0x277   :  { %v2440_v12 = vsel %vm2429_vm14, nan, %v2439_v35  ;;  %v2524_v17 = vmul.f32 %v2523_v44, %v2521_v57  ;;  %v2608_v41 = vshll.u32 %v2607_v46, 30  ;;  %v2662_v52 = vshrl.u32 %v2661_v38, 5 }
 0x278   :  { %v2673_v62 = vshrl.u32 %v13650_v19, %v2664_v14  ;;  %v2675_v10 = vshll.u32 %v13650_v19, %v2663_v5  ;;  %v2753_v13 = vand.u32 2147483647, %v13705_v63  ;;  %7036 = vst [vmem:[#allocation5 + $0x98] sm:$0xff] %v2440_v12  ;;  %v2676_v25 = vshrl.u32 %v13651_v27, %v2664_v14 }
 0x279   :  { %v2525_v26 = vxor.u32 2147483648, %v2524_v17  ;;  %v10398_v16 = vsub.s32 %v2605_v39, %v2608_v41  ;;  %v2756_v34 = vand.u32 2139095040, %v13705_v63  ;;  %vm2547_vm4 = vcmp.lt.s32.totalorder %v13699_v60, 0 }
 0x27a   :  { %v2665_v3 = vshrl.u32 %v13654_v28, %v2664_v14  ;;  %v2668_v45 = vor.u32 %v2667_v47, %v2666_v37  ;;  %v2678_v42 = vshll.u32 %v13651_v27, %v2663_v5  ;;  %v2679_v22 = vshrl.u32 %v13652_v43, %v2664_v14 }
 0x27b   :  { %v2526_v56 = vsel %vm2443_vm8, %v2525_v26, %v2524_v17  ;;  %v2611_v51 = vsub.s32 0, %v10398_v16  ;;  %v2671_v33 = vor.u32 %v2670_v0, %v2669_v8  ;;  %v2674_v40 = vor.u32 %v2673_v62, %v2672_v23 }
 0x27c   :  { %v2529_v7 = vsel %vm10325_vm10, %v13696_v30, %v2526_v56  ;;  %v2677_v1 = vor.u32 %v2676_v25, %v2675_v10  ;;  %v2680_v49 = vor.u32 %v2679_v22, %v2678_v42  ;;  %vm2681_vm5 = vcmp.lt.s32.totalorder %v2662_v52, 1 }
 0x27d   :  { %7702 = vcosq.f32 %v2529_v7  ;;  %vm10414_vm6 = vcmp.le.f32.partialorder %v2545_v59, 0.7853982  ;;  %v7185_v29 = vmin.u32 %v2611_v51, %v10398_v16  ;;  %v2697_v32 = vshll.u32 %v2657_v6, 8 }
 0x27e   :  { %v2757_v11 = vshrl.u32 %v2756_v34, 23  ;;  %7704 = vsinq.f32 %v2529_v7  ;;  %v2631_v61 = vsub.s32 4, %v2607_v46  ;;  %vm2683_vm7 = vcmp.lt.s32.totalorder %v2662_v52, 3 }
 0x27f   :  { %vm2684_vm8 = vcmp.lt.s32.totalorder %v2662_v52, 4  ;;  %v2613_v50 = vclz %v7185_v29  ;;  %vm2682_vm10 = vcmp.lt.s32.totalorder %v2662_v52, 2  ;;  %v2685_v39 = vsel %vm2681_vm5, %v2665_v3, %v2668_v45 }
 0x280   :  { %v2689_v38 = vsel %vm2681_vm5, %v2668_v45, %v2671_v33  ;;  %v2686_v20 = vsel %vm2684_vm8, %v2674_v40, 2102212464  ;;  %v2690_v55 = vsel %vm2684_vm8, %v2677_v1, 920167782  ;;  %v2693_v59 = vsel %vm2681_vm5, %v2671_v33, %v2674_v40 }
 0x281   :  { %v2694_v5 = vsel %vm2684_vm8, %v2680_v49, 1326507024  ;;  %v7186_v53 = vadd.s32 4294967294, %v2613_v50  ;;  %v2687_v31 = vsel %vm2683_vm7, %v2671_v33, %v2686_v20  ;;  %v2691_v44 = vsel %vm2683_vm7, %v2674_v40, %v2690_v55 }
 0x282   :  { %v2695_v9 = vsel %vm2683_vm7, %v2677_v1, %v2694_v5  ;;  %v2601_v48 = vadd.s32 %v10364_v54, %v10370_v2  ;;  %v2692_v6 = vsel %vm2682_vm10, %v2689_v38, %v2691_v44  ;;  %v7192_v4 = vadd.s32 4294967169, %v2757_v11 }
 0x283   :  { %v2696_v14 = vsel %vm2682_vm10, %v2693_v59, %v2695_v9  ;;  %vm7187_vm11 = vcmp.lt.s32.totalorder %v7186_v53, 0  ;;  %v2632_v57 = vsel %vm2547_vm4, %v2631_v61, %v2607_v46  ;;  %v2688_v8 = vsel %vm2682_vm10, %v2685_v39, %v2687_v31 }
 0x284   :  { %v10428_v37 = vmul.u32.u64.low %v2697_v32, %v2696_v14  ;;  %v10429_v35 = vmul.u32.u64.high %v2697_v32, %v2696_v14, %v10428_v37  ;;  %v2616_v47 = vsel %vm7187_vm11, 0, %v7186_v53  ;;  %v2763_v41 = vadd.s32 1, %v7192_v4 }
 0x285   :  { %v10432_v23 = vmul.u32.u64.low %v2697_v32, %v2692_v6  ;;  %v10433_v12 = vmul.u32.u64.high %v2697_v32, %v2692_v6, %v10432_v23  ;;  %v2617_v54 = vsub.s32 32, %v2616_v47  ;;  %v2618_v2 = vshll.u32 %v10398_v16, %v2616_v47 }
 0x286   :  { %v2621_v17 = vsub.s32 4294967266, %v2616_v47  ;;  %vm2533_vm9 = vweird.f32 %v13696_v30  ;;  %v2634_v46 = vsel %vm10414_vm6, 0, %v2632_v57  ;;  %v2704_v10 = vmul.u32 %v2697_v32, %v2688_v8  ;;  %v13708_v47 = vld [vmem:[#allocation15_spill] sm:$0xff] }
 0x287   :  { %v2619_v0 = vshrl.u32 %v2601_v48, %v2617_v54  ;;  %vm2706_vm13 = vc.u32 %v10429_v35, %v10432_v23  ;;  %vm2536_vm12 = vcmp.lt.s32.totalorder %v10385_v21, 2  ;;  %v2707_v52 = vadd.s32 1, %v10433_v12 }
 0x288   :  { %v2622_v62 = vadd.s32 127, %v2621_v17  ;;  %v2760_v26 = vand.u32 8388607, %v2753_v13  ;;  %vm2764_vm14 = vcmp.gt.s32.totalorder %v2763_v41, 0  ;;  %vm2537_vm15 = vcmp.eq.s32.totalorder %v10385_v21, 0 }
 0x289   :  { %v2620_v16 = vor.u32 %v2619_v0, %v2618_v2  ;;  %v2765_v34 = vsel %vm2764_vm14, %v2763_v41, 0  ;;  %vm2540_vm1 = vcmp.eq.s32.totalorder %v10385_v21, 2  ;;  %v2638_v45 = vadd.s32 3, %v2634_v46 }
 0x28a   :  { %v2623_v25 = vshll.u32 %v2622_v62, 23  ;;  %v7703_v3 = vpop.eup %7702  ;;  %v2708_v42 = vsel %vm2706_vm13, %v2707_v52, %v10433_v12  ;;  %v2767_v22 = vand.u32 31, %v2765_v34  ;;  %v2761_v49 = vor.u32 8388608, %v2760_v26 }
 0x28b   :  { %v7705_v56 = vpop.eup %7704  ;;  %v2541_v51 = vxor.u32 2147483648, %v7703_v3  ;;  %v2627_v40 = vcvt.s32.f32 %v2620_v16  ;;  %v2709_v7 = vadd.s32 %v2708_v42, %v2704_v10  ;;  %v2766_v48 = vshrl.u32 %v2765_v34, 5 }
 0x28c   :  { %v2624_v33 = vor.u32 4788187, %v2623_v25  ;;  %v2538_v1 = vxor.u32 2147483648, %v7705_v56  ;;  %v2768_v29 = vsub.s32 32, %v2767_v22  ;;  %v2770_v32 = vshll.u32 %v13654_v28, %v2767_v22 }
 0x28d   :  { %v2542_v11 = vsel %vm2540_vm1, %v2541_v51, %v7705_v56  ;;  %v2710_v50 = vadd.s32 536870912, %v2709_v7  ;;  %v2773_v39 = vshll.u32 %v13648_v18, %v2767_v22  ;;  %v2776_v59 = vshll.u32 %v13649_v24, %v2767_v22 }
 0x28e   :  { %v2625_v61 = vand.u32 2147483647, %v2624_v33  ;;  %v2539_v38 = vsel %vm2537_vm15, %v7703_v3, %v2538_v1  ;;  %v2771_v20 = vshrl.u32 %v13648_v18, %v2768_v29  ;;  %v2774_v55 = vshrl.u32 %v13649_v24, %v2768_v29 }
 0x28f   :  { %v2543_v5 = vsel %vm2536_vm12, %v2539_v38, %v2542_v11  ;;  %v2711_v31 = vshrl.u32 %v2710_v50, 30  ;;  %v2777_v44 = vshrl.u32 %v13650_v19, %v2768_v29  ;;  %v2779_v6 = vshll.u32 %v13650_v19, %v2767_v22 }
 0x290   :  { %v2628_v53 = vmul.f32 %v2627_v40, %v2625_v61  ;;  %v2544_v9 = vsel %vm2533_vm9, nan, %v2543_v5  ;;  %v10462_v14 = vshll.u32 %v2761_v49, 8  ;;  %v2769_v37 = vshrl.u32 %v13654_v28, %v2768_v29 }
 0x291   :  { %v2712_v57 = vshll.u32 %v2711_v31, 30  ;;  %v2860_v8 = vand.u32 2139095040, %v13708_v47  ;;  %7037 = vst [vmem:[#allocation5 + $0xa0] sm:$0xff] %v2544_v9  ;;  %v2772_v21 = vor.u32 %v2771_v20, %v2770_v32  ;;  %v2780_v12 = vshrl.u32 %v13651_v27, %v2768_v29 }
 0x292   :  { %v2629_v4 = vxor.u32 2147483648, %v2628_v53  ;;  %v2782_v54 = vshll.u32 %v13651_v27, %v2767_v22  ;;  %v2783_v30 = vshrl.u32 %v13652_v43, %v2768_v29  ;;  %v2775_v41 = vor.u32 %v2774_v55, %v2773_v39 }
 0x293   :  { %v10471_v17 = vsub.s32 %v2709_v7, %v2712_v57  ;;  %v2778_v46 = vor.u32 %v2777_v44, %v2776_v59  ;;  %v2781_v62 = vor.u32 %v2780_v12, %v2779_v6  ;;  %vm2785_vm0 = vcmp.lt.s32.totalorder %v2766_v48, 1 }
 0x294   :  { %v2630_v2 = vsel %vm2547_vm4, %v2629_v4, %v2628_v53  ;;  %v2784_v10 = vor.u32 %v2783_v30, %v2782_v54  ;;  %vm2787_vm2 = vcmp.lt.s32.totalorder %v2766_v48, 3  ;;  %v2861_v26 = vshrl.u32 %v2860_v8, 23 }
 0x295   :  { %v2633_v0 = vsel %vm10414_vm6, %v13699_v60, %v2630_v2  ;;  %v2715_v52 = vsub.s32 0, %v10471_v17  ;;  %vm2786_vm3 = vcmp.lt.s32.totalorder %v2766_v48, 2  ;;  %vm2788_vm5 = vcmp.lt.s32.totalorder %v2766_v48, 4 }
 0x296   :  { %7706 = vcosq.f32 %v2633_v0  ;;  %v2789_v16 = vsel %vm2785_vm0, %v2769_v37, %v2772_v21  ;;  %v2790_v34 = vsel %vm2788_vm5, %v2778_v46, 2102212464  ;;  %v2793_v3 = vsel %vm2785_vm0, %v2772_v21, %v2775_v41 }
 0x297   :  { %7708 = vsinq.f32 %v2633_v0  ;;  %v7189_v25 = vmin.u32 %v2715_v52, %v10471_v17  ;;  %v2794_v42 = vsel %vm2788_vm5, %v2781_v62, 920167782  ;;  %v2791_v15 = vsel %vm2787_vm2, %v2775_v41, %v2790_v34 }
 0x298   :  { %v2795_v22 = vsel %vm2787_vm2, %v2778_v46, %v2794_v42  ;;  %v2797_v56 = vsel %vm2785_vm0, %v2775_v41, %v2778_v46  ;;  %v2798_v51 = vsel %vm2788_vm5, %v2784_v10, 1326507024  ;;  %v2639_v33 = vand.u32 3, %v2638_v45 }
 0x299   :  { %v2717_v40 = vclz %v7189_v25  ;;  %v2735_v7 = vsub.s32 4, %v2711_v31  ;;  %v2792_v1 = vsel %vm2786_vm3, %v2789_v16, %v2791_v15  ;;  %v2796_v49 = vsel %vm2786_vm3, %v2793_v3, %v2795_v22  ;;  %v13711_v25 = vld [vmem:[#allocation16_spill] sm:$0xff] }
 0x29a   :  { %v2799_v29 = vsel %vm2787_vm2, %v2781_v62, %v2798_v51  ;;  %v7196_v32 = vadd.s32 4294967169, %v2861_v26  ;;  %v10485_v50 = vmul.u32.u64.low %v10462_v14, %v2796_v49  ;;  %v10486_v39 = vmul.u32.u64.high %v10462_v14, %v2796_v49, %v10485_v50 }
 0x29b   :  { %v7190_v11 = vadd.s32 4294967294, %v2717_v40  ;;  %v2800_v61 = vsel %vm2786_vm3, %v2797_v56, %v2799_v29  ;;  %vm2651_vm4 = vcmp.lt.s32.totalorder %v13704_v36, 0  ;;  %v2857_v20 = vand.u32 2147483647, %v13708_v47 }
 0x29c   :  { %v10491_v45 = vmul.u32.u64.low %v10462_v14, %v2800_v61  ;;  %v10492_v38 = vmul.u32.u64.high %v10462_v14, %v2800_v61, %v10491_v45  ;;  %vm2637_vm6 = vweird.f32 %v13699_v60  ;;  %v2705_v55 = vadd.s32 %v10432_v23, %v10429_v35 }
 0x29d   :  { %vm7191_vm7 = vcmp.lt.s32.totalorder %v7190_v11, 0  ;;  %v2736_v59 = vsel %vm2651_vm4, %v2735_v7, %v2711_v31  ;;  %v2867_v5 = vadd.s32 1, %v7196_v32  ;;  %vm2640_vm8 = vcmp.lt.s32.totalorder %v2639_v33, 2 }
 0x29e   :  { %vm10502_vm10 = vcmp.le.f32.partialorder %v2649_v58, 0.7853982  ;;  %v2720_v44 = vsel %vm7191_vm7, 0, %v7190_v11  ;;  %v2808_v9 = vmul.u32 %v10462_v14, %v2792_v1  ;;  %v2811_v35 = vadd.s32 1, %v10486_v39 }
 0x29f   :  { %v2721_v48 = vsub.s32 32, %v2720_v44  ;;  %v2722_v6 = vshll.u32 %v10471_v17, %v2720_v44  ;;  %v2725_v4 = vsub.s32 4294967266, %v2720_v44  ;;  %v2738_v23 = vsel %vm10502_vm10, 0, %v2736_v59 }
 0x2a0   :  { %vm2810_vm11 = vc.u32 %v10492_v38, %v10485_v50  ;;  %v2864_v58 = vand.u32 8388607, %v2857_v20  ;;  %vm2868_vm9 = vcmp.gt.s32.totalorder %v2867_v5, 0  ;;  %vm2641_vm13 = vcmp.eq.s32.totalorder %v2639_v33, 0 }
 0x2a1   :  { %v2723_v31 = vshrl.u32 %v2705_v55, %v2721_v48  ;;  %v2726_v57 = vadd.s32 127, %v2725_v4  ;;  %v2812_v14 = vsel %vm2810_vm11, %v2811_v35, %v10486_v39  ;;  %v2869_v37 = vsel %vm2868_vm9, %v2867_v5, 0 }
 0x2a2   :  { %vm2644_vm12 = vcmp.eq.s32.totalorder %v2639_v33, 2  ;;  %v2813_v21 = vadd.s32 %v2812_v14, %v2808_v9  ;;  %v2871_v12 = vand.u32 31, %v2869_v37  ;;  %v10516_v41 = vadd.s32 3, %v2738_v23 }
 0x2a3   :  { %v7707_v8 = vpop.eup %7706  ;;  %v2724_v2 = vor.u32 %v2723_v31, %v2722_v6  ;;  %v2727_v17 = vshll.u32 %v2726_v57, 23  ;;  %v2865_v62 = vor.u32 8388608, %v2864_v58  ;;  %v2961_v34 = vand.u32 2147483647, %v13711_v25 }
 0x2a4   :  { %v7709_v54 = vpop.eup %7708  ;;  %v2645_v30 = vxor.u32 2147483648, %v7707_v8  ;;  %v2814_v0 = vadd.s32 536870912, %v2813_v21  ;;  %v2872_v10 = vsub.s32 32, %v2871_v12  ;;  %v2870_v15 = vshrl.u32 %v2869_v37, 5 }
 0x2a5   :  { %v2642_v46 = vxor.u32 2147483648, %v7709_v54  ;;  %v2728_v26 = vor.u32 4788187, %v2727_v17  ;;  %v2731_v16 = vcvt.s32.f32 %v2724_v2  ;;  %v2964_v22 = vand.u32 2139095040, %v13711_v25 }
 0x2a6   :  { %v2646_v52 = vsel %vm2644_vm12, %v2645_v30, %v7709_v54  ;;  %v2815_v42 = vshrl.u32 %v2814_v0, 30  ;;  %v2874_v40 = vshll.u32 %v13654_v28, %v2871_v12  ;;  %v2877_v7 = vshll.u32 %v13648_v18, %v2871_v12 }
 0x2a7   :  { %v2643_v3 = vsel %vm2641_vm13, %v7707_v8, %v2642_v46  ;;  %v2729_v51 = vand.u32 2147483647, %v2728_v26  ;;  %v2875_v29 = vshrl.u32 %v13648_v18, %v2872_v10  ;;  %v2878_v32 = vshrl.u32 %v13649_v24, %v2872_v10 }
 0x2a8   :  { %v2647_v56 = vsel %vm2640_vm8, %v2643_v3, %v2646_v52  ;;  %v2816_v49 = vshll.u32 %v2815_v42, 30  ;;  %v2880_v61 = vshll.u32 %v13649_v24, %v2871_v12  ;;  %v2881_v39 = vshrl.u32 %v13650_v19, %v2872_v10 }
 0x2a9   :  { %v2648_v1 = vsel %vm2637_vm6, nan, %v2647_v56  ;;  %v2732_v11 = vmul.f32 %v2731_v16, %v2729_v51  ;;  %v2883_v33 = vshll.u32 %v13650_v19, %v2871_v12  ;;  %v2884_v55 = vshrl.u32 %v13651_v27, %v2872_v10 }
 0x2aa   :  { %7038 = vst [vmem:[#allocation5 + $0xa8] sm:$0xff] %v2648_v1  ;;  %v10531_v45 = vsub.s32 %v2813_v21, %v2816_v49  ;;  %v2886_v60 = vshll.u32 %v13651_v27, %v2871_v12  ;;  %v10535_v59 = vshll.u32 %v2865_v62, 8  ;;  %v2809_v44 = vadd.s32 %v10485_v50, %v10492_v38 }
 0x2ab   :  { %v2733_v5 = vxor.u32 2147483648, %v2732_v11  ;;  %v2887_v9 = vshrl.u32 %v13652_v43, %v2872_v10  ;;  %v2965_v48 = vshrl.u32 %v2964_v22, 23  ;;  %vm2755_vm14 = vcmp.lt.s32.totalorder %v13705_v63, 0 }
 0x2ac   :  { %v2819_v6 = vsub.s32 0, %v10531_v45  ;;  %v2873_v4 = vshrl.u32 %v13654_v28, %v2872_v10  ;;  %v2876_v35 = vor.u32 %v2875_v29, %v2874_v40  ;;  %v2879_v23 = vor.u32 %v2878_v32, %v2877_v7 }
 0x2ad   :  { %v2734_v58 = vsel %vm2651_vm4, %v2733_v5, %v2732_v11  ;;  %v2882_v31 = vor.u32 %v2881_v39, %v2880_v61  ;;  %v2885_v57 = vor.u32 %v2884_v55, %v2883_v33  ;;  %vm2889_vm15 = vcmp.lt.s32.totalorder %v2870_v15, 1 }
 0x2ae   :  { %v2737_v50 = vsel %vm10502_vm10, %v13704_v36, %v2734_v58  ;;  %v7193_v38 = vmin.u32 %v2819_v6, %v10531_v45  ;;  %v2888_v14 = vor.u32 %v2887_v9, %v2886_v60  ;;  %vm2892_vm1 = vcmp.lt.s32.totalorder %v2870_v15, 4 }
 0x2af   :  { %7710 = vcosq.f32 %v2737_v50  ;;  %vm2890_vm0 = vcmp.lt.s32.totalorder %v2870_v15, 2  ;;  %vm2891_vm2 = vcmp.lt.s32.totalorder %v2870_v15, 3  ;;  %v2894_v37 = vsel %vm2892_vm1, %v2882_v31, 2102212464 }
 0x2b0   :  { %7712 = vsinq.f32 %v2737_v50  ;;  %v2821_v8 = vclz %v7193_v38  ;;  %v2893_v21 = vsel %vm2889_vm15, %v2873_v4, %v2876_v35  ;;  %v2897_v12 = vsel %vm2889_vm15, %v2876_v35, %v2879_v23 }
 0x2b1   :  { %v2839_v54 = vsub.s32 4, %v2815_v42  ;;  %v2895_v30 = vsel %vm2891_vm2, %v2879_v23, %v2894_v37  ;;  %v2898_v2 = vsel %vm2892_vm1, %v2885_v57, 920167782  ;;  %v2901_v53 = vsel %vm2889_vm15, %v2879_v23, %v2882_v31 }
 0x2b2   :  { %v7194_v17 = vadd.s32 4294967294, %v2821_v8  ;;  %v2899_v46 = vsel %vm2891_vm2, %v2882_v31, %v2898_v2  ;;  %v2902_v0 = vsel %vm2892_vm1, %v2888_v14, 1326507024  ;;  %v2968_v62 = vand.u32 8388607, %v2961_v34 }
 0x2b3   :  { %v2896_v10 = vsel %vm2890_vm0, %v2893_v21, %v2895_v30  ;;  %v2900_v52 = vsel %vm2890_vm0, %v2897_v12, %v2899_v46  ;;  %v2903_v26 = vsel %vm2891_vm2, %v2885_v57, %v2902_v0  ;;  %v7200_v16 = vadd.s32 4294967169, %v2965_v48 }
 0x2b4   :  { %vm7195_vm3 = vcmp.lt.s32.totalorder %v7194_v17, 0  ;;  %v2904_v3 = vsel %vm2890_vm0, %v2901_v53, %v2903_v26  ;;  %v10561_v22 = vmul.u32.u64.low %v10535_v59, %v2900_v52  ;;  %v10562_v56 = vmul.u32.u64.high %v10535_v59, %v2900_v52, %v10561_v22 }
 0x2b5   :  { %v2824_v51 = vsel %vm7195_vm3, 0, %v7194_v17  ;;  %v2840_v40 = vsel %vm2755_vm14, %v2839_v54, %v2815_v42  ;;  %v10568_v7 = vmul.u32.u64.low %v10535_v59, %v2904_v3  ;;  %v10569_v1 = vmul.u32.u64.high %v10535_v59, %v2904_v3, %v10568_v7 }
 0x2b6   :  { %v2825_v49 = vsub.s32 32, %v2824_v51  ;;  %v2826_v29 = vshll.u32 %v10531_v45, %v2824_v51  ;;  %v2829_v32 = vsub.s32 4294967266, %v2824_v51  ;;  %v2971_v11 = vadd.s32 1, %v7200_v16 }
 0x2b7   :  { %v2743_v15 = vand.u32 3, %v10516_v41  ;;  %vm10575_vm5 = vcmp.le.f32.partialorder %v2753_v13, 0.7853982  ;;  %v2912_v39 = vmul.u32 %v10535_v59, %v2896_v10  ;;  %v2915_v55 = vadd.s32 1, %v10562_v56 }
 0x2b8   :  { %v2827_v42 = vshrl.u32 %v2809_v44, %v2825_v49  ;;  %v2830_v33 = vadd.s32 127, %v2829_v32  ;;  %vm2972_vm4 = vcmp.gt.s32.totalorder %v2971_v11, 0  ;;  %v2842_v45 = vsel %vm10575_vm5, 0, %v2840_v40 }
 0x2b9   :  { %vm2914_vm6 = vc.u32 %v10569_v1, %v10561_v22  ;;  %v2969_v41 = vor.u32 8388608, %v2968_v62  ;;  %v2973_v60 = vsel %vm2972_vm4, %v2971_v11, 0  ;;  %vm2741_vm7 = vweird.f32 %v13704_v36 }
 0x2ba   :  { %v2828_v5 = vor.u32 %v2827_v42, %v2826_v29  ;;  %v2831_v13 = vshll.u32 %v2830_v33, 23  ;;  %v2916_v9 = vsel %vm2914_vm6, %v2915_v55, %v10562_v56  ;;  %v10586_v48 = vshrl.u32 %v2973_v60, 5 }
 0x2bb   :  { %vm2744_vm8 = vcmp.lt.s32.totalorder %v2743_v15, 2  ;;  %v2917_v59 = vadd.s32 %v2916_v9, %v2912_v39  ;;  %v2975_v44 = vand.u32 31, %v2973_v60  ;;  %vm2745_vm10 = vcmp.eq.s32.totalorder %v2743_v15, 0 }
 0x2bc   :  { %v7711_v6 = vpop.eup %7710  ;;  %vm2748_vm11 = vcmp.eq.s32.totalorder %v2743_v15, 2  ;;  %v2832_v4 = vor.u32 4788187, %v2831_v13  ;;  %v2835_v35 = vcvt.s32.f32 %v2828_v5  ;;  %v2846_v31 = vadd.s32 3, %v2842_v45  ;;  %v13716_v45 = vld [vmem:[#allocation17_spill] sm:$0xff] }
 0x2bd   :  { %v7713_v23 = vpop.eup %7712  ;;  %v2749_v58 = vxor.u32 2147483648, %v7711_v6  ;;  %v2918_v57 = vadd.s32 536870912, %v2917_v59  ;;  %v2976_v50 = vsub.s32 32, %v2975_v44  ;;  %vm2993_vm9 = vcmp.lt.s32.totalorder %v10586_v48, 1 }
 0x2be   :  { %v2746_v38 = vxor.u32 2147483648, %v7713_v23  ;;  %v2833_v14 = vand.u32 2147483647, %v2832_v4  ;;  %v10590_v37 = vshll.u32 %v2969_v41, 8  ;;  %v2978_v12 = vshll.u32 %v13654_v28, %v2975_v44 }
 0x2bf   :  { %v2750_v8 = vsel %vm2748_vm11, %v2749_v58, %v7713_v23  ;;  %v2919_v21 = vshrl.u32 %v2918_v57, 30  ;;  %v2979_v54 = vshrl.u32 %v13648_v18, %v2976_v50  ;;  %vm2859_vm13 = vcmp.lt.s32.totalorder %v13708_v47, 0 }
 0x2c0   :  { %v2747_v30 = vsel %vm2745_vm10, %v7711_v6, %v2746_v38  ;;  %v2836_v2 = vmul.f32 %v2835_v35, %v2833_v14  ;;  %v2981_v53 = vshll.u32 %v13648_v18, %v2975_v44  ;;  %v2982_v17 = vshrl.u32 %v13649_v24, %v2976_v50 }
 0x2c1   :  { %v2751_v46 = vsel %vm2744_vm8, %v2747_v30, %v2750_v8  ;;  %v2920_v0 = vshll.u32 %v2919_v21, 30  ;;  %v2984_v62 = vshll.u32 %v13649_v24, %v2975_v44  ;;  %v2985_v10 = vshrl.u32 %v13650_v19, %v2976_v50 }
 0x2c2   :  { %v2752_v52 = vsel %vm2741_vm7, nan, %v2751_v46  ;;  %v2837_v26 = vxor.u32 2147483648, %v2836_v2  ;;  %v2943_v16 = vsub.s32 4, %v2919_v21  ;;  %v2977_v3 = vshrl.u32 %v13654_v28, %v2976_v50 }
 0x2c3   :  { %v10604_v56 = vsub.s32 %v2917_v59, %v2920_v0  ;;  %v2980_v51 = vor.u32 %v2979_v54, %v2978_v12  ;;  %v2987_v40 = vshll.u32 %v13650_v19, %v2975_v44  ;;  %v2988_v7 = vshrl.u32 %v13651_v27, %v2976_v50  ;;  %7039 = vst [vmem:[#allocation5 + $0xb0] sm:$0xff] %v2752_v52 }
 0x2c4   :  { %v2838_v49 = vsel %vm2755_vm14, %v2837_v26, %v2836_v2  ;;  %v2983_v29 = vor.u32 %v2982_v17, %v2981_v53  ;;  %v2990_v32 = vshll.u32 %v13651_v27, %v2975_v44  ;;  %v2991_v36 = vshrl.u32 %v13652_v43, %v2976_v50 }
 0x2c5   :  { %v2841_v11 = vsel %vm10575_vm5, %v13705_v63, %v2838_v49  ;;  %vm10617_vm12 = vcmp.le.f32.partialorder %v2857_v20, 0.7853982  ;;  %v2923_v39 = vsub.s32 0, %v10604_v56  ;;  %v2986_v42 = vor.u32 %v2985_v10, %v2984_v62 }
 0x2c6   :  { %v2989_v33 = vor.u32 %v2988_v7, %v2987_v40  ;;  %7714 = vcosq.f32 %v2841_v11  ;;  %v2992_v55 = vor.u32 %v2991_v36, %v2990_v32  ;;  %vm2996_vm14 = vcmp.lt.s32.totalorder %v10586_v48, 4 }
 0x2c7   :  { %v3068_v41 = vand.u32 2139095040, %v13716_v45  ;;  %7716 = vsinq.f32 %v2841_v11  ;;  %v7197_v61 = vmin.u32 %v2923_v39, %v10604_v56  ;;  %vm2994_vm15 = vcmp.lt.s32.totalorder %v10586_v48, 2 }
 0x2c8   :  { %vm2995_vm1 = vcmp.lt.s32.totalorder %v10586_v48, 3  ;;  %v2997_v20 = vsel %vm2993_vm9, %v2977_v3, %v2980_v51  ;;  %v2998_v60 = vsel %vm2996_vm14, %v2986_v42, 2102212464  ;;  %v3001_v5 = vsel %vm2993_vm9, %v2980_v51, %v2983_v29 }
 0x2c9   :  { %v3002_v13 = vsel %vm2996_vm14, %v2989_v33, 920167782  ;;  %v2847_v9 = vand.u32 3, %v2846_v31  ;;  %v2925_v59 = vclz %v7197_v61  ;;  %v2944_v44 = vsel %vm2859_vm13, %v2943_v16, %v2919_v21 }
 0x2ca   :  { %v3005_v6 = vsel %vm2993_vm9, %v2983_v29, %v2986_v42  ;;  %v2999_v4 = vsel %vm2995_vm1, %v2983_v29, %v2998_v60  ;;  %v3003_v35 = vsel %vm2995_vm1, %v2986_v42, %v3002_v13  ;;  %v3006_v23 = vsel %vm2996_vm14, %v2992_v55, 1326507024 }
 0x2cb   :  { %v3069_v58 = vshrl.u32 %v3068_v41, 23  ;;  %v7198_v57 = vadd.s32 4294967294, %v2925_v59  ;;  %v3000_v31 = vsel %vm2994_vm15, %v2997_v20, %v2999_v4  ;;  %v3004_v50 = vsel %vm2994_vm15, %v3001_v5, %v3003_v35 }
 0x2cc   :  { %v3007_v38 = vsel %vm2995_vm1, %v2989_v33, %v3006_v23  ;;  %v2913_v14 = vadd.s32 %v10561_v22, %v10569_v1  ;;  %v10656_v21 = vmul.u32.u64.low %v10590_v37, %v3004_v50  ;;  %v10657_v12 = vmul.u32.u64.high %v10590_v37, %v3004_v50, %v10656_v21 }
 0x2cd   :  { %v3008_v8 = vsel %vm2994_vm15, %v3005_v6, %v3007_v38  ;;  %vm7199_vm0 = vcmp.lt.s32.totalorder %v7198_v57, 0  ;;  %v7204_v2 = vadd.s32 4294967169, %v3069_v58  ;;  %v2946_v17 = vsel %vm10617_vm12, 0, %v2944_v44 }
 0x2ce   :  { %v10661_v54 = vmul.u32.u64.low %v10590_v37, %v3008_v8  ;;  %v10662_v30 = vmul.u32.u64.high %v10590_v37, %v3008_v8, %v10661_v54  ;;  %v2928_v53 = vsel %vm7199_vm0, 0, %v7198_v57  ;;  %v3016_v22 = vmul.u32 %v10590_v37, %v3000_v31 }
 0x2cf   :  { %v3065_v1 = vand.u32 2147483647, %v13716_v45  ;;  %v2929_v48 = vsub.s32 32, %v2928_v53  ;;  %v2930_v46 = vshll.u32 %v10604_v56, %v2928_v53  ;;  %v2933_v0 = vsub.s32 4294967266, %v2928_v53 }
 0x2d0   :  { %v3075_v62 = vadd.s32 1, %v7204_v2  ;;  %vm2845_vm2 = vweird.f32 %v13705_v63  ;;  %v3019_v10 = vadd.s32 1, %v10657_v12  ;;  %vm2852_vm3 = vcmp.eq.s32.totalorder %v2847_v9, 2 }
 0x2d1   :  { %v2931_v52 = vshrl.u32 %v2913_v14, %v2929_v48  ;;  %v2934_v26 = vadd.s32 127, %v2933_v0  ;;  %vm3018_vm5 = vc.u32 %v10662_v30, %v10656_v21  ;;  %v2950_v16 = vadd.s32 3, %v2946_v17 }
 0x2d2   :  { %v3020_v37 = vsel %vm3018_vm5, %v3019_v10, %v10657_v12  ;;  %v3072_v3 = vand.u32 8388607, %v3065_v1  ;;  %vm3076_vm4 = vcmp.gt.s32.totalorder %v3075_v62, 0  ;;  %vm2848_vm6 = vcmp.lt.s32.totalorder %v2847_v9, 2 }
 0x2d3   :  { %v7715_v56 = vpop.eup %7714  ;;  %v2932_v51 = vor.u32 %v2931_v52, %v2930_v46  ;;  %v2935_v40 = vshll.u32 %v2934_v26, 23  ;;  %v3021_v7 = vadd.s32 %v3020_v37, %v3016_v22  ;;  %v3077_v49 = vsel %vm3076_vm4, %v3075_v62, 0 }
 0x2d4   :  { %v7717_v29 = vpop.eup %7716  ;;  %vm2849_vm7 = vcmp.eq.s32.totalorder %v2847_v9, 0  ;;  %v2853_v32 = vxor.u32 2147483648, %v7715_v56  ;;  %v3079_v36 = vand.u32 31, %v3077_v49  ;;  %v10677_v41 = vand.u32 3, %v2950_v16  ;;  %v13717_v9 = vld [vmem:[#allocation8_spill] sm:$0xff] }
 0x2d5   :  { %v2850_v11 = vxor.u32 2147483648, %v7717_v29  ;;  %v2936_v39 = vor.u32 4788187, %v2935_v40  ;;  %v2939_v42 = vcvt.s32.f32 %v2932_v51  ;;  %v3022_v33 = vadd.s32 536870912, %v3021_v7 }
 0x2d6   :  { %v2854_v55 = vsel %vm2852_vm3, %v2853_v32, %v7717_v29  ;;  %v3073_v61 = vor.u32 8388608, %v3072_v3  ;;  %v3080_v20 = vsub.s32 32, %v3079_v36  ;;  %v3082_v59 = vshll.u32 %v13654_v28, %v3079_v36 }
 0x2d7   :  { %v2851_v60 = vsel %vm2849_vm7, %v7715_v56, %v2850_v11  ;;  %v2937_v5 = vand.u32 2147483647, %v2936_v39  ;;  %v3023_v13 = vshrl.u32 %v3022_v33, 30  ;;  %v3085_v4 = vshll.u32 %v13648_v18, %v3079_v36 }
 0x2d8   :  { %v2855_v44 = vsel %vm2848_vm6, %v2851_v60, %v2854_v55  ;;  %v3083_v6 = vshrl.u32 %v13648_v18, %v3080_v20  ;;  %v3088_v35 = vshll.u32 %v13649_v24, %v3079_v36  ;;  %v3086_v31 = vshrl.u32 %v13649_v24, %v3080_v20 }
 0x2d9   :  { %v2856_v23 = vsel %vm2845_vm2, nan, %v2855_v44  ;;  %v2940_v58 = vmul.f32 %v2939_v42, %v2937_v5  ;;  %v3024_v57 = vshll.u32 %v3023_v13, 30  ;;  %v3078_v50 = vshrl.u32 %v3077_v49, 5 }
 0x2da   :  { %v3089_v38 = vshrl.u32 %v13650_v19, %v3080_v20  ;;  %v3091_v14 = vshll.u32 %v13650_v19, %v3079_v36  ;;  %v3169_v8 = vand.u32 2147483647, %v13717_v9  ;;  %7040 = vst [vmem:[#allocation5 + $0xb8] sm:$0xff] %v2856_v23  ;;  %v3092_v2 = vshrl.u32 %v13651_v27, %v3080_v20 }
 0x2db   :  { %v2941_v12 = vxor.u32 2147483648, %v2940_v58  ;;  %v10690_v54 = vsub.s32 %v3021_v7, %v3024_v57  ;;  %v3172_v63 = vand.u32 2139095040, %v13717_v9  ;;  %vm2963_vm8 = vcmp.lt.s32.totalorder %v13711_v25, 0 }
 0x2dc   :  { %v3081_v53 = vshrl.u32 %v13654_v28, %v3080_v20  ;;  %v3084_v17 = vor.u32 %v3083_v6, %v3082_v59  ;;  %v3094_v22 = vshll.u32 %v13651_v27, %v3079_v36  ;;  %v3095_v48 = vshrl.u32 %v13652_v43, %v3080_v20 }
 0x2dd   :  { %v2942_v46 = vsel %vm2859_vm13, %v2941_v12, %v2940_v58  ;;  %v3027_v0 = vsub.s32 0, %v10690_v54  ;;  %v3087_v62 = vor.u32 %v3086_v31, %v3085_v4  ;;  %v3090_v10 = vor.u32 %v3089_v38, %v3088_v35 }
 0x2de   :  { %v2945_v52 = vsel %vm10617_vm12, %v13708_v47, %v2942_v46  ;;  %v3093_v26 = vor.u32 %v3092_v2, %v3091_v14  ;;  %v3096_v16 = vor.u32 %v3095_v48, %v3094_v22  ;;  %vm3097_vm10 = vcmp.lt.s32.totalorder %v3078_v50, 1 }
 0x2df   :  { %7718 = vcosq.f32 %v2945_v52  ;;  %vm10706_vm11 = vcmp.le.f32.partialorder %v2961_v34, 0.7853982  ;;  %v7201_v3 = vmin.u32 %v3027_v0, %v10690_v54  ;;  %v3113_v56 = vshll.u32 %v3073_v61, 8 }
 0x2e0   :  { %v3173_v51 = vshrl.u32 %v3172_v63, 23  ;;  %7720 = vsinq.f32 %v2945_v52  ;;  %v3047_v40 = vsub.s32 4, %v3023_v13  ;;  %vm3099_vm9 = vcmp.lt.s32.totalorder %v3078_v50, 3 }
 0x2e1   :  { %vm3100_vm13 = vcmp.lt.s32.totalorder %v3078_v50, 4  ;;  %v3029_v15 = vclz %v7201_v3  ;;  %vm3098_vm12 = vcmp.lt.s32.totalorder %v3078_v50, 2  ;;  %v3101_v7 = vsel %vm3097_vm10, %v3081_v53, %v3084_v17 }
 0x2e2   :  { %v3105_v49 = vsel %vm3097_vm10, %v3084_v17, %v3087_v62  ;;  %v3102_v29 = vsel %vm3100_vm13, %v3090_v10, 2102212464  ;;  %v3106_v32 = vsel %vm3100_vm13, %v3093_v26, 920167782  ;;  %v3109_v34 = vsel %vm3097_vm10, %v3087_v62, %v3090_v10 }
 0x2e3   :  { %v3110_v36 = vsel %vm3100_vm13, %v3096_v16, 1326507024  ;;  %v7202_v11 = vadd.s32 4294967294, %v3029_v15  ;;  %v3103_v39 = vsel %vm3099_vm9, %v3087_v62, %v3102_v29  ;;  %v3107_v42 = vsel %vm3099_vm9, %v3090_v10, %v3106_v32 }
 0x2e4   :  { %v3111_v33 = vsel %vm3099_vm9, %v3093_v26, %v3110_v36  ;;  %v3017_v55 = vadd.s32 %v10656_v21, %v10662_v30  ;;  %v3108_v61 = vsel %vm3098_vm12, %v3105_v49, %v3107_v42  ;;  %v7208_v60 = vadd.s32 4294967169, %v3173_v51 }
 0x2e5   :  { %v3112_v20 = vsel %vm3098_vm12, %v3109_v34, %v3111_v33  ;;  %vm7203_vm14 = vcmp.lt.s32.totalorder %v7202_v11, 0  ;;  %v3048_v5 = vsel %vm2963_vm8, %v3047_v40, %v3023_v13  ;;  %v3104_v4 = vsel %vm3098_vm12, %v3101_v7, %v3103_v39 }
 0x2e6   :  { %v10720_v59 = vmul.u32.u64.low %v3113_v56, %v3112_v20  ;;  %v10721_v44 = vmul.u32.u64.high %v3113_v56, %v3112_v20, %v10720_v59  ;;  %v3032_v6 = vsel %vm7203_vm14, 0, %v7202_v11  ;;  %v3179_v57 = vadd.s32 1, %v7208_v60 }
 0x2e7   :  { %v10724_v35 = vmul.u32.u64.low %v3113_v56, %v3108_v61  ;;  %v10725_v23 = vmul.u32.u64.high %v3113_v56, %v3108_v61, %v10724_v35  ;;  %v3033_v21 = vsub.s32 32, %v3032_v6  ;;  %v3034_v30 = vshll.u32 %v10690_v54, %v3032_v6 }
 0x2e8   :  { %v3037_v58 = vsub.s32 4294967266, %v3032_v6  ;;  %vm2949_vm15 = vweird.f32 %v13708_v47  ;;  %v3050_v13 = vsel %vm10706_vm11, 0, %v3048_v5  ;;  %v3120_v14 = vmul.u32 %v3113_v56, %v3104_v4  ;;  %v13720_v6 = vld [vmem:[#allocation27_spill] sm:$0xff] }
 0x2e9   :  { %v3035_v31 = vshrl.u32 %v3017_v55, %v3033_v21  ;;  %vm3122_vm1 = vc.u32 %v10721_v44, %v10724_v35  ;;  %vm2952_vm0 = vcmp.lt.s32.totalorder %v10677_v41, 2  ;;  %v3123_v50 = vadd.s32 1, %v10725_v23 }
 0x2ea   :  { %v3038_v38 = vadd.s32 127, %v3037_v58  ;;  %v3176_v12 = vand.u32 8388607, %v3169_v8  ;;  %vm3180_vm2 = vcmp.gt.s32.totalorder %v3179_v57, 0  ;;  %vm2953_vm3 = vcmp.eq.s32.totalorder %v10677_v41, 0 }
 0x2eb   :  { %v3036_v54 = vor.u32 %v3035_v31, %v3034_v30  ;;  %v3181_v63 = vsel %vm3180_vm2, %v3179_v57, 0  ;;  %vm2956_vm5 = vcmp.eq.s32.totalorder %v10677_v41, 2  ;;  %v3054_v17 = vadd.s32 3, %v3050_v13 }
 0x2ec   :  { %v3039_v2 = vshll.u32 %v3038_v38, 23  ;;  %v7719_v53 = vpop.eup %7718  ;;  %v3124_v22 = vsel %vm3122_vm1, %v3123_v50, %v10725_v23  ;;  %v3183_v48 = vand.u32 31, %v3181_v63  ;;  %v3177_v16 = vor.u32 8388608, %v3176_v12 }
 0x2ed   :  { %v7721_v46 = vpop.eup %7720  ;;  %v2957_v0 = vxor.u32 2147483648, %v7719_v53  ;;  %v3043_v10 = vcvt.s32.f32 %v3036_v54  ;;  %v3125_v52 = vadd.s32 %v3124_v22, %v3120_v14  ;;  %v3182_v55 = vshrl.u32 %v3181_v63, 5 }
 0x2ee   :  { %v3040_v62 = vor.u32 4788187, %v3039_v2  ;;  %v2954_v26 = vxor.u32 2147483648, %v7721_v46  ;;  %v3184_v3 = vsub.s32 32, %v3183_v48  ;;  %v3186_v56 = vshll.u32 %v13654_v28, %v3183_v48 }
 0x2ef   :  { %v2958_v51 = vsel %vm2956_vm5, %v2957_v0, %v7721_v46  ;;  %v3126_v15 = vadd.s32 536870912, %v3125_v52  ;;  %v3189_v7 = vshll.u32 %v13648_v18, %v3183_v48  ;;  %v3192_v34 = vshll.u32 %v13649_v24, %v3183_v48 }
 0x2f0   :  { %v3041_v40 = vand.u32 2147483647, %v3040_v62  ;;  %v2955_v49 = vsel %vm2953_vm3, %v7719_v53, %v2954_v26  ;;  %v3187_v29 = vshrl.u32 %v13648_v18, %v3184_v3  ;;  %v3190_v32 = vshrl.u32 %v13649_v24, %v3184_v3 }
 0x2f1   :  { %v2959_v36 = vsel %vm2952_vm0, %v2955_v49, %v2958_v51  ;;  %v3127_v39 = vshrl.u32 %v3126_v15, 30  ;;  %v3193_v42 = vshrl.u32 %v13650_v19, %v3184_v3  ;;  %v3195_v61 = vshll.u32 %v13650_v19, %v3183_v48 }
 0x2f2   :  { %v3044_v11 = vmul.f32 %v3043_v10, %v3041_v40  ;;  %v2960_v33 = vsel %vm2949_vm15, nan, %v2959_v36  ;;  %v10754_v20 = vshll.u32 %v3177_v16, 8  ;;  %v3185_v59 = vshrl.u32 %v13654_v28, %v3184_v3 }
 0x2f3   :  { %v3128_v5 = vshll.u32 %v3127_v39, 30  ;;  %v3276_v4 = vand.u32 2139095040, %v13720_v6  ;;  %7041 = vst [vmem:[#allocation5 + $0xc0] sm:$0xff] %v2960_v33  ;;  %v3188_v41 = vor.u32 %v3187_v29, %v3186_v56  ;;  %v3196_v23 = vshrl.u32 %v13651_v27, %v3184_v3 }
 0x2f4   :  { %v3045_v60 = vxor.u32 2147483648, %v3044_v11  ;;  %v3198_v21 = vshll.u32 %v13651_v27, %v3183_v48  ;;  %v3199_v47 = vshrl.u32 %v13652_v43, %v3184_v3  ;;  %v3191_v57 = vor.u32 %v3190_v32, %v3189_v7 }
 0x2f5   :  { %v10763_v58 = vsub.s32 %v3125_v52, %v3128_v5  ;;  %v3194_v13 = vor.u32 %v3193_v42, %v3192_v34  ;;  %v3197_v38 = vor.u32 %v3196_v23, %v3195_v61  ;;  %vm3201_vm4 = vcmp.lt.s32.totalorder %v3182_v55, 1 }
 0x2f6   :  { %v3046_v30 = vsel %vm2963_vm8, %v3045_v60, %v3044_v11  ;;  %v3200_v14 = vor.u32 %v3199_v47, %v3198_v21  ;;  %vm3203_vm6 = vcmp.lt.s32.totalorder %v3182_v55, 3  ;;  %v3277_v12 = vshrl.u32 %v3276_v4, 23 }
 0x2f7   :  { %v3049_v31 = vsel %vm10706_vm11, %v13711_v25, %v3046_v30  ;;  %v3131_v50 = vsub.s32 0, %v10763_v58  ;;  %vm3202_vm7 = vcmp.lt.s32.totalorder %v3182_v55, 2  ;;  %vm3204_vm10 = vcmp.lt.s32.totalorder %v3182_v55, 4 }
 0x2f8   :  { %7722 = vcosq.f32 %v3049_v31  ;;  %v3205_v54 = vsel %vm3201_vm4, %v3185_v59, %v3188_v41  ;;  %v3206_v63 = vsel %vm3204_vm10, %v3194_v13, 2102212464  ;;  %v3209_v53 = vsel %vm3201_vm4, %v3188_v41, %v3191_v57 }
 0x2f9   :  { %7724 = vsinq.f32 %v3049_v31  ;;  %v7205_v2 = vmin.u32 %v3131_v50, %v10763_v58  ;;  %v3210_v22 = vsel %vm3204_vm10, %v3197_v38, 920167782  ;;  %v3207_v37 = vsel %vm3203_vm6, %v3191_v57, %v3206_v63 }
 0x2fa   :  { %v3211_v48 = vsel %vm3203_vm6, %v3194_v13, %v3210_v22  ;;  %v3213_v46 = vsel %vm3201_vm4, %v3191_v57, %v3194_v13  ;;  %v3214_v0 = vsel %vm3204_vm10, %v3200_v14, 1326507024  ;;  %v3055_v62 = vand.u32 3, %v3054_v17 }
 0x2fb   :  { %v3133_v10 = vclz %v7205_v2  ;;  %v3151_v52 = vsub.s32 4, %v3127_v39  ;;  %v3208_v26 = vsel %vm3202_vm7, %v3205_v54, %v3207_v37  ;;  %v3212_v16 = vsel %vm3202_vm7, %v3209_v53, %v3211_v48  ;;  %v13723_v2 = vld [vmem:[#allocation28_spill] sm:$0xff] }
 0x2fc   :  { %v3215_v3 = vsel %vm3203_vm6, %v3197_v38, %v3214_v0  ;;  %v7212_v56 = vadd.s32 4294967169, %v3277_v12  ;;  %v10777_v15 = vmul.u32.u64.low %v10754_v20, %v3212_v16  ;;  %v10778_v7 = vmul.u32.u64.high %v10754_v20, %v3212_v16, %v10777_v15 }
 0x2fd   :  { %v7206_v51 = vadd.s32 4294967294, %v3133_v10  ;;  %v3216_v40 = vsel %vm3202_vm7, %v3213_v46, %v3215_v3  ;;  %vm3067_vm8 = vcmp.lt.s32.totalorder %v13716_v45, 0  ;;  %v3273_v29 = vand.u32 2147483647, %v13720_v6 }
 0x2fe   :  { %v10783_v17 = vmul.u32.u64.low %v10754_v20, %v3216_v40  ;;  %v10784_v49 = vmul.u32.u64.high %v10754_v20, %v3216_v40, %v10783_v17  ;;  %vm3053_vm11 = vweird.f32 %v13711_v25  ;;  %v3121_v32 = vadd.s32 %v10724_v35, %v10721_v44 }
 0x2ff   :  { %vm7207_vm9 = vcmp.lt.s32.totalorder %v7206_v51, 0  ;;  %v3152_v34 = vsel %vm3067_vm8, %v3151_v52, %v3127_v39  ;;  %v3283_v36 = vadd.s32 1, %v7212_v56  ;;  %vm3056_vm13 = vcmp.lt.s32.totalorder %v3055_v62, 2 }
 0x300   :  { %vm10794_vm12 = vcmp.le.f32.partialorder %v3065_v1, 0.7853982  ;;  %v3136_v42 = vsel %vm7207_vm9, 0, %v7206_v51  ;;  %v3224_v33 = vmul.u32 %v10754_v20, %v3208_v26  ;;  %v3227_v44 = vadd.s32 1, %v10778_v7 }
 0x301   :  { %v3137_v55 = vsub.s32 32, %v3136_v42  ;;  %v3138_v61 = vshll.u32 %v10763_v58, %v3136_v42  ;;  %v3141_v60 = vsub.s32 4294967266, %v3136_v42  ;;  %v3154_v35 = vsel %vm10794_vm12, 0, %v3152_v34 }
 0x302   :  { %vm3226_vm14 = vc.u32 %v10784_v49, %v10777_v15  ;;  %v3280_v1 = vand.u32 8388607, %v3273_v29  ;;  %vm3284_vm15 = vcmp.gt.s32.totalorder %v3283_v36, 0  ;;  %vm3057_vm1 = vcmp.eq.s32.totalorder %v3055_v62, 0 }
 0x303   :  { %v3139_v39 = vshrl.u32 %v3121_v32, %v3137_v55  ;;  %v3142_v5 = vadd.s32 127, %v3141_v60  ;;  %v3228_v20 = vsel %vm3226_vm14, %v3227_v44, %v10778_v7  ;;  %v3285_v59 = vsel %vm3284_vm15, %v3283_v36, 0 }
 0x304   :  { %vm3060_vm0 = vcmp.eq.s32.totalorder %v3055_v62, 2  ;;  %v3229_v41 = vadd.s32 %v3228_v20, %v3224_v33  ;;  %v3287_v23 = vand.u32 31, %v3285_v59  ;;  %v10808_v57 = vadd.s32 3, %v3154_v35 }
 0x305   :  { %v7723_v4 = vpop.eup %7722  ;;  %v3140_v30 = vor.u32 %v3139_v39, %v3138_v61  ;;  %v3143_v58 = vshll.u32 %v3142_v5, 23  ;;  %v3281_v38 = vor.u32 8388608, %v3280_v1  ;;  %v3377_v63 = vand.u32 2147483647, %v13723_v2 }
 0x306   :  { %v7725_v21 = vpop.eup %7724  ;;  %v3061_v47 = vxor.u32 2147483648, %v7723_v4  ;;  %v3230_v31 = vadd.s32 536870912, %v3229_v41  ;;  %v3288_v14 = vsub.s32 32, %v3287_v23  ;;  %v3286_v37 = vshrl.u32 %v3285_v59, 5 }
 0x307   :  { %v3058_v13 = vxor.u32 2147483648, %v7725_v21  ;;  %v3144_v12 = vor.u32 4788187, %v3143_v58  ;;  %v3147_v54 = vcvt.s32.f32 %v3140_v30  ;;  %v3380_v48 = vand.u32 2139095040, %v13723_v2 }
 0x308   :  { %v3062_v50 = vsel %vm3060_vm0, %v3061_v47, %v7725_v21  ;;  %v3231_v22 = vshrl.u32 %v3230_v31, 30  ;;  %v3290_v10 = vshll.u32 %v13654_v28, %v3287_v23  ;;  %v3293_v52 = vshll.u32 %v13648_v18, %v3287_v23 }
 0x309   :  { %v3059_v53 = vsel %vm3057_vm1, %v7723_v4, %v3058_v13  ;;  %v3145_v0 = vand.u32 2147483647, %v3144_v12  ;;  %v3291_v3 = vshrl.u32 %v13648_v18, %v3288_v14  ;;  %v3294_v56 = vshrl.u32 %v13649_v24, %v3288_v14 }
 0x30a   :  { %v3063_v46 = vsel %vm3056_vm13, %v3059_v53, %v3062_v50  ;;  %v3232_v16 = vshll.u32 %v3231_v22, 30  ;;  %v3296_v40 = vshll.u32 %v13649_v24, %v3287_v23  ;;  %v3297_v7 = vshrl.u32 %v13650_v19, %v3288_v14 }
 0x30b   :  { %v3064_v26 = vsel %vm3053_vm11, nan, %v3063_v46  ;;  %v3148_v51 = vmul.f32 %v3147_v54, %v3145_v0  ;;  %v3299_v62 = vshll.u32 %v13650_v19, %v3287_v23  ;;  %v3300_v32 = vshrl.u32 %v13651_v27, %v3288_v14 }
 0x30c   :  { %7042 = vst [vmem:[#allocation5 + $0xc8] sm:$0xff] %v3064_v26  ;;  %v10823_v17 = vsub.s32 %v3229_v41, %v3232_v16  ;;  %v3302_v25 = vshll.u32 %v13651_v27, %v3287_v23  ;;  %v10827_v34 = vshll.u32 %v3281_v38, 8  ;;  %v3225_v42 = vadd.s32 %v10777_v15, %v10784_v49 }
 0x30d   :  { %v3149_v36 = vxor.u32 2147483648, %v3148_v51  ;;  %v3303_v33 = vshrl.u32 %v13652_v43, %v3288_v14  ;;  %v3381_v55 = vshrl.u32 %v3380_v48, 23  ;;  %vm3171_vm2 = vcmp.lt.s32.totalorder %v13717_v9, 0 }
 0x30e   :  { %v3235_v61 = vsub.s32 0, %v10823_v17  ;;  %v3289_v60 = vshrl.u32 %v13654_v28, %v3288_v14  ;;  %v3292_v44 = vor.u32 %v3291_v3, %v3290_v10  ;;  %v3295_v35 = vor.u32 %v3294_v56, %v3293_v52 }
 0x30f   :  { %v3150_v1 = vsel %vm3067_vm8, %v3149_v36, %v3148_v51  ;;  %v3298_v39 = vor.u32 %v3297_v7, %v3296_v40  ;;  %v3301_v5 = vor.u32 %v3300_v32, %v3299_v62  ;;  %vm3305_vm3 = vcmp.lt.s32.totalorder %v3286_v37, 1 }
 0x310   :  { %v3153_v15 = vsel %vm10794_vm12, %v13716_v45, %v3150_v1  ;;  %v7209_v49 = vmin.u32 %v3235_v61, %v10823_v17  ;;  %v3304_v20 = vor.u32 %v3303_v33, %v3302_v25  ;;  %vm3308_vm5 = vcmp.lt.s32.totalorder %v3286_v37, 4 }
 0x311   :  { %7726 = vcosq.f32 %v3153_v15  ;;  %vm3306_vm4 = vcmp.lt.s32.totalorder %v3286_v37, 2  ;;  %vm3307_vm6 = vcmp.lt.s32.totalorder %v3286_v37, 3  ;;  %v3310_v59 = vsel %vm3308_vm5, %v3298_v39, 2102212464 }
 0x312   :  { %7728 = vsinq.f32 %v3153_v15  ;;  %v3237_v4 = vclz %v7209_v49  ;;  %v3309_v41 = vsel %vm3305_vm3, %v3289_v60, %v3292_v44  ;;  %v3313_v23 = vsel %vm3305_vm3, %v3292_v44, %v3295_v35 }
 0x313   :  { %v3255_v21 = vsub.s32 4, %v3231_v22  ;;  %v3311_v47 = vsel %vm3307_vm6, %v3295_v35, %v3310_v59  ;;  %v3314_v30 = vsel %vm3308_vm5, %v3301_v5, 920167782  ;;  %v3317_v11 = vsel %vm3305_vm3, %v3295_v35, %v3298_v39 }
 0x314   :  { %v7210_v58 = vadd.s32 4294967294, %v3237_v4  ;;  %v3315_v13 = vsel %vm3307_vm6, %v3298_v39, %v3314_v30  ;;  %v3318_v31 = vsel %vm3308_vm5, %v3304_v20, 1326507024  ;;  %v3384_v38 = vand.u32 8388607, %v3377_v63 }
 0x315   :  { %v3312_v14 = vsel %vm3306_vm4, %v3309_v41, %v3311_v47  ;;  %v3316_v50 = vsel %vm3306_vm4, %v3313_v23, %v3315_v13  ;;  %v3319_v12 = vsel %vm3307_vm6, %v3301_v5, %v3318_v31  ;;  %v7216_v54 = vadd.s32 4294967169, %v3381_v55 }
 0x316   :  { %vm7211_vm7 = vcmp.lt.s32.totalorder %v7210_v58, 0  ;;  %v3320_v53 = vsel %vm3306_vm4, %v3317_v11, %v3319_v12  ;;  %v10853_v48 = vmul.u32.u64.low %v10827_v34, %v3316_v50  ;;  %v10854_v46 = vmul.u32.u64.high %v10827_v34, %v3316_v50, %v10853_v48 }
 0x317   :  { %v3240_v0 = vsel %vm7211_vm7, 0, %v7210_v58  ;;  %v3256_v10 = vsel %vm3171_vm2, %v3255_v21, %v3231_v22  ;;  %v10860_v52 = vmul.u32.u64.low %v10827_v34, %v3320_v53  ;;  %v10861_v26 = vmul.u32.u64.high %v10827_v34, %v3320_v53, %v10860_v52 }
 0x318   :  { %v3241_v16 = vsub.s32 32, %v3240_v0  ;;  %v3242_v3 = vshll.u32 %v10823_v17, %v3240_v0  ;;  %v3245_v56 = vsub.s32 4294967266, %v3240_v0  ;;  %v3387_v51 = vadd.s32 1, %v7216_v54 }
 0x319   :  { %v3159_v37 = vand.u32 3, %v10808_v57  ;;  %vm10867_vm10 = vcmp.le.f32.partialorder %v3169_v8, 0.7853982  ;;  %v3328_v7 = vmul.u32 %v10827_v34, %v3312_v14  ;;  %v3331_v32 = vadd.s32 1, %v10854_v46 }
 0x31a   :  { %v3243_v22 = vshrl.u32 %v3225_v42, %v3241_v16  ;;  %v3246_v62 = vadd.s32 127, %v3245_v56  ;;  %vm3388_vm8 = vcmp.gt.s32.totalorder %v3387_v51, 0  ;;  %v3258_v17 = vsel %vm10867_vm10, 0, %v3256_v10 }
 0x31b   :  { %vm3330_vm11 = vc.u32 %v10861_v26, %v10853_v48  ;;  %v3385_v57 = vor.u32 8388608, %v3384_v38  ;;  %v3389_v25 = vsel %vm3388_vm8, %v3387_v51, 0  ;;  %vm3157_vm9 = vweird.f32 %v13716_v45 }
 0x31c   :  { %v3244_v36 = vor.u32 %v3243_v22, %v3242_v3  ;;  %v3247_v8 = vshll.u32 %v3246_v62, 23  ;;  %v3332_v33 = vsel %vm3330_vm11, %v3331_v32, %v10854_v46  ;;  %v10878_v55 = vshrl.u32 %v3389_v25, 5 }
 0x31d   :  { %vm3160_vm13 = vcmp.lt.s32.totalorder %v3159_v37, 2  ;;  %v3333_v34 = vadd.s32 %v3332_v33, %v3328_v7  ;;  %v3391_v42 = vand.u32 31, %v3389_v25  ;;  %vm3161_vm12 = vcmp.eq.s32.totalorder %v3159_v37, 0 }
 0x31e   :  { %v7727_v61 = vpop.eup %7726  ;;  %vm3164_vm14 = vcmp.eq.s32.totalorder %v3159_v37, 2  ;;  %v3248_v60 = vor.u32 4788187, %v3247_v8  ;;  %v3251_v44 = vcvt.s32.f32 %v3244_v36  ;;  %v3262_v39 = vadd.s32 3, %v3258_v17  ;;  %v13728_v17 = vld [vmem:[#allocation29_spill] sm:$0xff] }
 0x31f   :  { %v7729_v35 = vpop.eup %7728  ;;  %v3165_v1 = vxor.u32 2147483648, %v7727_v61  ;;  %v3334_v5 = vadd.s32 536870912, %v3333_v34  ;;  %v3392_v15 = vsub.s32 32, %v3391_v42  ;;  %vm3409_vm15 = vcmp.lt.s32.totalorder %v10878_v55, 1 }
 0x320   :  { %v3162_v49 = vxor.u32 2147483648, %v7729_v35  ;;  %v3249_v20 = vand.u32 2147483647, %v3248_v60  ;;  %v10882_v59 = vshll.u32 %v3385_v57, 8  ;;  %v3394_v23 = vshll.u32 %v13654_v28, %v3391_v42 }
 0x321   :  { %v3166_v4 = vsel %vm3164_vm14, %v3165_v1, %v7729_v35  ;;  %v3335_v41 = vshrl.u32 %v3334_v5, 30  ;;  %v3395_v21 = vshrl.u32 %v13648_v18, %v3392_v15  ;;  %vm3275_vm1 = vcmp.lt.s32.totalorder %v13720_v6, 0 }
 0x322   :  { %v3163_v47 = vsel %vm3161_vm12, %v7727_v61, %v3162_v49  ;;  %v3252_v30 = vmul.f32 %v3251_v44, %v3249_v20  ;;  %v3397_v11 = vshll.u32 %v13648_v18, %v3391_v42  ;;  %v3398_v58 = vshrl.u32 %v13649_v24, %v3392_v15 }
 0x323   :  { %v3167_v13 = vsel %vm3160_vm13, %v3163_v47, %v3166_v4  ;;  %v3336_v31 = vshll.u32 %v3335_v41, 30  ;;  %v3400_v38 = vshll.u32 %v13649_v24, %v3391_v42  ;;  %v3401_v14 = vshrl.u32 %v13650_v19, %v3392_v15 }
 0x324   :  { %v3168_v50 = vsel %vm3157_vm9, nan, %v3167_v13  ;;  %v3253_v12 = vxor.u32 2147483648, %v3252_v30  ;;  %v3359_v54 = vsub.s32 4, %v3335_v41  ;;  %v3393_v53 = vshrl.u32 %v13654_v28, %v3392_v15 }
 0x325   :  { %v10896_v46 = vsub.s32 %v3333_v34, %v3336_v31  ;;  %v3396_v0 = vor.u32 %v3395_v21, %v3394_v23  ;;  %v3403_v10 = vshll.u32 %v13650_v19, %v3391_v42  ;;  %v3404_v52 = vshrl.u32 %v13651_v27, %v3392_v15  ;;  %7043 = vst [vmem:[#allocation5 + $0xd0] sm:$0xff] %v3168_v50 }
 0x326   :  { %v3254_v16 = vsel %vm3171_vm2, %v3253_v12, %v3252_v30  ;;  %v3399_v3 = vor.u32 %v3398_v58, %v3397_v11  ;;  %v3406_v56 = vshll.u32 %v13651_v27, %v3391_v42  ;;  %v3407_v45 = vshrl.u32 %v13652_v43, %v3392_v15 }
 0x327   :  { %v3257_v51 = vsel %vm10867_vm10, %v13717_v9, %v3254_v16  ;;  %vm10909_vm0 = vcmp.le.f32.partialorder %v3273_v29, 0.7853982  ;;  %v3339_v7 = vsub.s32 0, %v10896_v46  ;;  %v3402_v22 = vor.u32 %v3401_v14, %v3400_v38 }
 0x328   :  { %v3405_v62 = vor.u32 %v3404_v52, %v3403_v10  ;;  %7730 = vcosq.f32 %v3257_v51  ;;  %v3408_v32 = vor.u32 %v3407_v45, %v3406_v56  ;;  %vm3412_vm2 = vcmp.lt.s32.totalorder %v10878_v55, 4 }
 0x329   :  { %v3484_v57 = vand.u32 2139095040, %v13728_v17  ;;  %7732 = vsinq.f32 %v3257_v51  ;;  %v7213_v40 = vmin.u32 %v3339_v7, %v10896_v46  ;;  %vm3410_vm3 = vcmp.lt.s32.totalorder %v10878_v55, 2 }
 0x32a   :  { %vm3411_vm5 = vcmp.lt.s32.totalorder %v10878_v55, 3  ;;  %v3413_v29 = vsel %vm3409_vm15, %v3393_v53, %v3396_v0  ;;  %v3414_v25 = vsel %vm3412_vm2, %v3402_v22, 2102212464  ;;  %v3417_v36 = vsel %vm3409_vm15, %v3396_v0, %v3399_v3 }
 0x32b   :  { %v3418_v8 = vsel %vm3412_vm2, %v3405_v62, 920167782  ;;  %v3263_v33 = vand.u32 3, %v3262_v39  ;;  %v3341_v34 = vclz %v7213_v40  ;;  %v3360_v42 = vsel %vm3275_vm1, %v3359_v54, %v3335_v41 }
 0x32c   :  { %v3421_v61 = vsel %vm3409_vm15, %v3399_v3, %v3402_v22  ;;  %v3415_v60 = vsel %vm3411_vm5, %v3399_v3, %v3414_v25  ;;  %v3419_v44 = vsel %vm3411_vm5, %v3402_v22, %v3418_v8  ;;  %v3422_v35 = vsel %vm3412_vm2, %v3408_v32, 1326507024 }
 0x32d   :  { %v3485_v1 = vshrl.u32 %v3484_v57, 23  ;;  %v7214_v5 = vadd.s32 4294967294, %v3341_v34  ;;  %v3416_v39 = vsel %vm3410_vm3, %v3413_v29, %v3415_v60  ;;  %v3420_v15 = vsel %vm3410_vm3, %v3417_v36, %v3419_v44 }
 0x32e   :  { %v3423_v49 = vsel %vm3411_vm5, %v3405_v62, %v3422_v35  ;;  %v3329_v20 = vadd.s32 %v10853_v48, %v10861_v26  ;;  %v10948_v41 = vmul.u32.u64.low %v10882_v59, %v3420_v15  ;;  %v10949_v23 = vmul.u32.u64.high %v10882_v59, %v3420_v15, %v10948_v41 }
 0x32f   :  { %v3424_v4 = vsel %vm3410_vm3, %v3421_v61, %v3423_v49  ;;  %vm7215_vm4 = vcmp.lt.s32.totalorder %v7214_v5, 0  ;;  %v7220_v30 = vadd.s32 4294967169, %v3485_v1  ;;  %v3362_v58 = vsel %vm10909_vm0, 0, %v3360_v42 }
 0x330   :  { %v10953_v21 = vmul.u32.u64.low %v10882_v59, %v3424_v4  ;;  %v10954_v47 = vmul.u32.u64.high %v10882_v59, %v3424_v4, %v10953_v21  ;;  %v3344_v11 = vsel %vm7215_vm4, 0, %v7214_v5  ;;  %v3432_v48 = vmul.u32 %v10882_v59, %v3416_v39 }
 0x331   :  { %v3481_v26 = vand.u32 2147483647, %v13728_v17  ;;  %v3345_v55 = vsub.s32 32, %v3344_v11  ;;  %v3346_v13 = vshll.u32 %v10896_v46, %v3344_v11  ;;  %v3349_v31 = vsub.s32 4294967266, %v3344_v11 }
 0x332   :  { %v3491_v38 = vadd.s32 1, %v7220_v30  ;;  %vm3261_vm6 = vweird.f32 %v13717_v9  ;;  %v3435_v14 = vadd.s32 1, %v10949_v23  ;;  %vm3268_vm7 = vcmp.eq.s32.totalorder %v3263_v33, 2 }
 0x333   :  { %v3347_v50 = vshrl.u32 %v3329_v20, %v3345_v55  ;;  %v3350_v12 = vadd.s32 127, %v3349_v31  ;;  %vm3434_vm10 = vc.u32 %v10954_v47, %v10948_v41  ;;  %v3366_v54 = vadd.s32 3, %v3362_v58 }
 0x334   :  { %v3436_v59 = vsel %vm3434_vm10, %v3435_v14, %v10949_v23  ;;  %v3488_v53 = vand.u32 8388607, %v3481_v26  ;;  %vm3492_vm8 = vcmp.gt.s32.totalorder %v3491_v38, 0  ;;  %vm3264_vm11 = vcmp.lt.s32.totalorder %v3263_v33, 2 }
 0x335   :  { %v7731_v46 = vpop.eup %7730  ;;  %v3348_v0 = vor.u32 %v3347_v50, %v3346_v13  ;;  %v3351_v10 = vshll.u32 %v3350_v12, 23  ;;  %v3437_v52 = vadd.s32 %v3436_v59, %v3432_v48  ;;  %v3493_v16 = vsel %vm3492_vm8, %v3491_v38, 0 }
 0x336   :  { %v7733_v3 = vpop.eup %7732  ;;  %vm3265_vm9 = vcmp.eq.s32.totalorder %v3263_v33, 0  ;;  %v3269_v56 = vxor.u32 2147483648, %v7731_v46  ;;  %v3495_v45 = vand.u32 31, %v3493_v16  ;;  %v10969_v57 = vand.u32 3, %v3366_v54  ;;  %v13729_v33 = vld [vmem:[#allocation30_spill] sm:$0xff] }
 0x337   :  { %v3266_v51 = vxor.u32 2147483648, %v7733_v3  ;;  %v3352_v7 = vor.u32 4788187, %v3351_v10  ;;  %v3355_v22 = vcvt.s32.f32 %v3348_v0  ;;  %v3438_v62 = vadd.s32 536870912, %v3437_v52 }
 0x338   :  { %v3270_v32 = vsel %vm3268_vm7, %v3269_v56, %v7733_v3  ;;  %v3489_v40 = vor.u32 8388608, %v3488_v53  ;;  %v3496_v29 = vsub.s32 32, %v3495_v45  ;;  %v3498_v34 = vshll.u32 %v13654_v28, %v3495_v45 }
 0x339   :  { %v3267_v25 = vsel %vm3265_vm9, %v7731_v46, %v3266_v51  ;;  %v3353_v36 = vand.u32 2147483647, %v3352_v7  ;;  %v3439_v8 = vshrl.u32 %v3438_v62, 30  ;;  %v3501_v60 = vshll.u32 %v13648_v18, %v3495_v45 }
 0x33a   :  { %v3271_v42 = vsel %vm3264_vm11, %v3267_v25, %v3270_v32  ;;  %v3499_v61 = vshrl.u32 %v13648_v18, %v3496_v29  ;;  %v3504_v44 = vshll.u32 %v13649_v24, %v3495_v45  ;;  %v3502_v39 = vshrl.u32 %v13649_v24, %v3496_v29 }
 0x33b   :  { %v3272_v35 = vsel %vm3261_vm6, nan, %v3271_v42  ;;  %v3356_v1 = vmul.f32 %v3355_v22, %v3353_v36  ;;  %v3440_v5 = vshll.u32 %v3439_v8, 30  ;;  %v3494_v15 = vshrl.u32 %v3493_v16, 5 }
 0x33c   :  { %v3505_v49 = vshrl.u32 %v13650_v19, %v3496_v29  ;;  %v3507_v20 = vshll.u32 %v13650_v19, %v3495_v45  ;;  %v3585_v4 = vand.u32 2147483647, %v13729_v33  ;;  %7044 = vst [vmem:[#allocation5 + $0xd8] sm:$0xff] %v3272_v35  ;;  %v3508_v30 = vshrl.u32 %v13651_v27, %v3496_v29 }
 0x33d   :  { %v3357_v23 = vxor.u32 2147483648, %v3356_v1  ;;  %v10982_v21 = vsub.s32 %v3437_v52, %v3440_v5  ;;  %v3588_v9 = vand.u32 2139095040, %v13729_v33  ;;  %vm3379_vm13 = vcmp.lt.s32.totalorder %v13723_v2, 0 }
 0x33e   :  { %v3497_v11 = vshrl.u32 %v13654_v28, %v3496_v29  ;;  %v3500_v58 = vor.u32 %v3499_v61, %v3498_v34  ;;  %v3510_v48 = vshll.u32 %v13651_v27, %v3495_v45  ;;  %v3511_v55 = vshrl.u32 %v13652_v43, %v3496_v29 }
 0x33f   :  { %v3358_v13 = vsel %vm3275_vm1, %v3357_v23, %v3356_v1  ;;  %v3443_v31 = vsub.s32 0, %v10982_v21  ;;  %v3503_v38 = vor.u32 %v3502_v39, %v3501_v60  ;;  %v3506_v14 = vor.u32 %v3505_v49, %v3504_v44 }
 0x340   :  { %v3361_v50 = vsel %vm10909_vm0, %v13720_v6, %v3358_v13  ;;  %v3509_v12 = vor.u32 %v3508_v30, %v3507_v20  ;;  %v3512_v54 = vor.u32 %v3511_v55, %v3510_v48  ;;  %vm3513_vm12 = vcmp.lt.s32.totalorder %v3494_v15, 1 }
 0x341   :  { %7734 = vcosq.f32 %v3361_v50  ;;  %vm10998_vm14 = vcmp.le.f32.partialorder %v3377_v63, 0.7853982  ;;  %v7217_v53 = vmin.u32 %v3443_v31, %v10982_v21  ;;  %v3529_v46 = vshll.u32 %v3489_v40, 8 }
 0x342   :  { %v3589_v0 = vshrl.u32 %v3588_v9, 23  ;;  %7736 = vsinq.f32 %v3361_v50  ;;  %v3463_v10 = vsub.s32 4, %v3439_v8  ;;  %vm3515_vm15 = vcmp.lt.s32.totalorder %v3494_v15, 3 }
 0x343   :  { %vm3516_vm1 = vcmp.lt.s32.totalorder %v3494_v15, 4  ;;  %v3445_v37 = vclz %v7217_v53  ;;  %vm3514_vm0 = vcmp.lt.s32.totalorder %v3494_v15, 2  ;;  %v3517_v52 = vsel %vm3513_vm12, %v3497_v11, %v3500_v58 }
 0x344   :  { %v3521_v16 = vsel %vm3513_vm12, %v3500_v58, %v3503_v38  ;;  %v3518_v3 = vsel %vm3516_vm1, %v3506_v14, 2102212464  ;;  %v3522_v56 = vsel %vm3516_vm1, %v3509_v12, 920167782  ;;  %v3525_v63 = vsel %vm3513_vm12, %v3503_v38, %v3506_v14 }
 0x345   :  { %v3526_v45 = vsel %vm3516_vm1, %v3512_v54, 1326507024  ;;  %v7218_v51 = vadd.s32 4294967294, %v3445_v37  ;;  %v3519_v7 = vsel %vm3515_vm15, %v3503_v38, %v3518_v3  ;;  %v3523_v22 = vsel %vm3515_vm15, %v3506_v14, %v3522_v56 }
 0x346   :  { %v3527_v62 = vsel %vm3515_vm15, %v3509_v12, %v3526_v45  ;;  %v3433_v32 = vadd.s32 %v10948_v41, %v10954_v47  ;;  %v3524_v40 = vsel %vm3514_vm0, %v3521_v16, %v3523_v22  ;;  %v7224_v25 = vadd.s32 4294967169, %v3589_v0 }
 0x347   :  { %v3528_v29 = vsel %vm3514_vm0, %v3525_v63, %v3527_v62  ;;  %vm7219_vm2 = vcmp.lt.s32.totalorder %v7218_v51, 0  ;;  %v3464_v36 = vsel %vm3379_vm13, %v3463_v10, %v3439_v8  ;;  %v3520_v60 = vsel %vm3514_vm0, %v3517_v52, %v3519_v7 }
 0x348   :  { %v11012_v34 = vmul.u32.u64.low %v3529_v46, %v3528_v29  ;;  %v11013_v42 = vmul.u32.u64.high %v3529_v46, %v3528_v29, %v11012_v34  ;;  %v3448_v61 = vsel %vm7219_vm2, 0, %v7218_v51  ;;  %v3595_v5 = vadd.s32 1, %v7224_v25 }
 0x349   :  { %v11016_v44 = vmul.u32.u64.low %v3529_v46, %v3524_v40  ;;  %v11017_v35 = vmul.u32.u64.high %v3529_v46, %v3524_v40, %v11016_v44  ;;  %v3449_v41 = vsub.s32 32, %v3448_v61  ;;  %v3450_v47 = vshll.u32 %v10982_v21, %v3448_v61 }
 0x34a   :  { %v3453_v1 = vsub.s32 4294967266, %v3448_v61  ;;  %vm3365_vm3 = vweird.f32 %v13720_v6  ;;  %v3466_v8 = vsel %vm10998_vm14, 0, %v3464_v36  ;;  %v3536_v20 = vmul.u32 %v3529_v46, %v3520_v60  ;;  %v13732_v61 = vld [vmem:[#allocation31_spill] sm:$0xff] }
 0x34b   :  { %v3451_v39 = vshrl.u32 %v3433_v32, %v3449_v41  ;;  %vm3538_vm5 = vc.u32 %v11013_v42, %v11016_v44  ;;  %vm3368_vm4 = vcmp.lt.s32.totalorder %v10969_v57, 2  ;;  %v3539_v15 = vadd.s32 1, %v11017_v35 }
 0x34c   :  { %v3454_v49 = vadd.s32 127, %v3453_v1  ;;  %v3592_v23 = vand.u32 8388607, %v3585_v4  ;;  %vm3596_vm6 = vcmp.gt.s32.totalorder %v3595_v5, 0  ;;  %vm3369_vm7 = vcmp.eq.s32.totalorder %v10969_v57, 0 }
 0x34d   :  { %v3452_v21 = vor.u32 %v3451_v39, %v3450_v47  ;;  %v3597_v9 = vsel %vm3596_vm6, %v3595_v5, 0  ;;  %vm3372_vm10 = vcmp.eq.s32.totalorder %v10969_v57, 2  ;;  %v3470_v58 = vadd.s32 3, %v3466_v8 }
 0x34e   :  { %v3455_v30 = vshll.u32 %v3454_v49, 23  ;;  %v7735_v11 = vpop.eup %7734  ;;  %v3540_v48 = vsel %vm3538_vm5, %v3539_v15, %v11017_v35  ;;  %v3599_v55 = vand.u32 31, %v3597_v9  ;;  %v3593_v54 = vor.u32 8388608, %v3592_v23 }
 0x34f   :  { %v7737_v13 = vpop.eup %7736  ;;  %v3373_v31 = vxor.u32 2147483648, %v7735_v11  ;;  %v3459_v14 = vcvt.s32.f32 %v3452_v21  ;;  %v3541_v50 = vadd.s32 %v3540_v48, %v3536_v20  ;;  %v3598_v32 = vshrl.u32 %v3597_v9, 5 }
 0x350   :  { %v3456_v38 = vor.u32 4788187, %v3455_v30  ;;  %v3370_v12 = vxor.u32 2147483648, %v7737_v13  ;;  %v3600_v53 = vsub.s32 32, %v3599_v55  ;;  %v3602_v46 = vshll.u32 %v13654_v28, %v3599_v55 }
 0x351   :  { %v3374_v0 = vsel %vm3372_vm10, %v3373_v31, %v7737_v13  ;;  %v3542_v37 = vadd.s32 536870912, %v3541_v50  ;;  %v3605_v52 = vshll.u32 %v13648_v18, %v3599_v55  ;;  %v3608_v63 = vshll.u32 %v13649_v24, %v3599_v55 }
 0x352   :  { %v3457_v10 = vand.u32 2147483647, %v3456_v38  ;;  %v3371_v16 = vsel %vm3369_vm7, %v7735_v11, %v3370_v12  ;;  %v3603_v3 = vshrl.u32 %v13648_v18, %v3600_v53  ;;  %v3606_v56 = vshrl.u32 %v13649_v24, %v3600_v53 }
 0x353   :  { %v3375_v45 = vsel %vm3368_vm4, %v3371_v16, %v3374_v0  ;;  %v3543_v7 = vshrl.u32 %v3542_v37, 30  ;;  %v3609_v22 = vshrl.u32 %v13650_v19, %v3600_v53  ;;  %v3611_v40 = vshll.u32 %v13650_v19, %v3599_v55 }
 0x354   :  { %v3460_v51 = vmul.f32 %v3459_v14, %v3457_v10  ;;  %v3376_v62 = vsel %vm3365_vm3, nan, %v3375_v45  ;;  %v11046_v29 = vshll.u32 %v3593_v54, 8  ;;  %v3601_v34 = vshrl.u32 %v13654_v28, %v3600_v53 }
 0x355   :  { %v3544_v36 = vshll.u32 %v3543_v7, 30  ;;  %v3692_v60 = vand.u32 2139095040, %v13732_v61  ;;  %7045 = vst [vmem:[#allocation5 + $0xe0] sm:$0xff] %v3376_v62  ;;  %v3604_v57 = vor.u32 %v3603_v3, %v3602_v46  ;;  %v3612_v35 = vshrl.u32 %v13651_v27, %v3600_v53 }
 0x356   :  { %v3461_v25 = vxor.u32 2147483648, %v3460_v51  ;;  %v3614_v41 = vshll.u32 %v13651_v27, %v3599_v55  ;;  %v3615_v6 = vshrl.u32 %v13652_v43, %v3600_v53  ;;  %v3607_v5 = vor.u32 %v3606_v56, %v3605_v52 }
 0x357   :  { %v11055_v1 = vsub.s32 %v3541_v50, %v3544_v36  ;;  %v3610_v8 = vor.u32 %v3609_v22, %v3608_v63  ;;  %v3613_v49 = vor.u32 %v3612_v35, %v3611_v40  ;;  %vm3617_vm8 = vcmp.lt.s32.totalorder %v3598_v32, 1 }
 0x358   :  { %v3462_v47 = vsel %vm3379_vm13, %v3461_v25, %v3460_v51  ;;  %v3616_v20 = vor.u32 %v3615_v6, %v3614_v41  ;;  %vm3619_vm11 = vcmp.lt.s32.totalorder %v3598_v32, 3  ;;  %v3693_v23 = vshrl.u32 %v3692_v60, 23 }
 0x359   :  { %v3465_v39 = vsel %vm10998_vm14, %v13723_v2, %v3462_v47  ;;  %v3547_v15 = vsub.s32 0, %v11055_v1  ;;  %vm3618_vm9 = vcmp.lt.s32.totalorder %v3598_v32, 2  ;;  %vm3620_vm12 = vcmp.lt.s32.totalorder %v3598_v32, 4 }
 0x35a   :  { %7738 = vcosq.f32 %v3465_v39  ;;  %v3621_v21 = vsel %vm3617_vm8, %v3601_v34, %v3604_v57  ;;  %v3622_v9 = vsel %vm3620_vm12, %v3610_v8, 2102212464  ;;  %v3625_v11 = vsel %vm3617_vm8, %v3604_v57, %v3607_v5 }
 0x35b   :  { %7740 = vsinq.f32 %v3465_v39  ;;  %v7221_v30 = vmin.u32 %v3547_v15, %v11055_v1  ;;  %v3626_v48 = vsel %vm3620_vm12, %v3613_v49, 920167782  ;;  %v3623_v59 = vsel %vm3619_vm11, %v3607_v5, %v3622_v9 }
 0x35c   :  { %v3627_v55 = vsel %vm3619_vm11, %v3610_v8, %v3626_v48  ;;  %v3629_v13 = vsel %vm3617_vm8, %v3607_v5, %v3610_v8  ;;  %v3630_v31 = vsel %vm3620_vm12, %v3616_v20, 1326507024  ;;  %v3471_v38 = vand.u32 3, %v3470_v58 }
 0x35d   :  { %v3549_v14 = vclz %v7221_v30  ;;  %v3567_v50 = vsub.s32 4, %v3543_v7  ;;  %v3624_v12 = vsel %vm3618_vm9, %v3621_v21, %v3623_v59  ;;  %v3628_v54 = vsel %vm3618_vm9, %v3625_v11, %v3627_v55  ;;  %v13735_v30 = vld [vmem:[#allocation32_spill] sm:$0xff] }
 0x35e   :  { %v3631_v53 = vsel %vm3619_vm11, %v3613_v49, %v3630_v31  ;;  %v7228_v46 = vadd.s32 4294967169, %v3693_v23  ;;  %v11069_v37 = vmul.u32.u64.low %v11046_v29, %v3628_v54  ;;  %v11070_v52 = vmul.u32.u64.high %v11046_v29, %v3628_v54, %v11069_v37 }
 0x35f   :  { %v7222_v0 = vadd.s32 4294967294, %v3549_v14  ;;  %v3632_v10 = vsel %vm3618_vm9, %v3629_v13, %v3631_v53  ;;  %vm3483_vm13 = vcmp.lt.s32.totalorder %v13728_v17, 0  ;;  %v3689_v3 = vand.u32 2147483647, %v13732_v61 }
 0x360   :  { %v11075_v58 = vmul.u32.u64.low %v11046_v29, %v3632_v10  ;;  %v11076_v16 = vmul.u32.u64.high %v11046_v29, %v3632_v10, %v11075_v58  ;;  %vm3469_vm14 = vweird.f32 %v13723_v2  ;;  %v3537_v56 = vadd.s32 %v11016_v44, %v11013_v42 }
 0x361   :  { %vm7223_vm15 = vcmp.lt.s32.totalorder %v7222_v0, 0  ;;  %v3568_v63 = vsel %vm3483_vm13, %v3567_v50, %v3543_v7  ;;  %v3699_v45 = vadd.s32 1, %v7228_v46  ;;  %vm3472_vm1 = vcmp.lt.s32.totalorder %v3471_v38, 2 }
 0x362   :  { %vm11086_vm0 = vcmp.le.f32.partialorder %v3481_v26, 0.7853982  ;;  %v3552_v22 = vsel %vm7223_vm15, 0, %v7222_v0  ;;  %v3640_v62 = vmul.u32 %v11046_v29, %v3624_v12  ;;  %v3643_v42 = vadd.s32 1, %v11070_v52 }
 0x363   :  { %v3553_v32 = vsub.s32 32, %v3552_v22  ;;  %v3554_v40 = vshll.u32 %v11055_v1, %v3552_v22  ;;  %v3557_v25 = vsub.s32 4294967266, %v3552_v22  ;;  %v3570_v44 = vsel %vm11086_vm0, 0, %v3568_v63 }
 0x364   :  { %vm3642_vm2 = vc.u32 %v11076_v16, %v11069_v37  ;;  %v3696_v26 = vand.u32 8388607, %v3689_v3  ;;  %vm3700_vm3 = vcmp.gt.s32.totalorder %v3699_v45, 0  ;;  %vm3473_vm5 = vcmp.eq.s32.totalorder %v3471_v38, 0 }
 0x365   :  { %v3555_v7 = vshrl.u32 %v3537_v56, %v3553_v32  ;;  %v3558_v36 = vadd.s32 127, %v3557_v25  ;;  %v3644_v29 = vsel %vm3642_vm2, %v3643_v42, %v11070_v52  ;;  %v3701_v34 = vsel %vm3700_vm3, %v3699_v45, 0 }
 0x366   :  { %vm3476_vm4 = vcmp.eq.s32.totalorder %v3471_v38, 2  ;;  %v3645_v57 = vadd.s32 %v3644_v29, %v3640_v62  ;;  %v3703_v35 = vand.u32 31, %v3701_v34  ;;  %v11100_v5 = vadd.s32 3, %v3570_v44 }
 0x367   :  { %v7739_v60 = vpop.eup %7738  ;;  %v3556_v47 = vor.u32 %v3555_v7, %v3554_v40  ;;  %v3559_v1 = vshll.u32 %v3558_v36, 23  ;;  %v3697_v49 = vor.u32 8388608, %v3696_v26  ;;  %v3793_v9 = vand.u32 2147483647, %v13735_v30 }
 0x368   :  { %v7741_v41 = vpop.eup %7740  ;;  %v3477_v6 = vxor.u32 2147483648, %v7739_v60  ;;  %v3646_v39 = vadd.s32 536870912, %v3645_v57  ;;  %v3704_v20 = vsub.s32 32, %v3703_v35  ;;  %v3702_v59 = vshrl.u32 %v3701_v34, 5 }
 0x369   :  { %v3474_v8 = vxor.u32 2147483648, %v7741_v41  ;;  %v3560_v23 = vor.u32 4788187, %v3559_v1  ;;  %v3563_v21 = vcvt.s32.f32 %v3556_v47  ;;  %v3796_v55 = vand.u32 2139095040, %v13735_v30 }
 0x36a   :  { %v3478_v15 = vsel %vm3476_vm4, %v3477_v6, %v7741_v41  ;;  %v3647_v48 = vshrl.u32 %v3646_v39, 30  ;;  %v3706_v14 = vshll.u32 %v13654_v28, %v3703_v35  ;;  %v3709_v50 = vshll.u32 %v13648_v18, %v3703_v35 }
 0x36b   :  { %v3475_v11 = vsel %vm3473_vm5, %v7739_v60, %v3474_v8  ;;  %v3561_v31 = vand.u32 2147483647, %v3560_v23  ;;  %v3707_v53 = vshrl.u32 %v13648_v18, %v3704_v20  ;;  %v3710_v46 = vshrl.u32 %v13649_v24, %v3704_v20 }
 0x36c   :  { %v3479_v13 = vsel %vm3472_vm1, %v3475_v11, %v3478_v15  ;;  %v3648_v54 = vshll.u32 %v3647_v48, 30  ;;  %v3712_v10 = vshll.u32 %v13649_v24, %v3703_v35  ;;  %v3713_v52 = vshrl.u32 %v13650_v19, %v3704_v20 }
 0x36d   :  { %v3480_v12 = vsel %vm3469_vm14, nan, %v3479_v13  ;;  %v3564_v0 = vmul.f32 %v3563_v21, %v3561_v31  ;;  %v3715_v38 = vshll.u32 %v13650_v19, %v3703_v35  ;;  %v3716_v56 = vshrl.u32 %v13651_v27, %v3704_v20 }
 0x36e   :  { %7046 = vst [vmem:[#allocation5 + $0xe8] sm:$0xff] %v3480_v12  ;;  %v11115_v58 = vsub.s32 %v3645_v57, %v3648_v54  ;;  %v3718_v2 = vshll.u32 %v13651_v27, %v3703_v35  ;;  %v11119_v63 = vshll.u32 %v3697_v49, 8  ;;  %v3641_v22 = vadd.s32 %v11069_v37, %v11076_v16 }
 0x36f   :  { %v3565_v45 = vxor.u32 2147483648, %v3564_v0  ;;  %v3719_v62 = vshrl.u32 %v13652_v43, %v3704_v20  ;;  %v3797_v32 = vshrl.u32 %v3796_v55, 23  ;;  %vm3587_vm6 = vcmp.lt.s32.totalorder %v13729_v33, 0 }
 0x370   :  { %v3651_v40 = vsub.s32 0, %v11115_v58  ;;  %v3705_v25 = vshrl.u32 %v13654_v28, %v3704_v20  ;;  %v3708_v42 = vor.u32 %v3707_v53, %v3706_v14  ;;  %v3711_v44 = vor.u32 %v3710_v46, %v3709_v50 }
 0x371   :  { %v3566_v26 = vsel %vm3483_vm13, %v3565_v45, %v3564_v0  ;;  %v3714_v7 = vor.u32 %v3713_v52, %v3712_v10  ;;  %v3717_v36 = vor.u32 %v3716_v56, %v3715_v38  ;;  %vm3721_vm7 = vcmp.lt.s32.totalorder %v3702_v59, 1 }
 0x372   :  { %v3569_v37 = vsel %vm11086_vm0, %v13728_v17, %v3566_v26  ;;  %v7225_v16 = vmin.u32 %v3651_v40, %v11115_v58  ;;  %v3720_v29 = vor.u32 %v3719_v62, %v3718_v2  ;;  %vm3724_vm10 = vcmp.lt.s32.totalorder %v3702_v59, 4 }
 0x373   :  { %7742 = vcosq.f32 %v3569_v37  ;;  %vm3722_vm8 = vcmp.lt.s32.totalorder %v3702_v59, 2  ;;  %vm3723_vm11 = vcmp.lt.s32.totalorder %v3702_v59, 3  ;;  %v3726_v34 = vsel %vm3724_vm10, %v3714_v7, 2102212464 }
 0x374   :  { %7744 = vsinq.f32 %v3569_v37  ;;  %v3653_v60 = vclz %v7225_v16  ;;  %v3725_v57 = vsel %vm3721_vm7, %v3705_v25, %v3708_v42  ;;  %v3729_v35 = vsel %vm3721_vm7, %v3708_v42, %v3711_v44 }
 0x375   :  { %v3671_v41 = vsub.s32 4, %v3647_v48  ;;  %v3727_v6 = vsel %vm3723_vm11, %v3711_v44, %v3726_v34  ;;  %v3730_v47 = vsel %vm3724_vm10, %v3717_v36, 920167782  ;;  %v3733_v51 = vsel %vm3721_vm7, %v3711_v44, %v3714_v7 }
 0x376   :  { %v7226_v1 = vadd.s32 4294967294, %v3653_v60  ;;  %v3731_v8 = vsel %vm3723_vm11, %v3714_v7, %v3730_v47  ;;  %v3734_v39 = vsel %vm3724_vm10, %v3720_v29, 1326507024  ;;  %v3800_v49 = vand.u32 8388607, %v3793_v9 }
 0x377   :  { %v3728_v20 = vsel %vm3722_vm8, %v3725_v57, %v3727_v6  ;;  %v3732_v15 = vsel %vm3722_vm8, %v3729_v35, %v3731_v8  ;;  %v3735_v23 = vsel %vm3723_vm11, %v3717_v36, %v3734_v39  ;;  %v7232_v21 = vadd.s32 4294967169, %v3797_v32 }
 0x378   :  { %vm7227_vm9 = vcmp.lt.s32.totalorder %v7226_v1, 0  ;;  %v3736_v11 = vsel %vm3722_vm8, %v3733_v51, %v3735_v23  ;;  %v11145_v55 = vmul.u32.u64.low %v11119_v63, %v3732_v15  ;;  %v11146_v13 = vmul.u32.u64.high %v11119_v63, %v3732_v15, %v11145_v55 }
 0x379   :  { %v3656_v31 = vsel %vm7227_vm9, 0, %v7226_v1  ;;  %v3672_v14 = vsel %vm3587_vm6, %v3671_v41, %v3647_v48  ;;  %v11152_v50 = vmul.u32.u64.low %v11119_v63, %v3736_v11  ;;  %v11153_v12 = vmul.u32.u64.high %v11119_v63, %v3736_v11, %v11152_v50 }
 0x37a   :  { %v3657_v54 = vsub.s32 32, %v3656_v31  ;;  %v3658_v53 = vshll.u32 %v11115_v58, %v3656_v31  ;;  %v3661_v46 = vsub.s32 4294967266, %v3656_v31  ;;  %v3803_v0 = vadd.s32 1, %v7232_v21 }
 0x37b   :  { %v3575_v59 = vand.u32 3, %v11100_v5  ;;  %vm11159_vm12 = vcmp.le.f32.partialorder %v3585_v4, 0.7853982  ;;  %v3744_v52 = vmul.u32 %v11119_v63, %v3728_v20  ;;  %v3747_v56 = vadd.s32 1, %v11146_v13 }
 0x37c   :  { %v3659_v48 = vshrl.u32 %v3641_v22, %v3657_v54  ;;  %v3662_v38 = vadd.s32 127, %v3661_v46  ;;  %vm3804_vm13 = vcmp.gt.s32.totalorder %v3803_v0, 0  ;;  %v3674_v58 = vsel %vm11159_vm12, 0, %v3672_v14 }
 0x37d   :  { %vm3746_vm14 = vc.u32 %v11153_v12, %v11145_v55  ;;  %v3801_v5 = vor.u32 8388608, %v3800_v49  ;;  %v3805_v2 = vsel %vm3804_vm13, %v3803_v0, 0  ;;  %vm3573_vm15 = vweird.f32 %v13728_v17 }
 0x37e   :  { %v3660_v45 = vor.u32 %v3659_v48, %v3658_v53  ;;  %v3663_v4 = vshll.u32 %v3662_v38, 23  ;;  %v3748_v62 = vsel %vm3746_vm14, %v3747_v56, %v11146_v13  ;;  %v11170_v32 = vshrl.u32 %v3805_v2, 5 }
 0x37f   :  { %vm3576_vm1 = vcmp.lt.s32.totalorder %v3575_v59, 2  ;;  %v3749_v63 = vadd.s32 %v3748_v62, %v3744_v52  ;;  %v3807_v22 = vand.u32 31, %v3805_v2  ;;  %vm3577_vm0 = vcmp.eq.s32.totalorder %v3575_v59, 0 }
 0x380   :  { %v7743_v40 = vpop.eup %7742  ;;  %vm3580_vm2 = vcmp.eq.s32.totalorder %v3575_v59, 2  ;;  %v3664_v25 = vor.u32 4788187, %v3663_v4  ;;  %v3667_v42 = vcvt.s32.f32 %v3660_v45  ;;  %v3678_v7 = vadd.s32 3, %v3674_v58  ;;  %v13740_v58 = vld [vmem:[#allocation33_spill] sm:$0xff] }
 0x381   :  { %v7745_v44 = vpop.eup %7744  ;;  %v3581_v26 = vxor.u32 2147483648, %v7743_v40  ;;  %v3750_v36 = vadd.s32 536870912, %v3749_v63  ;;  %v3808_v37 = vsub.s32 32, %v3807_v22  ;;  %vm3825_vm3 = vcmp.lt.s32.totalorder %v11170_v32, 1 }
 0x382   :  { %v3578_v16 = vxor.u32 2147483648, %v7745_v44  ;;  %v3665_v29 = vand.u32 2147483647, %v3664_v25  ;;  %v11174_v34 = vshll.u32 %v3801_v5, 8  ;;  %v3810_v35 = vshll.u32 %v13654_v28, %v3807_v22 }
 0x383   :  { %v3582_v60 = vsel %vm3580_vm2, %v3581_v26, %v7745_v44  ;;  %v3751_v57 = vshrl.u32 %v3750_v36, 30  ;;  %v3811_v41 = vshrl.u32 %v13648_v18, %v3808_v37  ;;  %vm3691_vm5 = vcmp.lt.s32.totalorder %v13732_v61, 0 }
 0x384   :  { %v3579_v6 = vsel %vm3577_vm0, %v7743_v40, %v3578_v16  ;;  %v3668_v47 = vmul.f32 %v3667_v42, %v3665_v29  ;;  %v3813_v51 = vshll.u32 %v13648_v18, %v3807_v22  ;;  %v3814_v1 = vshrl.u32 %v13649_v24, %v3808_v37 }
 0x385   :  { %v3583_v8 = vsel %vm3576_vm1, %v3579_v6, %v3582_v60  ;;  %v3752_v39 = vshll.u32 %v3751_v57, 30  ;;  %v3816_v49 = vshll.u32 %v13649_v24, %v3807_v22  ;;  %v3817_v20 = vshrl.u32 %v13650_v19, %v3808_v37 }
 0x386   :  { %v3584_v15 = vsel %vm3573_vm15, nan, %v3583_v8  ;;  %v3669_v23 = vxor.u32 2147483648, %v3668_v47  ;;  %v3775_v21 = vsub.s32 4, %v3751_v57  ;;  %v3809_v11 = vshrl.u32 %v13654_v28, %v3808_v37 }
 0x387   :  { %v11188_v13 = vsub.s32 %v3749_v63, %v3752_v39  ;;  %v3812_v31 = vor.u32 %v3811_v41, %v3810_v35  ;;  %v3819_v14 = vshll.u32 %v13650_v19, %v3807_v22  ;;  %v3820_v50 = vshrl.u32 %v13651_v27, %v3808_v37  ;;  %7047 = vst [vmem:[#allocation5 + $0xf0] sm:$0xff] %v3584_v15 }
 0x388   :  { %v3670_v54 = vsel %vm3587_vm6, %v3669_v23, %v3668_v47  ;;  %v3815_v53 = vor.u32 %v3814_v1, %v3813_v51  ;;  %v3822_v46 = vshll.u32 %v13651_v27, %v3807_v22  ;;  %v3823_v17 = vshrl.u32 %v13652_v43, %v3808_v37 }
 0x389   :  { %v3673_v0 = vsel %vm11159_vm12, %v13729_v33, %v3670_v54  ;;  %vm11201_vm4 = vcmp.le.f32.partialorder %v3689_v3, 0.7853982  ;;  %v3755_v52 = vsub.s32 0, %v11188_v13  ;;  %v3818_v48 = vor.u32 %v3817_v20, %v3816_v49 }
 0x38a   :  { %v3821_v38 = vor.u32 %v3820_v50, %v3819_v14  ;;  %7746 = vcosq.f32 %v3673_v0  ;;  %v3824_v56 = vor.u32 %v3823_v17, %v3822_v46  ;;  %vm3828_vm6 = vcmp.lt.s32.totalorder %v11170_v32, 4 }
 0x38b   :  { %v3900_v5 = vand.u32 2139095040, %v13740_v58  ;;  %7748 = vsinq.f32 %v3673_v0  ;;  %v7229_v10 = vmin.u32 %v3755_v52, %v11188_v13  ;;  %vm3826_vm7 = vcmp.lt.s32.totalorder %v11170_v32, 2 }
 0x38c   :  { %vm3827_vm10 = vcmp.lt.s32.totalorder %v11170_v32, 3  ;;  %v3829_v3 = vsel %vm3825_vm3, %v3809_v11, %v3812_v31  ;;  %v3830_v2 = vsel %vm3828_vm6, %v3818_v48, 2102212464  ;;  %v3833_v45 = vsel %vm3825_vm3, %v3812_v31, %v3815_v53 }
 0x38d   :  { %v3834_v4 = vsel %vm3828_vm6, %v3821_v38, 920167782  ;;  %v3679_v62 = vand.u32 3, %v3678_v7  ;;  %v3757_v63 = vclz %v7229_v10  ;;  %v3776_v22 = vsel %vm3691_vm5, %v3775_v21, %v3751_v57 }
 0x38e   :  { %v3837_v40 = vsel %vm3825_vm3, %v3815_v53, %v3818_v48  ;;  %v3831_v25 = vsel %vm3827_vm10, %v3815_v53, %v3830_v2  ;;  %v3835_v42 = vsel %vm3827_vm10, %v3818_v48, %v3834_v4  ;;  %v3838_v44 = vsel %vm3828_vm6, %v3824_v56, 1326507024 }
 0x38f   :  { %v3901_v26 = vshrl.u32 %v3900_v5, 23  ;;  %v7230_v36 = vadd.s32 4294967294, %v3757_v63  ;;  %v3832_v7 = vsel %vm3826_vm7, %v3829_v3, %v3831_v25  ;;  %v3836_v37 = vsel %vm3826_vm7, %v3833_v45, %v3835_v42 }
 0x390   :  { %v3839_v16 = vsel %vm3827_vm10, %v3821_v38, %v3838_v44  ;;  %v3745_v29 = vadd.s32 %v11145_v55, %v11153_v12  ;;  %v11240_v57 = vmul.u32.u64.low %v11174_v34, %v3836_v37  ;;  %v11241_v35 = vmul.u32.u64.high %v11174_v34, %v3836_v37, %v11240_v57 }
 0x391   :  { %v3840_v60 = vsel %vm3826_vm7, %v3837_v40, %v3839_v16  ;;  %vm7231_vm8 = vcmp.lt.s32.totalorder %v7230_v36, 0  ;;  %v7236_v47 = vadd.s32 4294967169, %v3901_v26  ;;  %v3778_v1 = vsel %vm11201_vm4, 0, %v3776_v22 }
 0x392   :  { %v11245_v41 = vmul.u32.u64.low %v11174_v34, %v3840_v60  ;;  %v11246_v6 = vmul.u32.u64.high %v11174_v34, %v3840_v60, %v11245_v41  ;;  %v3760_v51 = vsel %vm7231_vm8, 0, %v7230_v36  ;;  %v3848_v55 = vmul.u32 %v11174_v34, %v3832_v7 }
 0x393   :  { %v3897_v12 = vand.u32 2147483647, %v13740_v58  ;;  %v3761_v32 = vsub.s32 32, %v3760_v51  ;;  %v3762_v8 = vshll.u32 %v11188_v13, %v3760_v51  ;;  %v3765_v39 = vsub.s32 4294967266, %v3760_v51 }
 0x394   :  { %v3907_v49 = vadd.s32 1, %v7236_v47  ;;  %vm3677_vm11 = vweird.f32 %v13729_v33  ;;  %v3851_v20 = vadd.s32 1, %v11241_v35  ;;  %vm3684_vm9 = vcmp.eq.s32.totalorder %v3679_v62, 2 }
 0x395   :  { %v3763_v15 = vshrl.u32 %v3745_v29, %v3761_v32  ;;  %v3766_v23 = vadd.s32 127, %v3765_v39  ;;  %vm3850_vm12 = vc.u32 %v11246_v6, %v11240_v57  ;;  %v3782_v21 = vadd.s32 3, %v3778_v1 }
 0x396   :  { %v3852_v34 = vsel %vm3850_vm12, %v3851_v20, %v11241_v35  ;;  %v3904_v11 = vand.u32 8388607, %v3897_v12  ;;  %vm3908_vm13 = vcmp.gt.s32.totalorder %v3907_v49, 0  ;;  %vm3680_vm14 = vcmp.lt.s32.totalorder %v3679_v62, 2 }
 0x397   :  { %v7747_v13 = vpop.eup %7746  ;;  %v3764_v31 = vor.u32 %v3763_v15, %v3762_v8  ;;  %v3767_v14 = vshll.u32 %v3766_v23, 23  ;;  %v3853_v50 = vadd.s32 %v3852_v34, %v3848_v55  ;;  %v3909_v54 = vsel %vm3908_vm13, %v3907_v49, 0 }
 0x398   :  { %v7749_v53 = vpop.eup %7748  ;;  %vm3681_vm15 = vcmp.eq.s32.totalorder %v3679_v62, 0  ;;  %v3685_v46 = vxor.u32 2147483648, %v7747_v13  ;;  %v3911_v17 = vand.u32 31, %v3909_v54  ;;  %v11261_v5 = vand.u32 3, %v3782_v21  ;;  %v13741_v62 = vld [vmem:[#allocation34_spill] sm:$0xff] }
 0x399   :  { %v3682_v0 = vxor.u32 2147483648, %v7749_v53  ;;  %v3768_v52 = vor.u32 4788187, %v3767_v14  ;;  %v3771_v48 = vcvt.s32.f32 %v3764_v31  ;;  %v3854_v38 = vadd.s32 536870912, %v3853_v50 }
 0x39a   :  { %v3686_v56 = vsel %vm3684_vm9, %v3685_v46, %v7749_v53  ;;  %v3905_v10 = vor.u32 8388608, %v3904_v11  ;;  %v3912_v3 = vsub.s32 32, %v3911_v17  ;;  %v3914_v63 = vshll.u32 %v13654_v28, %v3911_v17 }
 0x39b   :  { %v3683_v2 = vsel %vm3681_vm15, %v7747_v13, %v3682_v0  ;;  %v3769_v45 = vand.u32 2147483647, %v3768_v52  ;;  %v3855_v4 = vshrl.u32 %v3854_v38, 30  ;;  %v3917_v25 = vshll.u32 %v13648_v18, %v3911_v17 }
 0x39c   :  { %v3687_v22 = vsel %vm3680_vm14, %v3683_v2, %v3686_v56  ;;  %v3915_v40 = vshrl.u32 %v13648_v18, %v3912_v3  ;;  %v3920_v42 = vshll.u32 %v13649_v24, %v3911_v17  ;;  %v3918_v7 = vshrl.u32 %v13649_v24, %v3912_v3 }
 0x39d   :  { %v3688_v44 = vsel %vm3677_vm11, nan, %v3687_v22  ;;  %v3772_v26 = vmul.f32 %v3771_v48, %v3769_v45  ;;  %v3856_v36 = vshll.u32 %v3855_v4, 30  ;;  %v3910_v37 = vshrl.u32 %v3909_v54, 5 }
 0x39e   :  { %v3921_v16 = vshrl.u32 %v13650_v19, %v3912_v3  ;;  %v3923_v29 = vshll.u32 %v13650_v19, %v3911_v17  ;;  %v4001_v60 = vand.u32 2147483647, %v13741_v62  ;;  %7048 = vst [vmem:[#allocation5 + $0xf8] sm:$0xff] %v3688_v44  ;;  %v3924_v47 = vshrl.u32 %v13651_v27, %v3912_v3 }
 0x39f   :  { %v3773_v35 = vxor.u32 2147483648, %v3772_v26  ;;  %v11274_v41 = vsub.s32 %v3853_v50, %v3856_v36  ;;  %v4004_v33 = vand.u32 2139095040, %v13741_v62  ;;  %vm3795_vm1 = vcmp.lt.s32.totalorder %v13735_v30, 0 }
 0x3a0   :  { %v3913_v51 = vshrl.u32 %v13654_v28, %v3912_v3  ;;  %v3916_v1 = vor.u32 %v3915_v40, %v3914_v63  ;;  %v3926_v55 = vshll.u32 %v13651_v27, %v3911_v17  ;;  %v3927_v32 = vshrl.u32 %v13652_v43, %v3912_v3 }
 0x3a1   :  { %v3774_v8 = vsel %vm3691_vm5, %v3773_v35, %v3772_v26  ;;  %v3859_v39 = vsub.s32 0, %v11274_v41  ;;  %v3919_v49 = vor.u32 %v3918_v7, %v3917_v25  ;;  %v3922_v20 = vor.u32 %v3921_v16, %v3920_v42 }
 0x3a2   :  { %v3777_v15 = vsel %vm11201_vm4, %v13732_v61, %v3774_v8  ;;  %v3925_v23 = vor.u32 %v3924_v47, %v3923_v29  ;;  %v3928_v21 = vor.u32 %v3927_v32, %v3926_v55  ;;  %vm3929_vm0 = vcmp.lt.s32.totalorder %v3910_v37, 1 }
 0x3a3   :  { %7750 = vcosq.f32 %v3777_v15  ;;  %vm11290_vm2 = vcmp.le.f32.partialorder %v3793_v9, 0.7853982  ;;  %v7233_v11 = vmin.u32 %v3859_v39, %v11274_v41  ;;  %v3945_v13 = vshll.u32 %v3905_v10, 8 }
 0x3a4   :  { %v4005_v31 = vshrl.u32 %v4004_v33, 23  ;;  %7752 = vsinq.f32 %v3777_v15  ;;  %v3879_v14 = vsub.s32 4, %v3855_v4  ;;  %vm3931_vm3 = vcmp.lt.s32.totalorder %v3910_v37, 3 }
 0x3a5   :  { %vm3932_vm5 = vcmp.lt.s32.totalorder %v3910_v37, 4  ;;  %v3861_v59 = vclz %v7233_v11  ;;  %vm3930_vm4 = vcmp.lt.s32.totalorder %v3910_v37, 2  ;;  %v3933_v50 = vsel %vm3929_vm0, %v3913_v51, %v3916_v1 }
 0x3a6   :  { %v3937_v54 = vsel %vm3929_vm0, %v3916_v1, %v3919_v49  ;;  %v3934_v53 = vsel %vm3932_vm5, %v3922_v20, 2102212464  ;;  %v3938_v46 = vsel %vm3932_vm5, %v3925_v23, 920167782  ;;  %v3941_v9 = vsel %vm3929_vm0, %v3919_v49, %v3922_v20 }
 0x3a7   :  { %v3942_v17 = vsel %vm3932_vm5, %v3928_v21, 1326507024  ;;  %v7234_v0 = vadd.s32 4294967294, %v3861_v59  ;;  %v3935_v52 = vsel %vm3931_vm3, %v3919_v49, %v3934_v53  ;;  %v3939_v48 = vsel %vm3931_vm3, %v3922_v20, %v3938_v46 }
 0x3a8   :  { %v3943_v38 = vsel %vm3931_vm3, %v3925_v23, %v3942_v17  ;;  %v3849_v56 = vadd.s32 %v11240_v57, %v11246_v6  ;;  %v3940_v10 = vsel %vm3930_vm4, %v3937_v54, %v3939_v48  ;;  %v7240_v2 = vadd.s32 4294967169, %v4005_v31 }
 0x3a9   :  { %v3944_v3 = vsel %vm3930_vm4, %v3941_v9, %v3943_v38  ;;  %vm7235_vm6 = vcmp.lt.s32.totalorder %v7234_v0, 0  ;;  %v3880_v45 = vsel %vm3795_vm1, %v3879_v14, %v3855_v4  ;;  %v3936_v25 = vsel %vm3930_vm4, %v3933_v50, %v3935_v52 }
 0x3aa   :  { %v11304_v63 = vmul.u32.u64.low %v3945_v13, %v3944_v3  ;;  %v11305_v22 = vmul.u32.u64.high %v3945_v13, %v3944_v3, %v11304_v63  ;;  %v3864_v40 = vsel %vm7235_vm6, 0, %v7234_v0  ;;  %v4011_v36 = vadd.s32 1, %v7240_v2 }
 0x3ab   :  { %v11308_v42 = vmul.u32.u64.low %v3945_v13, %v3940_v10  ;;  %v11309_v44 = vmul.u32.u64.high %v3945_v13, %v3940_v10, %v11308_v42  ;;  %v3865_v57 = vsub.s32 32, %v3864_v40  ;;  %v3866_v6 = vshll.u32 %v11274_v41, %v3864_v40 }
 0x3ac   :  { %v3869_v26 = vsub.s32 4294967266, %v3864_v40  ;;  %vm3781_vm7 = vweird.f32 %v13732_v61  ;;  %v3882_v4 = vsel %vm11290_vm2, 0, %v3880_v45  ;;  %v3952_v29 = vmul.u32 %v3945_v13, %v3936_v25  ;;  %v13744_v40 = vld [vmem:[#allocation35_spill] sm:$0xff] }
 0x3ad   :  { %v3867_v7 = vshrl.u32 %v3849_v56, %v3865_v57  ;;  %vm3954_vm10 = vc.u32 %v11305_v22, %v11308_v42  ;;  %vm3784_vm8 = vcmp.lt.s32.totalorder %v11261_v5, 2  ;;  %v3955_v37 = vadd.s32 1, %v11309_v44 }
 0x3ae   :  { %v3870_v16 = vadd.s32 127, %v3869_v26  ;;  %v4008_v35 = vand.u32 8388607, %v4001_v60  ;;  %vm4012_vm11 = vcmp.gt.s32.totalorder %v4011_v36, 0  ;;  %vm3785_vm9 = vcmp.eq.s32.totalorder %v11261_v5, 0 }
 0x3af   :  { %v3868_v41 = vor.u32 %v3867_v7, %v3866_v6  ;;  %v4013_v33 = vsel %vm4012_vm11, %v4011_v36, 0  ;;  %vm3788_vm12 = vcmp.eq.s32.totalorder %v11261_v5, 2  ;;  %v3886_v1 = vadd.s32 3, %v3882_v4 }
 0x3b0   :  { %v3871_v47 = vshll.u32 %v3870_v16, 23  ;;  %v7751_v51 = vpop.eup %7750  ;;  %v3956_v55 = vsel %vm3954_vm10, %v3955_v37, %v11309_v44  ;;  %v4015_v32 = vand.u32 31, %v4013_v33  ;;  %v4009_v21 = vor.u32 8388608, %v4008_v35 }
 0x3b1   :  { %v7753_v8 = vpop.eup %7752  ;;  %v3789_v39 = vxor.u32 2147483648, %v7751_v51  ;;  %v3875_v20 = vcvt.s32.f32 %v3868_v41  ;;  %v3957_v15 = vadd.s32 %v3956_v55, %v3952_v29  ;;  %v4014_v56 = vshrl.u32 %v4013_v33, 5 }
 0x3b2   :  { %v3872_v49 = vor.u32 4788187, %v3871_v47  ;;  %v3786_v23 = vxor.u32 2147483648, %v7753_v8  ;;  %v4016_v11 = vsub.s32 32, %v4015_v32  ;;  %v4018_v13 = vshll.u32 %v13654_v28, %v4015_v32 }
 0x3b3   :  { %v3790_v31 = vsel %vm3788_vm12, %v3789_v39, %v7753_v8  ;;  %v3958_v59 = vadd.s32 536870912, %v3957_v15  ;;  %v4021_v50 = vshll.u32 %v13648_v18, %v4015_v32  ;;  %v4024_v9 = vshll.u32 %v13649_v24, %v4015_v32 }
 0x3b4   :  { %v3873_v14 = vand.u32 2147483647, %v3872_v49  ;;  %v3787_v54 = vsel %vm3785_vm9, %v7751_v51, %v3786_v23  ;;  %v4019_v53 = vshrl.u32 %v13648_v18, %v4016_v11  ;;  %v4022_v46 = vshrl.u32 %v13649_v24, %v4016_v11 }
 0x3b5   :  { %v3791_v17 = vsel %vm3784_vm8, %v3787_v54, %v3790_v31  ;;  %v3959_v52 = vshrl.u32 %v3958_v59, 30  ;;  %v4025_v48 = vshrl.u32 %v13650_v19, %v4016_v11  ;;  %v4027_v10 = vshll.u32 %v13650_v19, %v4015_v32 }
 0x3b6   :  { %v3876_v0 = vmul.f32 %v3875_v20, %v3873_v14  ;;  %v3792_v38 = vsel %vm3781_vm7, nan, %v3791_v17  ;;  %v11338_v3 = vshll.u32 %v4009_v21, 8  ;;  %v4017_v63 = vshrl.u32 %v13654_v28, %v4016_v11 }
 0x3b7   :  { %v3960_v45 = vshll.u32 %v3959_v52, 30  ;;  %v4108_v25 = vand.u32 2139095040, %v13744_v40  ;;  %7049 = vst [vmem:[#allocation5 + $0x100] sm:$0xff] %v3792_v38  ;;  %v4020_v5 = vor.u32 %v4019_v53, %v4018_v13  ;;  %v4028_v44 = vshrl.u32 %v13651_v27, %v4016_v11 }
 0x3b8   :  { %v3877_v2 = vxor.u32 2147483648, %v3876_v0  ;;  %v4030_v57 = vshll.u32 %v13651_v27, %v4015_v32  ;;  %v4031_v61 = vshrl.u32 %v13652_v43, %v4016_v11  ;;  %v4023_v36 = vor.u32 %v4022_v46, %v4021_v50 }
 0x3b9   :  { %v11347_v26 = vsub.s32 %v3957_v15, %v3960_v45  ;;  %v4026_v4 = vor.u32 %v4025_v48, %v4024_v9  ;;  %v4029_v16 = vor.u32 %v4028_v44, %v4027_v10  ;;  %vm4033_vm13 = vcmp.lt.s32.totalorder %v4014_v56, 1 }
 0x3ba   :  { %v3878_v6 = vsel %vm3795_vm1, %v3877_v2, %v3876_v0  ;;  %v4032_v29 = vor.u32 %v4031_v61, %v4030_v57  ;;  %vm4035_vm14 = vcmp.lt.s32.totalorder %v4014_v56, 3  ;;  %v4109_v35 = vshrl.u32 %v4108_v25, 23 }
 0x3bb   :  { %v3881_v7 = vsel %vm11290_vm2, %v13735_v30, %v3878_v6  ;;  %v3963_v37 = vsub.s32 0, %v11347_v26  ;;  %vm4034_vm15 = vcmp.lt.s32.totalorder %v4014_v56, 2  ;;  %vm4036_vm0 = vcmp.lt.s32.totalorder %v4014_v56, 4 }
 0x3bc   :  { %7754 = vcosq.f32 %v3881_v7  ;;  %v4037_v41 = vsel %vm4033_vm13, %v4017_v63, %v4020_v5  ;;  %v4038_v33 = vsel %vm4036_vm0, %v4026_v4, 2102212464  ;;  %v4041_v51 = vsel %vm4033_vm13, %v4020_v5, %v4023_v36 }
 0x3bd   :  { %7756 = vsinq.f32 %v3881_v7  ;;  %v7237_v47 = vmin.u32 %v3963_v37, %v11347_v26  ;;  %v4042_v55 = vsel %vm4036_vm0, %v4029_v16, 920167782  ;;  %v4039_v34 = vsel %vm4035_vm14, %v4023_v36, %v4038_v33 }
 0x3be   :  { %v4043_v32 = vsel %vm4035_vm14, %v4026_v4, %v4042_v55  ;;  %v4045_v8 = vsel %vm4033_vm13, %v4023_v36, %v4026_v4  ;;  %v4046_v39 = vsel %vm4036_vm0, %v4032_v29, 1326507024  ;;  %v3887_v49 = vand.u32 3, %v3886_v1 }
 0x3bf   :  { %v3965_v20 = vclz %v7237_v47  ;;  %v3983_v15 = vsub.s32 4, %v3959_v52  ;;  %v4040_v23 = vsel %vm4034_vm15, %v4037_v41, %v4039_v34  ;;  %v4044_v21 = vsel %vm4034_vm15, %v4041_v51, %v4043_v32  ;;  %v13747_v47 = vld [vmem:[#allocation36_spill] sm:$0xff] }
 0x3c0   :  { %v4047_v11 = vsel %vm4035_vm14, %v4029_v16, %v4046_v39  ;;  %v7244_v13 = vadd.s32 4294967169, %v4109_v35  ;;  %v11361_v59 = vmul.u32.u64.low %v11338_v3, %v4044_v21  ;;  %v11362_v50 = vmul.u32.u64.high %v11338_v3, %v4044_v21, %v11361_v59 }
 0x3c1   :  { %v7238_v31 = vadd.s32 4294967294, %v3965_v20  ;;  %v4048_v14 = vsel %vm4034_vm15, %v4045_v8, %v4047_v11  ;;  %vm3899_vm1 = vcmp.lt.s32.totalorder %v13740_v58, 0  ;;  %v4105_v53 = vand.u32 2147483647, %v13744_v40 }
 0x3c2   :  { %v11367_v1 = vmul.u32.u64.low %v11338_v3, %v4048_v14  ;;  %v11368_v54 = vmul.u32.u64.high %v11338_v3, %v4048_v14, %v11367_v1  ;;  %vm3885_vm2 = vweird.f32 %v13735_v30  ;;  %v3953_v46 = vadd.s32 %v11308_v42, %v11305_v22 }
 0x3c3   :  { %vm7239_vm3 = vcmp.lt.s32.totalorder %v7238_v31, 0  ;;  %v3984_v9 = vsel %vm3899_vm1, %v3983_v15, %v3959_v52  ;;  %v4115_v17 = vadd.s32 1, %v7244_v13  ;;  %vm3888_vm5 = vcmp.lt.s32.totalorder %v3887_v49, 2 }
 0x3c4   :  { %vm11378_vm4 = vcmp.le.f32.partialorder %v3897_v12, 0.7853982  ;;  %v3968_v48 = vsel %vm7239_vm3, 0, %v7238_v31  ;;  %v4056_v38 = vmul.u32 %v11338_v3, %v4040_v23  ;;  %v4059_v22 = vadd.s32 1, %v11362_v50 }
 0x3c5   :  { %v3969_v56 = vsub.s32 32, %v3968_v48  ;;  %v3970_v10 = vshll.u32 %v11347_v26, %v3968_v48  ;;  %v3973_v2 = vsub.s32 4294967266, %v3968_v48  ;;  %v3986_v42 = vsel %vm11378_vm4, 0, %v3984_v9 }
 0x3c6   :  { %vm4058_vm6 = vc.u32 %v11368_v54, %v11361_v59  ;;  %v4112_v12 = vand.u32 8388607, %v4105_v53  ;;  %vm4116_vm7 = vcmp.gt.s32.totalorder %v4115_v17, 0  ;;  %vm3889_vm10 = vcmp.eq.s32.totalorder %v3887_v49, 0 }
 0x3c7   :  { %v3971_v52 = vshrl.u32 %v3953_v46, %v3969_v56  ;;  %v3974_v45 = vadd.s32 127, %v3973_v2  ;;  %v4060_v3 = vsel %vm4058_vm6, %v4059_v22, %v11362_v50  ;;  %v4117_v63 = vsel %vm4116_vm7, %v4115_v17, 0 }
 0x3c8   :  { %vm3892_vm8 = vcmp.eq.s32.totalorder %v3887_v49, 2  ;;  %v4061_v5 = vadd.s32 %v4060_v3, %v4056_v38  ;;  %v4119_v44 = vand.u32 31, %v4117_v63  ;;  %v11392_v36 = vadd.s32 3, %v3986_v42 }
 0x3c9   :  { %v7755_v25 = vpop.eup %7754  ;;  %v3972_v6 = vor.u32 %v3971_v52, %v3970_v10  ;;  %v3975_v26 = vshll.u32 %v3974_v45, 23  ;;  %v4113_v16 = vor.u32 8388608, %v4112_v12  ;;  %v4209_v33 = vand.u32 2147483647, %v13747_v47 }
 0x3ca   :  { %v7757_v57 = vpop.eup %7756  ;;  %v3893_v61 = vxor.u32 2147483648, %v7755_v25  ;;  %v4062_v7 = vadd.s32 536870912, %v4061_v5  ;;  %v4120_v29 = vsub.s32 32, %v4119_v44  ;;  %v4118_v34 = vshrl.u32 %v4117_v63, 5 }
 0x3cb   :  { %v3890_v4 = vxor.u32 2147483648, %v7757_v57  ;;  %v3976_v35 = vor.u32 4788187, %v3975_v26  ;;  %v3979_v41 = vcvt.s32.f32 %v3972_v6  ;;  %v4212_v32 = vand.u32 2139095040, %v13747_v47 }
 0x3cc   :  { %v3894_v37 = vsel %vm3892_vm8, %v3893_v61, %v7757_v57  ;;  %v4063_v55 = vshrl.u32 %v4062_v7, 30  ;;  %v4122_v20 = vshll.u32 %v13654_v28, %v4119_v44  ;;  %v4125_v15 = vshll.u32 %v13648_v18, %v4119_v44 }
 0x3cd   :  { %v3891_v51 = vsel %vm3889_vm10, %v7755_v25, %v3890_v4  ;;  %v3977_v39 = vand.u32 2147483647, %v3976_v35  ;;  %v4123_v11 = vshrl.u32 %v13648_v18, %v4120_v29  ;;  %v4126_v13 = vshrl.u32 %v13649_v24, %v4120_v29 }
 0x3ce   :  { %v3895_v8 = vsel %vm3888_vm5, %v3891_v51, %v3894_v37  ;;  %v4064_v21 = vshll.u32 %v4063_v55, 30  ;;  %v4128_v14 = vshll.u32 %v13649_v24, %v4119_v44  ;;  %v4129_v50 = vshrl.u32 %v13650_v19, %v4120_v29 }
 0x3cf   :  { %v3896_v23 = vsel %vm3885_vm2, nan, %v3895_v8  ;;  %v3980_v31 = vmul.f32 %v3979_v41, %v3977_v39  ;;  %v4131_v49 = vshll.u32 %v13650_v19, %v4119_v44  ;;  %v4132_v46 = vshrl.u32 %v13651_v27, %v4120_v29 }
 0x3d0   :  { %7050 = vst [vmem:[#allocation5 + $0x108] sm:$0xff] %v3896_v23  ;;  %v11407_v1 = vsub.s32 %v4061_v5, %v4064_v21  ;;  %v4134_v30 = vshll.u32 %v13651_v27, %v4119_v44  ;;  %v11411_v9 = vshll.u32 %v4113_v16, 8  ;;  %v4057_v48 = vadd.s32 %v11361_v59, %v11368_v54 }
 0x3d1   :  { %v3981_v17 = vxor.u32 2147483648, %v3980_v31  ;;  %v4135_v38 = vshrl.u32 %v13652_v43, %v4120_v29  ;;  %v4213_v56 = vshrl.u32 %v4212_v32, 23  ;;  %vm4003_vm11 = vcmp.lt.s32.totalorder %v13741_v62, 0 }
 0x3d2   :  { %v4067_v10 = vsub.s32 0, %v11407_v1  ;;  %v4121_v2 = vshrl.u32 %v13654_v28, %v4120_v29  ;;  %v4124_v22 = vor.u32 %v4123_v11, %v4122_v20  ;;  %v4127_v42 = vor.u32 %v4126_v13, %v4125_v15 }
 0x3d3   :  { %v3982_v12 = vsel %vm3899_vm1, %v3981_v17, %v3980_v31  ;;  %v4130_v52 = vor.u32 %v4129_v50, %v4128_v14  ;;  %v4133_v45 = vor.u32 %v4132_v46, %v4131_v49  ;;  %vm4137_vm9 = vcmp.lt.s32.totalorder %v4118_v34, 1 }
 0x3d4   :  { %v3985_v59 = vsel %vm11378_vm4, %v13740_v58, %v3982_v12  ;;  %v7241_v54 = vmin.u32 %v4067_v10, %v11407_v1  ;;  %v4136_v3 = vor.u32 %v4135_v38, %v4134_v30  ;;  %vm4140_vm12 = vcmp.lt.s32.totalorder %v4118_v34, 4 }
 0x3d5   :  { %7758 = vcosq.f32 %v3985_v59  ;;  %vm4138_vm13 = vcmp.lt.s32.totalorder %v4118_v34, 2  ;;  %vm4139_vm14 = vcmp.lt.s32.totalorder %v4118_v34, 3  ;;  %v4142_v63 = vsel %vm4140_vm12, %v4130_v52, 2102212464 }
 0x3d6   :  { %7760 = vsinq.f32 %v3985_v59  ;;  %v4069_v25 = vclz %v7241_v54  ;;  %v4141_v5 = vsel %vm4137_vm9, %v4121_v2, %v4124_v22  ;;  %v4145_v44 = vsel %vm4137_vm9, %v4124_v22, %v4127_v42 }
 0x3d7   :  { %v4087_v57 = vsub.s32 4, %v4063_v55  ;;  %v4143_v61 = vsel %vm4139_vm14, %v4127_v42, %v4142_v63  ;;  %v4146_v6 = vsel %vm4140_vm12, %v4133_v45, 920167782  ;;  %v4149_v0 = vsel %vm4137_vm9, %v4127_v42, %v4130_v52 }
 0x3d8   :  { %v7242_v26 = vadd.s32 4294967294, %v4069_v25  ;;  %v4147_v4 = vsel %vm4139_vm14, %v4130_v52, %v4146_v6  ;;  %v4150_v7 = vsel %vm4140_vm12, %v4136_v3, 1326507024  ;;  %v4216_v16 = vand.u32 8388607, %v4209_v33 }
 0x3d9   :  { %v4144_v29 = vsel %vm4138_vm13, %v4141_v5, %v4143_v61  ;;  %v4148_v37 = vsel %vm4138_vm13, %v4145_v44, %v4147_v4  ;;  %v4151_v35 = vsel %vm4139_vm14, %v4133_v45, %v4150_v7  ;;  %v7248_v41 = vadd.s32 4294967169, %v4213_v56 }
 0x3da   :  { %vm7243_vm15 = vcmp.lt.s32.totalorder %v7242_v26, 0  ;;  %v4152_v51 = vsel %vm4138_vm13, %v4149_v0, %v4151_v35  ;;  %v11437_v32 = vmul.u32.u64.low %v11411_v9, %v4148_v37  ;;  %v11438_v8 = vmul.u32.u64.high %v11411_v9, %v4148_v37, %v11437_v32 }
 0x3db   :  { %v4072_v39 = vsel %vm7243_vm15, 0, %v7242_v26  ;;  %v4088_v20 = vsel %vm4003_vm11, %v4087_v57, %v4063_v55  ;;  %v11444_v15 = vmul.u32.u64.low %v11411_v9, %v4152_v51  ;;  %v11445_v23 = vmul.u32.u64.high %v11411_v9, %v4152_v51, %v11444_v15 }
 0x3dc   :  { %v4073_v21 = vsub.s32 32, %v4072_v39  ;;  %v4074_v11 = vshll.u32 %v11407_v1, %v4072_v39  ;;  %v4077_v13 = vsub.s32 4294967266, %v4072_v39  ;;  %v4219_v31 = vadd.s32 1, %v7248_v41 }
 0x3dd   :  { %v3991_v34 = vand.u32 3, %v11392_v36  ;;  %vm11451_vm0 = vcmp.le.f32.partialorder %v4001_v60, 0.7853982  ;;  %v4160_v50 = vmul.u32 %v11411_v9, %v4144_v29  ;;  %v4163_v46 = vadd.s32 1, %v11438_v8 }
 0x3de   :  { %v4075_v55 = vshrl.u32 %v4057_v48, %v4073_v21  ;;  %v4078_v49 = vadd.s32 127, %v4077_v13  ;;  %vm4220_vm1 = vcmp.gt.s32.totalorder %v4219_v31, 0  ;;  %v4090_v1 = vsel %vm11451_vm0, 0, %v4088_v20 }
 0x3df   :  { %vm4162_vm2 = vc.u32 %v11445_v23, %v11437_v32  ;;  %v4217_v36 = vor.u32 8388608, %v4216_v16  ;;  %v4221_v30 = vsel %vm4220_vm1, %v4219_v31, 0  ;;  %vm3989_vm3 = vweird.f32 %v13740_v58 }
 0x3e0   :  { %v4076_v17 = vor.u32 %v4075_v55, %v4074_v11  ;;  %v4079_v60 = vshll.u32 %v4078_v49, 23  ;;  %v4164_v38 = vsel %vm4162_vm2, %v4163_v46, %v11438_v8  ;;  %v11462_v56 = vshrl.u32 %v4221_v30, 5 }
 0x3e1   :  { %vm3992_vm5 = vcmp.lt.s32.totalorder %v3991_v34, 2  ;;  %v4165_v9 = vadd.s32 %v4164_v38, %v4160_v50  ;;  %v4223_v48 = vand.u32 31, %v4221_v30  ;;  %vm3993_vm4 = vcmp.eq.s32.totalorder %v3991_v34, 0 }
 0x3e2   :  { %v7759_v10 = vpop.eup %7758  ;;  %vm3996_vm6 = vcmp.eq.s32.totalorder %v3991_v34, 2  ;;  %v4080_v2 = vor.u32 4788187, %v4079_v60  ;;  %v4083_v22 = vcvt.s32.f32 %v4076_v17  ;;  %v4094_v52 = vadd.s32 3, %v4090_v1  ;;  %v13752_v1 = vld [vmem:[#allocation37_spill] sm:$0xff] }
 0x3e3   :  { %v7761_v42 = vpop.eup %7760  ;;  %v3997_v12 = vxor.u32 2147483648, %v7759_v10  ;;  %v4166_v45 = vadd.s32 536870912, %v4165_v9  ;;  %v4224_v59 = vsub.s32 32, %v4223_v48  ;;  %vm4241_vm7 = vcmp.lt.s32.totalorder %v11462_v56, 1 }
 0x3e4   :  { %v3994_v54 = vxor.u32 2147483648, %v7761_v42  ;;  %v4081_v3 = vand.u32 2147483647, %v4080_v2  ;;  %v11466_v63 = vshll.u32 %v4217_v36, 8  ;;  %v4226_v44 = vshll.u32 %v13654_v28, %v4223_v48 }
 0x3e5   :  { %v3998_v25 = vsel %vm3996_vm6, %v3997_v12, %v7761_v42  ;;  %v4167_v5 = vshrl.u32 %v4166_v45, 30  ;;  %v4227_v57 = vshrl.u32 %v13648_v18, %v4224_v59  ;;  %vm4107_vm10 = vcmp.lt.s32.totalorder %v13744_v40, 0 }
 0x3e6   :  { %v3995_v61 = vsel %vm3993_vm4, %v7759_v10, %v3994_v54  ;;  %v4084_v6 = vmul.f32 %v4083_v22, %v4081_v3  ;;  %v4229_v0 = vshll.u32 %v13648_v18, %v4223_v48  ;;  %v4230_v26 = vshrl.u32 %v13649_v24, %v4224_v59 }
 0x3e7   :  { %v3999_v4 = vsel %vm3992_vm5, %v3995_v61, %v3998_v25  ;;  %v4168_v7 = vshll.u32 %v4167_v5, 30  ;;  %v4232_v16 = vshll.u32 %v13649_v24, %v4223_v48  ;;  %v4233_v29 = vshrl.u32 %v13650_v19, %v4224_v59 }
 0x3e8   :  { %v4000_v37 = vsel %vm3989_vm3, nan, %v3999_v4  ;;  %v4085_v35 = vxor.u32 2147483648, %v4084_v6  ;;  %v4191_v41 = vsub.s32 4, %v4167_v5  ;;  %v4225_v51 = vshrl.u32 %v13654_v28, %v4224_v59 }
 0x3e9   :  { %v11480_v8 = vsub.s32 %v4165_v9, %v4168_v7  ;;  %v4228_v39 = vor.u32 %v4227_v57, %v4226_v44  ;;  %v4235_v20 = vshll.u32 %v13650_v19, %v4223_v48  ;;  %v4236_v15 = vshrl.u32 %v13651_v27, %v4224_v59  ;;  %7051 = vst [vmem:[#allocation5 + $0x110] sm:$0xff] %v4000_v37 }
 0x3ea   :  { %v4086_v21 = vsel %vm4003_vm11, %v4085_v35, %v4084_v6  ;;  %v4231_v11 = vor.u32 %v4230_v26, %v4229_v0  ;;  %v4238_v13 = vshll.u32 %v13651_v27, %v4223_v48  ;;  %v4239_v58 = vshrl.u32 %v13652_v43, %v4224_v59 }
 0x3eb   :  { %v4089_v31 = vsel %vm11451_vm0, %v13741_v62, %v4086_v21  ;;  %vm11493_vm8 = vcmp.le.f32.partialorder %v4105_v53, 0.7853982  ;;  %v4171_v50 = vsub.s32 0, %v11480_v8  ;;  %v4234_v55 = vor.u32 %v4233_v29, %v4232_v16 }
 0x3ec   :  { %v4237_v49 = vor.u32 %v4236_v15, %v4235_v20  ;;  %7762 = vcosq.f32 %v4089_v31  ;;  %v4240_v46 = vor.u32 %v4239_v58, %v4238_v13  ;;  %vm4244_vm11 = vcmp.lt.s32.totalorder %v11462_v56, 4 }
 0x3ed   :  { %v4316_v36 = vand.u32 2139095040, %v13752_v1  ;;  %7764 = vsinq.f32 %v4089_v31  ;;  %v7245_v14 = vmin.u32 %v4171_v50, %v11480_v8  ;;  %vm4242_vm9 = vcmp.lt.s32.totalorder %v11462_v56, 2 }
 0x3ee   :  { %vm4243_vm12 = vcmp.lt.s32.totalorder %v11462_v56, 3  ;;  %v4245_v53 = vsel %vm4241_vm7, %v4225_v51, %v4228_v39  ;;  %v4246_v30 = vsel %vm4244_vm11, %v4234_v55, 2102212464  ;;  %v4249_v17 = vsel %vm4241_vm7, %v4228_v39, %v4231_v11 }
 0x3ef   :  { %v4250_v60 = vsel %vm4244_vm11, %v4237_v49, 920167782  ;;  %v4095_v38 = vand.u32 3, %v4094_v52  ;;  %v4173_v9 = vclz %v7245_v14  ;;  %v4192_v48 = vsel %vm4107_vm10, %v4191_v41, %v4167_v5 }
 0x3f0   :  { %v4253_v10 = vsel %vm4241_vm7, %v4231_v11, %v4234_v55  ;;  %v4247_v2 = vsel %vm4243_vm12, %v4231_v11, %v4246_v30  ;;  %v4251_v22 = vsel %vm4243_vm12, %v4234_v55, %v4250_v60  ;;  %v4254_v42 = vsel %vm4244_vm11, %v4240_v46, 1326507024 }
 0x3f1   :  { %v4317_v12 = vshrl.u32 %v4316_v36, 23  ;;  %v7246_v45 = vadd.s32 4294967294, %v4173_v9  ;;  %v4248_v52 = vsel %vm4242_vm9, %v4245_v53, %v4247_v2  ;;  %v4252_v59 = vsel %vm4242_vm9, %v4249_v17, %v4251_v22 }
 0x3f2   :  { %v4255_v54 = vsel %vm4243_vm12, %v4237_v49, %v4254_v42  ;;  %v4161_v3 = vadd.s32 %v11437_v32, %v11445_v23  ;;  %v11532_v5 = vmul.u32.u64.low %v11466_v63, %v4252_v59  ;;  %v11533_v44 = vmul.u32.u64.high %v11466_v63, %v4252_v59, %v11532_v5 }
 0x3f3   :  { %v4256_v25 = vsel %vm4242_vm9, %v4253_v10, %v4255_v54  ;;  %vm7247_vm13 = vcmp.lt.s32.totalorder %v7246_v45, 0  ;;  %v7252_v6 = vadd.s32 4294967169, %v4317_v12  ;;  %v4194_v26 = vsel %vm11493_vm8, 0, %v4192_v48 }
 0x3f4   :  { %v11537_v57 = vmul.u32.u64.low %v11466_v63, %v4256_v25  ;;  %v11538_v61 = vmul.u32.u64.high %v11466_v63, %v4256_v25, %v11537_v57  ;;  %v4176_v0 = vsel %vm7247_vm13, 0, %v7246_v45  ;;  %v4264_v32 = vmul.u32 %v11466_v63, %v4248_v52 }
 0x3f5   :  { %v4313_v23 = vand.u32 2147483647, %v13752_v1  ;;  %v4177_v56 = vsub.s32 32, %v4176_v0  ;;  %v4178_v4 = vshll.u32 %v11480_v8, %v4176_v0  ;;  %v4181_v7 = vsub.s32 4294967266, %v4176_v0 }
 0x3f6   :  { %v4323_v16 = vadd.s32 1, %v7252_v6  ;;  %vm4093_vm14 = vweird.f32 %v13741_v62  ;;  %v4267_v29 = vadd.s32 1, %v11533_v44  ;;  %vm4100_vm15 = vcmp.eq.s32.totalorder %v4095_v38, 2 }
 0x3f7   :  { %v4179_v37 = vshrl.u32 %v4161_v3, %v4177_v56  ;;  %v4182_v35 = vadd.s32 127, %v4181_v7  ;;  %vm4266_vm0 = vc.u32 %v11538_v61, %v11532_v5  ;;  %v4198_v41 = vadd.s32 3, %v4194_v26 }
 0x3f8   :  { %v4268_v63 = vsel %vm4266_vm0, %v4267_v29, %v11533_v44  ;;  %v4320_v51 = vand.u32 8388607, %v4313_v23  ;;  %vm4324_vm1 = vcmp.gt.s32.totalorder %v4323_v16, 0  ;;  %vm4096_vm2 = vcmp.lt.s32.totalorder %v4095_v38, 2 }
 0x3f9   :  { %v7763_v8 = vpop.eup %7762  ;;  %v4180_v39 = vor.u32 %v4179_v37, %v4178_v4  ;;  %v4183_v20 = vshll.u32 %v4182_v35, 23  ;;  %v4269_v15 = vadd.s32 %v4268_v63, %v4264_v32  ;;  %v4325_v21 = vsel %vm4324_vm1, %v4323_v16, 0 }
 0x3fa   :  { %v7765_v11 = vpop.eup %7764  ;;  %vm4097_vm3 = vcmp.eq.s32.totalorder %v4095_v38, 0  ;;  %v4101_v13 = vxor.u32 2147483648, %v7763_v8  ;;  %v4327_v58 = vand.u32 31, %v4325_v21  ;;  %v11553_v36 = vand.u32 3, %v4198_v41  ;;  %v13753_v38 = vld [vmem:[#allocation38_spill] sm:$0xff] }
 0x3fb   :  { %v4098_v31 = vxor.u32 2147483648, %v7765_v11  ;;  %v4184_v50 = vor.u32 4788187, %v4183_v20  ;;  %v4187_v55 = vcvt.s32.f32 %v4180_v39  ;;  %v4270_v49 = vadd.s32 536870912, %v4269_v15 }
 0x3fc   :  { %v4102_v46 = vsel %vm4100_vm15, %v4101_v13, %v7765_v11  ;;  %v4321_v14 = vor.u32 8388608, %v4320_v51  ;;  %v4328_v53 = vsub.s32 32, %v4327_v58  ;;  %v4330_v9 = vshll.u32 %v13654_v28, %v4327_v58 }
 0x3fd   :  { %v4099_v30 = vsel %vm4097_vm3, %v7763_v8, %v4098_v31  ;;  %v4185_v17 = vand.u32 2147483647, %v4184_v50  ;;  %v4271_v60 = vshrl.u32 %v4270_v49, 30  ;;  %v4333_v2 = vshll.u32 %v13648_v18, %v4327_v58 }
 0x3fe   :  { %v4103_v48 = vsel %vm4096_vm2, %v4099_v30, %v4102_v46  ;;  %v4331_v10 = vshrl.u32 %v13648_v18, %v4328_v53  ;;  %v4336_v22 = vshll.u32 %v13649_v24, %v4327_v58  ;;  %v4334_v52 = vshrl.u32 %v13649_v24, %v4328_v53 }
 0x3ff   :  { %v4104_v42 = vsel %vm4093_vm14, nan, %v4103_v48  ;;  %v4188_v12 = vmul.f32 %v4187_v55, %v4185_v17  ;;  %v4272_v45 = vshll.u32 %v4271_v60, 30  ;;  %v4326_v59 = vshrl.u32 %v4325_v21, 5 }
 0x400   :  { %v4337_v54 = vshrl.u32 %v13650_v19, %v4328_v53  ;;  %v4339_v3 = vshll.u32 %v13650_v19, %v4327_v58  ;;  %v4417_v25 = vand.u32 2147483647, %v13753_v38  ;;  %7052 = vst [vmem:[#allocation5 + $0x118] sm:$0xff] %v4104_v42  ;;  %v4340_v6 = vshrl.u32 %v13651_v27, %v4328_v53 }
 0x401   :  { %v4189_v44 = vxor.u32 2147483648, %v4188_v12  ;;  %v11566_v57 = vsub.s32 %v4269_v15, %v4272_v45  ;;  %v4420_v62 = vand.u32 2139095040, %v13753_v38  ;;  %vm4211_vm5 = vcmp.lt.s32.totalorder %v13747_v47, 0 }
 0x402   :  { %v4329_v0 = vshrl.u32 %v13654_v28, %v4328_v53  ;;  %v4332_v26 = vor.u32 %v4331_v10, %v4330_v9  ;;  %v4342_v32 = vshll.u32 %v13651_v27, %v4327_v58  ;;  %v4343_v56 = vshrl.u32 %v13652_v43, %v4328_v53 }
 0x403   :  { %v4190_v4 = vsel %vm4107_vm10, %v4189_v44, %v4188_v12  ;;  %v4275_v7 = vsub.s32 0, %v11566_v57  ;;  %v4335_v16 = vor.u32 %v4334_v52, %v4333_v2  ;;  %v4338_v29 = vor.u32 %v4337_v54, %v4336_v22 }
 0x404   :  { %v4193_v37 = vsel %vm11493_vm8, %v13744_v40, %v4190_v4  ;;  %v4341_v35 = vor.u32 %v4340_v6, %v4339_v3  ;;  %v4344_v41 = vor.u32 %v4343_v56, %v4342_v32  ;;  %vm4345_vm4 = vcmp.lt.s32.totalorder %v4326_v59, 1 }
 0x405   :  { %7766 = vcosq.f32 %v4193_v37  ;;  %vm11582_vm6 = vcmp.le.f32.partialorder %v4209_v33, 0.7853982  ;;  %v7249_v51 = vmin.u32 %v4275_v7, %v11566_v57  ;;  %v4361_v8 = vshll.u32 %v4321_v14, 8 }
 0x406   :  { %v4421_v39 = vshrl.u32 %v4420_v62, 23  ;;  %7768 = vsinq.f32 %v4193_v37  ;;  %v4295_v20 = vsub.s32 4, %v4271_v60  ;;  %vm4347_vm7 = vcmp.lt.s32.totalorder %v4326_v59, 3 }
 0x407   :  { %vm4348_vm10 = vcmp.lt.s32.totalorder %v4326_v59, 4  ;;  %v4277_v34 = vclz %v7249_v51  ;;  %vm4346_vm8 = vcmp.lt.s32.totalorder %v4326_v59, 2  ;;  %v4349_v15 = vsel %vm4345_vm4, %v4329_v0, %v4332_v26 }
 0x408   :  { %v4353_v21 = vsel %vm4345_vm4, %v4332_v26, %v4335_v16  ;;  %v4350_v11 = vsel %vm4348_vm10, %v4338_v29, 2102212464  ;;  %v4354_v13 = vsel %vm4348_vm10, %v4341_v35, 920167782  ;;  %v4357_v33 = vsel %vm4345_vm4, %v4335_v16, %v4338_v29 }
 0x409   :  { %v4358_v58 = vsel %vm4348_vm10, %v4344_v41, 1326507024  ;;  %v7250_v31 = vadd.s32 4294967294, %v4277_v34  ;;  %v4351_v50 = vsel %vm4347_vm7, %v4335_v16, %v4350_v11  ;;  %v4355_v55 = vsel %vm4347_vm7, %v4338_v29, %v4354_v13 }
 0x40a   :  { %v4359_v49 = vsel %vm4347_vm7, %v4341_v35, %v4358_v58  ;;  %v4265_v46 = vadd.s32 %v11532_v5, %v11538_v61  ;;  %v4356_v14 = vsel %vm4346_vm8, %v4353_v21, %v4355_v55  ;;  %v7256_v30 = vadd.s32 4294967169, %v4421_v39 }
 0x40b   :  { %v4360_v53 = vsel %vm4346_vm8, %v4357_v33, %v4359_v49  ;;  %vm7251_vm11 = vcmp.lt.s32.totalorder %v7250_v31, 0  ;;  %v4296_v17 = vsel %vm4211_vm5, %v4295_v20, %v4271_v60  ;;  %v4352_v2 = vsel %vm4346_vm8, %v4349_v15, %v4351_v50 }
 0x40c   :  { %v11596_v9 = vmul.u32.u64.low %v4361_v8, %v4360_v53  ;;  %v11597_v48 = vmul.u32.u64.high %v4361_v8, %v4360_v53, %v11596_v9  ;;  %v4280_v10 = vsel %vm7251_vm11, 0, %v7250_v31  ;;  %v4427_v45 = vadd.s32 1, %v7256_v30 }
 0x40d   :  { %v11600_v22 = vmul.u32.u64.low %v4361_v8, %v4356_v14  ;;  %v11601_v42 = vmul.u32.u64.high %v4361_v8, %v4356_v14, %v11600_v22  ;;  %v4281_v5 = vsub.s32 32, %v4280_v10  ;;  %v4282_v61 = vshll.u32 %v11566_v57, %v4280_v10 }
 0x40e   :  { %v4285_v12 = vsub.s32 4294967266, %v4280_v10  ;;  %vm4197_vm9 = vweird.f32 %v13744_v40  ;;  %v4298_v60 = vsel %vm11582_vm6, 0, %v4296_v17  ;;  %v4368_v3 = vmul.u32 %v4361_v8, %v4352_v2  ;;  %v13756_v10 = vld [vmem:[#allocation39_spill] sm:$0xff] }
 0x40f   :  { %v4283_v52 = vshrl.u32 %v4265_v46, %v4281_v5  ;;  %vm4370_vm12 = vc.u32 %v11597_v48, %v11600_v22  ;;  %vm4200_vm13 = vcmp.lt.s32.totalorder %v11553_v36, 2  ;;  %v4371_v59 = vadd.s32 1, %v11601_v42 }
 0x410   :  { %v4286_v54 = vadd.s32 127, %v4285_v12  ;;  %v4424_v44 = vand.u32 8388607, %v4417_v25  ;;  %vm4428_vm14 = vcmp.gt.s32.totalorder %v4427_v45, 0  ;;  %vm4201_vm15 = vcmp.eq.s32.totalorder %v11553_v36, 0 }
 0x411   :  { %v4284_v57 = vor.u32 %v4283_v52, %v4282_v61  ;;  %v4429_v62 = vsel %vm4428_vm14, %v4427_v45, 0  ;;  %vm4204_vm0 = vcmp.eq.s32.totalorder %v11553_v36, 2  ;;  %v4302_v26 = vadd.s32 3, %v4298_v60 }
 0x412   :  { %v4287_v6 = vshll.u32 %v4286_v54, 23  ;;  %v7767_v0 = vpop.eup %7766  ;;  %v4372_v32 = vsel %vm4370_vm12, %v4371_v59, %v11601_v42  ;;  %v4431_v56 = vand.u32 31, %v4429_v62  ;;  %v4425_v41 = vor.u32 8388608, %v4424_v44 }
 0x413   :  { %v7769_v4 = vpop.eup %7768  ;;  %v4205_v7 = vxor.u32 2147483648, %v7767_v0  ;;  %v4291_v29 = vcvt.s32.f32 %v4284_v57  ;;  %v4373_v37 = vadd.s32 %v4372_v32, %v4368_v3  ;;  %v4430_v46 = vshrl.u32 %v4429_v62, 5 }
 0x414   :  { %v4288_v16 = vor.u32 4788187, %v4287_v6  ;;  %v4202_v35 = vxor.u32 2147483648, %v7769_v4  ;;  %v4432_v51 = vsub.s32 32, %v4431_v56  ;;  %v4434_v8 = vshll.u32 %v13654_v28, %v4431_v56 }
 0x415   :  { %v4206_v39 = vsel %vm4204_vm0, %v4205_v7, %v7769_v4  ;;  %v4374_v34 = vadd.s32 536870912, %v4373_v37  ;;  %v4437_v15 = vshll.u32 %v13648_v18, %v4431_v56  ;;  %v4440_v33 = vshll.u32 %v13649_v24, %v4431_v56 }
 0x416   :  { %v4289_v20 = vand.u32 2147483647, %v4288_v16  ;;  %v4203_v21 = vsel %vm4201_vm15, %v7767_v0, %v4202_v35  ;;  %v4435_v11 = vshrl.u32 %v13648_v18, %v4432_v51  ;;  %v4438_v13 = vshrl.u32 %v13649_v24, %v4432_v51 }
 0x417   :  { %v4207_v58 = vsel %vm4200_vm13, %v4203_v21, %v4206_v39  ;;  %v4375_v50 = vshrl.u32 %v4374_v34, 30  ;;  %v4441_v55 = vshrl.u32 %v13650_v19, %v4432_v51  ;;  %v4443_v14 = vshll.u32 %v13650_v19, %v4431_v56 }
 0x418   :  { %v4292_v31 = vmul.f32 %v4291_v29, %v4289_v20  ;;  %v4208_v49 = vsel %vm4197_vm9, nan, %v4207_v58  ;;  %v11630_v53 = vshll.u32 %v4425_v41, 8  ;;  %v4433_v9 = vshrl.u32 %v13654_v28, %v4432_v51 }
 0x419   :  { %v4376_v17 = vshll.u32 %v4375_v50, 30  ;;  %v4524_v2 = vand.u32 2139095040, %v13756_v10  ;;  %7053 = vst [vmem:[#allocation5 + $0x120] sm:$0xff] %v4208_v49  ;;  %v4436_v36 = vor.u32 %v4435_v11, %v4434_v8  ;;  %v4444_v42 = vshrl.u32 %v13651_v27, %v4432_v51 }
 0x41a   :  { %v4293_v30 = vxor.u32 2147483648, %v4292_v31  ;;  %v4446_v5 = vshll.u32 %v13651_v27, %v4431_v56  ;;  %v4447_v40 = vshrl.u32 %v13652_v43, %v4432_v51  ;;  %v4439_v45 = vor.u32 %v4438_v13, %v4437_v15 }
 0x41b   :  { %v11639_v12 = vsub.s32 %v4373_v37, %v4376_v17  ;;  %v4442_v60 = vor.u32 %v4441_v55, %v4440_v33  ;;  %v4445_v54 = vor.u32 %v4444_v42, %v4443_v14  ;;  %vm4449_vm1 = vcmp.lt.s32.totalorder %v4430_v46, 1 }
 0x41c   :  { %v4294_v61 = vsel %vm4211_vm5, %v4293_v30, %v4292_v31  ;;  %v4448_v3 = vor.u32 %v4447_v40, %v4446_v5  ;;  %vm4451_vm2 = vcmp.lt.s32.totalorder %v4430_v46, 3  ;;  %v4525_v44 = vshrl.u32 %v4524_v2, 23 }
 0x41d   :  { %v4297_v52 = vsel %vm11582_vm6, %v13747_v47, %v4294_v61  ;;  %v4379_v59 = vsub.s32 0, %v11639_v12  ;;  %vm4450_vm3 = vcmp.lt.s32.totalorder %v4430_v46, 2  ;;  %vm4452_vm4 = vcmp.lt.s32.totalorder %v4430_v46, 4 }
 0x41e   :  { %7770 = vcosq.f32 %v4297_v52  ;;  %v4453_v57 = vsel %vm4449_vm1, %v4433_v9, %v4436_v36  ;;  %v4454_v62 = vsel %vm4452_vm4, %v4442_v60, 2102212464  ;;  %v4457_v0 = vsel %vm4449_vm1, %v4436_v36, %v4439_v45 }
 0x41f   :  { %7772 = vsinq.f32 %v4297_v52  ;;  %v7253_v6 = vmin.u32 %v4379_v59, %v11639_v12  ;;  %v4458_v32 = vsel %vm4452_vm4, %v4445_v54, 920167782  ;;  %v4455_v63 = vsel %vm4451_vm2, %v4439_v45, %v4454_v62 }
 0x420   :  { %v4459_v56 = vsel %vm4451_vm2, %v4442_v60, %v4458_v32  ;;  %v4461_v4 = vsel %vm4449_vm1, %v4439_v45, %v4442_v60  ;;  %v4462_v7 = vsel %vm4452_vm4, %v4448_v3, 1326507024  ;;  %v4303_v16 = vand.u32 3, %v4302_v26 }
 0x421   :  { %v4381_v29 = vclz %v7253_v6  ;;  %v4399_v37 = vsub.s32 4, %v4375_v50  ;;  %v4456_v35 = vsel %vm4450_vm3, %v4453_v57, %v4455_v63  ;;  %v4460_v41 = vsel %vm4450_vm3, %v4457_v0, %v4459_v56  ;;  %v13759_v6 = vld [vmem:[#allocation40_spill] sm:$0xff] }
 0x422   :  { %v4463_v51 = vsel %vm4451_vm2, %v4445_v54, %v4462_v7  ;;  %v7260_v8 = vadd.s32 4294967169, %v4525_v44  ;;  %v11653_v34 = vmul.u32.u64.low %v11630_v53, %v4460_v41  ;;  %v11654_v15 = vmul.u32.u64.high %v11630_v53, %v4460_v41, %v11653_v34 }
 0x423   :  { %v7254_v39 = vadd.s32 4294967294, %v4381_v29  ;;  %v4464_v20 = vsel %vm4450_vm3, %v4461_v4, %v4463_v51  ;;  %vm4315_vm5 = vcmp.lt.s32.totalorder %v13752_v1, 0  ;;  %v4521_v11 = vand.u32 2147483647, %v13756_v10 }
 0x424   :  { %v11659_v26 = vmul.u32.u64.low %v11630_v53, %v4464_v20  ;;  %v11660_v21 = vmul.u32.u64.high %v11630_v53, %v4464_v20, %v11659_v26  ;;  %vm4301_vm6 = vweird.f32 %v13747_v47  ;;  %v4369_v13 = vadd.s32 %v11600_v22, %v11597_v48 }
 0x425   :  { %vm7255_vm7 = vcmp.lt.s32.totalorder %v7254_v39, 0  ;;  %v4400_v33 = vsel %vm4315_vm5, %v4399_v37, %v4375_v50  ;;  %v4531_v58 = vadd.s32 1, %v7260_v8  ;;  %vm4304_vm10 = vcmp.lt.s32.totalorder %v4303_v16, 2 }
 0x426   :  { %vm11670_vm8 = vcmp.le.f32.partialorder %v4313_v23, 0.7853982  ;;  %v4384_v55 = vsel %vm7255_vm7, 0, %v7254_v39  ;;  %v4472_v49 = vmul.u32 %v11630_v53, %v4456_v35  ;;  %v4475_v48 = vadd.s32 1, %v11654_v15 }
 0x427   :  { %v4385_v46 = vsub.s32 32, %v4384_v55  ;;  %v4386_v14 = vshll.u32 %v11639_v12, %v4384_v55  ;;  %v4389_v30 = vsub.s32 4294967266, %v4384_v55  ;;  %v4402_v22 = vsel %vm11670_vm8, 0, %v4400_v33 }
 0x428   :  { %vm4474_vm11 = vc.u32 %v11660_v21, %v11653_v34  ;;  %v4528_v23 = vand.u32 8388607, %v4521_v11  ;;  %vm4532_vm9 = vcmp.gt.s32.totalorder %v4531_v58, 0  ;;  %vm4305_vm12 = vcmp.eq.s32.totalorder %v4303_v16, 0 }
 0x429   :  { %v4387_v50 = vshrl.u32 %v4369_v13, %v4385_v46  ;;  %v4390_v17 = vadd.s32 127, %v4389_v30  ;;  %v4476_v53 = vsel %vm4474_vm11, %v4475_v48, %v11654_v15  ;;  %v4533_v9 = vsel %vm4532_vm9, %v4531_v58, 0 }
 0x42a   :  { %vm4308_vm13 = vcmp.eq.s32.totalorder %v4303_v16, 2  ;;  %v4477_v36 = vadd.s32 %v4476_v53, %v4472_v49  ;;  %v4535_v42 = vand.u32 31, %v4533_v9  ;;  %v11684_v45 = vadd.s32 3, %v4402_v22 }
 0x42b   :  { %v7771_v2 = vpop.eup %7770  ;;  %v4388_v61 = vor.u32 %v4387_v50, %v4386_v14  ;;  %v4391_v12 = vshll.u32 %v4390_v17, 23  ;;  %v4529_v54 = vor.u32 8388608, %v4528_v23  ;;  %v4625_v62 = vand.u32 2147483647, %v13759_v6 }
 0x42c   :  { %v7773_v5 = vpop.eup %7772  ;;  %v4309_v40 = vxor.u32 2147483648, %v7771_v2  ;;  %v4478_v52 = vadd.s32 536870912, %v4477_v36  ;;  %v4536_v3 = vsub.s32 32, %v4535_v42  ;;  %v4534_v63 = vshrl.u32 %v4533_v9, 5 }
 0x42d   :  { %v4306_v60 = vxor.u32 2147483648, %v7773_v5  ;;  %v4392_v44 = vor.u32 4788187, %v4391_v12  ;;  %v4395_v57 = vcvt.s32.f32 %v4388_v61  ;;  %v4628_v56 = vand.u32 2139095040, %v13759_v6 }
 0x42e   :  { %v4310_v59 = vsel %vm4308_vm13, %v4309_v40, %v7773_v5  ;;  %v4479_v32 = vshrl.u32 %v4478_v52, 30  ;;  %v4538_v29 = vshll.u32 %v13654_v28, %v4535_v42  ;;  %v4541_v37 = vshll.u32 %v13648_v18, %v4535_v42 }
 0x42f   :  { %v4307_v0 = vsel %vm4305_vm12, %v7771_v2, %v4306_v60  ;;  %v4393_v7 = vand.u32 2147483647, %v4392_v44  ;;  %v4539_v51 = vshrl.u32 %v13648_v18, %v4536_v3  ;;  %v4542_v8 = vshrl.u32 %v13649_v24, %v4536_v3 }
 0x430   :  { %v4311_v4 = vsel %vm4304_vm10, %v4307_v0, %v4310_v59  ;;  %v4480_v41 = vshll.u32 %v4479_v32, 30  ;;  %v4544_v20 = vshll.u32 %v13649_v24, %v4535_v42  ;;  %v4545_v15 = vshrl.u32 %v13650_v19, %v4536_v3 }
 0x431   :  { %v4312_v35 = vsel %vm4301_vm6, nan, %v4311_v4  ;;  %v4396_v39 = vmul.f32 %v4395_v57, %v4393_v7  ;;  %v4547_v16 = vshll.u32 %v13650_v19, %v4535_v42  ;;  %v4548_v13 = vshrl.u32 %v13651_v27, %v4536_v3 }
 0x432   :  { %7054 = vst [vmem:[#allocation5 + $0x128] sm:$0xff] %v4312_v35  ;;  %v11699_v26 = vsub.s32 %v4477_v36, %v4480_v41  ;;  %v4550_v47 = vshll.u32 %v13651_v27, %v4535_v42  ;;  %v11703_v33 = vshll.u32 %v4529_v54, 8  ;;  %v4473_v55 = vadd.s32 %v11653_v34, %v11660_v21 }
 0x433   :  { %v4397_v58 = vxor.u32 2147483648, %v4396_v39  ;;  %v4551_v49 = vshrl.u32 %v13652_v43, %v4536_v3  ;;  %v4629_v46 = vshrl.u32 %v4628_v56, 23  ;;  %vm4419_vm14 = vcmp.lt.s32.totalorder %v13753_v38, 0 }
 0x434   :  { %v4483_v14 = vsub.s32 0, %v11699_v26  ;;  %v4537_v30 = vshrl.u32 %v13654_v28, %v4536_v3  ;;  %v4540_v48 = vor.u32 %v4539_v51, %v4538_v29  ;;  %v4543_v22 = vor.u32 %v4542_v8, %v4541_v37 }
 0x435   :  { %v4398_v23 = vsel %vm4315_vm5, %v4397_v58, %v4396_v39  ;;  %v4546_v50 = vor.u32 %v4545_v15, %v4544_v20  ;;  %v4549_v17 = vor.u32 %v4548_v13, %v4547_v16  ;;  %vm4553_vm15 = vcmp.lt.s32.totalorder %v4534_v63, 1 }
 0x436   :  { %v4401_v34 = vsel %vm11670_vm8, %v13752_v1, %v4398_v23  ;;  %v7257_v21 = vmin.u32 %v4483_v14, %v11699_v26  ;;  %v4552_v53 = vor.u32 %v4551_v49, %v4550_v47  ;;  %vm4556_vm0 = vcmp.lt.s32.totalorder %v4534_v63, 4 }
 0x437   :  { %7774 = vcosq.f32 %v4401_v34  ;;  %vm4554_vm1 = vcmp.lt.s32.totalorder %v4534_v63, 2  ;;  %vm4555_vm2 = vcmp.lt.s32.totalorder %v4534_v63, 3  ;;  %v4558_v9 = vsel %vm4556_vm0, %v4546_v50, 2102212464 }
 0x438   :  { %7776 = vsinq.f32 %v4401_v34  ;;  %v4485_v2 = vclz %v7257_v21  ;;  %v4557_v36 = vsel %vm4553_vm15, %v4537_v30, %v4540_v48  ;;  %v4561_v42 = vsel %vm4553_vm15, %v4540_v48, %v4543_v22 }
 0x439   :  { %v4503_v5 = vsub.s32 4, %v4479_v32  ;;  %v4559_v40 = vsel %vm4555_vm2, %v4543_v22, %v4558_v9  ;;  %v4562_v61 = vsel %vm4556_vm0, %v4549_v17, 920167782  ;;  %v4565_v31 = vsel %vm4553_vm15, %v4543_v22, %v4546_v50 }
 0x43a   :  { %v7258_v12 = vadd.s32 4294967294, %v4485_v2  ;;  %v4563_v60 = vsel %vm4555_vm2, %v4546_v50, %v4562_v61  ;;  %v4566_v52 = vsel %vm4556_vm0, %v4552_v53, 1326507024  ;;  %v4632_v54 = vand.u32 8388607, %v4625_v62 }
 0x43b   :  { %v4560_v3 = vsel %vm4554_vm1, %v4557_v36, %v4559_v40  ;;  %v4564_v59 = vsel %vm4554_vm1, %v4561_v42, %v4563_v60  ;;  %v4567_v44 = vsel %vm4555_vm2, %v4549_v17, %v4566_v52  ;;  %v7264_v57 = vadd.s32 4294967169, %v4629_v46 }
 0x43c   :  { %vm7259_vm3 = vcmp.lt.s32.totalorder %v7258_v12, 0  ;;  %v4568_v0 = vsel %vm4554_vm1, %v4565_v31, %v4567_v44  ;;  %v11729_v56 = vmul.u32.u64.low %v11703_v33, %v4564_v59  ;;  %v11730_v4 = vmul.u32.u64.high %v11703_v33, %v4564_v59, %v11729_v56 }
 0x43d   :  { %v4488_v7 = vsel %vm7259_vm3, 0, %v7258_v12  ;;  %v4504_v29 = vsel %vm4419_vm14, %v4503_v5, %v4479_v32  ;;  %v11736_v37 = vmul.u32.u64.low %v11703_v33, %v4568_v0  ;;  %v11737_v35 = vmul.u32.u64.high %v11703_v33, %v4568_v0, %v11736_v37 }
 0x43e   :  { %v4489_v41 = vsub.s32 32, %v4488_v7  ;;  %v4490_v51 = vshll.u32 %v11699_v26, %v4488_v7  ;;  %v4493_v8 = vsub.s32 4294967266, %v4488_v7  ;;  %v4635_v39 = vadd.s32 1, %v7264_v57 }
 0x43f   :  { %v4407_v63 = vand.u32 3, %v11684_v45  ;;  %vm11743_vm4 = vcmp.le.f32.partialorder %v4417_v25, 0.7853982  ;;  %v4576_v15 = vmul.u32 %v11703_v33, %v4560_v3  ;;  %v4579_v13 = vadd.s32 1, %v11730_v4 }
 0x440   :  { %v4491_v32 = vshrl.u32 %v4473_v55, %v4489_v41  ;;  %v4494_v16 = vadd.s32 127, %v4493_v8  ;;  %vm4636_vm5 = vcmp.gt.s32.totalorder %v4635_v39, 0  ;;  %v4506_v26 = vsel %vm11743_vm4, 0, %v4504_v29 }
 0x441   :  { %vm4578_vm6 = vc.u32 %v11737_v35, %v11729_v56  ;;  %v4633_v45 = vor.u32 8388608, %v4632_v54  ;;  %v4637_v47 = vsel %vm4636_vm5, %v4635_v39, 0  ;;  %vm4405_vm7 = vweird.f32 %v13752_v1 }
 0x442   :  { %v4492_v58 = vor.u32 %v4491_v32, %v4490_v51  ;;  %v4495_v25 = vshll.u32 %v4494_v16, 23  ;;  %v4580_v49 = vsel %vm4578_vm6, %v4579_v13, %v11730_v4  ;;  %v11754_v46 = vshrl.u32 %v4637_v47, 5 }
 0x443   :  { %vm4408_vm10 = vcmp.lt.s32.totalorder %v4407_v63, 2  ;;  %v4581_v33 = vadd.s32 %v4580_v49, %v4576_v15  ;;  %v4639_v55 = vand.u32 31, %v4637_v47  ;;  %vm4409_vm8 = vcmp.eq.s32.totalorder %v4407_v63, 0 }
 0x444   :  { %v7775_v14 = vpop.eup %7774  ;;  %vm4412_vm11 = vcmp.eq.s32.totalorder %v4407_v63, 2  ;;  %v4496_v30 = vor.u32 4788187, %v4495_v25  ;;  %v4499_v48 = vcvt.s32.f32 %v4492_v58  ;;  %v4510_v50 = vadd.s32 3, %v4506_v26  ;;  %v13764_v26 = vld [vmem:[#allocation18_spill] sm:$0xff] }
 0x445   :  { %v7777_v22 = vpop.eup %7776  ;;  %v4413_v23 = vxor.u32 2147483648, %v7775_v14  ;;  %v4582_v17 = vadd.s32 536870912, %v4581_v33  ;;  %v4640_v34 = vsub.s32 32, %v4639_v55  ;;  %vm4657_vm9 = vcmp.lt.s32.totalorder %v11754_v46, 1 }
 0x446   :  { %v4410_v21 = vxor.u32 2147483648, %v7777_v22  ;;  %v4497_v53 = vand.u32 2147483647, %v4496_v30  ;;  %v11758_v9 = vshll.u32 %v4633_v45, 8  ;;  %v4642_v42 = vshll.u32 %v13654_v28, %v4639_v55 }
 0x447   :  { %v4414_v2 = vsel %vm4412_vm11, %v4413_v23, %v7777_v22  ;;  %v4583_v36 = vshrl.u32 %v4582_v17, 30  ;;  %v4643_v5 = vshrl.u32 %v13648_v18, %v4640_v34  ;;  %vm4523_vm12 = vcmp.lt.s32.totalorder %v13756_v10, 0 }
 0x448   :  { %v4411_v40 = vsel %vm4409_vm8, %v7775_v14, %v4410_v21  ;;  %v4500_v61 = vmul.f32 %v4499_v48, %v4497_v53  ;;  %v4645_v31 = vshll.u32 %v13648_v18, %v4639_v55  ;;  %v4646_v12 = vshrl.u32 %v13649_v24, %v4640_v34 }
 0x449   :  { %v4415_v60 = vsel %vm4408_vm10, %v4411_v40, %v4414_v2  ;;  %v4584_v52 = vshll.u32 %v4583_v36, 30  ;;  %v4648_v54 = vshll.u32 %v13649_v24, %v4639_v55  ;;  %v4649_v3 = vshrl.u32 %v13650_v19, %v4640_v34 }
 0x44a   :  { %v4416_v59 = vsel %vm4405_vm7, nan, %v4415_v60  ;;  %v4501_v44 = vxor.u32 2147483648, %v4500_v61  ;;  %v4607_v57 = vsub.s32 4, %v4583_v36  ;;  %v4641_v0 = vshrl.u32 %v13654_v28, %v4640_v34 }
 0x44b   :  { %v11772_v4 = vsub.s32 %v4581_v33, %v4584_v52  ;;  %v4644_v7 = vor.u32 %v4643_v5, %v4642_v42  ;;  %v4651_v29 = vshll.u32 %v13650_v19, %v4639_v55  ;;  %v4652_v37 = vshrl.u32 %v13651_v27, %v4640_v34  ;;  %7055 = vst [vmem:[#allocation5 + $0x130] sm:$0xff] %v4416_v59 }
 0x44c   :  { %v4502_v41 = vsel %vm4419_vm14, %v4501_v44, %v4500_v61  ;;  %v4647_v51 = vor.u32 %v4646_v12, %v4645_v31  ;;  %v4654_v8 = vshll.u32 %v13651_v27, %v4639_v55  ;;  %v4655_v1 = vshrl.u32 %v13652_v43, %v4640_v34 }
 0x44d   :  { %v4505_v39 = vsel %vm11743_vm4, %v13753_v38, %v4502_v41  ;;  %vm11785_vm13 = vcmp.le.f32.partialorder %v4521_v11, 0.7853982  ;;  %v4587_v15 = vsub.s32 0, %v11772_v4  ;;  %v4650_v32 = vor.u32 %v4649_v3, %v4648_v54 }
 0x44e   :  { %v4653_v16 = vor.u32 %v4652_v37, %v4651_v29  ;;  %7778 = vcosq.f32 %v4505_v39  ;;  %v4656_v13 = vor.u32 %v4655_v1, %v4654_v8  ;;  %vm4660_vm14 = vcmp.lt.s32.totalorder %v11754_v46, 4 }
 0x44f   :  { %v4732_v45 = vand.u32 2139095040, %v13764_v26  ;;  %7780 = vsinq.f32 %v4505_v39  ;;  %v7261_v20 = vmin.u32 %v4587_v15, %v11772_v4  ;;  %vm4658_vm15 = vcmp.lt.s32.totalorder %v11754_v46, 2 }
 0x450   :  { %vm4659_vm0 = vcmp.lt.s32.totalorder %v11754_v46, 3  ;;  %v4661_v11 = vsel %vm4657_vm9, %v4641_v0, %v4644_v7  ;;  %v4662_v47 = vsel %vm4660_vm14, %v4650_v32, 2102212464  ;;  %v4665_v58 = vsel %vm4657_vm9, %v4644_v7, %v4647_v51 }
 0x451   :  { %v4666_v25 = vsel %vm4660_vm14, %v4653_v16, 920167782  ;;  %v4511_v49 = vand.u32 3, %v4510_v50  ;;  %v4589_v33 = vclz %v7261_v20  ;;  %v4608_v55 = vsel %vm4523_vm12, %v4607_v57, %v4583_v36 }
 0x452   :  { %v4669_v14 = vsel %vm4657_vm9, %v4647_v51, %v4650_v32  ;;  %v4663_v30 = vsel %vm4659_vm0, %v4647_v51, %v4662_v47  ;;  %v4667_v48 = vsel %vm4659_vm0, %v4650_v32, %v4666_v25  ;;  %v4670_v22 = vsel %vm4660_vm14, %v4656_v13, 1326507024 }
 0x453   :  { %v4733_v23 = vshrl.u32 %v4732_v45, 23  ;;  %v7262_v17 = vadd.s32 4294967294, %v4589_v33  ;;  %v4664_v50 = vsel %vm4658_vm15, %v4661_v11, %v4663_v30  ;;  %v4668_v34 = vsel %vm4658_vm15, %v4665_v58, %v4667_v48 }
 0x454   :  { %v4671_v21 = vsel %vm4659_vm0, %v4653_v16, %v4670_v22  ;;  %v4577_v53 = vadd.s32 %v11729_v56, %v11737_v35  ;;  %v11824_v36 = vmul.u32.u64.low %v11758_v9, %v4668_v34  ;;  %v11825_v42 = vmul.u32.u64.high %v11758_v9, %v4668_v34, %v11824_v36 }
 0x455   :  { %v4672_v2 = vsel %vm4658_vm15, %v4669_v14, %v4671_v21  ;;  %vm7263_vm1 = vcmp.lt.s32.totalorder %v7262_v17, 0  ;;  %v7268_v61 = vadd.s32 4294967169, %v4733_v23  ;;  %v4610_v12 = vsel %vm11785_vm13, 0, %v4608_v55 }
 0x456   :  { %v11829_v5 = vmul.u32.u64.low %v11758_v9, %v4672_v2  ;;  %v11830_v40 = vmul.u32.u64.high %v11758_v9, %v4672_v2, %v11829_v5  ;;  %v4592_v31 = vsel %vm7263_vm1, 0, %v7262_v17  ;;  %v4680_v56 = vmul.u32 %v11758_v9, %v4664_v50 }
 0x457   :  { %v4729_v35 = vand.u32 2147483647, %v13764_v26  ;;  %v4593_v46 = vsub.s32 32, %v4592_v31  ;;  %v4594_v60 = vshll.u32 %v11772_v4, %v4592_v31  ;;  %v4597_v52 = vsub.s32 4294967266, %v4592_v31 }
 0x458   :  { %v4739_v54 = vadd.s32 1, %v7268_v61  ;;  %vm4509_vm2 = vweird.f32 %v13753_v38  ;;  %v4683_v3 = vadd.s32 1, %v11825_v42  ;;  %vm4516_vm3 = vcmp.eq.s32.totalorder %v4511_v49, 2 }
 0x459   :  { %v4595_v59 = vshrl.u32 %v4577_v53, %v4593_v46  ;;  %v4598_v44 = vadd.s32 127, %v4597_v52  ;;  %vm4682_vm4 = vc.u32 %v11830_v40, %v11824_v36  ;;  %v4614_v57 = vadd.s32 3, %v4610_v12 }
 0x45a   :  { %v4684_v9 = vsel %vm4682_vm4, %v4683_v3, %v11825_v42  ;;  %v4736_v0 = vand.u32 8388607, %v4729_v35  ;;  %vm4740_vm5 = vcmp.gt.s32.totalorder %v4739_v54, 0  ;;  %vm4512_vm6 = vcmp.lt.s32.totalorder %v4511_v49, 2 }
 0x45b   :  { %v7779_v4 = vpop.eup %7778  ;;  %v4596_v7 = vor.u32 %v4595_v59, %v4594_v60  ;;  %v4599_v29 = vshll.u32 %v4598_v44, 23  ;;  %v4685_v37 = vadd.s32 %v4684_v9, %v4680_v56  ;;  %v4741_v41 = vsel %vm4740_vm5, %v4739_v54, 0 }
 0x45c   :  { %v7781_v51 = vpop.eup %7780  ;;  %vm4513_vm7 = vcmp.eq.s32.totalorder %v4511_v49, 0  ;;  %v4517_v8 = vxor.u32 2147483648, %v7779_v4  ;;  %v4743_v1 = vand.u32 31, %v4741_v41  ;;  %v11845_v45 = vand.u32 3, %v4614_v57  ;;  %v13765_v49 = vld [vmem:[#allocation19_spill] sm:$0xff] }
 0x45d   :  { %v4514_v39 = vxor.u32 2147483648, %v7781_v51  ;;  %v4600_v15 = vor.u32 4788187, %v4599_v29  ;;  %v4603_v32 = vcvt.s32.f32 %v4596_v7  ;;  %v4686_v16 = vadd.s32 536870912, %v4685_v37 }
 0x45e   :  { %v4518_v13 = vsel %vm4516_vm3, %v4517_v8, %v7781_v51  ;;  %v4737_v20 = vor.u32 8388608, %v4736_v0  ;;  %v4744_v11 = vsub.s32 32, %v4743_v1  ;;  %v4746_v33 = vshll.u32 %v13654_v28, %v4743_v1 }
 0x45f   :  { %v4515_v47 = vsel %vm4513_vm7, %v7779_v4, %v4514_v39  ;;  %v4601_v58 = vand.u32 2147483647, %v4600_v15  ;;  %v4687_v25 = vshrl.u32 %v4686_v16, 30  ;;  %v4749_v30 = vshll.u32 %v13648_v18, %v4743_v1 }
 0x460   :  { %v4519_v55 = vsel %vm4512_vm6, %v4515_v47, %v4518_v13  ;;  %v4747_v14 = vshrl.u32 %v13648_v18, %v4744_v11  ;;  %v4752_v48 = vshll.u32 %v13649_v24, %v4743_v1  ;;  %v4750_v50 = vshrl.u32 %v13649_v24, %v4744_v11 }
 0x461   :  { %v4520_v22 = vsel %vm4509_vm2, nan, %v4519_v55  ;;  %v4604_v23 = vmul.f32 %v4603_v32, %v4601_v58  ;;  %v4688_v17 = vshll.u32 %v4687_v25, 30  ;;  %v4742_v34 = vshrl.u32 %v4741_v41, 5 }
 0x462   :  { %v4753_v21 = vshrl.u32 %v13650_v19, %v4744_v11  ;;  %v4755_v53 = vshll.u32 %v13650_v19, %v4743_v1  ;;  %v4833_v2 = vand.u32 2147483647, %v13765_v49  ;;  %7056 = vst [vmem:[#allocation5 + $0x138] sm:$0xff] %v4520_v22  ;;  %v4756_v61 = vshrl.u32 %v13651_v27, %v4744_v11 }
 0x463   :  { %v4605_v42 = vxor.u32 2147483648, %v4604_v23  ;;  %v11858_v5 = vsub.s32 %v4685_v37, %v4688_v17  ;;  %v4836_v38 = vand.u32 2139095040, %v13765_v49  ;;  %vm4627_vm10 = vcmp.lt.s32.totalorder %v13759_v6, 0 }
 0x464   :  { %v4745_v31 = vshrl.u32 %v13654_v28, %v4744_v11  ;;  %v4748_v12 = vor.u32 %v4747_v14, %v4746_v33  ;;  %v4758_v56 = vshll.u32 %v13651_v27, %v4743_v1  ;;  %v4759_v46 = vshrl.u32 %v13652_v43, %v4744_v11 }
 0x465   :  { %v4606_v60 = vsel %vm4523_vm12, %v4605_v42, %v4604_v23  ;;  %v4691_v52 = vsub.s32 0, %v11858_v5  ;;  %v4751_v54 = vor.u32 %v4750_v50, %v4749_v30  ;;  %v4754_v3 = vor.u32 %v4753_v21, %v4752_v48 }
 0x466   :  { %v4609_v59 = vsel %vm11785_vm13, %v13756_v10, %v4606_v60  ;;  %v4757_v44 = vor.u32 %v4756_v61, %v4755_v53  ;;  %v4760_v57 = vor.u32 %v4759_v46, %v4758_v56  ;;  %vm4761_vm8 = vcmp.lt.s32.totalorder %v4742_v34, 1 }
 0x467   :  { %7782 = vcosq.f32 %v4609_v59  ;;  %vm11874_vm11 = vcmp.le.f32.partialorder %v4625_v62, 0.7853982  ;;  %v7265_v0 = vmin.u32 %v4691_v52, %v11858_v5  ;;  %v4777_v4 = vshll.u32 %v4737_v20, 8 }
 0x468   :  { %v4837_v7 = vshrl.u32 %v4836_v38, 23  ;;  %7784 = vsinq.f32 %v4609_v59  ;;  %v4711_v29 = vsub.s32 4, %v4687_v25  ;;  %vm4763_vm9 = vcmp.lt.s32.totalorder %v4742_v34, 3 }
 0x469   :  { %vm4764_vm12 = vcmp.lt.s32.totalorder %v4742_v34, 4  ;;  %v4693_v63 = vclz %v7265_v0  ;;  %vm4762_vm13 = vcmp.lt.s32.totalorder %v4742_v34, 2  ;;  %v4765_v37 = vsel %vm4761_vm8, %v4745_v31, %v4748_v12 }
 0x46a   :  { %v4769_v41 = vsel %vm4761_vm8, %v4748_v12, %v4751_v54  ;;  %v4766_v51 = vsel %vm4764_vm12, %v4754_v3, 2102212464  ;;  %v4770_v8 = vsel %vm4764_vm12, %v4757_v44, 920167782  ;;  %v4773_v62 = vsel %vm4761_vm8, %v4751_v54, %v4754_v3 }
 0x46b   :  { %v4774_v1 = vsel %vm4764_vm12, %v4760_v57, 1326507024  ;;  %v7266_v39 = vadd.s32 4294967294, %v4693_v63  ;;  %v4767_v15 = vsel %vm4763_vm9, %v4751_v54, %v4766_v51  ;;  %v4771_v32 = vsel %vm4763_vm9, %v4754_v3, %v4770_v8 }
 0x46c   :  { %v4775_v16 = vsel %vm4763_vm9, %v4757_v44, %v4774_v1  ;;  %v4681_v13 = vadd.s32 %v11824_v36, %v11830_v40  ;;  %v4772_v20 = vsel %vm4762_vm13, %v4769_v41, %v4771_v32  ;;  %v7272_v47 = vadd.s32 4294967169, %v4837_v7 }
 0x46d   :  { %v4776_v11 = vsel %vm4762_vm13, %v4773_v62, %v4775_v16  ;;  %vm7267_vm14 = vcmp.lt.s32.totalorder %v7266_v39, 0  ;;  %v4712_v58 = vsel %vm4627_vm10, %v4711_v29, %v4687_v25  ;;  %v4768_v30 = vsel %vm4762_vm13, %v4765_v37, %v4767_v15 }
 0x46e   :  { %v11888_v33 = vmul.u32.u64.low %v4777_v4, %v4776_v11  ;;  %v11889_v55 = vmul.u32.u64.high %v4777_v4, %v4776_v11, %v11888_v33  ;;  %v4696_v14 = vsel %vm7267_vm14, 0, %v7266_v39  ;;  %v4843_v17 = vadd.s32 1, %v7272_v47 }
 0x46f   :  { %v11892_v48 = vmul.u32.u64.low %v4777_v4, %v4772_v20  ;;  %v11893_v22 = vmul.u32.u64.high %v4777_v4, %v4772_v20, %v11892_v48  ;;  %v4697_v36 = vsub.s32 32, %v4696_v14  ;;  %v4698_v40 = vshll.u32 %v11858_v5, %v4696_v14 }
 0x470   :  { %v4701_v23 = vsub.s32 4294967266, %v4696_v14  ;;  %vm4613_vm15 = vweird.f32 %v13756_v10  ;;  %v4714_v25 = vsel %vm11874_vm11, 0, %v4712_v58  ;;  %v4784_v53 = vmul.u32 %v4777_v4, %v4768_v30  ;;  %v13768_v14 = vld [vmem:[#allocation20_spill] sm:$0xff] }
 0x471   :  { %v4699_v50 = vshrl.u32 %v4681_v13, %v4697_v36  ;;  %vm4786_vm0 = vc.u32 %v11889_v55, %v11892_v48  ;;  %vm4616_vm1 = vcmp.lt.s32.totalorder %v11845_v45, 2  ;;  %v4787_v34 = vadd.s32 1, %v11893_v22 }
 0x472   :  { %v4702_v21 = vadd.s32 127, %v4701_v23  ;;  %v4840_v42 = vand.u32 8388607, %v4833_v2  ;;  %vm4844_vm2 = vcmp.gt.s32.totalorder %v4843_v17, 0  ;;  %vm4617_vm3 = vcmp.eq.s32.totalorder %v11845_v45, 0 }
 0x473   :  { %v4700_v5 = vor.u32 %v4699_v50, %v4698_v40  ;;  %v4845_v38 = vsel %vm4844_vm2, %v4843_v17, 0  ;;  %vm4620_vm4 = vcmp.eq.s32.totalorder %v11845_v45, 2  ;;  %v4718_v12 = vadd.s32 3, %v4714_v25 }
 0x474   :  { %v4703_v61 = vshll.u32 %v4702_v21, 23  ;;  %v7783_v31 = vpop.eup %7782  ;;  %v4788_v56 = vsel %vm4786_vm0, %v4787_v34, %v11893_v22  ;;  %v4847_v46 = vand.u32 31, %v4845_v38  ;;  %v4841_v57 = vor.u32 8388608, %v4840_v42 }
 0x475   :  { %v7785_v60 = vpop.eup %7784  ;;  %v4621_v52 = vxor.u32 2147483648, %v7783_v31  ;;  %v4707_v3 = vcvt.s32.f32 %v4700_v5  ;;  %v4789_v59 = vadd.s32 %v4788_v56, %v4784_v53  ;;  %v4846_v13 = vshrl.u32 %v4845_v38, 5 }
 0x476   :  { %v4704_v54 = vor.u32 4788187, %v4703_v61  ;;  %v4618_v44 = vxor.u32 2147483648, %v7785_v60  ;;  %v4848_v0 = vsub.s32 32, %v4847_v46  ;;  %v4850_v4 = vshll.u32 %v13654_v28, %v4847_v46 }
 0x477   :  { %v4622_v7 = vsel %vm4620_vm4, %v4621_v52, %v7785_v60  ;;  %v4790_v63 = vadd.s32 536870912, %v4789_v59  ;;  %v4853_v37 = vshll.u32 %v13648_v18, %v4847_v46  ;;  %v4856_v62 = vshll.u32 %v13649_v24, %v4847_v46 }
 0x478   :  { %v4705_v29 = vand.u32 2147483647, %v4704_v54  ;;  %v4619_v41 = vsel %vm4617_vm3, %v7783_v31, %v4618_v44  ;;  %v4851_v51 = vshrl.u32 %v13648_v18, %v4848_v0  ;;  %v4854_v8 = vshrl.u32 %v13649_v24, %v4848_v0 }
 0x479   :  { %v4623_v1 = vsel %vm4616_vm1, %v4619_v41, %v4622_v7  ;;  %v4791_v15 = vshrl.u32 %v4790_v63, 30  ;;  %v4857_v32 = vshrl.u32 %v13650_v19, %v4848_v0  ;;  %v4859_v20 = vshll.u32 %v13650_v19, %v4847_v46 }
 0x47a   :  { %v4708_v39 = vmul.f32 %v4707_v3, %v4705_v29  ;;  %v4624_v16 = vsel %vm4613_vm15, nan, %v4623_v1  ;;  %v11922_v11 = vshll.u32 %v4841_v57, 8  ;;  %v4849_v33 = vshrl.u32 %v13654_v28, %v4848_v0 }
 0x47b   :  { %v4792_v58 = vshll.u32 %v4791_v15, 30  ;;  %v4940_v30 = vand.u32 2139095040, %v13768_v14  ;;  %7057 = vst [vmem:[#allocation5 + $0x140] sm:$0xff] %v4624_v16  ;;  %v4852_v45 = vor.u32 %v4851_v51, %v4850_v4  ;;  %v4860_v22 = vshrl.u32 %v13651_v27, %v4848_v0 }
 0x47c   :  { %v4709_v47 = vxor.u32 2147483648, %v4708_v39  ;;  %v4862_v36 = vshll.u32 %v13651_v27, %v4847_v46  ;;  %v4863_v10 = vshrl.u32 %v13652_v43, %v4848_v0  ;;  %v4855_v17 = vor.u32 %v4854_v8, %v4853_v37 }
 0x47d   :  { %v11931_v23 = vsub.s32 %v4789_v59, %v4792_v58  ;;  %v4858_v25 = vor.u32 %v4857_v32, %v4856_v62  ;;  %v4861_v21 = vor.u32 %v4860_v22, %v4859_v20  ;;  %vm4865_vm5 = vcmp.lt.s32.totalorder %v4846_v13, 1 }
 0x47e   :  { %v4710_v40 = vsel %vm4627_vm10, %v4709_v47, %v4708_v39  ;;  %v4864_v53 = vor.u32 %v4863_v10, %v4862_v36  ;;  %vm4867_vm6 = vcmp.lt.s32.totalorder %v4846_v13, 3  ;;  %v4941_v42 = vshrl.u32 %v4940_v30, 23 }
 0x47f   :  { %v4713_v50 = vsel %vm11874_vm11, %v13759_v6, %v4710_v40  ;;  %v4795_v34 = vsub.s32 0, %v11931_v23  ;;  %vm4866_vm7 = vcmp.lt.s32.totalorder %v4846_v13, 2  ;;  %vm4868_vm8 = vcmp.lt.s32.totalorder %v4846_v13, 4 }
 0x480   :  { %7786 = vcosq.f32 %v4713_v50  ;;  %v4869_v5 = vsel %vm4865_vm5, %v4849_v33, %v4852_v45  ;;  %v4870_v38 = vsel %vm4868_vm8, %v4858_v25, 2102212464  ;;  %v4873_v31 = vsel %vm4865_vm5, %v4852_v45, %v4855_v17 }
 0x481   :  { %7788 = vsinq.f32 %v4713_v50  ;;  %v7269_v61 = vmin.u32 %v4795_v34, %v11931_v23  ;;  %v4874_v56 = vsel %vm4868_vm8, %v4861_v21, 920167782  ;;  %v4871_v9 = vsel %vm4867_vm6, %v4855_v17, %v4870_v38 }
 0x482   :  { %v4875_v46 = vsel %vm4867_vm6, %v4858_v25, %v4874_v56  ;;  %v4877_v60 = vsel %vm4865_vm5, %v4855_v17, %v4858_v25  ;;  %v4878_v52 = vsel %vm4868_vm8, %v4864_v53, 1326507024  ;;  %v4719_v54 = vand.u32 3, %v4718_v12 }
 0x483   :  { %v4797_v3 = vclz %v7269_v61  ;;  %v4815_v59 = vsub.s32 4, %v4791_v15  ;;  %v4872_v44 = vsel %vm4866_vm7, %v4869_v5, %v4871_v9  ;;  %v4876_v57 = vsel %vm4866_vm7, %v4873_v31, %v4875_v46  ;;  %v13771_v61 = vld [vmem:[#allocation21_spill] sm:$0xff] }
 0x484   :  { %v4879_v0 = vsel %vm4867_vm6, %v4861_v21, %v4878_v52  ;;  %v7276_v4 = vadd.s32 4294967169, %v4941_v42  ;;  %v11945_v63 = vmul.u32.u64.low %v11922_v11, %v4876_v57  ;;  %v11946_v37 = vmul.u32.u64.high %v11922_v11, %v4876_v57, %v11945_v63 }
 0x485   :  { %v7270_v7 = vadd.s32 4294967294, %v4797_v3  ;;  %v4880_v29 = vsel %vm4866_vm7, %v4877_v60, %v4879_v0  ;;  %vm4731_vm10 = vcmp.lt.s32.totalorder %v13764_v26, 0  ;;  %v4937_v51 = vand.u32 2147483647, %v13768_v14 }
 0x486   :  { %v11951_v12 = vmul.u32.u64.low %v11922_v11, %v4880_v29  ;;  %v11952_v41 = vmul.u32.u64.high %v11922_v11, %v4880_v29, %v11951_v12  ;;  %vm4717_vm11 = vweird.f32 %v13759_v6  ;;  %v4785_v8 = vadd.s32 %v11892_v48, %v11889_v55 }
 0x487   :  { %vm7271_vm9 = vcmp.lt.s32.totalorder %v7270_v7, 0  ;;  %v4816_v62 = vsel %vm4731_vm10, %v4815_v59, %v4791_v15  ;;  %v4947_v1 = vadd.s32 1, %v7276_v4  ;;  %vm4720_vm12 = vcmp.lt.s32.totalorder %v4719_v54, 2 }
 0x488   :  { %vm11962_vm13 = vcmp.le.f32.partialorder %v4729_v35, 0.7853982  ;;  %v4800_v32 = vsel %vm7271_vm9, 0, %v7270_v7  ;;  %v4888_v16 = vmul.u32 %v11922_v11, %v4872_v44  ;;  %v4891_v55 = vadd.s32 1, %v11946_v37 }
 0x489   :  { %v4801_v13 = vsub.s32 32, %v4800_v32  ;;  %v4802_v20 = vshll.u32 %v11931_v23, %v4800_v32  ;;  %v4805_v47 = vsub.s32 4294967266, %v4800_v32  ;;  %v4818_v48 = vsel %vm11962_vm13, 0, %v4816_v62 }
 0x48a   :  { %vm4890_vm14 = vc.u32 %v11952_v41, %v11945_v63  ;;  %v4944_v35 = vand.u32 8388607, %v4937_v51  ;;  %vm4948_vm15 = vcmp.gt.s32.totalorder %v4947_v1, 0  ;;  %vm4721_vm0 = vcmp.eq.s32.totalorder %v4719_v54, 0 }
 0x48b   :  { %v4803_v15 = vshrl.u32 %v4785_v8, %v4801_v13  ;;  %v4806_v58 = vadd.s32 127, %v4805_v47  ;;  %v4892_v11 = vsel %vm4890_vm14, %v4891_v55, %v11946_v37  ;;  %v4949_v33 = vsel %vm4948_vm15, %v4947_v1, 0 }
 0x48c   :  { %vm4724_vm1 = vcmp.eq.s32.totalorder %v4719_v54, 2  ;;  %v4893_v45 = vadd.s32 %v4892_v11, %v4888_v16  ;;  %v4951_v22 = vand.u32 31, %v4949_v33  ;;  %v11976_v17 = vadd.s32 3, %v4818_v48 }
 0x48d   :  { %v7787_v30 = vpop.eup %7786  ;;  %v4804_v40 = vor.u32 %v4803_v15, %v4802_v20  ;;  %v4807_v23 = vshll.u32 %v4806_v58, 23  ;;  %v4945_v21 = vor.u32 8388608, %v4944_v35  ;;  %v5041_v38 = vand.u32 2147483647, %v13771_v61 }
 0x48e   :  { %v7789_v36 = vpop.eup %7788  ;;  %v4725_v10 = vxor.u32 2147483648, %v7787_v30  ;;  %v4894_v50 = vadd.s32 536870912, %v4893_v45  ;;  %v4952_v53 = vsub.s32 32, %v4951_v22  ;;  %v4950_v9 = vshrl.u32 %v4949_v33, 5 }
 0x48f   :  { %v4722_v25 = vxor.u32 2147483648, %v7789_v36  ;;  %v4808_v42 = vor.u32 4788187, %v4807_v23  ;;  %v4811_v5 = vcvt.s32.f32 %v4804_v40  ;;  %v5044_v46 = vand.u32 2139095040, %v13771_v61 }
 0x490   :  { %v4726_v34 = vsel %vm4724_vm1, %v4725_v10, %v7789_v36  ;;  %v4895_v56 = vshrl.u32 %v4894_v50, 30  ;;  %v4954_v3 = vshll.u32 %v13654_v28, %v4951_v22  ;;  %v4957_v59 = vshll.u32 %v13648_v18, %v4951_v22 }
 0x491   :  { %v4723_v31 = vsel %vm4721_vm0, %v7787_v30, %v4722_v25  ;;  %v4809_v52 = vand.u32 2147483647, %v4808_v42  ;;  %v4955_v0 = vshrl.u32 %v13648_v18, %v4952_v53  ;;  %v4958_v4 = vshrl.u32 %v13649_v24, %v4952_v53 }
 0x492   :  { %v4727_v60 = vsel %vm4720_vm12, %v4723_v31, %v4726_v34  ;;  %v4896_v57 = vshll.u32 %v4895_v56, 30  ;;  %v4960_v29 = vshll.u32 %v13649_v24, %v4951_v22  ;;  %v4961_v37 = vshrl.u32 %v13650_v19, %v4952_v53 }
 0x493   :  { %v4728_v44 = vsel %vm4717_vm11, nan, %v4727_v60  ;;  %v4812_v7 = vmul.f32 %v4811_v5, %v4809_v52  ;;  %v4963_v54 = vshll.u32 %v13650_v19, %v4951_v22  ;;  %v4964_v8 = vshrl.u32 %v13651_v27, %v4952_v53 }
 0x494   :  { %7058 = vst [vmem:[#allocation5 + $0x148] sm:$0xff] %v4728_v44  ;;  %v11991_v12 = vsub.s32 %v4893_v45, %v4896_v57  ;;  %v4966_v6 = vshll.u32 %v13651_v27, %v4951_v22  ;;  %v11995_v62 = vshll.u32 %v4945_v21, 8  ;;  %v4889_v32 = vadd.s32 %v11945_v63, %v11952_v41 }
 0x495   :  { %v4813_v1 = vxor.u32 2147483648, %v4812_v7  ;;  %v4967_v16 = vshrl.u32 %v13652_v43, %v4952_v53  ;;  %v5045_v13 = vshrl.u32 %v5044_v46, 23  ;;  %vm4835_vm2 = vcmp.lt.s32.totalorder %v13765_v49, 0 }
 0x496   :  { %v4899_v20 = vsub.s32 0, %v11991_v12  ;;  %v4953_v47 = vshrl.u32 %v13654_v28, %v4952_v53  ;;  %v4956_v55 = vor.u32 %v4955_v0, %v4954_v3  ;;  %v4959_v48 = vor.u32 %v4958_v4, %v4957_v59 }
 0x497   :  { %v4814_v35 = vsel %vm4731_vm10, %v4813_v1, %v4812_v7  ;;  %v4962_v15 = vor.u32 %v4961_v37, %v4960_v29  ;;  %v4965_v58 = vor.u32 %v4964_v8, %v4963_v54  ;;  %vm4969_vm3 = vcmp.lt.s32.totalorder %v4950_v9, 1 }
 0x498   :  { %v4817_v63 = vsel %vm11962_vm13, %v13764_v26, %v4814_v35  ;;  %v7273_v41 = vmin.u32 %v4899_v20, %v11991_v12  ;;  %v4968_v11 = vor.u32 %v4967_v16, %v4966_v6  ;;  %vm4972_vm4 = vcmp.lt.s32.totalorder %v4950_v9, 4 }
 0x499   :  { %7790 = vcosq.f32 %v4817_v63  ;;  %vm4970_vm5 = vcmp.lt.s32.totalorder %v4950_v9, 2  ;;  %vm4971_vm6 = vcmp.lt.s32.totalorder %v4950_v9, 3  ;;  %v4974_v33 = vsel %vm4972_vm4, %v4962_v15, 2102212464 }
 0x49a   :  { %7792 = vsinq.f32 %v4817_v63  ;;  %v4901_v30 = vclz %v7273_v41  ;;  %v4973_v45 = vsel %vm4969_vm3, %v4953_v47, %v4956_v55  ;;  %v4977_v22 = vsel %vm4969_vm3, %v4956_v55, %v4959_v48 }
 0x49b   :  { %v4919_v36 = vsub.s32 4, %v4895_v56  ;;  %v4975_v10 = vsel %vm4971_vm6, %v4959_v48, %v4974_v33  ;;  %v4978_v40 = vsel %vm4972_vm4, %v4965_v58, 920167782  ;;  %v4981_v39 = vsel %vm4969_vm3, %v4959_v48, %v4962_v15 }
 0x49c   :  { %v7274_v23 = vadd.s32 4294967294, %v4901_v30  ;;  %v4979_v25 = vsel %vm4971_vm6, %v4962_v15, %v4978_v40  ;;  %v4982_v50 = vsel %vm4972_vm4, %v4968_v11, 1326507024  ;;  %v5048_v21 = vand.u32 8388607, %v5041_v38 }
 0x49d   :  { %v4976_v53 = vsel %vm4970_vm5, %v4973_v45, %v4975_v10  ;;  %v4980_v34 = vsel %vm4970_vm5, %v4977_v22, %v4979_v25  ;;  %v4983_v42 = vsel %vm4971_vm6, %v4965_v58, %v4982_v50  ;;  %v7280_v5 = vadd.s32 4294967169, %v5045_v13 }
 0x49e   :  { %vm7275_vm7 = vcmp.lt.s32.totalorder %v7274_v23, 0  ;;  %v4984_v31 = vsel %vm4970_vm5, %v4981_v39, %v4983_v42  ;;  %v12021_v46 = vmul.u32.u64.low %v11995_v62, %v4980_v34  ;;  %v12022_v60 = vmul.u32.u64.high %v11995_v62, %v4980_v34, %v12021_v46 }
 0x49f   :  { %v4904_v52 = vsel %vm7275_vm7, 0, %v7274_v23  ;;  %v4920_v3 = vsel %vm4835_vm2, %v4919_v36, %v4895_v56  ;;  %v12028_v59 = vmul.u32.u64.low %v11995_v62, %v4984_v31  ;;  %v12029_v44 = vmul.u32.u64.high %v11995_v62, %v4984_v31, %v12028_v59 }
 0x4a0   :  { %v4905_v57 = vsub.s32 32, %v4904_v52  ;;  %v4906_v0 = vshll.u32 %v11991_v12, %v4904_v52  ;;  %v4909_v4 = vsub.s32 4294967266, %v4904_v52  ;;  %v5051_v7 = vadd.s32 1, %v7280_v5 }
 0x4a1   :  { %v4823_v9 = vand.u32 3, %v11976_v17  ;;  %vm12035_vm8 = vcmp.le.f32.partialorder %v4833_v2, 0.7853982  ;;  %v4992_v37 = vmul.u32 %v11995_v62, %v4976_v53  ;;  %v4995_v8 = vadd.s32 1, %v12022_v60 }
 0x4a2   :  { %v4907_v56 = vshrl.u32 %v4889_v32, %v4905_v57  ;;  %v4910_v54 = vadd.s32 127, %v4909_v4  ;;  %vm5052_vm10 = vcmp.gt.s32.totalorder %v5051_v7, 0  ;;  %v4922_v12 = vsel %vm12035_vm8, 0, %v4920_v3 }
 0x4a3   :  { %vm4994_vm11 = vc.u32 %v12029_v44, %v12021_v46  ;;  %v5049_v17 = vor.u32 8388608, %v5048_v21  ;;  %v5053_v6 = vsel %vm5052_vm10, %v5051_v7, 0  ;;  %vm4821_vm9 = vweird.f32 %v13764_v26 }
 0x4a4   :  { %v4908_v1 = vor.u32 %v4907_v56, %v4906_v0  ;;  %v4911_v2 = vshll.u32 %v4910_v54, 23  ;;  %v4996_v16 = vsel %vm4994_vm11, %v4995_v8, %v12022_v60  ;;  %v12046_v13 = vshrl.u32 %v5053_v6, 5 }
 0x4a5   :  { %vm4824_vm12 = vcmp.lt.s32.totalorder %v4823_v9, 2  ;;  %v4997_v62 = vadd.s32 %v4996_v16, %v4992_v37  ;;  %v5055_v32 = vand.u32 31, %v5053_v6  ;;  %vm4825_vm13 = vcmp.eq.s32.totalorder %v4823_v9, 0 }
 0x4a6   :  { %v7791_v20 = vpop.eup %7790  ;;  %vm4828_vm14 = vcmp.eq.s32.totalorder %v4823_v9, 2  ;;  %v4912_v47 = vor.u32 4788187, %v4911_v2  ;;  %v4915_v55 = vcvt.s32.f32 %v4908_v1  ;;  %v4926_v15 = vadd.s32 3, %v4922_v12  ;;  %v13776_v12 = vld [vmem:[#allocation22_spill] sm:$0xff] }
 0x4a7   :  { %v7793_v48 = vpop.eup %7792  ;;  %v4829_v35 = vxor.u32 2147483648, %v7791_v20  ;;  %v4998_v58 = vadd.s32 536870912, %v4997_v62  ;;  %v5056_v63 = vsub.s32 32, %v5055_v32  ;;  %vm5073_vm15 = vcmp.lt.s32.totalorder %v12046_v13, 1 }
 0x4a8   :  { %v4826_v41 = vxor.u32 2147483648, %v7793_v48  ;;  %v4913_v11 = vand.u32 2147483647, %v4912_v47  ;;  %v12050_v33 = vshll.u32 %v5049_v17, 8  ;;  %v5058_v22 = vshll.u32 %v13654_v28, %v5055_v32 }
 0x4a9   :  { %v4830_v30 = vsel %vm4828_vm14, %v4829_v35, %v7793_v48  ;;  %v4999_v45 = vshrl.u32 %v4998_v58, 30  ;;  %v5059_v36 = vshrl.u32 %v13648_v18, %v5056_v63  ;;  %vm4939_vm0 = vcmp.lt.s32.totalorder %v13768_v14, 0 }
 0x4aa   :  { %v4827_v10 = vsel %vm4825_vm13, %v7791_v20, %v4826_v41  ;;  %v4916_v40 = vmul.f32 %v4915_v55, %v4913_v11  ;;  %v5061_v39 = vshll.u32 %v13648_v18, %v5055_v32  ;;  %v5062_v23 = vshrl.u32 %v13649_v24, %v5056_v63 }
 0x4ab   :  { %v4831_v25 = vsel %vm4824_vm12, %v4827_v10, %v4830_v30  ;;  %v5000_v50 = vshll.u32 %v4999_v45, 30  ;;  %v5064_v21 = vshll.u32 %v13649_v24, %v5055_v32  ;;  %v5065_v53 = vshrl.u32 %v13650_v19, %v5056_v63 }
 0x4ac   :  { %v4832_v34 = vsel %vm4821_vm9, nan, %v4831_v25  ;;  %v4917_v42 = vxor.u32 2147483648, %v4916_v40  ;;  %v5023_v5 = vsub.s32 4, %v4999_v45  ;;  %v5057_v31 = vshrl.u32 %v13654_v28, %v5056_v63 }
 0x4ad   :  { %v12064_v60 = vsub.s32 %v4997_v62, %v5000_v50  ;;  %v5060_v52 = vor.u32 %v5059_v36, %v5058_v22  ;;  %v5067_v3 = vshll.u32 %v13650_v19, %v5055_v32  ;;  %v5068_v59 = vshrl.u32 %v13651_v27, %v5056_v63  ;;  %7059 = vst [vmem:[#allocation5 + $0x150] sm:$0xff] %v4832_v34 }
 0x4ae   :  { %v4918_v57 = vsel %vm4835_vm2, %v4917_v42, %v4916_v40  ;;  %v5063_v0 = vor.u32 %v5062_v23, %v5061_v39  ;;  %v5070_v4 = vshll.u32 %v13651_v27, %v5055_v32  ;;  %v5071_v26 = vshrl.u32 %v13652_v43, %v5056_v63 }
 0x4af   :  { %v4921_v7 = vsel %vm12035_vm8, %v13765_v49, %v4918_v57  ;;  %vm12077_vm1 = vcmp.le.f32.partialorder %v4937_v51, 0.7853982  ;;  %v5003_v37 = vsub.s32 0, %v12064_v60  ;;  %v5066_v56 = vor.u32 %v5065_v53, %v5064_v21 }
 0x4b0   :  { %v5069_v54 = vor.u32 %v5068_v59, %v5067_v3  ;;  %7794 = vcosq.f32 %v4921_v7  ;;  %v5072_v8 = vor.u32 %v5071_v26, %v5070_v4  ;;  %vm5076_vm2 = vcmp.lt.s32.totalorder %v12046_v13, 4 }
 0x4b1   :  { %v5148_v17 = vand.u32 2139095040, %v13776_v12  ;;  %7796 = vsinq.f32 %v4921_v7  ;;  %v7277_v29 = vmin.u32 %v5003_v37, %v12064_v60  ;;  %vm5074_vm3 = vcmp.lt.s32.totalorder %v12046_v13, 2 }
 0x4b2   :  { %vm5075_vm4 = vcmp.lt.s32.totalorder %v12046_v13, 3  ;;  %v5077_v51 = vsel %vm5073_vm15, %v5057_v31, %v5060_v52  ;;  %v5078_v6 = vsel %vm5076_vm2, %v5066_v56, 2102212464  ;;  %v5081_v1 = vsel %vm5073_vm15, %v5060_v52, %v5063_v0 }
 0x4b3   :  { %v5082_v2 = vsel %vm5076_vm2, %v5069_v54, 920167782  ;;  %v4927_v16 = vand.u32 3, %v4926_v15  ;;  %v5005_v62 = vclz %v7277_v29  ;;  %v5024_v32 = vsel %vm4939_vm0, %v5023_v5, %v4999_v45 }
 0x4b4   :  { %v5085_v20 = vsel %vm5073_vm15, %v5063_v0, %v5066_v56  ;;  %v5079_v47 = vsel %vm5075_vm4, %v5063_v0, %v5078_v6  ;;  %v5083_v55 = vsel %vm5075_vm4, %v5066_v56, %v5082_v2  ;;  %v5086_v48 = vsel %vm5076_vm2, %v5072_v8, 1326507024 }
 0x4b5   :  { %v5149_v35 = vshrl.u32 %v5148_v17, 23  ;;  %v7278_v58 = vadd.s32 4294967294, %v5005_v62  ;;  %v5080_v15 = vsel %vm5074_vm3, %v5077_v51, %v5079_v47  ;;  %v5084_v63 = vsel %vm5074_vm3, %v5081_v1, %v5083_v55 }
 0x4b6   :  { %v5087_v41 = vsel %vm5075_vm4, %v5069_v54, %v5086_v48  ;;  %v4993_v11 = vadd.s32 %v12021_v46, %v12029_v44  ;;  %v12116_v45 = vmul.u32.u64.low %v12050_v33, %v5084_v63  ;;  %v12117_v22 = vmul.u32.u64.high %v12050_v33, %v5084_v63, %v12116_v45 }
 0x4b7   :  { %v5088_v30 = vsel %vm5074_vm3, %v5085_v20, %v5087_v41  ;;  %vm7279_vm5 = vcmp.lt.s32.totalorder %v7278_v58, 0  ;;  %v7284_v40 = vadd.s32 4294967169, %v5149_v35  ;;  %v5026_v23 = vsel %vm12077_vm1, 0, %v5024_v32 }
 0x4b8   :  { %v12121_v36 = vmul.u32.u64.low %v12050_v33, %v5088_v30  ;;  %v12122_v10 = vmul.u32.u64.high %v12050_v33, %v5088_v30, %v12121_v36  ;;  %v5008_v39 = vsel %vm7279_vm5, 0, %v7278_v58  ;;  %v5096_v46 = vmul.u32 %v12050_v33, %v5080_v15 }
 0x4b9   :  { %v5145_v44 = vand.u32 2147483647, %v13776_v12  ;;  %v5009_v13 = vsub.s32 32, %v5008_v39  ;;  %v5010_v25 = vshll.u32 %v12064_v60, %v5008_v39  ;;  %v5013_v50 = vsub.s32 4294967266, %v5008_v39 }
 0x4ba   :  { %v5155_v21 = vadd.s32 1, %v7284_v40  ;;  %vm4925_vm6 = vweird.f32 %v13765_v49  ;;  %v5099_v53 = vadd.s32 1, %v12117_v22  ;;  %vm4932_vm7 = vcmp.eq.s32.totalorder %v4927_v16, 2 }
 0x4bb   :  { %v5011_v34 = vshrl.u32 %v4993_v11, %v5009_v13  ;;  %v5014_v42 = vadd.s32 127, %v5013_v50  ;;  %vm5098_vm8 = vc.u32 %v12122_v10, %v12116_v45  ;;  %v5030_v5 = vadd.s32 3, %v5026_v23 }
 0x4bc   :  { %v5100_v33 = vsel %vm5098_vm8, %v5099_v53, %v12117_v22  ;;  %v5152_v31 = vand.u32 8388607, %v5145_v44  ;;  %vm5156_vm10 = vcmp.gt.s32.totalorder %v5155_v21, 0  ;;  %vm4928_vm11 = vcmp.lt.s32.totalorder %v4927_v16, 2 }
 0x4bd   :  { %v7795_v60 = vpop.eup %7794  ;;  %v5012_v52 = vor.u32 %v5011_v34, %v5010_v25  ;;  %v5015_v3 = vshll.u32 %v5014_v42, 23  ;;  %v5101_v59 = vadd.s32 %v5100_v33, %v5096_v46  ;;  %v5157_v57 = vsel %vm5156_vm10, %v5155_v21, 0 }
 0x4be   :  { %v7797_v0 = vpop.eup %7796  ;;  %vm4929_vm9 = vcmp.eq.s32.totalorder %v4927_v16, 0  ;;  %v4933_v4 = vxor.u32 2147483648, %v7795_v60  ;;  %v5159_v26 = vand.u32 31, %v5157_v57  ;;  %v12137_v17 = vand.u32 3, %v5030_v5  ;;  %v13777_v16 = vld [vmem:[#allocation23_spill] sm:$0xff] }
 0x4bf   :  { %v4930_v7 = vxor.u32 2147483648, %v7797_v0  ;;  %v5016_v37 = vor.u32 4788187, %v5015_v3  ;;  %v5019_v56 = vcvt.s32.f32 %v5012_v52  ;;  %v5102_v54 = vadd.s32 536870912, %v5101_v59 }
 0x4c0   :  { %v4934_v8 = vsel %vm4932_vm7, %v4933_v4, %v7797_v0  ;;  %v5153_v29 = vor.u32 8388608, %v5152_v31  ;;  %v5160_v51 = vsub.s32 32, %v5159_v26  ;;  %v5162_v62 = vshll.u32 %v13654_v28, %v5159_v26 }
 0x4c1   :  { %v4931_v6 = vsel %vm4929_vm9, %v7795_v60, %v4930_v7  ;;  %v5017_v1 = vand.u32 2147483647, %v5016_v37  ;;  %v5103_v2 = vshrl.u32 %v5102_v54, 30  ;;  %v5165_v47 = vshll.u32 %v13648_v18, %v5159_v26 }
 0x4c2   :  { %v4935_v32 = vsel %vm4928_vm11, %v4931_v6, %v4934_v8  ;;  %v5163_v20 = vshrl.u32 %v13648_v18, %v5160_v51  ;;  %v5168_v55 = vshll.u32 %v13649_v24, %v5159_v26  ;;  %v5166_v15 = vshrl.u32 %v13649_v24, %v5160_v51 }
 0x4c3   :  { %v4936_v48 = vsel %vm4925_vm6, nan, %v4935_v32  ;;  %v5020_v35 = vmul.f32 %v5019_v56, %v5017_v1  ;;  %v5104_v58 = vshll.u32 %v5103_v2, 30  ;;  %v5158_v63 = vshrl.u32 %v5157_v57, 5 }
 0x4c4   :  { %v5169_v41 = vshrl.u32 %v13650_v19, %v5160_v51  ;;  %v5171_v11 = vshll.u32 %v13650_v19, %v5159_v26  ;;  %v5249_v30 = vand.u32 2147483647, %v13777_v16  ;;  %7060 = vst [vmem:[#allocation5 + $0x158] sm:$0xff] %v4936_v48  ;;  %v5172_v40 = vshrl.u32 %v13651_v27, %v5160_v51 }
 0x4c5   :  { %v5021_v22 = vxor.u32 2147483648, %v5020_v35  ;;  %v12150_v36 = vsub.s32 %v5101_v59, %v5104_v58  ;;  %v5252_v49 = vand.u32 2139095040, %v13777_v16  ;;  %vm5043_vm12 = vcmp.lt.s32.totalorder %v13771_v61, 0 }
 0x4c6   :  { %v5161_v39 = vshrl.u32 %v13654_v28, %v5160_v51  ;;  %v5164_v23 = vor.u32 %v5163_v20, %v5162_v62  ;;  %v5174_v46 = vshll.u32 %v13651_v27, %v5159_v26  ;;  %v5175_v13 = vshrl.u32 %v13652_v43, %v5160_v51 }
 0x4c7   :  { %v5022_v25 = vsel %vm4939_vm0, %v5021_v22, %v5020_v35  ;;  %v5107_v50 = vsub.s32 0, %v12150_v36  ;;  %v5167_v21 = vor.u32 %v5166_v15, %v5165_v47  ;;  %v5170_v53 = vor.u32 %v5169_v41, %v5168_v55 }
 0x4c8   :  { %v5025_v34 = vsel %vm12077_vm1, %v13768_v14, %v5022_v25  ;;  %v5173_v42 = vor.u32 %v5172_v40, %v5171_v11  ;;  %v5176_v5 = vor.u32 %v5175_v13, %v5174_v46  ;;  %vm5177_vm13 = vcmp.lt.s32.totalorder %v5158_v63, 1 }
 0x4c9   :  { %7798 = vcosq.f32 %v5025_v34  ;;  %vm12166_vm14 = vcmp.le.f32.partialorder %v5041_v38, 0.7853982  ;;  %v7281_v31 = vmin.u32 %v5107_v50, %v12150_v36  ;;  %v5193_v60 = vshll.u32 %v5153_v29, 8 }
 0x4ca   :  { %v5253_v52 = vshrl.u32 %v5252_v49, 23  ;;  %7800 = vsinq.f32 %v5025_v34  ;;  %v5127_v3 = vsub.s32 4, %v5103_v2  ;;  %vm5179_vm15 = vcmp.lt.s32.totalorder %v5158_v63, 3 }
 0x4cb   :  { %vm5180_vm0 = vcmp.lt.s32.totalorder %v5158_v63, 4  ;;  %v5109_v9 = vclz %v7281_v31  ;;  %vm5178_vm1 = vcmp.lt.s32.totalorder %v5158_v63, 2  ;;  %v5181_v59 = vsel %vm5177_vm13, %v5161_v39, %v5164_v23 }
 0x4cc   :  { %v5185_v57 = vsel %vm5177_vm13, %v5164_v23, %v5167_v21  ;;  %v5182_v0 = vsel %vm5180_vm0, %v5170_v53, 2102212464  ;;  %v5186_v4 = vsel %vm5180_vm0, %v5173_v42, 920167782  ;;  %v5189_v38 = vsel %vm5177_vm13, %v5167_v21, %v5170_v53 }
 0x4cd   :  { %v5190_v26 = vsel %vm5180_vm0, %v5176_v5, 1326507024  ;;  %v7282_v7 = vadd.s32 4294967294, %v5109_v9  ;;  %v5183_v37 = vsel %vm5179_vm15, %v5167_v21, %v5182_v0  ;;  %v5187_v56 = vsel %vm5179_vm15, %v5170_v53, %v5186_v4 }
 0x4ce   :  { %v5191_v54 = vsel %vm5179_vm15, %v5173_v42, %v5190_v26  ;;  %v5097_v8 = vadd.s32 %v12116_v45, %v12122_v10  ;;  %v5188_v29 = vsel %vm5178_vm1, %v5185_v57, %v5187_v56  ;;  %v7288_v6 = vadd.s32 4294967169, %v5253_v52 }
 0x4cf   :  { %v5192_v51 = vsel %vm5178_vm1, %v5189_v38, %v5191_v54  ;;  %vm7283_vm2 = vcmp.lt.s32.totalorder %v7282_v7, 0  ;;  %v5128_v1 = vsel %vm5043_vm12, %v5127_v3, %v5103_v2  ;;  %v5184_v47 = vsel %vm5178_vm1, %v5181_v59, %v5183_v37 }
 0x4d0   :  { %v12180_v62 = vmul.u32.u64.low %v5193_v60, %v5192_v51  ;;  %v12181_v32 = vmul.u32.u64.high %v5193_v60, %v5192_v51, %v12180_v62  ;;  %v5112_v20 = vsel %vm7283_vm2, 0, %v7282_v7  ;;  %v5259_v58 = vadd.s32 1, %v7288_v6 }
 0x4d1   :  { %v12184_v55 = vmul.u32.u64.low %v5193_v60, %v5188_v29  ;;  %v12185_v48 = vmul.u32.u64.high %v5193_v60, %v5188_v29, %v12184_v55  ;;  %v5113_v45 = vsub.s32 32, %v5112_v20  ;;  %v5114_v10 = vshll.u32 %v12150_v36, %v5112_v20 }
 0x4d2   :  { %v5117_v35 = vsub.s32 4294967266, %v5112_v20  ;;  %vm5029_vm3 = vweird.f32 %v13768_v14  ;;  %v5130_v2 = vsel %vm12166_vm14, 0, %v5128_v1  ;;  %v5200_v11 = vmul.u32 %v5193_v60, %v5184_v47  ;;  %v13780_v20 = vld [vmem:[#allocation24_spill] sm:$0xff] }
 0x4d3   :  { %v5115_v15 = vshrl.u32 %v5097_v8, %v5113_v45  ;;  %vm5202_vm4 = vc.u32 %v12181_v32, %v12184_v55  ;;  %vm5032_vm5 = vcmp.lt.s32.totalorder %v12137_v17, 2  ;;  %v5203_v63 = vadd.s32 1, %v12185_v48 }
 0x4d4   :  { %v5118_v41 = vadd.s32 127, %v5117_v35  ;;  %v5256_v22 = vand.u32 8388607, %v5249_v30  ;;  %vm5260_vm6 = vcmp.gt.s32.totalorder %v5259_v58, 0  ;;  %vm5033_vm7 = vcmp.eq.s32.totalorder %v12137_v17, 0 }
 0x4d5   :  { %v5116_v36 = vor.u32 %v5115_v15, %v5114_v10  ;;  %v5261_v49 = vsel %vm5260_vm6, %v5259_v58, 0  ;;  %vm5036_vm8 = vcmp.eq.s32.totalorder %v12137_v17, 2  ;;  %v5134_v23 = vadd.s32 3, %v5130_v2 }
 0x4d6   :  { %v5119_v40 = vshll.u32 %v5118_v41, 23  ;;  %v7799_v39 = vpop.eup %7798  ;;  %v5204_v46 = vsel %vm5202_vm4, %v5203_v63, %v12185_v48  ;;  %v5263_v13 = vand.u32 31, %v5261_v49  ;;  %v5257_v5 = vor.u32 8388608, %v5256_v22 }
 0x4d7   :  { %v7801_v25 = vpop.eup %7800  ;;  %v5037_v50 = vxor.u32 2147483648, %v7799_v39  ;;  %v5123_v53 = vcvt.s32.f32 %v5116_v36  ;;  %v5205_v34 = vadd.s32 %v5204_v46, %v5200_v11  ;;  %v5262_v8 = vshrl.u32 %v5261_v49, 5 }
 0x4d8   :  { %v5120_v21 = vor.u32 4788187, %v5119_v40  ;;  %v5034_v42 = vxor.u32 2147483648, %v7801_v25  ;;  %v5264_v31 = vsub.s32 32, %v5263_v13  ;;  %v5266_v60 = vshll.u32 %v13654_v28, %v5263_v13 }
 0x4d9   :  { %v5038_v52 = vsel %vm5036_vm8, %v5037_v50, %v7801_v25  ;;  %v5206_v9 = vadd.s32 536870912, %v5205_v34  ;;  %v5269_v59 = vshll.u32 %v13648_v18, %v5263_v13  ;;  %v5272_v38 = vshll.u32 %v13649_v24, %v5263_v13 }
 0x4da   :  { %v5121_v3 = vand.u32 2147483647, %v5120_v21  ;;  %v5035_v57 = vsel %vm5033_vm7, %v7799_v39, %v5034_v42  ;;  %v5267_v0 = vshrl.u32 %v13648_v18, %v5264_v31  ;;  %v5270_v4 = vshrl.u32 %v13649_v24, %v5264_v31 }
 0x4db   :  { %v5039_v26 = vsel %vm5032_vm5, %v5035_v57, %v5038_v52  ;;  %v5207_v37 = vshrl.u32 %v5206_v9, 30  ;;  %v5273_v56 = vshrl.u32 %v13650_v19, %v5264_v31  ;;  %v5275_v29 = vshll.u32 %v13650_v19, %v5263_v13 }
 0x4dc   :  { %v5124_v7 = vmul.f32 %v5123_v53, %v5121_v3  ;;  %v5040_v54 = vsel %vm5029_vm3, nan, %v5039_v26  ;;  %v12214_v51 = vshll.u32 %v5257_v5, 8  ;;  %v5265_v62 = vshrl.u32 %v13654_v28, %v5264_v31 }
 0x4dd   :  { %v5208_v1 = vshll.u32 %v5207_v37, 30  ;;  %v5356_v47 = vand.u32 2139095040, %v13780_v20  ;;  %7061 = vst [vmem:[#allocation5 + $0x160] sm:$0xff] %v5040_v54  ;;  %v5268_v17 = vor.u32 %v5267_v0, %v5266_v60  ;;  %v5276_v48 = vshrl.u32 %v13651_v27, %v5264_v31 }
 0x4de   :  { %v5125_v6 = vxor.u32 2147483648, %v5124_v7  ;;  %v5278_v45 = vshll.u32 %v13651_v27, %v5263_v13  ;;  %v5279_v14 = vshrl.u32 %v13652_v43, %v5264_v31  ;;  %v5271_v58 = vor.u32 %v5270_v4, %v5269_v59 }
 0x4df   :  { %v12223_v35 = vsub.s32 %v5205_v34, %v5208_v1  ;;  %v5274_v2 = vor.u32 %v5273_v56, %v5272_v38  ;;  %v5277_v41 = vor.u32 %v5276_v48, %v5275_v29  ;;  %vm5281_vm10 = vcmp.lt.s32.totalorder %v5262_v8, 1 }
 0x4e0   :  { %v5126_v10 = vsel %vm5043_vm12, %v5125_v6, %v5124_v7  ;;  %v5280_v11 = vor.u32 %v5279_v14, %v5278_v45  ;;  %vm5283_vm11 = vcmp.lt.s32.totalorder %v5262_v8, 3  ;;  %v5357_v22 = vshrl.u32 %v5356_v47, 23 }
 0x4e1   :  { %v5129_v15 = vsel %vm12166_vm14, %v13771_v61, %v5126_v10  ;;  %v5211_v63 = vsub.s32 0, %v12223_v35  ;;  %vm5282_vm9 = vcmp.lt.s32.totalorder %v5262_v8, 2  ;;  %vm5284_vm13 = vcmp.lt.s32.totalorder %v5262_v8, 4 }
 0x4e2   :  { %7802 = vcosq.f32 %v5129_v15  ;;  %v5285_v36 = vsel %vm5281_vm10, %v5265_v62, %v5268_v17  ;;  %v5286_v49 = vsel %vm5284_vm13, %v5274_v2, 2102212464  ;;  %v5289_v39 = vsel %vm5281_vm10, %v5268_v17, %v5271_v58 }
 0x4e3   :  { %7804 = vsinq.f32 %v5129_v15  ;;  %v7285_v40 = vmin.u32 %v5211_v63, %v12223_v35  ;;  %v5290_v46 = vsel %vm5284_vm13, %v5277_v41, 920167782  ;;  %v5287_v33 = vsel %vm5283_vm11, %v5271_v58, %v5286_v49 }
 0x4e4   :  { %v5291_v13 = vsel %vm5283_vm11, %v5274_v2, %v5290_v46  ;;  %v5293_v25 = vsel %vm5281_vm10, %v5271_v58, %v5274_v2  ;;  %v5294_v50 = vsel %vm5284_vm13, %v5280_v11, 1326507024  ;;  %v5135_v21 = vand.u32 3, %v5134_v23 }
 0x4e5   :  { %v5213_v53 = vclz %v7285_v40  ;;  %v5231_v34 = vsub.s32 4, %v5207_v37  ;;  %v5288_v42 = vsel %vm5282_vm9, %v5285_v36, %v5287_v33  ;;  %v5292_v5 = vsel %vm5282_vm9, %v5289_v39, %v5291_v13  ;;  %v13783_v40 = vld [vmem:[#allocation25_spill] sm:$0xff] }
 0x4e6   :  { %v5295_v31 = vsel %vm5283_vm11, %v5277_v41, %v5294_v50  ;;  %v7292_v60 = vadd.s32 4294967169, %v5357_v22  ;;  %v12237_v9 = vmul.u32.u64.low %v12214_v51, %v5292_v5  ;;  %v12238_v59 = vmul.u32.u64.high %v12214_v51, %v5292_v5, %v12237_v9 }
 0x4e7   :  { %v7286_v52 = vadd.s32 4294967294, %v5213_v53  ;;  %v5296_v3 = vsel %vm5282_vm9, %v5293_v25, %v5295_v31  ;;  %vm5147_vm12 = vcmp.lt.s32.totalorder %v13776_v12, 0  ;;  %v5353_v0 = vand.u32 2147483647, %v13780_v20 }
 0x4e8   :  { %v12243_v23 = vmul.u32.u64.low %v12214_v51, %v5296_v3  ;;  %v12244_v57 = vmul.u32.u64.high %v12214_v51, %v5296_v3, %v12243_v23  ;;  %vm5133_vm14 = vweird.f32 %v13771_v61  ;;  %v5201_v4 = vadd.s32 %v12184_v55, %v12181_v32 }
 0x4e9   :  { %vm7287_vm15 = vcmp.lt.s32.totalorder %v7286_v52, 0  ;;  %v5232_v38 = vsel %vm5147_vm12, %v5231_v34, %v5207_v37  ;;  %v5363_v26 = vadd.s32 1, %v7292_v60  ;;  %vm5136_vm0 = vcmp.lt.s32.totalorder %v5135_v21, 2 }
 0x4ea   :  { %vm12254_vm1 = vcmp.le.f32.partialorder %v5145_v44, 0.7853982  ;;  %v5216_v56 = vsel %vm7287_vm15, 0, %v7286_v52  ;;  %v5304_v54 = vmul.u32 %v12214_v51, %v5288_v42  ;;  %v5307_v32 = vadd.s32 1, %v12238_v59 }
 0x4eb   :  { %v5217_v8 = vsub.s32 32, %v5216_v56  ;;  %v5218_v29 = vshll.u32 %v12223_v35, %v5216_v56  ;;  %v5221_v6 = vsub.s32 4294967266, %v5216_v56  ;;  %v5234_v55 = vsel %vm12254_vm1, 0, %v5232_v38 }
 0x4ec   :  { %vm5306_vm2 = vc.u32 %v12244_v57, %v12237_v9  ;;  %v5360_v44 = vand.u32 8388607, %v5353_v0  ;;  %vm5364_vm3 = vcmp.gt.s32.totalorder %v5363_v26, 0  ;;  %vm5137_vm4 = vcmp.eq.s32.totalorder %v5135_v21, 0 }
 0x4ed   :  { %v5219_v37 = vshrl.u32 %v5201_v4, %v5217_v8  ;;  %v5222_v1 = vadd.s32 127, %v5221_v6  ;;  %v5308_v51 = vsel %vm5306_vm2, %v5307_v32, %v12238_v59  ;;  %v5365_v62 = vsel %vm5364_vm3, %v5363_v26, 0 }
 0x4ee   :  { %vm5140_vm5 = vcmp.eq.s32.totalorder %v5135_v21, 2  ;;  %v5309_v17 = vadd.s32 %v5308_v51, %v5304_v54  ;;  %v5367_v48 = vand.u32 31, %v5365_v62  ;;  %v12268_v58 = vadd.s32 3, %v5234_v55 }
 0x4ef   :  { %v7803_v47 = vpop.eup %7802  ;;  %v5220_v10 = vor.u32 %v5219_v37, %v5218_v29  ;;  %v5223_v35 = vshll.u32 %v5222_v1, 23  ;;  %v5361_v41 = vor.u32 8388608, %v5360_v44  ;;  %v5457_v49 = vand.u32 2147483647, %v13783_v40 }
 0x4f0   :  { %v7805_v45 = vpop.eup %7804  ;;  %v5141_v14 = vxor.u32 2147483648, %v7803_v47  ;;  %v5310_v15 = vadd.s32 536870912, %v5309_v17  ;;  %v5368_v11 = vsub.s32 32, %v5367_v48  ;;  %v5366_v33 = vshrl.u32 %v5365_v62, 5 }
 0x4f1   :  { %v5138_v2 = vxor.u32 2147483648, %v7805_v45  ;;  %v5224_v22 = vor.u32 4788187, %v5223_v35  ;;  %v5227_v36 = vcvt.s32.f32 %v5220_v10  ;;  %v5460_v13 = vand.u32 2139095040, %v13783_v40 }
 0x4f2   :  { %v5142_v63 = vsel %vm5140_vm5, %v5141_v14, %v7805_v45  ;;  %v5311_v46 = vshrl.u32 %v5310_v15, 30  ;;  %v5370_v53 = vshll.u32 %v13654_v28, %v5367_v48  ;;  %v5373_v34 = vshll.u32 %v13648_v18, %v5367_v48 }
 0x4f3   :  { %v5139_v39 = vsel %vm5137_vm4, %v7803_v47, %v5138_v2  ;;  %v5225_v50 = vand.u32 2147483647, %v5224_v22  ;;  %v5371_v31 = vshrl.u32 %v13648_v18, %v5368_v11  ;;  %v5374_v60 = vshrl.u32 %v13649_v24, %v5368_v11 }
 0x4f4   :  { %v5143_v25 = vsel %vm5136_vm0, %v5139_v39, %v5142_v63  ;;  %v5312_v5 = vshll.u32 %v5311_v46, 30  ;;  %v5376_v3 = vshll.u32 %v13649_v24, %v5367_v48  ;;  %v5377_v59 = vshrl.u32 %v13650_v19, %v5368_v11 }
 0x4f5   :  { %v5144_v42 = vsel %vm5133_vm14, nan, %v5143_v25  ;;  %v5228_v52 = vmul.f32 %v5227_v36, %v5225_v50  ;;  %v5379_v21 = vshll.u32 %v13650_v19, %v5367_v48  ;;  %v5380_v4 = vshrl.u32 %v13651_v27, %v5368_v11 }
 0x4f6   :  { %7062 = vst [vmem:[#allocation5 + $0x168] sm:$0xff] %v5144_v42  ;;  %v12283_v23 = vsub.s32 %v5309_v17, %v5312_v5  ;;  %v5382_v61 = vshll.u32 %v13651_v27, %v5367_v48  ;;  %v12287_v38 = vshll.u32 %v5361_v41, 8  ;;  %v5305_v56 = vadd.s32 %v12237_v9, %v12244_v57 }
 0x4f7   :  { %v5229_v26 = vxor.u32 2147483648, %v5228_v52  ;;  %v5383_v54 = vshrl.u32 %v13652_v43, %v5368_v11  ;;  %v5461_v8 = vshrl.u32 %v5460_v13, 23  ;;  %vm5251_vm6 = vcmp.lt.s32.totalorder %v13777_v16, 0 }
 0x4f8   :  { %v5315_v29 = vsub.s32 0, %v12283_v23  ;;  %v5369_v6 = vshrl.u32 %v13654_v28, %v5368_v11  ;;  %v5372_v32 = vor.u32 %v5371_v31, %v5370_v53  ;;  %v5375_v55 = vor.u32 %v5374_v60, %v5373_v34 }
 0x4f9   :  { %v5230_v44 = vsel %vm5147_vm12, %v5229_v26, %v5228_v52  ;;  %v5378_v37 = vor.u32 %v5377_v59, %v5376_v3  ;;  %v5381_v1 = vor.u32 %v5380_v4, %v5379_v21  ;;  %vm5385_vm7 = vcmp.lt.s32.totalorder %v5366_v33, 1 }
 0x4fa   :  { %v5233_v9 = vsel %vm12254_vm1, %v13776_v12, %v5230_v44  ;;  %v7289_v57 = vmin.u32 %v5315_v29, %v12283_v23  ;;  %v5384_v51 = vor.u32 %v5383_v54, %v5382_v61  ;;  %vm5388_vm8 = vcmp.lt.s32.totalorder %v5366_v33, 4 }
 0x4fb   :  { %7806 = vcosq.f32 %v5233_v9  ;;  %vm5386_vm10 = vcmp.lt.s32.totalorder %v5366_v33, 2  ;;  %vm5387_vm11 = vcmp.lt.s32.totalorder %v5366_v33, 3  ;;  %v5390_v62 = vsel %vm5388_vm8, %v5378_v37, 2102212464 }
 0x4fc   :  { %7808 = vsinq.f32 %v5233_v9  ;;  %v5317_v47 = vclz %v7289_v57  ;;  %v5389_v17 = vsel %vm5385_vm7, %v5369_v6, %v5372_v32  ;;  %v5393_v48 = vsel %vm5385_vm7, %v5372_v32, %v5375_v55 }
 0x4fd   :  { %v5335_v45 = vsub.s32 4, %v5311_v46  ;;  %v5391_v14 = vsel %vm5387_vm11, %v5375_v55, %v5390_v62  ;;  %v5394_v10 = vsel %vm5388_vm8, %v5381_v1, 920167782  ;;  %v5397_v7 = vsel %vm5385_vm7, %v5375_v55, %v5378_v37 }
 0x4fe   :  { %v7290_v35 = vadd.s32 4294967294, %v5317_v47  ;;  %v5395_v2 = vsel %vm5387_vm11, %v5378_v37, %v5394_v10  ;;  %v5398_v15 = vsel %vm5388_vm8, %v5384_v51, 1326507024  ;;  %v5464_v41 = vand.u32 8388607, %v5457_v49 }
 0x4ff   :  { %v5392_v11 = vsel %vm5386_vm10, %v5389_v17, %v5391_v14  ;;  %v5396_v63 = vsel %vm5386_vm10, %v5393_v48, %v5395_v2  ;;  %v5399_v22 = vsel %vm5387_vm11, %v5381_v1, %v5398_v15  ;;  %v7296_v36 = vadd.s32 4294967169, %v5461_v8 }
 0x500   :  { %vm7291_vm9 = vcmp.lt.s32.totalorder %v7290_v35, 0  ;;  %v5400_v39 = vsel %vm5386_vm10, %v5397_v7, %v5399_v22  ;;  %v12313_v13 = vmul.u32.u64.low %v12287_v38, %v5396_v63  ;;  %v12314_v25 = vmul.u32.u64.high %v12287_v38, %v5396_v63, %v12313_v13 }
 0x501   :  { %v5320_v50 = vsel %vm7291_vm9, 0, %v7290_v35  ;;  %v5336_v53 = vsel %vm5251_vm6, %v5335_v45, %v5311_v46  ;;  %v12320_v34 = vmul.u32.u64.low %v12287_v38, %v5400_v39  ;;  %v12321_v42 = vmul.u32.u64.high %v12287_v38, %v5400_v39, %v12320_v34 }
 0x502   :  { %v5321_v5 = vsub.s32 32, %v5320_v50  ;;  %v5322_v31 = vshll.u32 %v12283_v23, %v5320_v50  ;;  %v5325_v60 = vsub.s32 4294967266, %v5320_v50  ;;  %v5467_v52 = vadd.s32 1, %v7296_v36 }
 0x503   :  { %v5239_v33 = vand.u32 3, %v12268_v58  ;;  %vm12327_vm13 = vcmp.le.f32.partialorder %v5249_v30, 0.7853982  ;;  %v5408_v59 = vmul.u32 %v12287_v38, %v5392_v11  ;;  %v5411_v4 = vadd.s32 1, %v12314_v25 }
 0x504   :  { %v5323_v46 = vshrl.u32 %v5305_v56, %v5321_v5  ;;  %v5326_v21 = vadd.s32 127, %v5325_v60  ;;  %vm5468_vm12 = vcmp.gt.s32.totalorder %v5467_v52, 0  ;;  %v5338_v23 = vsel %vm12327_vm13, 0, %v5336_v53 }
 0x505   :  { %vm5410_vm14 = vc.u32 %v12321_v42, %v12313_v13  ;;  %v5465_v58 = vor.u32 8388608, %v5464_v41  ;;  %v5469_v61 = vsel %vm5468_vm12, %v5467_v52, 0  ;;  %vm5237_vm15 = vweird.f32 %v13776_v12 }
 0x506   :  { %v5324_v26 = vor.u32 %v5323_v46, %v5322_v31  ;;  %v5327_v30 = vshll.u32 %v5326_v21, 23  ;;  %v5412_v54 = vsel %vm5410_vm14, %v5411_v4, %v12314_v25  ;;  %v12338_v8 = vshrl.u32 %v5469_v61, 5 }
 0x507   :  { %vm5240_vm0 = vcmp.lt.s32.totalorder %v5239_v33, 2  ;;  %v5413_v38 = vadd.s32 %v5412_v54, %v5408_v59  ;;  %v5471_v56 = vand.u32 31, %v5469_v61  ;;  %vm5241_vm1 = vcmp.eq.s32.totalorder %v5239_v33, 0 }
 0x508   :  { %v7807_v29 = vpop.eup %7806  ;;  %vm5244_vm2 = vcmp.eq.s32.totalorder %v5239_v33, 2  ;;  %v5328_v6 = vor.u32 4788187, %v5327_v30  ;;  %v5331_v32 = vcvt.s32.f32 %v5324_v26  ;;  %v5342_v37 = vadd.s32 3, %v5338_v23  ;;  %v13788_v23 = vld [vmem:[#allocation41_spill] sm:$0xff] }
 0x509   :  { %v7809_v55 = vpop.eup %7808  ;;  %v5245_v44 = vxor.u32 2147483648, %v7807_v29  ;;  %v5414_v1 = vadd.s32 536870912, %v5413_v38  ;;  %v5472_v9 = vsub.s32 32, %v5471_v56  ;;  %vm5489_vm3 = vcmp.lt.s32.totalorder %v12338_v8, 1 }
 0x50a   :  { %v5242_v57 = vxor.u32 2147483648, %v7809_v55  ;;  %v5329_v51 = vand.u32 2147483647, %v5328_v6  ;;  %v12342_v62 = vshll.u32 %v5465_v58, 8  ;;  %v5474_v48 = vshll.u32 %v13654_v28, %v5471_v56 }
 0x50b   :  { %v5246_v47 = vsel %vm5244_vm2, %v5245_v44, %v7809_v55  ;;  %v5415_v17 = vshrl.u32 %v5414_v1, 30  ;;  %v5475_v45 = vshrl.u32 %v13648_v18, %v5472_v9  ;;  %vm5355_vm4 = vcmp.lt.s32.totalorder %v13780_v20, 0 }
 0x50c   :  { %v5243_v14 = vsel %vm5241_vm1, %v7807_v29, %v5242_v57  ;;  %v5332_v10 = vmul.f32 %v5331_v32, %v5329_v51  ;;  %v5477_v7 = vshll.u32 %v13648_v18, %v5471_v56  ;;  %v5478_v35 = vshrl.u32 %v13649_v24, %v5472_v9 }
 0x50d   :  { %v5247_v2 = vsel %vm5240_vm0, %v5243_v14, %v5246_v47  ;;  %v5416_v15 = vshll.u32 %v5415_v17, 30  ;;  %v5480_v41 = vshll.u32 %v13649_v24, %v5471_v56  ;;  %v5481_v11 = vshrl.u32 %v13650_v19, %v5472_v9 }
 0x50e   :  { %v5248_v63 = vsel %vm5237_vm15, nan, %v5247_v2  ;;  %v5333_v22 = vxor.u32 2147483648, %v5332_v10  ;;  %v5439_v36 = vsub.s32 4, %v5415_v17  ;;  %v5473_v39 = vshrl.u32 %v13654_v28, %v5472_v9 }
 0x50f   :  { %v12356_v25 = vsub.s32 %v5413_v38, %v5416_v15  ;;  %v5476_v50 = vor.u32 %v5475_v45, %v5474_v48  ;;  %v5483_v53 = vshll.u32 %v13650_v19, %v5471_v56  ;;  %v5484_v34 = vshrl.u32 %v13651_v27, %v5472_v9  ;;  %7063 = vst [vmem:[#allocation5 + $0x170] sm:$0xff] %v5248_v63 }
 0x510   :  { %v5334_v5 = vsel %vm5251_vm6, %v5333_v22, %v5332_v10  ;;  %v5479_v31 = vor.u32 %v5478_v35, %v5477_v7  ;;  %v5486_v60 = vshll.u32 %v13651_v27, %v5471_v56  ;;  %v5487_v12 = vshrl.u32 %v13652_v43, %v5472_v9 }
 0x511   :  { %v5337_v52 = vsel %vm12327_vm13, %v13777_v16, %v5334_v5  ;;  %vm12369_vm5 = vcmp.le.f32.partialorder %v5353_v0, 0.7853982  ;;  %v5419_v59 = vsub.s32 0, %v12356_v25  ;;  %v5482_v46 = vor.u32 %v5481_v11, %v5480_v41 }
 0x512   :  { %v5485_v21 = vor.u32 %v5484_v34, %v5483_v53  ;;  %7810 = vcosq.f32 %v5337_v52  ;;  %v5488_v4 = vor.u32 %v5487_v12, %v5486_v60  ;;  %vm5492_vm6 = vcmp.lt.s32.totalorder %v12338_v8, 4 }
 0x513   :  { %v5564_v58 = vand.u32 2139095040, %v13788_v23  ;;  %7812 = vsinq.f32 %v5337_v52  ;;  %v7293_v3 = vmin.u32 %v5419_v59, %v12356_v25  ;;  %vm5490_vm7 = vcmp.lt.s32.totalorder %v12338_v8, 2 }
 0x514   :  { %vm5491_vm8 = vcmp.lt.s32.totalorder %v12338_v8, 3  ;;  %v5493_v0 = vsel %vm5489_vm3, %v5473_v39, %v5476_v50  ;;  %v5494_v61 = vsel %vm5492_vm6, %v5482_v46, 2102212464  ;;  %v5497_v26 = vsel %vm5489_vm3, %v5476_v50, %v5479_v31 }
 0x515   :  { %v5498_v30 = vsel %vm5492_vm6, %v5485_v21, 920167782  ;;  %v5343_v54 = vand.u32 3, %v5342_v37  ;;  %v5421_v38 = vclz %v7293_v3  ;;  %v5440_v56 = vsel %vm5355_vm4, %v5439_v36, %v5415_v17 }
 0x516   :  { %v5501_v29 = vsel %vm5489_vm3, %v5479_v31, %v5482_v46  ;;  %v5495_v6 = vsel %vm5491_vm8, %v5479_v31, %v5494_v61  ;;  %v5499_v32 = vsel %vm5491_vm8, %v5482_v46, %v5498_v30  ;;  %v5502_v55 = vsel %vm5492_vm6, %v5488_v4, 1326507024 }
 0x517   :  { %v5565_v44 = vshrl.u32 %v5564_v58, 23  ;;  %v7294_v1 = vadd.s32 4294967294, %v5421_v38  ;;  %v5496_v37 = vsel %vm5490_vm7, %v5493_v0, %v5495_v6  ;;  %v5500_v9 = vsel %vm5490_vm7, %v5497_v26, %v5499_v32 }
 0x518   :  { %v5503_v57 = vsel %vm5491_vm8, %v5485_v21, %v5502_v55  ;;  %v5409_v51 = vadd.s32 %v12313_v13, %v12321_v42  ;;  %v12408_v17 = vmul.u32.u64.low %v12342_v62, %v5500_v9  ;;  %v12409_v48 = vmul.u32.u64.high %v12342_v62, %v5500_v9, %v12408_v17 }
 0x519   :  { %v5504_v47 = vsel %vm5490_vm7, %v5501_v29, %v5503_v57  ;;  %vm7295_vm10 = vcmp.lt.s32.totalorder %v7294_v1, 0  ;;  %v7300_v10 = vadd.s32 4294967169, %v5565_v44  ;;  %v5442_v35 = vsel %vm12369_vm5, 0, %v5440_v56 }
 0x51a   :  { %v12413_v45 = vmul.u32.u64.low %v12342_v62, %v5504_v47  ;;  %v12414_v14 = vmul.u32.u64.high %v12342_v62, %v5504_v47, %v12413_v45  ;;  %v5424_v7 = vsel %vm7295_vm10, 0, %v7294_v1  ;;  %v5512_v13 = vmul.u32 %v12342_v62, %v5496_v37 }
 0x51b   :  { %v5561_v42 = vand.u32 2147483647, %v13788_v23  ;;  %v5425_v8 = vsub.s32 32, %v5424_v7  ;;  %v5426_v2 = vshll.u32 %v12356_v25, %v5424_v7  ;;  %v5429_v15 = vsub.s32 4294967266, %v5424_v7 }
 0x51c   :  { %v5571_v41 = vadd.s32 1, %v7300_v10  ;;  %vm5341_vm11 = vweird.f32 %v13777_v16  ;;  %v5515_v11 = vadd.s32 1, %v12409_v48  ;;  %vm5348_vm9 = vcmp.eq.s32.totalorder %v5343_v54, 2 }
 0x51d   :  { %v5427_v63 = vshrl.u32 %v5409_v51, %v5425_v8  ;;  %v5430_v22 = vadd.s32 127, %v5429_v15  ;;  %vm5514_vm13 = vc.u32 %v12414_v14, %v12408_v17  ;;  %v5446_v36 = vadd.s32 3, %v5442_v35 }
 0x51e   :  { %v5516_v62 = vsel %vm5514_vm13, %v5515_v11, %v12409_v48  ;;  %v5568_v39 = vand.u32 8388607, %v5561_v42  ;;  %vm5572_vm12 = vcmp.gt.s32.totalorder %v5571_v41, 0  ;;  %vm5344_vm14 = vcmp.lt.s32.totalorder %v5343_v54, 2 }
 0x51f   :  { %v7811_v25 = vpop.eup %7810  ;;  %v5428_v50 = vor.u32 %v5427_v63, %v5426_v2  ;;  %v5431_v53 = vshll.u32 %v5430_v22, 23  ;;  %v5517_v34 = vadd.s32 %v5516_v62, %v5512_v13  ;;  %v5573_v5 = vsel %vm5572_vm12, %v5571_v41, 0 }
 0x520   :  { %v7813_v31 = vpop.eup %7812  ;;  %vm5345_vm15 = vcmp.eq.s32.totalorder %v5343_v54, 0  ;;  %v5349_v60 = vxor.u32 2147483648, %v7811_v25  ;;  %v5575_v12 = vand.u32 31, %v5573_v5  ;;  %v12429_v58 = vand.u32 3, %v5446_v36  ;;  %v13789_v54 = vld [vmem:[#allocation42_spill] sm:$0xff] }
 0x521   :  { %v5346_v52 = vxor.u32 2147483648, %v7813_v31  ;;  %v5432_v59 = vor.u32 4788187, %v5431_v53  ;;  %v5435_v46 = vcvt.s32.f32 %v5428_v50  ;;  %v5518_v21 = vadd.s32 536870912, %v5517_v34 }
 0x522   :  { %v5350_v4 = vsel %vm5348_vm9, %v5349_v60, %v7813_v31  ;;  %v5569_v3 = vor.u32 8388608, %v5568_v39  ;;  %v5576_v0 = vsub.s32 32, %v5575_v12  ;;  %v5578_v38 = vshll.u32 %v13654_v28, %v5575_v12 }
 0x523   :  { %v5347_v61 = vsel %vm5345_vm15, %v7811_v25, %v5346_v52  ;;  %v5433_v26 = vand.u32 2147483647, %v5432_v59  ;;  %v5519_v30 = vshrl.u32 %v5518_v21, 30  ;;  %v5581_v6 = vshll.u32 %v13648_v18, %v5575_v12 }
 0x524   :  { %v5351_v56 = vsel %vm5344_vm14, %v5347_v61, %v5350_v4  ;;  %v5579_v29 = vshrl.u32 %v13648_v18, %v5576_v0  ;;  %v5584_v32 = vshll.u32 %v13649_v24, %v5575_v12  ;;  %v5582_v37 = vshrl.u32 %v13649_v24, %v5576_v0 }
 0x525   :  { %v5352_v55 = vsel %vm5341_vm11, nan, %v5351_v56  ;;  %v5436_v44 = vmul.f32 %v5435_v46, %v5433_v26  ;;  %v5520_v1 = vshll.u32 %v5519_v30, 30  ;;  %v5574_v9 = vshrl.u32 %v5573_v5, 5 }
 0x526   :  { %v5585_v57 = vshrl.u32 %v13650_v19, %v5576_v0  ;;  %v5587_v51 = vshll.u32 %v13650_v19, %v5575_v12  ;;  %v5665_v47 = vand.u32 2147483647, %v13789_v54  ;;  %7064 = vst [vmem:[#allocation5 + $0x178] sm:$0xff] %v5352_v55  ;;  %v5588_v10 = vshrl.u32 %v13651_v27, %v5576_v0 }
 0x527   :  { %v5437_v48 = vxor.u32 2147483648, %v5436_v44  ;;  %v12442_v45 = vsub.s32 %v5517_v34, %v5520_v1  ;;  %v5668_v16 = vand.u32 2139095040, %v13789_v54  ;;  %vm5459_vm0 = vcmp.lt.s32.totalorder %v13783_v40, 0 }
 0x528   :  { %v5577_v7 = vshrl.u32 %v13654_v28, %v5576_v0  ;;  %v5580_v35 = vor.u32 %v5579_v29, %v5578_v38  ;;  %v5590_v13 = vshll.u32 %v13651_v27, %v5575_v12  ;;  %v5591_v8 = vshrl.u32 %v13652_v43, %v5576_v0 }
 0x529   :  { %v5438_v2 = vsel %vm5355_vm4, %v5437_v48, %v5436_v44  ;;  %v5523_v15 = vsub.s32 0, %v12442_v45  ;;  %v5583_v41 = vor.u32 %v5582_v37, %v5581_v6  ;;  %v5586_v11 = vor.u32 %v5585_v57, %v5584_v32 }
 0x52a   :  { %v5441_v63 = vsel %vm12369_vm5, %v13780_v20, %v5438_v2  ;;  %v5589_v22 = vor.u32 %v5588_v10, %v5587_v51  ;;  %v5592_v36 = vor.u32 %v5591_v8, %v5590_v13  ;;  %vm5593_vm1 = vcmp.lt.s32.totalorder %v5574_v9, 1 }
 0x52b   :  { %7814 = vcosq.f32 %v5441_v63  ;;  %vm12458_vm2 = vcmp.le.f32.partialorder %v5457_v49, 0.7853982  ;;  %v7297_v39 = vmin.u32 %v5523_v15, %v12442_v45  ;;  %v5609_v25 = vshll.u32 %v5569_v3, 8 }
 0x52c   :  { %v5669_v50 = vshrl.u32 %v5668_v16, 23  ;;  %7816 = vsinq.f32 %v5441_v63  ;;  %v5543_v53 = vsub.s32 4, %v5519_v30  ;;  %vm5595_vm3 = vcmp.lt.s32.totalorder %v5574_v9, 3 }
 0x52d   :  { %vm5596_vm4 = vcmp.lt.s32.totalorder %v5574_v9, 4  ;;  %v5525_v33 = vclz %v7297_v39  ;;  %vm5594_vm5 = vcmp.lt.s32.totalorder %v5574_v9, 2  ;;  %v5597_v34 = vsel %vm5593_vm1, %v5577_v7, %v5580_v35 }
 0x52e   :  { %v5601_v5 = vsel %vm5593_vm1, %v5580_v35, %v5583_v41  ;;  %v5598_v31 = vsel %vm5596_vm4, %v5586_v11, 2102212464  ;;  %v5602_v60 = vsel %vm5596_vm4, %v5589_v22, 920167782  ;;  %v5605_v49 = vsel %vm5593_vm1, %v5583_v41, %v5586_v11 }
 0x52f   :  { %v5606_v12 = vsel %vm5596_vm4, %v5592_v36, 1326507024  ;;  %v7298_v52 = vadd.s32 4294967294, %v5525_v33  ;;  %v5599_v59 = vsel %vm5595_vm3, %v5583_v41, %v5598_v31  ;;  %v5603_v46 = vsel %vm5595_vm3, %v5586_v11, %v5602_v60 }
 0x530   :  { %v5607_v21 = vsel %vm5595_vm3, %v5589_v22, %v5606_v12  ;;  %v5513_v4 = vadd.s32 %v12408_v17, %v12414_v14  ;;  %v5604_v3 = vsel %vm5594_vm5, %v5601_v5, %v5603_v46  ;;  %v7304_v61 = vadd.s32 4294967169, %v5669_v50 }
 0x531   :  { %v5608_v0 = vsel %vm5594_vm5, %v5605_v49, %v5607_v21  ;;  %vm7299_vm6 = vcmp.lt.s32.totalorder %v7298_v52, 0  ;;  %v5544_v26 = vsel %vm5459_vm0, %v5543_v53, %v5519_v30  ;;  %v5600_v6 = vsel %vm5594_vm5, %v5597_v34, %v5599_v59 }
 0x532   :  { %v12472_v38 = vmul.u32.u64.low %v5609_v25, %v5608_v0  ;;  %v12473_v56 = vmul.u32.u64.high %v5609_v25, %v5608_v0, %v12472_v38  ;;  %v5528_v29 = vsel %vm7299_vm6, 0, %v7298_v52  ;;  %v5675_v1 = vadd.s32 1, %v7304_v61 }
 0x533   :  { %v12476_v32 = vmul.u32.u64.low %v5609_v25, %v5604_v3  ;;  %v12477_v55 = vmul.u32.u64.high %v5609_v25, %v5604_v3, %v12476_v32  ;;  %v5529_v17 = vsub.s32 32, %v5528_v29  ;;  %v5530_v14 = vshll.u32 %v12442_v45, %v5528_v29 }
 0x534   :  { %v5533_v44 = vsub.s32 4294967266, %v5528_v29  ;;  %vm5445_vm7 = vweird.f32 %v13780_v20  ;;  %v5546_v30 = vsel %vm12458_vm2, 0, %v5544_v26  ;;  %v5616_v51 = vmul.u32 %v5609_v25, %v5600_v6  ;;  %v13792_v29 = vld [vmem:[#allocation43_spill] sm:$0xff] }
 0x535   :  { %v5531_v37 = vshrl.u32 %v5513_v4, %v5529_v17  ;;  %vm5618_vm8 = vc.u32 %v12473_v56, %v12476_v32  ;;  %vm5448_vm10 = vcmp.lt.s32.totalorder %v12429_v58, 2  ;;  %v5619_v9 = vadd.s32 1, %v12477_v55 }
 0x536   :  { %v5534_v57 = vadd.s32 127, %v5533_v44  ;;  %v5672_v48 = vand.u32 8388607, %v5665_v47  ;;  %vm5676_vm11 = vcmp.gt.s32.totalorder %v5675_v1, 0  ;;  %vm5449_vm9 = vcmp.eq.s32.totalorder %v12429_v58, 0 }
 0x537   :  { %v5532_v45 = vor.u32 %v5531_v37, %v5530_v14  ;;  %v5677_v16 = vsel %vm5676_vm11, %v5675_v1, 0  ;;  %vm5452_vm13 = vcmp.eq.s32.totalorder %v12429_v58, 2  ;;  %v5550_v35 = vadd.s32 3, %v5546_v30 }
 0x538   :  { %v5535_v10 = vshll.u32 %v5534_v57, 23  ;;  %v7815_v7 = vpop.eup %7814  ;;  %v5620_v13 = vsel %vm5618_vm8, %v5619_v9, %v12477_v55  ;;  %v5679_v8 = vand.u32 31, %v5677_v16  ;;  %v5673_v36 = vor.u32 8388608, %v5672_v48 }
 0x539   :  { %v7817_v2 = vpop.eup %7816  ;;  %v5453_v15 = vxor.u32 2147483648, %v7815_v7  ;;  %v5539_v11 = vcvt.s32.f32 %v5532_v45  ;;  %v5621_v63 = vadd.s32 %v5620_v13, %v5616_v51  ;;  %v5678_v4 = vshrl.u32 %v5677_v16, 5 }
 0x53a   :  { %v5536_v41 = vor.u32 4788187, %v5535_v10  ;;  %v5450_v22 = vxor.u32 2147483648, %v7817_v2  ;;  %v5680_v39 = vsub.s32 32, %v5679_v8  ;;  %v5682_v25 = vshll.u32 %v13654_v28, %v5679_v8 }
 0x53b   :  { %v5454_v50 = vsel %vm5452_vm13, %v5453_v15, %v7817_v2  ;;  %v5622_v33 = vadd.s32 536870912, %v5621_v63  ;;  %v5685_v34 = vshll.u32 %v13648_v18, %v5679_v8  ;;  %v5688_v49 = vshll.u32 %v13649_v24, %v5679_v8 }
 0x53c   :  { %v5537_v53 = vand.u32 2147483647, %v5536_v41  ;;  %v5451_v5 = vsel %vm5449_vm9, %v7815_v7, %v5450_v22  ;;  %v5683_v31 = vshrl.u32 %v13648_v18, %v5680_v39  ;;  %v5686_v60 = vshrl.u32 %v13649_v24, %v5680_v39 }
 0x53d   :  { %v5455_v12 = vsel %vm5448_vm10, %v5451_v5, %v5454_v50  ;;  %v5623_v59 = vshrl.u32 %v5622_v33, 30  ;;  %v5689_v46 = vshrl.u32 %v13650_v19, %v5680_v39  ;;  %v5691_v3 = vshll.u32 %v13650_v19, %v5679_v8 }
 0x53e   :  { %v5540_v52 = vmul.f32 %v5539_v11, %v5537_v53  ;;  %v5456_v21 = vsel %vm5445_vm7, nan, %v5455_v12  ;;  %v12506_v0 = vshll.u32 %v5673_v36, 8  ;;  %v5681_v38 = vshrl.u32 %v13654_v28, %v5680_v39 }
 0x53f   :  { %v5624_v26 = vshll.u32 %v5623_v59, 30  ;;  %v5772_v6 = vand.u32 2139095040, %v13792_v29  ;;  %7065 = vst [vmem:[#allocation5 + $0x180] sm:$0xff] %v5456_v21  ;;  %v5684_v58 = vor.u32 %v5683_v31, %v5682_v25  ;;  %v5692_v55 = vshrl.u32 %v13651_v27, %v5680_v39 }
 0x540   :  { %v5541_v61 = vxor.u32 2147483648, %v5540_v52  ;;  %v5694_v17 = vshll.u32 %v13651_v27, %v5679_v8  ;;  %v5695_v20 = vshrl.u32 %v13652_v43, %v5680_v39  ;;  %v5687_v1 = vor.u32 %v5686_v60, %v5685_v34 }
 0x541   :  { %v12515_v44 = vsub.s32 %v5621_v63, %v5624_v26  ;;  %v5690_v30 = vor.u32 %v5689_v46, %v5688_v49  ;;  %v5693_v57 = vor.u32 %v5692_v55, %v5691_v3  ;;  %vm5697_vm12 = vcmp.lt.s32.totalorder %v5678_v4, 1 }
 0x542   :  { %v5542_v14 = vsel %vm5459_vm0, %v5541_v61, %v5540_v52  ;;  %v5696_v51 = vor.u32 %v5695_v20, %v5694_v17  ;;  %vm5699_vm14 = vcmp.lt.s32.totalorder %v5678_v4, 3  ;;  %v5773_v48 = vshrl.u32 %v5772_v6, 23 }
 0x543   :  { %v5545_v37 = vsel %vm12458_vm2, %v13783_v40, %v5542_v14  ;;  %v5627_v9 = vsub.s32 0, %v12515_v44  ;;  %vm5698_vm15 = vcmp.lt.s32.totalorder %v5678_v4, 2  ;;  %vm5700_vm1 = vcmp.lt.s32.totalorder %v5678_v4, 4 }
 0x544   :  { %7818 = vcosq.f32 %v5545_v37  ;;  %v5701_v45 = vsel %vm5697_vm12, %v5681_v38, %v5684_v58  ;;  %v5702_v16 = vsel %vm5700_vm1, %v5690_v30, 2102212464  ;;  %v5705_v7 = vsel %vm5697_vm12, %v5684_v58, %v5687_v1 }
 0x545   :  { %7820 = vsinq.f32 %v5545_v37  ;;  %v7301_v10 = vmin.u32 %v5627_v9, %v12515_v44  ;;  %v5706_v13 = vsel %vm5700_vm1, %v5693_v57, 920167782  ;;  %v5703_v62 = vsel %vm5699_vm14, %v5687_v1, %v5702_v16 }
 0x546   :  { %v5707_v8 = vsel %vm5699_vm14, %v5690_v30, %v5706_v13  ;;  %v5709_v2 = vsel %vm5697_vm12, %v5687_v1, %v5690_v30  ;;  %v5710_v15 = vsel %vm5700_vm1, %v5696_v51, 1326507024  ;;  %v5551_v41 = vand.u32 3, %v5550_v35 }
 0x547   :  { %v5629_v11 = vclz %v7301_v10  ;;  %v5647_v63 = vsub.s32 4, %v5623_v59  ;;  %v5704_v22 = vsel %vm5698_vm15, %v5701_v45, %v5703_v62  ;;  %v5708_v36 = vsel %vm5698_vm15, %v5705_v7, %v5707_v8  ;;  %v13795_v10 = vld [vmem:[#allocation44_spill] sm:$0xff] }
 0x548   :  { %v5711_v39 = vsel %vm5699_vm14, %v5693_v57, %v5710_v15  ;;  %v7308_v25 = vadd.s32 4294967169, %v5773_v48  ;;  %v12529_v33 = vmul.u32.u64.low %v12506_v0, %v5708_v36  ;;  %v12530_v34 = vmul.u32.u64.high %v12506_v0, %v5708_v36, %v12529_v33 }
 0x549   :  { %v7302_v50 = vadd.s32 4294967294, %v5629_v11  ;;  %v5712_v53 = vsel %vm5698_vm15, %v5709_v2, %v5711_v39  ;;  %vm5563_vm0 = vcmp.lt.s32.totalorder %v13788_v23, 0  ;;  %v5769_v31 = vand.u32 2147483647, %v13792_v29 }
 0x54a   :  { %v12535_v35 = vmul.u32.u64.low %v12506_v0, %v5712_v53  ;;  %v12536_v5 = vmul.u32.u64.high %v12506_v0, %v5712_v53, %v12535_v35  ;;  %vm5549_vm2 = vweird.f32 %v13783_v40  ;;  %v5617_v60 = vadd.s32 %v12476_v32, %v12473_v56 }
 0x54b   :  { %vm7303_vm3 = vcmp.lt.s32.totalorder %v7302_v50, 0  ;;  %v5648_v49 = vsel %vm5563_vm0, %v5647_v63, %v5623_v59  ;;  %v5779_v12 = vadd.s32 1, %v7308_v25  ;;  %vm5552_vm4 = vcmp.lt.s32.totalorder %v5551_v41, 2 }
 0x54c   :  { %vm12546_vm5 = vcmp.le.f32.partialorder %v5561_v42, 0.7853982  ;;  %v5632_v46 = vsel %vm7303_vm3, 0, %v7302_v50  ;;  %v5720_v21 = vmul.u32 %v12506_v0, %v5704_v22  ;;  %v5723_v56 = vadd.s32 1, %v12530_v34 }
 0x54d   :  { %v5633_v4 = vsub.s32 32, %v5632_v46  ;;  %v5634_v3 = vshll.u32 %v12515_v44, %v5632_v46  ;;  %v5637_v61 = vsub.s32 4294967266, %v5632_v46  ;;  %v5650_v32 = vsel %vm12546_vm5, 0, %v5648_v49 }
 0x54e   :  { %vm5722_vm6 = vc.u32 %v12536_v5, %v12529_v33  ;;  %v5776_v42 = vand.u32 8388607, %v5769_v31  ;;  %vm5780_vm7 = vcmp.gt.s32.totalorder %v5779_v12, 0  ;;  %vm5553_vm8 = vcmp.eq.s32.totalorder %v5551_v41, 0 }
 0x54f   :  { %v5635_v59 = vshrl.u32 %v5617_v60, %v5633_v4  ;;  %v5638_v26 = vadd.s32 127, %v5637_v61  ;;  %v5724_v0 = vsel %vm5722_vm6, %v5723_v56, %v12530_v34  ;;  %v5781_v38 = vsel %vm5780_vm7, %v5779_v12, 0 }
 0x550   :  { %vm5556_vm10 = vcmp.eq.s32.totalorder %v5551_v41, 2  ;;  %v5725_v58 = vadd.s32 %v5724_v0, %v5720_v21  ;;  %v5783_v55 = vand.u32 31, %v5781_v38  ;;  %v12560_v1 = vadd.s32 3, %v5650_v32 }
 0x551   :  { %v7819_v6 = vpop.eup %7818  ;;  %v5636_v14 = vor.u32 %v5635_v59, %v5634_v3  ;;  %v5639_v44 = vshll.u32 %v5638_v26, 23  ;;  %v5777_v57 = vor.u32 8388608, %v5776_v42  ;;  %v5873_v16 = vand.u32 2147483647, %v13795_v10 }
 0x552   :  { %v7821_v17 = vpop.eup %7820  ;;  %v5557_v20 = vxor.u32 2147483648, %v7819_v6  ;;  %v5726_v37 = vadd.s32 536870912, %v5725_v58  ;;  %v5784_v51 = vsub.s32 32, %v5783_v55  ;;  %v5782_v62 = vshrl.u32 %v5781_v38, 5 }
 0x553   :  { %v5554_v30 = vxor.u32 2147483648, %v7821_v17  ;;  %v5640_v48 = vor.u32 4788187, %v5639_v44  ;;  %v5643_v45 = vcvt.s32.f32 %v5636_v14  ;;  %v5876_v8 = vand.u32 2139095040, %v13795_v10 }
 0x554   :  { %v5558_v9 = vsel %vm5556_vm10, %v5557_v20, %v7821_v17  ;;  %v5727_v13 = vshrl.u32 %v5726_v37, 30  ;;  %v5786_v11 = vshll.u32 %v13654_v28, %v5783_v55  ;;  %v5789_v63 = vshll.u32 %v13648_v18, %v5783_v55 }
 0x555   :  { %v5555_v7 = vsel %vm5553_vm8, %v7819_v6, %v5554_v30  ;;  %v5641_v15 = vand.u32 2147483647, %v5640_v48  ;;  %v5787_v39 = vshrl.u32 %v13648_v18, %v5784_v51  ;;  %v5790_v25 = vshrl.u32 %v13649_v24, %v5784_v51 }
 0x556   :  { %v5559_v2 = vsel %vm5552_vm4, %v5555_v7, %v5558_v9  ;;  %v5728_v36 = vshll.u32 %v5727_v13, 30  ;;  %v5792_v53 = vshll.u32 %v13649_v24, %v5783_v55  ;;  %v5793_v34 = vshrl.u32 %v13650_v19, %v5784_v51 }
 0x557   :  { %v5560_v22 = vsel %vm5549_vm2, nan, %v5559_v2  ;;  %v5644_v50 = vmul.f32 %v5643_v45, %v5641_v15  ;;  %v5795_v41 = vshll.u32 %v13650_v19, %v5783_v55  ;;  %v5796_v60 = vshrl.u32 %v13651_v27, %v5784_v51 }
 0x558   :  { %7066 = vst [vmem:[#allocation5 + $0x188] sm:$0xff] %v5560_v22  ;;  %v12575_v35 = vsub.s32 %v5725_v58, %v5728_v36  ;;  %v5798_v40 = vshll.u32 %v13651_v27, %v5783_v55  ;;  %v12579_v49 = vshll.u32 %v5777_v57, 8  ;;  %v5721_v46 = vadd.s32 %v12529_v33, %v12536_v5 }
 0x559   :  { %v5645_v12 = vxor.u32 2147483648, %v5644_v50  ;;  %v5799_v21 = vshrl.u32 %v13652_v43, %v5784_v51  ;;  %v5877_v4 = vshrl.u32 %v5876_v8, 23  ;;  %vm5667_vm11 = vcmp.lt.s32.totalorder %v13789_v54, 0 }
 0x55a   :  { %v5731_v3 = vsub.s32 0, %v12575_v35  ;;  %v5785_v61 = vshrl.u32 %v13654_v28, %v5784_v51  ;;  %v5788_v56 = vor.u32 %v5787_v39, %v5786_v11  ;;  %v5791_v32 = vor.u32 %v5790_v25, %v5789_v63 }
 0x55b   :  { %v5646_v42 = vsel %vm5563_vm0, %v5645_v12, %v5644_v50  ;;  %v5794_v59 = vor.u32 %v5793_v34, %v5792_v53  ;;  %v5797_v26 = vor.u32 %v5796_v60, %v5795_v41  ;;  %vm5801_vm9 = vcmp.lt.s32.totalorder %v5782_v62, 1 }
 0x55c   :  { %v5649_v33 = vsel %vm12546_vm5, %v13788_v23, %v5646_v42  ;;  %v7305_v5 = vmin.u32 %v5731_v3, %v12575_v35  ;;  %v5800_v0 = vor.u32 %v5799_v21, %v5798_v40  ;;  %vm5804_vm13 = vcmp.lt.s32.totalorder %v5782_v62, 4 }
 0x55d   :  { %7822 = vcosq.f32 %v5649_v33  ;;  %vm5802_vm12 = vcmp.lt.s32.totalorder %v5782_v62, 2  ;;  %vm5803_vm14 = vcmp.lt.s32.totalorder %v5782_v62, 3  ;;  %v5806_v38 = vsel %vm5804_vm13, %v5794_v59, 2102212464 }
 0x55e   :  { %7824 = vsinq.f32 %v5649_v33  ;;  %v5733_v6 = vclz %v7305_v5  ;;  %v5805_v58 = vsel %vm5801_vm9, %v5785_v61, %v5788_v56  ;;  %v5809_v55 = vsel %vm5801_vm9, %v5788_v56, %v5791_v32 }
 0x55f   :  { %v5751_v17 = vsub.s32 4, %v5727_v13  ;;  %v5807_v20 = vsel %vm5803_vm14, %v5791_v32, %v5806_v38  ;;  %v5810_v14 = vsel %vm5804_vm13, %v5797_v26, 920167782  ;;  %v5813_v52 = vsel %vm5801_vm9, %v5791_v32, %v5794_v59 }
 0x560   :  { %v7306_v44 = vadd.s32 4294967294, %v5733_v6  ;;  %v5811_v30 = vsel %vm5803_vm14, %v5794_v59, %v5810_v14  ;;  %v5814_v37 = vsel %vm5804_vm13, %v5800_v0, 1326507024  ;;  %v5880_v57 = vand.u32 8388607, %v5873_v16 }
 0x561   :  { %v5808_v51 = vsel %vm5802_vm12, %v5805_v58, %v5807_v20  ;;  %v5812_v9 = vsel %vm5802_vm12, %v5809_v55, %v5811_v30  ;;  %v5815_v48 = vsel %vm5803_vm14, %v5797_v26, %v5814_v37  ;;  %v7312_v45 = vadd.s32 4294967169, %v5877_v4 }
 0x562   :  { %vm7307_vm15 = vcmp.lt.s32.totalorder %v7306_v44, 0  ;;  %v5816_v7 = vsel %vm5802_vm12, %v5813_v52, %v5815_v48  ;;  %v12605_v8 = vmul.u32.u64.low %v12579_v49, %v5812_v9  ;;  %v12606_v2 = vmul.u32.u64.high %v12579_v49, %v5812_v9, %v12605_v8 }
 0x563   :  { %v5736_v15 = vsel %vm7307_vm15, 0, %v7306_v44  ;;  %v5752_v11 = vsel %vm5667_vm11, %v5751_v17, %v5727_v13  ;;  %v12612_v63 = vmul.u32.u64.low %v12579_v49, %v5816_v7  ;;  %v12613_v22 = vmul.u32.u64.high %v12579_v49, %v5816_v7, %v12612_v63 }
 0x564   :  { %v5737_v36 = vsub.s32 32, %v5736_v15  ;;  %v5738_v39 = vshll.u32 %v12575_v35, %v5736_v15  ;;  %v5741_v25 = vsub.s32 4294967266, %v5736_v15  ;;  %v5883_v50 = vadd.s32 1, %v7312_v45 }
 0x565   :  { %v5655_v62 = vand.u32 3, %v12560_v1  ;;  %vm12619_vm1 = vcmp.le.f32.partialorder %v5665_v47, 0.7853982  ;;  %v5824_v34 = vmul.u32 %v12579_v49, %v5808_v51  ;;  %v5827_v60 = vadd.s32 1, %v12606_v2 }
 0x566   :  { %v5739_v13 = vshrl.u32 %v5721_v46, %v5737_v36  ;;  %v5742_v41 = vadd.s32 127, %v5741_v25  ;;  %vm5884_vm0 = vcmp.gt.s32.totalorder %v5883_v50, 0  ;;  %v5754_v35 = vsel %vm12619_vm1, 0, %v5752_v11 }
 0x567   :  { %vm5826_vm2 = vc.u32 %v12613_v22, %v12605_v8  ;;  %v5881_v1 = vor.u32 8388608, %v5880_v57  ;;  %v5885_v40 = vsel %vm5884_vm0, %v5883_v50, 0  ;;  %vm5653_vm3 = vweird.f32 %v13788_v23 }
 0x568   :  { %v5740_v12 = vor.u32 %v5739_v13, %v5738_v39  ;;  %v5743_v47 = vshll.u32 %v5742_v41, 23  ;;  %v5828_v21 = vsel %vm5826_vm2, %v5827_v60, %v12606_v2  ;;  %v12630_v4 = vshrl.u32 %v5885_v40, 5 }
 0x569   :  { %vm5656_vm4 = vcmp.lt.s32.totalorder %v5655_v62, 2  ;;  %v5829_v49 = vadd.s32 %v5828_v21, %v5824_v34  ;;  %v5887_v46 = vand.u32 31, %v5885_v40  ;;  %vm5657_vm5 = vcmp.eq.s32.totalorder %v5655_v62, 0 }
 0x56a   :  { %v7823_v3 = vpop.eup %7822  ;;  %vm5660_vm6 = vcmp.eq.s32.totalorder %v5655_v62, 2  ;;  %v5744_v61 = vor.u32 4788187, %v5743_v47  ;;  %v5747_v56 = vcvt.s32.f32 %v5740_v12  ;;  %v5758_v59 = vadd.s32 3, %v5754_v35  ;;  %v13800_v35 = vld [vmem:[#allocation45_spill] sm:$0xff] }
 0x56b   :  { %v7825_v32 = vpop.eup %7824  ;;  %v5661_v42 = vxor.u32 2147483648, %v7823_v3  ;;  %v5830_v26 = vadd.s32 536870912, %v5829_v49  ;;  %v5888_v33 = vsub.s32 32, %v5887_v46  ;;  %vm5905_vm7 = vcmp.lt.s32.totalorder %v12630_v4, 1 }
 0x56c   :  { %v5658_v5 = vxor.u32 2147483648, %v7825_v32  ;;  %v5745_v0 = vand.u32 2147483647, %v5744_v61  ;;  %v12634_v38 = vshll.u32 %v5881_v1, 8  ;;  %v5890_v55 = vshll.u32 %v13654_v28, %v5887_v46 }
 0x56d   :  { %v5662_v6 = vsel %vm5660_vm6, %v5661_v42, %v7825_v32  ;;  %v5831_v58 = vshrl.u32 %v5830_v26, 30  ;;  %v5891_v17 = vshrl.u32 %v13648_v18, %v5888_v33  ;;  %vm5771_vm8 = vcmp.lt.s32.totalorder %v13792_v29, 0 }
 0x56e   :  { %v5659_v20 = vsel %vm5657_vm5, %v7823_v3, %v5658_v5  ;;  %v5748_v14 = vmul.f32 %v5747_v56, %v5745_v0  ;;  %v5893_v52 = vshll.u32 %v13648_v18, %v5887_v46  ;;  %v5894_v44 = vshrl.u32 %v13649_v24, %v5888_v33 }
 0x56f   :  { %v5663_v30 = vsel %vm5656_vm4, %v5659_v20, %v5662_v6  ;;  %v5832_v37 = vshll.u32 %v5831_v58, 30  ;;  %v5896_v57 = vshll.u32 %v13649_v24, %v5887_v46  ;;  %v5897_v51 = vshrl.u32 %v13650_v19, %v5888_v33 }
 0x570   :  { %v5664_v9 = vsel %vm5653_vm3, nan, %v5663_v30  ;;  %v5749_v48 = vxor.u32 2147483648, %v5748_v14  ;;  %v5855_v45 = vsub.s32 4, %v5831_v58  ;;  %v5889_v7 = vshrl.u32 %v13654_v28, %v5888_v33 }
 0x571   :  { %v12648_v2 = vsub.s32 %v5829_v49, %v5832_v37  ;;  %v5892_v15 = vor.u32 %v5891_v17, %v5890_v55  ;;  %v5899_v11 = vshll.u32 %v13650_v19, %v5887_v46  ;;  %v5900_v63 = vshrl.u32 %v13651_v27, %v5888_v33  ;;  %7067 = vst [vmem:[#allocation5 + $0x190] sm:$0xff] %v5664_v9 }
 0x572   :  { %v5750_v36 = vsel %vm5667_vm11, %v5749_v48, %v5748_v14  ;;  %v5895_v39 = vor.u32 %v5894_v44, %v5893_v52  ;;  %v5902_v25 = vshll.u32 %v13651_v27, %v5887_v46  ;;  %v5903_v23 = vshrl.u32 %v13652_v43, %v5888_v33 }
 0x573   :  { %v5753_v50 = vsel %vm12619_vm1, %v13789_v54, %v5750_v36  ;;  %vm12661_vm10 = vcmp.le.f32.partialorder %v5769_v31, 0.7853982  ;;  %v5835_v34 = vsub.s32 0, %v12648_v2  ;;  %v5898_v13 = vor.u32 %v5897_v51, %v5896_v57 }
 0x574   :  { %v5901_v41 = vor.u32 %v5900_v63, %v5899_v11  ;;  %7826 = vcosq.f32 %v5753_v50  ;;  %v5904_v60 = vor.u32 %v5903_v23, %v5902_v25  ;;  %vm5908_vm11 = vcmp.lt.s32.totalorder %v12630_v4, 4 }
 0x575   :  { %v5980_v1 = vand.u32 2139095040, %v13800_v35  ;;  %7828 = vsinq.f32 %v5753_v50  ;;  %v7309_v53 = vmin.u32 %v5835_v34, %v12648_v2  ;;  %vm5906_vm9 = vcmp.lt.s32.totalorder %v12630_v4, 2 }
 0x576   :  { %vm5907_vm13 = vcmp.lt.s32.totalorder %v12630_v4, 3  ;;  %v5909_v31 = vsel %vm5905_vm7, %v5889_v7, %v5892_v15  ;;  %v5910_v40 = vsel %vm5908_vm11, %v5898_v13, 2102212464  ;;  %v5913_v12 = vsel %vm5905_vm7, %v5892_v15, %v5895_v39 }
 0x577   :  { %v5914_v47 = vsel %vm5908_vm11, %v5901_v41, 920167782  ;;  %v5759_v21 = vand.u32 3, %v5758_v59  ;;  %v5837_v49 = vclz %v7309_v53  ;;  %v5856_v46 = vsel %vm5771_vm8, %v5855_v45, %v5831_v58 }
 0x578   :  { %v5917_v3 = vsel %vm5905_vm7, %v5895_v39, %v5898_v13  ;;  %v5911_v61 = vsel %vm5907_vm13, %v5895_v39, %v5910_v40  ;;  %v5915_v56 = vsel %vm5907_vm13, %v5898_v13, %v5914_v47  ;;  %v5918_v32 = vsel %vm5908_vm11, %v5904_v60, 1326507024 }
 0x579   :  { %v5981_v42 = vshrl.u32 %v5980_v1, 23  ;;  %v7310_v26 = vadd.s32 4294967294, %v5837_v49  ;;  %v5912_v59 = vsel %vm5906_vm9, %v5909_v31, %v5911_v61  ;;  %v5916_v33 = vsel %vm5906_vm9, %v5913_v12, %v5915_v56 }
 0x57a   :  { %v5919_v5 = vsel %vm5907_vm13, %v5901_v41, %v5918_v32  ;;  %v5825_v0 = vadd.s32 %v12605_v8, %v12613_v22  ;;  %v12700_v58 = vmul.u32.u64.low %v12634_v38, %v5916_v33  ;;  %v12701_v55 = vmul.u32.u64.high %v12634_v38, %v5916_v33, %v12700_v58 }
 0x57b   :  { %v5920_v6 = vsel %vm5906_vm9, %v5917_v3, %v5919_v5  ;;  %vm7311_vm12 = vcmp.lt.s32.totalorder %v7310_v26, 0  ;;  %v7316_v14 = vadd.s32 4294967169, %v5981_v42  ;;  %v5858_v44 = vsel %vm12661_vm10, 0, %v5856_v46 }
 0x57c   :  { %v12705_v17 = vmul.u32.u64.low %v12634_v38, %v5920_v6  ;;  %v12706_v20 = vmul.u32.u64.high %v12634_v38, %v5920_v6, %v12705_v17  ;;  %v5840_v52 = vsel %vm7311_vm12, 0, %v7310_v26  ;;  %v5928_v8 = vmul.u32 %v12634_v38, %v5912_v59 }
 0x57d   :  { %v5977_v22 = vand.u32 2147483647, %v13800_v35  ;;  %v5841_v4 = vsub.s32 32, %v5840_v52  ;;  %v5842_v30 = vshll.u32 %v12648_v2, %v5840_v52  ;;  %v5845_v37 = vsub.s32 4294967266, %v5840_v52 }
 0x57e   :  { %v5987_v57 = vadd.s32 1, %v7316_v14  ;;  %vm5757_vm14 = vweird.f32 %v13789_v54  ;;  %v5931_v51 = vadd.s32 1, %v12701_v55  ;;  %vm5764_vm15 = vcmp.eq.s32.totalorder %v5759_v21, 2 }
 0x57f   :  { %v5843_v9 = vshrl.u32 %v5825_v0, %v5841_v4  ;;  %v5846_v48 = vadd.s32 127, %v5845_v37  ;;  %vm5930_vm1 = vc.u32 %v12706_v20, %v12700_v58  ;;  %v5862_v45 = vadd.s32 3, %v5858_v44 }
 0x580   :  { %v5932_v38 = vsel %vm5930_vm1, %v5931_v51, %v12701_v55  ;;  %v5984_v7 = vand.u32 8388607, %v5977_v22  ;;  %vm5988_vm0 = vcmp.gt.s32.totalorder %v5987_v57, 0  ;;  %vm5760_vm2 = vcmp.lt.s32.totalorder %v5759_v21, 2 }
 0x581   :  { %v7827_v2 = vpop.eup %7826  ;;  %v5844_v15 = vor.u32 %v5843_v9, %v5842_v30  ;;  %v5847_v11 = vshll.u32 %v5846_v48, 23  ;;  %v5933_v63 = vadd.s32 %v5932_v38, %v5928_v8  ;;  %v5989_v36 = vsel %vm5988_vm0, %v5987_v57, 0 }
 0x582   :  { %v7829_v39 = vpop.eup %7828  ;;  %vm5761_vm3 = vcmp.eq.s32.totalorder %v5759_v21, 0  ;;  %v5765_v25 = vxor.u32 2147483648, %v7827_v2  ;;  %v5991_v23 = vand.u32 31, %v5989_v36  ;;  %v12721_v1 = vand.u32 3, %v5862_v45  ;;  %v13801_v21 = vld [vmem:[#allocation46_spill] sm:$0xff] }
 0x583   :  { %v5762_v50 = vxor.u32 2147483648, %v7829_v39  ;;  %v5848_v34 = vor.u32 4788187, %v5847_v11  ;;  %v5851_v13 = vcvt.s32.f32 %v5844_v15  ;;  %v5934_v41 = vadd.s32 536870912, %v5933_v63 }
 0x584   :  { %v5766_v60 = vsel %vm5764_vm15, %v5765_v25, %v7829_v39  ;;  %v5985_v53 = vor.u32 8388608, %v5984_v7  ;;  %v5992_v31 = vsub.s32 32, %v5991_v23  ;;  %v5994_v49 = vshll.u32 %v13654_v28, %v5991_v23 }
 0x585   :  { %v5763_v40 = vsel %vm5761_vm3, %v7827_v2, %v5762_v50  ;;  %v5849_v12 = vand.u32 2147483647, %v5848_v34  ;;  %v5935_v47 = vshrl.u32 %v5934_v41, 30  ;;  %v5997_v61 = vshll.u32 %v13648_v18, %v5991_v23 }
 0x586   :  { %v5767_v46 = vsel %vm5760_vm2, %v5763_v40, %v5766_v60  ;;  %v5995_v3 = vshrl.u32 %v13648_v18, %v5992_v31  ;;  %v6000_v56 = vshll.u32 %v13649_v24, %v5991_v23  ;;  %v5998_v59 = vshrl.u32 %v13649_v24, %v5992_v31 }
 0x587   :  { %v5768_v32 = vsel %vm5757_vm14, nan, %v5767_v46  ;;  %v5852_v42 = vmul.f32 %v5851_v13, %v5849_v12  ;;  %v5936_v26 = vshll.u32 %v5935_v47, 30  ;;  %v5990_v33 = vshrl.u32 %v5989_v36, 5 }
 0x588   :  { %v6001_v5 = vshrl.u32 %v13650_v19, %v5992_v31  ;;  %v6003_v0 = vshll.u32 %v13650_v19, %v5991_v23  ;;  %v6081_v6 = vand.u32 2147483647, %v13801_v21  ;;  %7068 = vst [vmem:[#allocation5 + $0x198] sm:$0xff] %v5768_v32  ;;  %v6004_v14 = vshrl.u32 %v13651_v27, %v5992_v31 }
 0x589   :  { %v5853_v55 = vxor.u32 2147483648, %v5852_v42  ;;  %v12734_v17 = vsub.s32 %v5933_v63, %v5936_v26  ;;  %v6084_v54 = vand.u32 2139095040, %v13801_v21  ;;  %vm5875_vm4 = vcmp.lt.s32.totalorder %v13795_v10, 0 }
 0x58a   :  { %v5993_v52 = vshrl.u32 %v13654_v28, %v5992_v31  ;;  %v5996_v44 = vor.u32 %v5995_v3, %v5994_v49  ;;  %v6006_v8 = vshll.u32 %v13651_v27, %v5991_v23  ;;  %v6007_v4 = vshrl.u32 %v13652_v43, %v5992_v31 }
 0x58b   :  { %v5854_v30 = vsel %vm5771_vm8, %v5853_v55, %v5852_v42  ;;  %v5939_v37 = vsub.s32 0, %v12734_v17  ;;  %v5999_v57 = vor.u32 %v5998_v59, %v5997_v61  ;;  %v6002_v51 = vor.u32 %v6001_v5, %v6000_v56 }
 0x58c   :  { %v5857_v9 = vsel %vm12661_vm10, %v13792_v29, %v5854_v30  ;;  %v6005_v48 = vor.u32 %v6004_v14, %v6003_v0  ;;  %v6008_v45 = vor.u32 %v6007_v4, %v6006_v8  ;;  %vm6009_vm5 = vcmp.lt.s32.totalorder %v5990_v33, 1 }
 0x58d   :  { %7830 = vcosq.f32 %v5857_v9  ;;  %vm12750_vm6 = vcmp.le.f32.partialorder %v5873_v16, 0.7853982  ;;  %v7313_v7 = vmin.u32 %v5939_v37, %v12734_v17  ;;  %v6025_v2 = vshll.u32 %v5985_v53, 8 }
 0x58e   :  { %v6085_v15 = vshrl.u32 %v6084_v54, 23  ;;  %7832 = vsinq.f32 %v5857_v9  ;;  %v5959_v11 = vsub.s32 4, %v5935_v47  ;;  %vm6011_vm7 = vcmp.lt.s32.totalorder %v5990_v33, 3 }
 0x58f   :  { %vm6012_vm8 = vcmp.lt.s32.totalorder %v5990_v33, 4  ;;  %v5941_v62 = vclz %v7313_v7  ;;  %vm6010_vm10 = vcmp.lt.s32.totalorder %v5990_v33, 2  ;;  %v6013_v63 = vsel %vm6009_vm5, %v5993_v52, %v5996_v44 }
 0x590   :  { %v6017_v36 = vsel %vm6009_vm5, %v5996_v44, %v5999_v57  ;;  %v6014_v39 = vsel %vm6012_vm8, %v6002_v51, 2102212464  ;;  %v6018_v25 = vsel %vm6012_vm8, %v6005_v48, 920167782  ;;  %v6021_v16 = vsel %vm6009_vm5, %v5999_v57, %v6002_v51 }
 0x591   :  { %v6022_v23 = vsel %vm6012_vm8, %v6008_v45, 1326507024  ;;  %v7314_v50 = vadd.s32 4294967294, %v5941_v62  ;;  %v6015_v34 = vsel %vm6011_vm7, %v5999_v57, %v6014_v39  ;;  %v6019_v13 = vsel %vm6011_vm7, %v6002_v51, %v6018_v25 }
 0x592   :  { %v6023_v41 = vsel %vm6011_vm7, %v6005_v48, %v6022_v23  ;;  %v5929_v60 = vadd.s32 %v12700_v58, %v12706_v20  ;;  %v6020_v53 = vsel %vm6010_vm10, %v6017_v36, %v6019_v13  ;;  %v7320_v40 = vadd.s32 4294967169, %v6085_v15 }
 0x593   :  { %v6024_v31 = vsel %vm6010_vm10, %v6021_v16, %v6023_v41  ;;  %vm7315_vm11 = vcmp.lt.s32.totalorder %v7314_v50, 0  ;;  %v5960_v12 = vsel %vm5875_vm4, %v5959_v11, %v5935_v47  ;;  %v6016_v61 = vsel %vm6010_vm10, %v6013_v63, %v6015_v34 }
 0x594   :  { %v12764_v49 = vmul.u32.u64.low %v6025_v2, %v6024_v31  ;;  %v12765_v46 = vmul.u32.u64.high %v6025_v2, %v6024_v31, %v12764_v49  ;;  %v5944_v3 = vsel %vm7315_vm11, 0, %v7314_v50  ;;  %v6091_v26 = vadd.s32 1, %v7320_v40 }
 0x595   :  { %v12768_v56 = vmul.u32.u64.low %v6025_v2, %v6020_v53  ;;  %v12769_v32 = vmul.u32.u64.high %v6025_v2, %v6020_v53, %v12768_v56  ;;  %v5945_v58 = vsub.s32 32, %v5944_v3  ;;  %v5946_v20 = vshll.u32 %v12734_v17, %v5944_v3 }
 0x596   :  { %v5949_v42 = vsub.s32 4294967266, %v5944_v3  ;;  %vm5861_vm9 = vweird.f32 %v13792_v29  ;;  %v5962_v47 = vsel %vm12750_vm6, 0, %v5960_v12  ;;  %v6032_v0 = vmul.u32 %v6025_v2, %v6016_v61  ;;  %v13804_v3 = vld [vmem:[#allocation26_spill] sm:$0xff] }
 0x597   :  { %v5947_v59 = vshrl.u32 %v5929_v60, %v5945_v58  ;;  %vm6034_vm13 = vc.u32 %v12765_v46, %v12768_v56  ;;  %vm5864_vm12 = vcmp.lt.s32.totalorder %v12721_v1, 2  ;;  %v6035_v33 = vadd.s32 1, %v12769_v32 }
 0x598   :  { %v5950_v5 = vadd.s32 127, %v5949_v42  ;;  %v6088_v55 = vand.u32 8388607, %v6081_v6  ;;  %vm6092_vm14 = vcmp.gt.s32.totalorder %v6091_v26, 0  ;;  %vm5865_vm15 = vcmp.eq.s32.totalorder %v12721_v1, 0 }
 0x599   :  { %v5948_v17 = vor.u32 %v5947_v59, %v5946_v20  ;;  %v6093_v54 = vsel %vm6092_vm14, %v6091_v26, 0  ;;  %vm5868_vm1 = vcmp.eq.s32.totalorder %v12721_v1, 2  ;;  %v5966_v44 = vadd.s32 3, %v5962_v47 }
 0x59a   :  { %v5951_v14 = vshll.u32 %v5950_v5, 23  ;;  %v7831_v52 = vpop.eup %7830  ;;  %v6036_v8 = vsel %vm6034_vm13, %v6035_v33, %v12769_v32  ;;  %v6095_v4 = vand.u32 31, %v6093_v54  ;;  %v6089_v45 = vor.u32 8388608, %v6088_v55 }
 0x59b   :  { %v7833_v30 = vpop.eup %7832  ;;  %v5869_v37 = vxor.u32 2147483648, %v7831_v52  ;;  %v5955_v51 = vcvt.s32.f32 %v5948_v17  ;;  %v6037_v9 = vadd.s32 %v6036_v8, %v6032_v0  ;;  %v6094_v60 = vshrl.u32 %v6093_v54, 5 }
 0x59c   :  { %v5952_v57 = vor.u32 4788187, %v5951_v14  ;;  %v5866_v48 = vxor.u32 2147483648, %v7833_v30  ;;  %v6096_v7 = vsub.s32 32, %v6095_v4  ;;  %v6098_v2 = vshll.u32 %v13654_v28, %v6095_v4 }
 0x59d   :  { %v5870_v15 = vsel %vm5868_vm1, %v5869_v37, %v7833_v30  ;;  %v6038_v62 = vadd.s32 536870912, %v6037_v9  ;;  %v6101_v63 = vshll.u32 %v13648_v18, %v6095_v4  ;;  %v6104_v16 = vshll.u32 %v13649_v24, %v6095_v4 }
 0x59e   :  { %v5953_v11 = vand.u32 2147483647, %v5952_v57  ;;  %v5867_v36 = vsel %vm5865_vm15, %v7831_v52, %v5866_v48  ;;  %v6099_v39 = vshrl.u32 %v13648_v18, %v6096_v7  ;;  %v6102_v25 = vshrl.u32 %v13649_v24, %v6096_v7 }
 0x59f   :  { %v5871_v23 = vsel %vm5864_vm12, %v5867_v36, %v5870_v15  ;;  %v6039_v34 = vshrl.u32 %v6038_v62, 30  ;;  %v6105_v13 = vshrl.u32 %v13650_v19, %v6096_v7  ;;  %v6107_v53 = vshll.u32 %v13650_v19, %v6095_v4 }
 0x5a0   :  { %v5956_v50 = vmul.f32 %v5955_v51, %v5953_v11  ;;  %v5872_v41 = vsel %vm5861_vm9, nan, %v5871_v23  ;;  %v12798_v31 = vshll.u32 %v6089_v45, 8  ;;  %v6097_v49 = vshrl.u32 %v13654_v28, %v6096_v7 }
 0x5a1   :  { %v6040_v12 = vshll.u32 %v6039_v34, 30  ;;  %v6188_v61 = vand.u32 2139095040, %v13804_v3  ;;  %7069 = vst [vmem:[#allocation5 + $0x1a0] sm:$0xff] %v5872_v41  ;;  %v6100_v1 = vor.u32 %v6099_v39, %v6098_v2  ;;  %v6108_v32 = vshrl.u32 %v13651_v27, %v6096_v7 }
 0x5a2   :  { %v5957_v40 = vxor.u32 2147483648, %v5956_v50  ;;  %v6110_v58 = vshll.u32 %v13651_v27, %v6095_v4  ;;  %v6111_v29 = vshrl.u32 %v13652_v43, %v6096_v7  ;;  %v6103_v26 = vor.u32 %v6102_v25, %v6101_v63 }
 0x5a3   :  { %v12807_v42 = vsub.s32 %v6037_v9, %v6040_v12  ;;  %v6106_v47 = vor.u32 %v6105_v13, %v6104_v16  ;;  %v6109_v5 = vor.u32 %v6108_v32, %v6107_v53  ;;  %vm6113_vm0 = vcmp.lt.s32.totalorder %v6094_v60, 1 }
 0x5a4   :  { %v5958_v20 = vsel %vm5875_vm4, %v5957_v40, %v5956_v50  ;;  %v6112_v0 = vor.u32 %v6111_v29, %v6110_v58  ;;  %vm6115_vm2 = vcmp.lt.s32.totalorder %v6094_v60, 3  ;;  %v6189_v55 = vshrl.u32 %v6188_v61, 23 }
 0x5a5   :  { %v5961_v59 = vsel %vm12750_vm6, %v13795_v10, %v5958_v20  ;;  %v6043_v33 = vsub.s32 0, %v12807_v42  ;;  %vm6114_vm3 = vcmp.lt.s32.totalorder %v6094_v60, 2  ;;  %vm6116_vm5 = vcmp.lt.s32.totalorder %v6094_v60, 4 }
 0x5a6   :  { %7834 = vcosq.f32 %v5961_v59  ;;  %v6117_v17 = vsel %vm6113_vm0, %v6097_v49, %v6100_v1  ;;  %v6118_v54 = vsel %vm6116_vm5, %v6106_v47, 2102212464  ;;  %v6121_v52 = vsel %vm6113_vm0, %v6100_v1, %v6103_v26 }
 0x5a7   :  { %7836 = vsinq.f32 %v5961_v59  ;;  %v7317_v14 = vmin.u32 %v6043_v33, %v12807_v42  ;;  %v6122_v8 = vsel %vm6116_vm5, %v6109_v5, 920167782  ;;  %v6119_v38 = vsel %vm6115_vm2, %v6103_v26, %v6118_v54 }
 0x5a8   :  { %v6123_v4 = vsel %vm6115_vm2, %v6106_v47, %v6122_v8  ;;  %v6125_v30 = vsel %vm6113_vm0, %v6103_v26, %v6106_v47  ;;  %v6126_v37 = vsel %vm6116_vm5, %v6112_v0, 1326507024  ;;  %v5967_v57 = vand.u32 3, %v5966_v44 }
 0x5a9   :  { %v6045_v51 = vclz %v7317_v14  ;;  %v6063_v9 = vsub.s32 4, %v6039_v34  ;;  %v6120_v48 = vsel %vm6114_vm3, %v6117_v17, %v6119_v38  ;;  %v6124_v45 = vsel %vm6114_vm3, %v6121_v52, %v6123_v4  ;;  %v13807_v14 = vld [vmem:[#allocation47_spill] sm:$0xff] }
 0x5aa   :  { %v6127_v7 = vsel %vm6115_vm2, %v6109_v5, %v6126_v37  ;;  %v7324_v2 = vadd.s32 4294967169, %v6189_v55  ;;  %v12821_v62 = vmul.u32.u64.low %v12798_v31, %v6124_v45  ;;  %v12822_v63 = vmul.u32.u64.high %v12798_v31, %v6124_v45, %v12821_v62 }
 0x5ab   :  { %v7318_v15 = vadd.s32 4294967294, %v6045_v51  ;;  %v6128_v11 = vsel %vm6114_vm3, %v6125_v30, %v6127_v7  ;;  %vm5979_vm4 = vcmp.lt.s32.totalorder %v13800_v35, 0  ;;  %v6185_v39 = vand.u32 2147483647, %v13804_v3 }
 0x5ac   :  { %v12827_v44 = vmul.u32.u64.low %v12798_v31, %v6128_v11  ;;  %v12828_v36 = vmul.u32.u64.high %v12798_v31, %v6128_v11, %v12827_v44  ;;  %vm5965_vm6 = vweird.f32 %v13795_v10  ;;  %v6033_v25 = vadd.s32 %v12768_v56, %v12765_v46 }
 0x5ad   :  { %vm7319_vm7 = vcmp.lt.s32.totalorder %v7318_v15, 0  ;;  %v6064_v16 = vsel %vm5979_vm4, %v6063_v9, %v6039_v34  ;;  %v6195_v23 = vadd.s32 1, %v7324_v2  ;;  %vm5968_vm8 = vcmp.lt.s32.totalorder %v5967_v57, 2 }
 0x5ae   :  { %vm12838_vm10 = vcmp.le.f32.partialorder %v5977_v22, 0.7853982  ;;  %v6048_v13 = vsel %vm7319_vm7, 0, %v7318_v15  ;;  %v6136_v41 = vmul.u32 %v12798_v31, %v6120_v48  ;;  %v6139_v46 = vadd.s32 1, %v12822_v63 }
 0x5af   :  { %v6049_v60 = vsub.s32 32, %v6048_v13  ;;  %v6050_v53 = vshll.u32 %v12807_v42, %v6048_v13  ;;  %v6053_v40 = vsub.s32 4294967266, %v6048_v13  ;;  %v6066_v56 = vsel %vm12838_vm10, 0, %v6064_v16 }
 0x5b0   :  { %vm6138_vm11 = vc.u32 %v12828_v36, %v12821_v62  ;;  %v6192_v22 = vand.u32 8388607, %v6185_v39  ;;  %vm6196_vm9 = vcmp.gt.s32.totalorder %v6195_v23, 0  ;;  %vm5969_vm13 = vcmp.eq.s32.totalorder %v5967_v57, 0 }
 0x5b1   :  { %v6051_v34 = vshrl.u32 %v6033_v25, %v6049_v60  ;;  %v6054_v12 = vadd.s32 127, %v6053_v40  ;;  %v6140_v31 = vsel %vm6138_vm11, %v6139_v46, %v12822_v63  ;;  %v6197_v49 = vsel %vm6196_vm9, %v6195_v23, 0 }
 0x5b2   :  { %vm5972_vm12 = vcmp.eq.s32.totalorder %v5967_v57, 2  ;;  %v6141_v1 = vadd.s32 %v6140_v31, %v6136_v41  ;;  %v6199_v32 = vand.u32 31, %v6197_v49  ;;  %v12852_v26 = vadd.s32 3, %v6066_v56 }
 0x5b3   :  { %v7835_v61 = vpop.eup %7834  ;;  %v6052_v20 = vor.u32 %v6051_v34, %v6050_v53  ;;  %v6055_v42 = vshll.u32 %v6054_v12, 23  ;;  %v6193_v5 = vor.u32 8388608, %v6192_v22  ;;  %v6289_v54 = vand.u32 2147483647, %v13807_v14 }
 0x5b4   :  { %v7837_v58 = vpop.eup %7836  ;;  %v5973_v29 = vxor.u32 2147483648, %v7835_v61  ;;  %v6142_v59 = vadd.s32 536870912, %v6141_v1  ;;  %v6200_v0 = vsub.s32 32, %v6199_v32  ;;  %v6198_v38 = vshrl.u32 %v6197_v49, 5 }
 0x5b5   :  { %v5970_v47 = vxor.u32 2147483648, %v7837_v58  ;;  %v6056_v55 = vor.u32 4788187, %v6055_v42  ;;  %v6059_v17 = vcvt.s32.f32 %v6052_v20  ;;  %v6292_v4 = vand.u32 2139095040, %v13807_v14 }
 0x5b6   :  { %v5974_v33 = vsel %vm5972_vm12, %v5973_v29, %v7837_v58  ;;  %v6143_v8 = vshrl.u32 %v6142_v59, 30  ;;  %v6202_v51 = vshll.u32 %v13654_v28, %v6199_v32  ;;  %v6205_v9 = vshll.u32 %v13648_v18, %v6199_v32 }
 0x5b7   :  { %v5971_v52 = vsel %vm5969_vm13, %v7835_v61, %v5970_v47  ;;  %v6057_v37 = vand.u32 2147483647, %v6056_v55  ;;  %v6203_v7 = vshrl.u32 %v13648_v18, %v6200_v0  ;;  %v6206_v2 = vshrl.u32 %v13649_v24, %v6200_v0 }
 0x5b8   :  { %v5975_v30 = vsel %vm5968_vm8, %v5971_v52, %v5974_v33  ;;  %v6144_v45 = vshll.u32 %v6143_v8, 30  ;;  %v6208_v11 = vshll.u32 %v13649_v24, %v6199_v32  ;;  %v6209_v63 = vshrl.u32 %v13650_v19, %v6200_v0 }
 0x5b9   :  { %v5976_v48 = vsel %vm5965_vm6, nan, %v5975_v30  ;;  %v6060_v15 = vmul.f32 %v6059_v17, %v6057_v37  ;;  %v6211_v57 = vshll.u32 %v13650_v19, %v6199_v32  ;;  %v6212_v25 = vshrl.u32 %v13651_v27, %v6200_v0 }
 0x5ba   :  { %7070 = vst [vmem:[#allocation5 + $0x1a8] sm:$0xff] %v5976_v48  ;;  %v12867_v44 = vsub.s32 %v6141_v1, %v6144_v45  ;;  %v6214_v10 = vshll.u32 %v13651_v27, %v6199_v32  ;;  %v12871_v16 = vshll.u32 %v6193_v5, 8  ;;  %v6137_v13 = vadd.s32 %v12821_v62, %v12828_v36 }
 0x5bb   :  { %v6061_v23 = vxor.u32 2147483648, %v6060_v15  ;;  %v6215_v41 = vshrl.u32 %v13652_v43, %v6200_v0  ;;  %v6293_v60 = vshrl.u32 %v6292_v4, 23  ;;  %vm6083_vm14 = vcmp.lt.s32.totalorder %v13801_v21, 0 }
 0x5bc   :  { %v6147_v53 = vsub.s32 0, %v12867_v44  ;;  %v6201_v40 = vshrl.u32 %v13654_v28, %v6200_v0  ;;  %v6204_v46 = vor.u32 %v6203_v7, %v6202_v51  ;;  %v6207_v56 = vor.u32 %v6206_v2, %v6205_v9 }
 0x5bd   :  { %v6062_v22 = vsel %vm5979_vm4, %v6061_v23, %v6060_v15  ;;  %v6210_v34 = vor.u32 %v6209_v63, %v6208_v11  ;;  %v6213_v12 = vor.u32 %v6212_v25, %v6211_v57  ;;  %vm6217_vm15 = vcmp.lt.s32.totalorder %v6198_v38, 1 }
 0x5be   :  { %v6065_v62 = vsel %vm12838_vm10, %v13800_v35, %v6062_v22  ;;  %v7321_v36 = vmin.u32 %v6147_v53, %v12867_v44  ;;  %v6216_v31 = vor.u32 %v6215_v41, %v6214_v10  ;;  %vm6220_vm1 = vcmp.lt.s32.totalorder %v6198_v38, 4 }
 0x5bf   :  { %7838 = vcosq.f32 %v6065_v62  ;;  %vm6218_vm0 = vcmp.lt.s32.totalorder %v6198_v38, 2  ;;  %vm6219_vm2 = vcmp.lt.s32.totalorder %v6198_v38, 3  ;;  %v6222_v49 = vsel %vm6220_vm1, %v6210_v34, 2102212464 }
 0x5c0   :  { %7840 = vsinq.f32 %v6065_v62  ;;  %v6149_v61 = vclz %v7321_v36  ;;  %v6221_v1 = vsel %vm6217_vm15, %v6201_v40, %v6204_v46  ;;  %v6225_v32 = vsel %vm6217_vm15, %v6204_v46, %v6207_v56 }
 0x5c1   :  { %v6167_v58 = vsub.s32 4, %v6143_v8  ;;  %v6223_v29 = vsel %vm6219_vm2, %v6207_v56, %v6222_v49  ;;  %v6226_v20 = vsel %vm6220_vm1, %v6213_v12, 920167782  ;;  %v6229_v50 = vsel %vm6217_vm15, %v6207_v56, %v6210_v34 }
 0x5c2   :  { %v7322_v42 = vadd.s32 4294967294, %v6149_v61  ;;  %v6227_v47 = vsel %vm6219_vm2, %v6210_v34, %v6226_v20  ;;  %v6230_v59 = vsel %vm6220_vm1, %v6216_v31, 1326507024  ;;  %v6296_v5 = vand.u32 8388607, %v6289_v54 }
 0x5c3   :  { %v6224_v0 = vsel %vm6218_vm0, %v6221_v1, %v6223_v29  ;;  %v6228_v33 = vsel %vm6218_vm0, %v6225_v32, %v6227_v47  ;;  %v6231_v55 = vsel %vm6219_vm2, %v6213_v12, %v6230_v59  ;;  %v7328_v17 = vadd.s32 4294967169, %v6293_v60 }
 0x5c4   :  { %vm7323_vm3 = vcmp.lt.s32.totalorder %v7322_v42, 0  ;;  %v6232_v52 = vsel %vm6218_vm0, %v6229_v50, %v6231_v55  ;;  %v12897_v4 = vmul.u32.u64.low %v12871_v16, %v6228_v33  ;;  %v12898_v30 = vmul.u32.u64.high %v12871_v16, %v6228_v33, %v12897_v4 }
 0x5c5   :  { %v6152_v37 = vsel %vm7323_vm3, 0, %v7322_v42  ;;  %v6168_v51 = vsel %vm6083_vm14, %v6167_v58, %v6143_v8  ;;  %v12904_v9 = vmul.u32.u64.low %v12871_v16, %v6232_v52  ;;  %v12905_v48 = vmul.u32.u64.high %v12871_v16, %v6232_v52, %v12904_v9 }
 0x5c6   :  { %v6153_v45 = vsub.s32 32, %v6152_v37  ;;  %v6154_v7 = vshll.u32 %v12867_v44, %v6152_v37  ;;  %v6157_v2 = vsub.s32 4294967266, %v6152_v37  ;;  %v6299_v15 = vadd.s32 1, %v7328_v17 }
 0x5c7   :  { %v6071_v38 = vand.u32 3, %v12852_v26  ;;  %vm12911_vm5 = vcmp.le.f32.partialorder %v6081_v6, 0.7853982  ;;  %v6240_v63 = vmul.u32 %v12871_v16, %v6224_v0  ;;  %v6243_v25 = vadd.s32 1, %v12898_v30 }
 0x5c8   :  { %v6155_v8 = vshrl.u32 %v6137_v13, %v6153_v45  ;;  %v6158_v57 = vadd.s32 127, %v6157_v2  ;;  %vm6300_vm4 = vcmp.gt.s32.totalorder %v6299_v15, 0  ;;  %v6170_v44 = vsel %vm12911_vm5, 0, %v6168_v51 }
 0x5c9   :  { %vm6242_vm6 = vc.u32 %v12905_v48, %v12897_v4  ;;  %v6297_v26 = vor.u32 8388608, %v6296_v5  ;;  %v6301_v10 = vsel %vm6300_vm4, %v6299_v15, 0  ;;  %vm6069_vm7 = vweird.f32 %v13800_v35 }
 0x5ca   :  { %v6156_v23 = vor.u32 %v6155_v8, %v6154_v7  ;;  %v6159_v6 = vshll.u32 %v6158_v57, 23  ;;  %v6244_v41 = vsel %vm6242_vm6, %v6243_v25, %v12898_v30  ;;  %v12922_v60 = vshrl.u32 %v6301_v10, 5 }
 0x5cb   :  { %vm6072_vm8 = vcmp.lt.s32.totalorder %v6071_v38, 2  ;;  %v6245_v16 = vadd.s32 %v6244_v41, %v6240_v63  ;;  %v6303_v13 = vand.u32 31, %v6301_v10  ;;  %vm6073_vm10 = vcmp.eq.s32.totalorder %v6071_v38, 0 }
 0x5cc   :  { %v7839_v53 = vpop.eup %7838  ;;  %vm6076_vm11 = vcmp.eq.s32.totalorder %v6071_v38, 2  ;;  %v6160_v40 = vor.u32 4788187, %v6159_v6  ;;  %v6163_v46 = vcvt.s32.f32 %v6156_v23  ;;  %v6174_v34 = vadd.s32 3, %v6170_v44  ;;  %v13812_v44 = vld [vmem:[#allocation48_spill] sm:$0xff] }
 0x5cd   :  { %v7841_v56 = vpop.eup %7840  ;;  %v6077_v22 = vxor.u32 2147483648, %v7839_v53  ;;  %v6246_v12 = vadd.s32 536870912, %v6245_v16  ;;  %v6304_v62 = vsub.s32 32, %v6303_v13  ;;  %vm6321_vm9 = vcmp.lt.s32.totalorder %v12922_v60, 1 }
 0x5ce   :  { %v6074_v36 = vxor.u32 2147483648, %v7841_v56  ;;  %v6161_v31 = vand.u32 2147483647, %v6160_v40  ;;  %v12926_v49 = vshll.u32 %v6297_v26, 8  ;;  %v6306_v32 = vshll.u32 %v13654_v28, %v6303_v13 }
 0x5cf   :  { %v6078_v61 = vsel %vm6076_vm11, %v6077_v22, %v7841_v56  ;;  %v6247_v1 = vshrl.u32 %v6246_v12, 30  ;;  %v6307_v58 = vshrl.u32 %v13648_v18, %v6304_v62  ;;  %vm6187_vm13 = vcmp.lt.s32.totalorder %v13804_v3, 0 }
 0x5d0   :  { %v6075_v29 = vsel %vm6073_vm10, %v7839_v53, %v6074_v36  ;;  %v6164_v20 = vmul.f32 %v6163_v46, %v6161_v31  ;;  %v6309_v50 = vshll.u32 %v13648_v18, %v6303_v13  ;;  %v6310_v42 = vshrl.u32 %v13649_v24, %v6304_v62 }
 0x5d1   :  { %v6079_v47 = vsel %vm6072_vm8, %v6075_v29, %v6078_v61  ;;  %v6248_v59 = vshll.u32 %v6247_v1, 30  ;;  %v6312_v5 = vshll.u32 %v13649_v24, %v6303_v13  ;;  %v6313_v0 = vshrl.u32 %v13650_v19, %v6304_v62 }
 0x5d2   :  { %v6080_v33 = vsel %vm6069_vm7, nan, %v6079_v47  ;;  %v6165_v55 = vxor.u32 2147483648, %v6164_v20  ;;  %v6271_v17 = vsub.s32 4, %v6247_v1  ;;  %v6305_v52 = vshrl.u32 %v13654_v28, %v6304_v62 }
 0x5d3   :  { %v12940_v30 = vsub.s32 %v6245_v16, %v6248_v59  ;;  %v6308_v37 = vor.u32 %v6307_v58, %v6306_v32  ;;  %v6315_v51 = vshll.u32 %v13650_v19, %v6303_v13  ;;  %v6316_v9 = vshrl.u32 %v13651_v27, %v6304_v62  ;;  %7071 = vst [vmem:[#allocation5 + $0x1b0] sm:$0xff] %v6080_v33 }
 0x5d4   :  { %v6166_v45 = vsel %vm6083_vm14, %v6165_v55, %v6164_v20  ;;  %v6311_v7 = vor.u32 %v6310_v42, %v6309_v50  ;;  %v6318_v2 = vshll.u32 %v13651_v27, %v6303_v13  ;;  %v6319_v35 = vshrl.u32 %v13652_v43, %v6304_v62 }
 0x5d5   :  { %v6169_v15 = vsel %vm12911_vm5, %v13801_v21, %v6166_v45  ;;  %vm12953_vm12 = vcmp.le.f32.partialorder %v6185_v39, 0.7853982  ;;  %v6251_v63 = vsub.s32 0, %v12940_v30  ;;  %v6314_v8 = vor.u32 %v6313_v0, %v6312_v5 }
 0x5d6   :  { %v6317_v57 = vor.u32 %v6316_v9, %v6315_v51  ;;  %7842 = vcosq.f32 %v6169_v15  ;;  %v6320_v25 = vor.u32 %v6319_v35, %v6318_v2  ;;  %vm6324_vm14 = vcmp.lt.s32.totalorder %v12922_v60, 4 }
 0x5d7   :  { %v6396_v26 = vand.u32 2139095040, %v13812_v44  ;;  %7844 = vsinq.f32 %v6169_v15  ;;  %v7325_v11 = vmin.u32 %v6251_v63, %v12940_v30  ;;  %vm6322_vm15 = vcmp.lt.s32.totalorder %v12922_v60, 2 }
 0x5d8   :  { %vm6323_vm1 = vcmp.lt.s32.totalorder %v12922_v60, 3  ;;  %v6325_v39 = vsel %vm6321_vm9, %v6305_v52, %v6308_v37  ;;  %v6326_v10 = vsel %vm6324_vm14, %v6314_v8, 2102212464  ;;  %v6329_v23 = vsel %vm6321_vm9, %v6308_v37, %v6311_v7 }
 0x5d9   :  { %v6330_v6 = vsel %vm6324_vm14, %v6317_v57, 920167782  ;;  %v6175_v41 = vand.u32 3, %v6174_v34  ;;  %v6253_v16 = vclz %v7325_v11  ;;  %v6272_v13 = vsel %vm6187_vm13, %v6271_v17, %v6247_v1 }
 0x5da   :  { %v6333_v53 = vsel %vm6321_vm9, %v6311_v7, %v6314_v8  ;;  %v6327_v40 = vsel %vm6323_vm1, %v6311_v7, %v6326_v10  ;;  %v6331_v46 = vsel %vm6323_vm1, %v6314_v8, %v6330_v6  ;;  %v6334_v56 = vsel %vm6324_vm14, %v6320_v25, 1326507024 }
 0x5db   :  { %v6397_v22 = vshrl.u32 %v6396_v26, 23  ;;  %v7326_v12 = vadd.s32 4294967294, %v6253_v16  ;;  %v6328_v34 = vsel %vm6322_vm15, %v6325_v39, %v6327_v40  ;;  %v6332_v62 = vsel %vm6322_vm15, %v6329_v23, %v6331_v46 }
 0x5dc   :  { %v6335_v36 = vsel %vm6323_vm1, %v6317_v57, %v6334_v56  ;;  %v6241_v31 = vadd.s32 %v12897_v4, %v12905_v48  ;;  %v12992_v1 = vmul.u32.u64.low %v12926_v49, %v6332_v62  ;;  %v12993_v32 = vmul.u32.u64.high %v12926_v49, %v6332_v62, %v12992_v1 }
 0x5dd   :  { %v6336_v61 = vsel %vm6322_vm15, %v6333_v53, %v6335_v36  ;;  %vm7327_vm0 = vcmp.lt.s32.totalorder %v7326_v12, 0  ;;  %v7332_v20 = vadd.s32 4294967169, %v6397_v22  ;;  %v6274_v42 = vsel %vm12953_vm12, 0, %v6272_v13 }
 0x5de   :  { %v12997_v58 = vmul.u32.u64.low %v12926_v49, %v6336_v61  ;;  %v12998_v29 = vmul.u32.u64.high %v12926_v49, %v6336_v61, %v12997_v58  ;;  %v6256_v50 = vsel %vm7327_vm0, 0, %v7326_v12  ;;  %v6344_v4 = vmul.u32 %v12926_v49, %v6328_v34 }
 0x5df   :  { %v6393_v48 = vand.u32 2147483647, %v13812_v44  ;;  %v6257_v60 = vsub.s32 32, %v6256_v50  ;;  %v6258_v47 = vshll.u32 %v12940_v30, %v6256_v50  ;;  %v6261_v59 = vsub.s32 4294967266, %v6256_v50 }
 0x5e0   :  { %v6403_v5 = vadd.s32 1, %v7332_v20  ;;  %vm6173_vm2 = vweird.f32 %v13801_v21  ;;  %v6347_v0 = vadd.s32 1, %v12993_v32  ;;  %vm6180_vm3 = vcmp.eq.s32.totalorder %v6175_v41, 2 }
 0x5e1   :  { %v6259_v33 = vshrl.u32 %v6241_v31, %v6257_v60  ;;  %v6262_v55 = vadd.s32 127, %v6261_v59  ;;  %vm6346_vm5 = vc.u32 %v12998_v29, %v12992_v1  ;;  %v6278_v17 = vadd.s32 3, %v6274_v42 }
 0x5e2   :  { %v6348_v49 = vsel %vm6346_vm5, %v6347_v0, %v12993_v32  ;;  %v6400_v52 = vand.u32 8388607, %v6393_v48  ;;  %vm6404_vm4 = vcmp.gt.s32.totalorder %v6403_v5, 0  ;;  %vm6176_vm6 = vcmp.lt.s32.totalorder %v6175_v41, 2 }
 0x5e3   :  { %v7843_v30 = vpop.eup %7842  ;;  %v6260_v37 = vor.u32 %v6259_v33, %v6258_v47  ;;  %v6263_v51 = vshll.u32 %v6262_v55, 23  ;;  %v6349_v9 = vadd.s32 %v6348_v49, %v6344_v4  ;;  %v6405_v45 = vsel %vm6404_vm4, %v6403_v5, 0 }
 0x5e4   :  { %v7845_v7 = vpop.eup %7844  ;;  %vm6177_vm7 = vcmp.eq.s32.totalorder %v6175_v41, 0  ;;  %v6181_v2 = vxor.u32 2147483648, %v7843_v30  ;;  %v6407_v35 = vand.u32 31, %v6405_v45  ;;  %v13013_v26 = vand.u32 3, %v6278_v17  ;;  %v13813_v41 = vld [vmem:[#allocation49_spill] sm:$0xff] }
 0x5e5   :  { %v6178_v15 = vxor.u32 2147483648, %v7845_v7  ;;  %v6264_v63 = vor.u32 4788187, %v6263_v51  ;;  %v6267_v8 = vcvt.s32.f32 %v6260_v37  ;;  %v6350_v57 = vadd.s32 536870912, %v6349_v9 }
 0x5e6   :  { %v6182_v25 = vsel %vm6180_vm3, %v6181_v2, %v7845_v7  ;;  %v6401_v11 = vor.u32 8388608, %v6400_v52  ;;  %v6408_v39 = vsub.s32 32, %v6407_v35  ;;  %v6410_v16 = vshll.u32 %v13654_v28, %v6407_v35 }
 0x5e7   :  { %v6179_v10 = vsel %vm6177_vm7, %v7843_v30, %v6178_v15  ;;  %v6265_v23 = vand.u32 2147483647, %v6264_v63  ;;  %v6351_v6 = vshrl.u32 %v6350_v57, 30  ;;  %v6413_v40 = vshll.u32 %v13648_v18, %v6407_v35 }
 0x5e8   :  { %v6183_v13 = vsel %vm6176_vm6, %v6179_v10, %v6182_v25  ;;  %v6411_v53 = vshrl.u32 %v13648_v18, %v6408_v39  ;;  %v6416_v46 = vshll.u32 %v13649_v24, %v6407_v35  ;;  %v6414_v34 = vshrl.u32 %v13649_v24, %v6408_v39 }
 0x5e9   :  { %v6184_v56 = vsel %vm6173_vm2, nan, %v6183_v13  ;;  %v6268_v22 = vmul.f32 %v6267_v8, %v6265_v23  ;;  %v6352_v12 = vshll.u32 %v6351_v6, 30  ;;  %v6406_v62 = vshrl.u32 %v6405_v45, 5 }
 0x5ea   :  { %v6417_v36 = vshrl.u32 %v13650_v19, %v6408_v39  ;;  %v6419_v31 = vshll.u32 %v13650_v19, %v6407_v35  ;;  %v6497_v61 = vand.u32 2147483647, %v13813_v41  ;;  %7072 = vst [vmem:[#allocation5 + $0x1b8] sm:$0xff] %v6184_v56  ;;  %v6420_v20 = vshrl.u32 %v13651_v27, %v6408_v39 }
 0x5eb   :  { %v6269_v32 = vxor.u32 2147483648, %v6268_v22  ;;  %v13026_v58 = vsub.s32 %v6349_v9, %v6352_v12  ;;  %v6500_v21 = vand.u32 2139095040, %v13813_v41  ;;  %vm6291_vm8 = vcmp.lt.s32.totalorder %v13807_v14, 0 }
 0x5ec   :  { %v6409_v50 = vshrl.u32 %v13654_v28, %v6408_v39  ;;  %v6412_v42 = vor.u32 %v6411_v53, %v6410_v16  ;;  %v6422_v4 = vshll.u32 %v13651_v27, %v6407_v35  ;;  %v6423_v60 = vshrl.u32 %v13652_v43, %v6408_v39 }
 0x5ed   :  { %v6270_v47 = vsel %vm6187_vm13, %v6269_v32, %v6268_v22  ;;  %v6355_v59 = vsub.s32 0, %v13026_v58  ;;  %v6415_v5 = vor.u32 %v6414_v34, %v6413_v40  ;;  %v6418_v0 = vor.u32 %v6417_v36, %v6416_v46 }
 0x5ee   :  { %v6273_v33 = vsel %vm12953_vm12, %v13804_v3, %v6270_v47  ;;  %v6421_v55 = vor.u32 %v6420_v20, %v6419_v31  ;;  %v6424_v17 = vor.u32 %v6423_v60, %v6422_v4  ;;  %vm6425_vm10 = vcmp.lt.s32.totalorder %v6406_v62, 1 }
 0x5ef   :  { %7846 = vcosq.f32 %v6273_v33  ;;  %vm13042_vm11 = vcmp.le.f32.partialorder %v6289_v54, 0.7853982  ;;  %v7329_v52 = vmin.u32 %v6355_v59, %v13026_v58  ;;  %v6441_v30 = vshll.u32 %v6401_v11, 8 }
 0x5f0   :  { %v6501_v37 = vshrl.u32 %v6500_v21, 23  ;;  %7848 = vsinq.f32 %v6273_v33  ;;  %v6375_v51 = vsub.s32 4, %v6351_v6  ;;  %vm6427_vm9 = vcmp.lt.s32.totalorder %v6406_v62, 3 }
 0x5f1   :  { %vm6428_vm13 = vcmp.lt.s32.totalorder %v6406_v62, 4  ;;  %v6357_v38 = vclz %v7329_v52  ;;  %vm6426_vm12 = vcmp.lt.s32.totalorder %v6406_v62, 2  ;;  %v6429_v9 = vsel %vm6425_vm10, %v6409_v50, %v6412_v42 }
 0x5f2   :  { %v6433_v45 = vsel %vm6425_vm10, %v6412_v42, %v6415_v5  ;;  %v6430_v7 = vsel %vm6428_vm13, %v6418_v0, 2102212464  ;;  %v6434_v2 = vsel %vm6428_vm13, %v6421_v55, 920167782  ;;  %v6437_v54 = vsel %vm6425_vm10, %v6415_v5, %v6418_v0 }
 0x5f3   :  { %v6438_v35 = vsel %vm6428_vm13, %v6424_v17, 1326507024  ;;  %v7330_v15 = vadd.s32 4294967294, %v6357_v38  ;;  %v6431_v63 = vsel %vm6427_vm9, %v6415_v5, %v6430_v7  ;;  %v6435_v8 = vsel %vm6427_vm9, %v6418_v0, %v6434_v2 }
 0x5f4   :  { %v6439_v57 = vsel %vm6427_vm9, %v6421_v55, %v6438_v35  ;;  %v6345_v25 = vadd.s32 %v12992_v1, %v12998_v29  ;;  %v6436_v11 = vsel %vm6426_vm12, %v6433_v45, %v6435_v8  ;;  %v7336_v10 = vadd.s32 4294967169, %v6501_v37 }
 0x5f5   :  { %v6440_v39 = vsel %vm6426_vm12, %v6437_v54, %v6439_v57  ;;  %vm7331_vm14 = vcmp.lt.s32.totalorder %v7330_v15, 0  ;;  %v6376_v23 = vsel %vm6291_vm8, %v6375_v51, %v6351_v6  ;;  %v6432_v40 = vsel %vm6426_vm12, %v6429_v9, %v6431_v63 }
 0x5f6   :  { %v13056_v16 = vmul.u32.u64.low %v6441_v30, %v6440_v39  ;;  %v13057_v13 = vmul.u32.u64.high %v6441_v30, %v6440_v39, %v13056_v16  ;;  %v6360_v53 = vsel %vm7331_vm14, 0, %v7330_v15  ;;  %v6507_v12 = vadd.s32 1, %v7336_v10 }
 0x5f7   :  { %v13060_v46 = vmul.u32.u64.low %v6441_v30, %v6436_v11  ;;  %v13061_v56 = vmul.u32.u64.high %v6441_v30, %v6436_v11, %v13060_v46  ;;  %v6361_v1 = vsub.s32 32, %v6360_v53  ;;  %v6362_v29 = vshll.u32 %v13026_v58, %v6360_v53 }
 0x5f8   :  { %v6365_v22 = vsub.s32 4294967266, %v6360_v53  ;;  %vm6277_vm15 = vweird.f32 %v13804_v3  ;;  %v6378_v6 = vsel %vm13042_vm11, 0, %v6376_v23  ;;  %v6448_v31 = vmul.u32 %v6441_v30, %v6432_v40  ;;  %v13816_v53 = vld [vmem:[#allocation9_spill] sm:$0xff] }
 0x5f9   :  { %v6363_v34 = vshrl.u32 %v6345_v25, %v6361_v1  ;;  %vm6450_vm1 = vc.u32 %v13057_v13, %v13060_v46  ;;  %vm6280_vm0 = vcmp.lt.s32.totalorder %v13013_v26, 2  ;;  %v6451_v62 = vadd.s32 1, %v13061_v56 }
 0x5fa   :  { %v6366_v36 = vadd.s32 127, %v6365_v22  ;;  %v6504_v32 = vand.u32 8388607, %v6497_v61  ;;  %vm6508_vm2 = vcmp.gt.s32.totalorder %v6507_v12, 0  ;;  %vm6281_vm3 = vcmp.eq.s32.totalorder %v13013_v26, 0 }
 0x5fb   :  { %v6364_v58 = vor.u32 %v6363_v34, %v6362_v29  ;;  %v6509_v21 = vsel %vm6508_vm2, %v6507_v12, 0  ;;  %vm6284_vm5 = vcmp.eq.s32.totalorder %v13013_v26, 2  ;;  %v6382_v42 = vadd.s32 3, %v6378_v6 }
 0x5fc   :  { %v6367_v20 = vshll.u32 %v6366_v36, 23  ;;  %v7847_v50 = vpop.eup %7846  ;;  %v6452_v4 = vsel %vm6450_vm1, %v6451_v62, %v13061_v56  ;;  %v6511_v60 = vand.u32 31, %v6509_v21  ;;  %v6505_v17 = vor.u32 8388608, %v6504_v32 }
 0x5fd   :  { %v7849_v47 = vpop.eup %7848  ;;  %v6285_v59 = vxor.u32 2147483648, %v7847_v50  ;;  %v6371_v0 = vcvt.s32.f32 %v6364_v58  ;;  %v6453_v33 = vadd.s32 %v6452_v4, %v6448_v31  ;;  %v6510_v25 = vshrl.u32 %v6509_v21, 5 }
 0x5fe   :  { %v6368_v5 = vor.u32 4788187, %v6367_v20  ;;  %v6282_v55 = vxor.u32 2147483648, %v7849_v47  ;;  %v6512_v52 = vsub.s32 32, %v6511_v60  ;;  %v6514_v30 = vshll.u32 %v13654_v28, %v6511_v60 }
 0x5ff   :  { %v6286_v37 = vsel %vm6284_vm5, %v6285_v59, %v7849_v47  ;;  %v6454_v38 = vadd.s32 536870912, %v6453_v33  ;;  %v6517_v9 = vshll.u32 %v13648_v18, %v6511_v60  ;;  %v6520_v54 = vshll.u32 %v13649_v24, %v6511_v60 }
 0x600   :  { %v6369_v51 = vand.u32 2147483647, %v6368_v5  ;;  %v6283_v45 = vsel %vm6281_vm3, %v7847_v50, %v6282_v55  ;;  %v6515_v7 = vshrl.u32 %v13648_v18, %v6512_v52  ;;  %v6518_v2 = vshrl.u32 %v13649_v24, %v6512_v52 }
 0x601   :  { %v6287_v35 = vsel %vm6280_vm0, %v6283_v45, %v6286_v37  ;;  %v6455_v63 = vshrl.u32 %v6454_v38, 30  ;;  %v6521_v8 = vshrl.u32 %v13650_v19, %v6512_v52  ;;  %v6523_v11 = vshll.u32 %v13650_v19, %v6511_v60 }
 0x602   :  { %v6372_v15 = vmul.f32 %v6371_v0, %v6369_v51  ;;  %v6288_v57 = vsel %vm6277_vm15, nan, %v6287_v35  ;;  %v13090_v39 = vshll.u32 %v6505_v17, 8  ;;  %v6513_v16 = vshrl.u32 %v13654_v28, %v6512_v52 }
 0x603   :  { %v6456_v23 = vshll.u32 %v6455_v63, 30  ;;  %v6604_v40 = vand.u32 2139095040, %v13816_v53  ;;  %7073 = vst [vmem:[#allocation5 + $0x1c0] sm:$0xff] %v6288_v57  ;;  %v6516_v26 = vor.u32 %v6515_v7, %v6514_v30  ;;  %v6524_v56 = vshrl.u32 %v13651_v27, %v6512_v52 }
 0x604   :  { %v6373_v10 = vxor.u32 2147483648, %v6372_v15  ;;  %v6526_v1 = vshll.u32 %v13651_v27, %v6511_v60  ;;  %v6527_v3 = vshrl.u32 %v13652_v43, %v6512_v52  ;;  %v6519_v12 = vor.u32 %v6518_v2, %v6517_v9 }
 0x605   :  { %v13099_v22 = vsub.s32 %v6453_v33, %v6456_v23  ;;  %v6522_v6 = vor.u32 %v6521_v8, %v6520_v54  ;;  %v6525_v36 = vor.u32 %v6524_v56, %v6523_v11  ;;  %vm6529_vm4 = vcmp.lt.s32.totalorder %v6510_v25, 1 }
 0x606   :  { %v6374_v29 = vsel %vm6291_vm8, %v6373_v10, %v6372_v15  ;;  %v6528_v31 = vor.u32 %v6527_v3, %v6526_v1  ;;  %vm6531_vm6 = vcmp.lt.s32.totalorder %v6510_v25, 3  ;;  %v6605_v32 = vshrl.u32 %v6604_v40, 23 }
 0x607   :  { %v6377_v34 = vsel %vm13042_vm11, %v13807_v14, %v6374_v29  ;;  %v6459_v62 = vsub.s32 0, %v13099_v22  ;;  %vm6530_vm7 = vcmp.lt.s32.totalorder %v6510_v25, 2  ;;  %vm6532_vm10 = vcmp.lt.s32.totalorder %v6510_v25, 4 }
 0x608   :  { %7850 = vcosq.f32 %v6377_v34  ;;  %v6533_v58 = vsel %vm6529_vm4, %v6513_v16, %v6516_v26  ;;  %v6534_v21 = vsel %vm6532_vm10, %v6522_v6, 2102212464  ;;  %v6537_v50 = vsel %vm6529_vm4, %v6516_v26, %v6519_v12 }
 0x609   :  { %7852 = vsinq.f32 %v6377_v34  ;;  %v7333_v20 = vmin.u32 %v6459_v62, %v13099_v22  ;;  %v6538_v4 = vsel %vm6532_vm10, %v6525_v36, 920167782  ;;  %v6535_v49 = vsel %vm6531_vm6, %v6519_v12, %v6534_v21 }
 0x60a   :  { %v6539_v60 = vsel %vm6531_vm6, %v6522_v6, %v6538_v4  ;;  %v6541_v47 = vsel %vm6529_vm4, %v6519_v12, %v6522_v6  ;;  %v6542_v59 = vsel %vm6532_vm10, %v6528_v31, 1326507024  ;;  %v6383_v5 = vand.u32 3, %v6382_v42 }
 0x60b   :  { %v6461_v0 = vclz %v7333_v20  ;;  %v6479_v33 = vsub.s32 4, %v6455_v63  ;;  %v6536_v55 = vsel %vm6530_vm7, %v6533_v58, %v6535_v49  ;;  %v6540_v17 = vsel %vm6530_vm7, %v6537_v50, %v6539_v60  ;;  %v13819_v20 = vld [vmem:[#allocation50_spill] sm:$0xff] }
 0x60c   :  { %v6543_v52 = vsel %vm6531_vm6, %v6525_v36, %v6542_v59  ;;  %v7340_v30 = vadd.s32 4294967169, %v6605_v32  ;;  %v13113_v38 = vmul.u32.u64.low %v13090_v39, %v6540_v17  ;;  %v13114_v9 = vmul.u32.u64.high %v13090_v39, %v6540_v17, %v13113_v38 }
 0x60d   :  { %v7334_v37 = vadd.s32 4294967294, %v6461_v0  ;;  %v6544_v51 = vsel %vm6530_vm7, %v6541_v47, %v6543_v52  ;;  %vm6395_vm8 = vcmp.lt.s32.totalorder %v13812_v44, 0  ;;  %v6601_v7 = vand.u32 2147483647, %v13816_v53 }
 0x60e   :  { %v13119_v42 = vmul.u32.u64.low %v13090_v39, %v6544_v51  ;;  %v13120_v45 = vmul.u32.u64.high %v13090_v39, %v6544_v51, %v13119_v42  ;;  %vm6381_vm11 = vweird.f32 %v13807_v14  ;;  %v6449_v2 = vadd.s32 %v13060_v46, %v13057_v13 }
 0x60f   :  { %vm7335_vm9 = vcmp.lt.s32.totalorder %v7334_v37, 0  ;;  %v6480_v54 = vsel %vm6395_vm8, %v6479_v33, %v6455_v63  ;;  %v6611_v35 = vadd.s32 1, %v7340_v30  ;;  %vm6384_vm13 = vcmp.lt.s32.totalorder %v6383_v5, 2 }
 0x610   :  { %vm13130_vm12 = vcmp.le.f32.partialorder %v6393_v48, 0.7853982  ;;  %v6464_v8 = vsel %vm7335_vm9, 0, %v7334_v37  ;;  %v6552_v57 = vmul.u32 %v13090_v39, %v6536_v55  ;;  %v6555_v13 = vadd.s32 1, %v13114_v9 }
 0x611   :  { %v6465_v25 = vsub.s32 32, %v6464_v8  ;;  %v6466_v11 = vshll.u32 %v13099_v22, %v6464_v8  ;;  %v6469_v10 = vsub.s32 4294967266, %v6464_v8  ;;  %v6482_v46 = vsel %vm13130_vm12, 0, %v6480_v54 }
 0x612   :  { %vm6554_vm14 = vc.u32 %v13120_v45, %v13113_v38  ;;  %v6608_v48 = vand.u32 8388607, %v6601_v7  ;;  %vm6612_vm15 = vcmp.gt.s32.totalorder %v6611_v35, 0  ;;  %vm6385_vm1 = vcmp.eq.s32.totalorder %v6383_v5, 0 }
 0x613   :  { %v6467_v63 = vshrl.u32 %v6449_v2, %v6465_v25  ;;  %v6470_v23 = vadd.s32 127, %v6469_v10  ;;  %v6556_v39 = vsel %vm6554_vm14, %v6555_v13, %v13114_v9  ;;  %v6613_v16 = vsel %vm6612_vm15, %v6611_v35, 0 }
 0x614   :  { %vm6388_vm0 = vcmp.eq.s32.totalorder %v6383_v5, 2  ;;  %v6557_v26 = vadd.s32 %v6556_v39, %v6552_v57  ;;  %v6615_v56 = vand.u32 31, %v6613_v16  ;;  %v13144_v12 = vadd.s32 3, %v6482_v46 }
 0x615   :  { %v7851_v40 = vpop.eup %7850  ;;  %v6468_v29 = vor.u32 %v6467_v63, %v6466_v11  ;;  %v6471_v22 = vshll.u32 %v6470_v23, 23  ;;  %v6609_v36 = vor.u32 8388608, %v6608_v48  ;;  %v6705_v21 = vand.u32 2147483647, %v13819_v20 }
 0x616   :  { %v7853_v1 = vpop.eup %7852  ;;  %v6389_v3 = vxor.u32 2147483648, %v7851_v40  ;;  %v6558_v34 = vadd.s32 536870912, %v6557_v26  ;;  %v6616_v31 = vsub.s32 32, %v6615_v56  ;;  %v6614_v49 = vshrl.u32 %v6613_v16, 5 }
 0x617   :  { %v6386_v6 = vxor.u32 2147483648, %v7853_v1  ;;  %v6472_v32 = vor.u32 4788187, %v6471_v22  ;;  %v6475_v58 = vcvt.s32.f32 %v6468_v29  ;;  %v6708_v60 = vand.u32 2139095040, %v13819_v20 }
 0x618   :  { %v6390_v62 = vsel %vm6388_vm0, %v6389_v3, %v7853_v1  ;;  %v6559_v4 = vshrl.u32 %v6558_v34, 30  ;;  %v6618_v0 = vshll.u32 %v13654_v28, %v6615_v56  ;;  %v6621_v33 = vshll.u32 %v13648_v18, %v6615_v56 }
 0x619   :  { %v6387_v50 = vsel %vm6385_vm1, %v7851_v40, %v6386_v6  ;;  %v6473_v59 = vand.u32 2147483647, %v6472_v32  ;;  %v6619_v52 = vshrl.u32 %v13648_v18, %v6616_v31  ;;  %v6622_v30 = vshrl.u32 %v13649_v24, %v6616_v31 }
 0x61a   :  { %v6391_v47 = vsel %vm6384_vm13, %v6387_v50, %v6390_v62  ;;  %v6560_v17 = vshll.u32 %v6559_v4, 30  ;;  %v6624_v51 = vshll.u32 %v13649_v24, %v6615_v56  ;;  %v6625_v9 = vshrl.u32 %v13650_v19, %v6616_v31 }
 0x61b   :  { %v6392_v55 = vsel %vm6381_vm11, nan, %v6391_v47  ;;  %v6476_v37 = vmul.f32 %v6475_v58, %v6473_v59  ;;  %v6627_v5 = vshll.u32 %v13650_v19, %v6615_v56  ;;  %v6628_v2 = vshrl.u32 %v13651_v27, %v6616_v31 }
 0x61c   :  { %7074 = vst [vmem:[#allocation5 + $0x1c8] sm:$0xff] %v6392_v55  ;;  %v13159_v42 = vsub.s32 %v6557_v26, %v6560_v17  ;;  %v6630_v14 = vshll.u32 %v13651_v27, %v6615_v56  ;;  %v13163_v54 = vshll.u32 %v6609_v36, 8  ;;  %v6553_v8 = vadd.s32 %v13113_v38, %v13120_v45 }
 0x61d   :  { %v6477_v35 = vxor.u32 2147483648, %v6476_v37  ;;  %v6631_v57 = vshrl.u32 %v13652_v43, %v6616_v31  ;;  %v6709_v25 = vshrl.u32 %v6708_v60, 23  ;;  %vm6499_vm2 = vcmp.lt.s32.totalorder %v13813_v41, 0 }
 0x61e   :  { %v6563_v11 = vsub.s32 0, %v13159_v42  ;;  %v6617_v10 = vshrl.u32 %v13654_v28, %v6616_v31  ;;  %v6620_v13 = vor.u32 %v6619_v52, %v6618_v0  ;;  %v6623_v46 = vor.u32 %v6622_v30, %v6621_v33 }
 0x61f   :  { %v6478_v48 = vsel %vm6395_vm8, %v6477_v35, %v6476_v37  ;;  %v6626_v63 = vor.u32 %v6625_v9, %v6624_v51  ;;  %v6629_v23 = vor.u32 %v6628_v2, %v6627_v5  ;;  %vm6633_vm3 = vcmp.lt.s32.totalorder %v6614_v49, 1 }
 0x620   :  { %v6481_v38 = vsel %vm13130_vm12, %v13812_v44, %v6478_v48  ;;  %v7337_v45 = vmin.u32 %v6563_v11, %v13159_v42  ;;  %v6632_v39 = vor.u32 %v6631_v57, %v6630_v14  ;;  %vm6636_vm5 = vcmp.lt.s32.totalorder %v6614_v49, 4 }
 0x621   :  { %7854 = vcosq.f32 %v6481_v38  ;;  %vm6634_vm4 = vcmp.lt.s32.totalorder %v6614_v49, 2  ;;  %vm6635_vm6 = vcmp.lt.s32.totalorder %v6614_v49, 3  ;;  %v6638_v16 = vsel %vm6636_vm5, %v6626_v63, 2102212464 }
 0x622   :  { %7856 = vsinq.f32 %v6481_v38  ;;  %v6565_v40 = vclz %v7337_v45  ;;  %v6637_v26 = vsel %vm6633_vm3, %v6617_v10, %v6620_v13  ;;  %v6641_v56 = vsel %vm6633_vm3, %v6620_v13, %v6623_v46 }
 0x623   :  { %v6583_v1 = vsub.s32 4, %v6559_v4  ;;  %v6639_v3 = vsel %vm6635_vm6, %v6623_v46, %v6638_v16  ;;  %v6642_v29 = vsel %vm6636_vm5, %v6629_v23, 920167782  ;;  %v6645_v15 = vsel %vm6633_vm3, %v6623_v46, %v6626_v63 }
 0x624   :  { %v7338_v22 = vadd.s32 4294967294, %v6565_v40  ;;  %v6643_v6 = vsel %vm6635_vm6, %v6626_v63, %v6642_v29  ;;  %v6646_v34 = vsel %vm6636_vm5, %v6632_v39, 1326507024  ;;  %v6712_v36 = vand.u32 8388607, %v6705_v21 }
 0x625   :  { %v6640_v31 = vsel %vm6634_vm4, %v6637_v26, %v6639_v3  ;;  %v6644_v62 = vsel %vm6634_vm4, %v6641_v56, %v6643_v6  ;;  %v6647_v32 = vsel %vm6635_vm6, %v6629_v23, %v6646_v34  ;;  %v7344_v58 = vadd.s32 4294967169, %v6709_v25 }
 0x626   :  { %vm7339_vm7 = vcmp.lt.s32.totalorder %v7338_v22, 0  ;;  %v6648_v50 = vsel %vm6634_vm4, %v6645_v15, %v6647_v32  ;;  %v13189_v60 = vmul.u32.u64.low %v13163_v54, %v6644_v62  ;;  %v13190_v47 = vmul.u32.u64.high %v13163_v54, %v6644_v62, %v13189_v60 }
 0x627   :  { %v6568_v59 = vsel %vm7339_vm7, 0, %v7338_v22  ;;  %v6584_v0 = vsel %vm6499_vm2, %v6583_v1, %v6559_v4  ;;  %v13196_v33 = vmul.u32.u64.low %v13163_v54, %v6648_v50  ;;  %v13197_v55 = vmul.u32.u64.high %v13163_v54, %v6648_v50, %v13196_v33 }
 0x628   :  { %v6569_v17 = vsub.s32 32, %v6568_v59  ;;  %v6570_v52 = vshll.u32 %v13159_v42, %v6568_v59  ;;  %v6573_v30 = vsub.s32 4294967266, %v6568_v59  ;;  %v6715_v37 = vadd.s32 1, %v7344_v58 }
 0x629   :  { %v6487_v49 = vand.u32 3, %v13144_v12  ;;  %vm13203_vm10 = vcmp.le.f32.partialorder %v6497_v61, 0.7853982  ;;  %v6656_v9 = vmul.u32 %v13163_v54, %v6640_v31  ;;  %v6659_v2 = vadd.s32 1, %v13190_v47 }
 0x62a   :  { %v6571_v4 = vshrl.u32 %v6553_v8, %v6569_v17  ;;  %v6574_v5 = vadd.s32 127, %v6573_v30  ;;  %vm6716_vm8 = vcmp.gt.s32.totalorder %v6715_v37, 0  ;;  %v6586_v42 = vsel %vm13203_vm10, 0, %v6584_v0 }
 0x62b   :  { %vm6658_vm11 = vc.u32 %v13197_v55, %v13189_v60  ;;  %v6717_v12 = vsel %vm6716_vm8, %v6715_v37, 0  ;;  %v6713_v57 = vor.u32 8388608, %v6712_v36  ;;  %vm6485_vm9 = vweird.f32 %v13812_v44 }
 0x62c   :  { %v6572_v14 = vor.u32 %v6571_v4, %v6570_v52  ;;  %v6575_v35 = vshll.u32 %v6574_v5, 23  ;;  %v6660_v61 = vsel %vm6658_vm11, %v6659_v2, %v13190_v47  ;;  %vm6488_vm13 = vcmp.lt.s32.totalorder %v6487_v49, 2  ;;  %v13822_v5 = vld [vmem:[#allocation51_spill] sm:$0xff] }
 0x62d   :  { %v6661_v54 = vadd.s32 %v6660_v61, %v6656_v9  ;;  %v6719_v8 = vand.u32 31, %v6717_v12  ;;  %vm6489_vm12 = vcmp.eq.s32.totalorder %v6487_v49, 0  ;;  %vm6492_vm14 = vcmp.eq.s32.totalorder %v6487_v49, 2 }
 0x62e   :  { %v7855_v25 = vpop.eup %7854  ;;  %v6576_v11 = vor.u32 4788187, %v6575_v35  ;;  %v6579_v10 = vcvt.s32.f32 %v6572_v14  ;;  %v6590_v48 = vadd.s32 3, %v6586_v42  ;;  %v6718_v39 = vshrl.u32 %v6717_v12, 5 }
 0x62f   :  { %v7857_v13 = vpop.eup %7856  ;;  %v6493_v46 = vxor.u32 2147483648, %v7855_v25  ;;  %v6662_v63 = vadd.s32 536870912, %v6661_v54  ;;  %v6720_v23 = vsub.s32 32, %v6719_v8  ;;  %v13215_v16 = vshll.u32 %v6713_v57, 8 }
 0x630   :  { %v6490_v38 = vxor.u32 2147483648, %v7857_v13  ;;  %v6577_v45 = vand.u32 2147483647, %v6576_v11  ;;  %v6722_v56 = vshll.u32 %v13654_v28, %v6719_v8  ;;  %v6725_v15 = vshll.u32 %v13648_v18, %v6719_v8 }
 0x631   :  { %v6494_v40 = vsel %vm6492_vm14, %v6493_v46, %v7857_v13  ;;  %v13217_v26 = vshrl.u32 %v6662_v63, 30  ;;  %v6723_v1 = vshrl.u32 %v13648_v18, %v6720_v23  ;;  %v6726_v22 = vshrl.u32 %v13649_v24, %v6720_v23 }
 0x632   :  { %v6491_v3 = vsel %vm6489_vm12, %v7855_v25, %v6490_v38  ;;  %v6580_v29 = vmul.f32 %v6579_v10, %v6577_v45  ;;  %v6728_v36 = vshll.u32 %v13649_v24, %v6719_v8  ;;  %v6729_v31 = vshrl.u32 %v13650_v19, %v6720_v23 }
 0x633   :  { %v6495_v6 = vsel %vm6488_vm13, %v6491_v3, %v6494_v40  ;;  %v6664_v34 = vshll.u32 %v13217_v26, 30  ;;  %v6721_v58 = vshrl.u32 %v13654_v28, %v6720_v23  ;;  %vm6737_vm15 = vcmp.lt.s32.totalorder %v6718_v39, 1 }
 0x634   :  { %v6496_v62 = vsel %vm6485_vm9, nan, %v6495_v6  ;;  %v6581_v32 = vxor.u32 2147483648, %v6580_v29  ;;  %v6724_v47 = vor.u32 %v6723_v1, %v6722_v56  ;;  %v6731_v59 = vshll.u32 %v13650_v19, %v6719_v8 }
 0x635   :  { %v13231_v50 = vsub.s32 %v6661_v54, %v6664_v34  ;;  %v6732_v0 = vshrl.u32 %v13651_v27, %v6720_v23  ;;  %7075 = vst [vmem:[#allocation5 + $0x1d0] sm:$0xff] %v6496_v62  ;;  %v6727_v17 = vor.u32 %v6726_v22, %v6725_v15  ;;  %v6734_v52 = vshll.u32 %v13651_v27, %v6719_v8 }
 0x636   :  { %v6582_v33 = vsel %vm6499_vm2, %v6581_v32, %v6580_v29  ;;  %v6735_v44 = vshrl.u32 %v13652_v43, %v6720_v23  ;;  %v6730_v49 = vor.u32 %v6729_v31, %v6728_v36  ;;  %vm6740_vm1 = vcmp.lt.s32.totalorder %v6718_v39, 4 }
 0x637   :  { %v6585_v30 = vsel %vm13203_vm10, %v13813_v41, %v6582_v33  ;;  %v6667_v37 = vsub.s32 0, %v13231_v50  ;;  %v6733_v9 = vor.u32 %v6732_v0, %v6731_v59  ;;  %v6812_v2 = vand.u32 2139095040, %v13822_v5 }
 0x638   :  { %7858 = vcosq.f32 %v6585_v30  ;;  %v6736_v4 = vor.u32 %v6735_v44, %v6734_v52  ;;  %vm6738_vm0 = vcmp.lt.s32.totalorder %v6718_v39, 2  ;;  %vm6739_vm2 = vcmp.lt.s32.totalorder %v6718_v39, 3 }
 0x639   :  { %7860 = vsinq.f32 %v6585_v30  ;;  %v7341_v42 = vmin.u32 %v6667_v37, %v13231_v50  ;;  %v6741_v12 = vsel %vm6737_vm15, %v6721_v58, %v6724_v47  ;;  %v6742_v14 = vsel %vm6740_vm1, %v6730_v49, 2102212464 }
 0x63a   :  { %v6745_v51 = vsel %vm6737_vm15, %v6724_v47, %v6727_v17  ;;  %v6746_v35 = vsel %vm6740_vm1, %v6733_v9, 920167782  ;;  %v6591_v61 = vand.u32 3, %v6590_v48  ;;  %v6749_v54 = vsel %vm6737_vm15, %v6727_v17, %v6730_v49 }
 0x63b   :  { %v6669_v57 = vclz %v7341_v42  ;;  %v6743_v8 = vsel %vm6739_vm2, %v6727_v17, %v6742_v14  ;;  %v6747_v25 = vsel %vm6739_vm2, %v6730_v49, %v6746_v35  ;;  %v6750_v11 = vsel %vm6740_vm1, %v6736_v4, 1326507024 }
 0x63c   :  { %v6813_v10 = vshrl.u32 %v6812_v2, 23  ;;  %v6744_v46 = vsel %vm6738_vm0, %v6741_v12, %v6743_v8  ;;  %v6748_v63 = vsel %vm6738_vm0, %v6745_v51, %v6747_v25  ;;  %v6751_v23 = vsel %vm6739_vm2, %v6733_v9, %v6750_v11 }
 0x63d   :  { %v7342_v13 = vadd.s32 4294967294, %v6669_v57  ;;  %v6657_v38 = vadd.s32 %v13189_v60, %v13197_v55  ;;  %v6752_v45 = vsel %vm6738_vm0, %v6749_v54, %v6751_v23  ;;  %v6687_v15 = vsub.s32 4, %v13217_v26 }
 0x63e   :  { %v13254_v48 = vmul.u32.u64.low %v13215_v16, %v6748_v63  ;;  %v13255_v40 = vmul.u32.u64.high %v13215_v16, %v6748_v63, %v13254_v48  ;;  %v13259_v56 = vmul.u32.u64.low %v13215_v16, %v6752_v45  ;;  %v13260_v1 = vmul.u32.u64.high %v13215_v16, %v6752_v45, %v13259_v56 }
 0x63f   :  { %vm7343_vm3 = vcmp.lt.s32.totalorder %v7342_v13, 0  ;;  %v7348_v3 = vadd.s32 4294967169, %v6813_v10  ;;  %v6760_v22 = vmul.u32 %v13215_v16, %v6744_v46  ;;  %vm6589_vm5 = vweird.f32 %v13813_v41  ;;  %v13825_v56 = vld [vmem:[#allocation52_spill] sm:$0xff] }
 0x640   :  { %v6672_v29 = vsel %vm7343_vm3, 0, %v7342_v13  ;;  %vm13268_vm4 = vcmp.le.f32.partialorder %v6601_v7, 0.7853982  ;;  %vm6603_vm6 = vcmp.lt.s32.totalorder %v13816_v53, 0  ;;  %v6763_v36 = vadd.s32 1, %v13255_v40 }
 0x641   :  { %v6673_v6 = vsub.s32 32, %v6672_v29  ;;  %v6674_v60 = vshll.u32 %v13231_v50, %v6672_v29  ;;  %v6677_v55 = vsub.s32 4294967266, %v6672_v29  ;;  %v6819_v39 = vadd.s32 1, %v7348_v3 }
 0x642   :  { %vm6596_vm7 = vcmp.eq.s32.totalorder %v6591_v61, 2  ;;  %vm6762_vm10 = vc.u32 %v13260_v1, %v13254_v48  ;;  %v6688_v62 = vsel %vm6603_vm6, %v6687_v15, %v13217_v26  ;;  %v6809_v7 = vand.u32 2147483647, %v13822_v5 }
 0x643   :  { %v6675_v31 = vshrl.u32 %v6657_v38, %v6673_v6  ;;  %v6678_v16 = vadd.s32 127, %v6677_v55  ;;  %v6764_v32 = vsel %vm6762_vm10, %v6763_v36, %v13255_v40  ;;  %vm6820_vm8 = vcmp.gt.s32.totalorder %v6819_v39, 0 }
 0x644   :  { %v6765_v59 = vadd.s32 %v6764_v32, %v6760_v22  ;;  %v6821_v0 = vsel %vm6820_vm8, %v6819_v39, 0  ;;  %vm6592_vm11 = vcmp.lt.s32.totalorder %v6591_v61, 2  ;;  %vm6593_vm9 = vcmp.eq.s32.totalorder %v6591_v61, 0 }
 0x645   :  { %v7859_v58 = vpop.eup %7858  ;;  %v6676_v50 = vor.u32 %v6675_v31, %v6674_v60  ;;  %v6679_v47 = vshll.u32 %v6678_v16, 23  ;;  %v6823_v52 = vand.u32 31, %v6821_v0  ;;  %v6690_v9 = vsel %vm13268_vm4, 0, %v6688_v62 }
 0x646   :  { %v7861_v33 = vpop.eup %7860  ;;  %v6597_v17 = vxor.u32 2147483648, %v7859_v58  ;;  %v6766_v49 = vadd.s32 536870912, %v6765_v59  ;;  %v6816_v4 = vand.u32 8388607, %v6809_v7  ;;  %v6822_v63 = vshrl.u32 %v6821_v0, 5 }
 0x647   :  { %v6594_v44 = vxor.u32 2147483648, %v7861_v33  ;;  %v6680_v30 = vor.u32 4788187, %v6679_v47  ;;  %v6683_v37 = vcvt.s32.f32 %v6676_v50  ;;  %v6824_v2 = vsub.s32 32, %v6823_v52 }
 0x648   :  { %v6598_v26 = vsel %vm6596_vm7, %v6597_v17, %v7861_v33  ;;  %v13286_v14 = vshrl.u32 %v6766_v49, 30  ;;  %v6826_v51 = vshll.u32 %v13654_v28, %v6823_v52  ;;  %v6829_v54 = vshll.u32 %v13648_v18, %v6823_v52 }
 0x649   :  { %v6595_v42 = vsel %vm6593_vm9, %v7859_v58, %v6594_v44  ;;  %v6681_v12 = vand.u32 2147483647, %v6680_v30  ;;  %v6827_v57 = vshrl.u32 %v13648_v18, %v6824_v2  ;;  %v6832_v8 = vshll.u32 %v13649_v24, %v6823_v52 }
 0x64a   :  { %v6599_v35 = vsel %vm6592_vm11, %v6595_v42, %v6598_v26  ;;  %v6768_v10 = vshll.u32 %v13286_v14, 30  ;;  %v6830_v13 = vshrl.u32 %v13649_v24, %v6824_v2  ;;  %v6817_v46 = vor.u32 8388608, %v6816_v4 }
 0x64b   :  { %v6600_v25 = vsel %vm6589_vm5, nan, %v6599_v35  ;;  %v6684_v11 = vmul.f32 %v6683_v37, %v6681_v12  ;;  %v6833_v23 = vshrl.u32 %v13650_v19, %v6824_v2  ;;  %v6835_v61 = vshll.u32 %v13650_v19, %v6823_v52 }
 0x64c   :  { %7076 = vst [vmem:[#allocation5 + $0x1d8] sm:$0xff] %v6600_v25  ;;  %v13299_v45 = vsub.s32 %v6765_v59, %v6768_v10  ;;  %v6836_v40 = vshrl.u32 %v13651_v27, %v6824_v2  ;;  %v6916_v41 = vand.u32 2139095040, %v13825_v56  ;;  %v6825_v3 = vshrl.u32 %v13654_v28, %v6824_v2 }
 0x64d   :  { %v6685_v38 = vxor.u32 2147483648, %v6684_v11  ;;  %v6828_v29 = vor.u32 %v6827_v57, %v6826_v51  ;;  %v6838_v15 = vshll.u32 %v13651_v27, %v6823_v52  ;;  %v6839_v22 = vshrl.u32 %v13652_v43, %v6824_v2 }
 0x64e   :  { %v6771_v60 = vsub.s32 0, %v13299_v45  ;;  %v6831_v55 = vor.u32 %v6830_v13, %v6829_v54  ;;  %v6834_v39 = vor.u32 %v6833_v23, %v6832_v8  ;;  %v6837_v31 = vor.u32 %v6836_v40, %v6835_v61 }
 0x64f   :  { %v6686_v6 = vsel %vm6603_vm6, %v6685_v38, %v6684_v11  ;;  %v6840_v16 = vor.u32 %v6839_v22, %v6838_v15  ;;  %vm6841_vm13 = vcmp.lt.s32.totalorder %v6822_v63, 1  ;;  %v6694_v62 = vadd.s32 3, %v6690_v9 }
 0x650   :  { %v6689_v36 = vsel %vm13268_vm4, %v13816_v53, %v6686_v6  ;;  %v7345_v32 = vmin.u32 %v6771_v60, %v13299_v45  ;;  %v6857_v58 = vshll.u32 %v6817_v46, 8  ;;  %vm6843_vm12 = vcmp.lt.s32.totalorder %v6822_v63, 3 }
 0x651   :  { %7862 = vcosq.f32 %v6689_v36  ;;  %vm6844_vm14 = vcmp.lt.s32.totalorder %v6822_v63, 4  ;;  %v6917_v50 = vshrl.u32 %v6916_v41, 23  ;;  %vm6842_vm15 = vcmp.lt.s32.totalorder %v6822_v63, 2 }
 0x652   :  { %7864 = vsinq.f32 %v6689_v36  ;;  %v6773_v47 = vclz %v7345_v32  ;;  %v6845_v59 = vsel %vm6841_vm13, %v6825_v3, %v6828_v29  ;;  %v6849_v0 = vsel %vm6841_vm13, %v6828_v29, %v6831_v55 }
 0x653   :  { %v6846_v33 = vsel %vm6844_vm14, %v6834_v39, 2102212464  ;;  %v6850_v17 = vsel %vm6844_vm14, %v6837_v31, 920167782  ;;  %v6853_v34 = vsel %vm6841_vm13, %v6831_v55, %v6834_v39  ;;  %v6854_v52 = vsel %vm6844_vm14, %v6840_v16, 1326507024 }
 0x654   :  { %v7346_v44 = vadd.s32 4294967294, %v6773_v47  ;;  %v6847_v30 = vsel %vm6843_vm12, %v6831_v55, %v6846_v33  ;;  %v6851_v37 = vsel %vm6843_vm12, %v6834_v39, %v6850_v17  ;;  %v6855_v49 = vsel %vm6843_vm12, %v6837_v31, %v6854_v52 }
 0x655   :  { %v6695_v26 = vand.u32 3, %v6694_v62  ;;  %v6852_v9 = vsel %vm6842_vm15, %v6849_v0, %v6851_v37  ;;  %v6856_v4 = vsel %vm6842_vm15, %v6853_v34, %v6855_v49  ;;  %v7352_v2 = vadd.s32 4294967169, %v6917_v50 }
 0x656   :  { %v6761_v42 = vadd.s32 %v13254_v48, %v13260_v1  ;;  %vm7347_vm1 = vcmp.lt.s32.totalorder %v7346_v44, 0  ;;  %v13317_v12 = vmul.u32.u64.low %v6857_v58, %v6856_v4  ;;  %v13318_v51 = vmul.u32.u64.high %v6857_v58, %v6856_v4, %v13317_v12 }
 0x657   :  { %v6776_v35 = vsel %vm7347_vm1, 0, %v7346_v44  ;;  %v6848_v57 = vsel %vm6842_vm15, %v6845_v59, %v6847_v30  ;;  %v13321_v54 = vmul.u32.u64.low %v6857_v58, %v6852_v9  ;;  %v13322_v8 = vmul.u32.u64.high %v6857_v58, %v6852_v9, %v13321_v54 }
 0x658   :  { %v6777_v25 = vsub.s32 32, %v6776_v35  ;;  %v6778_v11 = vshll.u32 %v13299_v45, %v6776_v35  ;;  %v6781_v10 = vsub.s32 4294967266, %v6776_v35  ;;  %v6923_v13 = vadd.s32 1, %v7352_v2 }
 0x659   :  { %vm6693_vm0 = vweird.f32 %v13816_v53  ;;  %vm6707_vm2 = vcmp.lt.s32.totalorder %v13819_v20, 0  ;;  %v6913_v48 = vand.u32 2147483647, %v13825_v56  ;;  %vm13331_vm3 = vcmp.le.f32.partialorder %v6705_v21, 0.7853982 }
 0x65a   :  { %v6779_v46 = vshrl.u32 %v6761_v42, %v6777_v25  ;;  %v6782_v63 = vadd.s32 127, %v6781_v10  ;;  %v6864_v23 = vmul.u32 %v6857_v58, %v6848_v57  ;;  %vm6866_vm5 = vc.u32 %v13318_v51, %v13321_v54 }
 0x65b   :  { %vm6696_vm4 = vcmp.lt.s32.totalorder %v6695_v26, 2  ;;  %v6791_v61 = vsub.s32 4, %v13286_v14  ;;  %v6867_v38 = vadd.s32 1, %v13322_v8  ;;  %vm6924_vm6 = vcmp.gt.s32.totalorder %v6923_v13, 0 }
 0x65c   :  { %vm6697_vm7 = vcmp.eq.s32.totalorder %v6695_v26, 0  ;;  %v6780_v45 = vor.u32 %v6779_v46, %v6778_v11  ;;  %v6783_v40 = vshll.u32 %v6782_v63, 23  ;;  %v6925_v41 = vsel %vm6924_vm6, %v6923_v13, 0 }
 0x65d   :  { %vm6700_vm10 = vcmp.eq.s32.totalorder %v6695_v26, 2  ;;  %v6868_v3 = vsel %vm6866_vm5, %v6867_v38, %v13322_v8  ;;  %v6920_v29 = vand.u32 8388607, %v6913_v48  ;;  %v6927_v15 = vand.u32 31, %v6925_v41 }
 0x65e   :  { %v7863_v21 = vpop.eup %7862  ;;  %v6784_v60 = vor.u32 4788187, %v6783_v40  ;;  %v6787_v55 = vcvt.s32.f32 %v6780_v45  ;;  %v6869_v39 = vadd.s32 %v6868_v3, %v6864_v23  ;;  %v6792_v31 = vsel %vm6707_vm2, %v6791_v61, %v13286_v14 }
 0x65f   :  { %v7865_v22 = vpop.eup %7864  ;;  %v6701_v6 = vxor.u32 2147483648, %v7863_v21  ;;  %v6928_v16 = vsub.s32 32, %v6927_v15  ;;  %v6930_v62 = vshll.u32 %v13654_v28, %v6927_v15  ;;  %v6933_v47 = vshll.u32 %v13648_v18, %v6927_v15 }
 0x660   :  { %v6698_v36 = vxor.u32 2147483648, %v7865_v22  ;;  %v6785_v58 = vand.u32 2147483647, %v6784_v60  ;;  %v6870_v50 = vadd.s32 536870912, %v6869_v39  ;;  %v6936_v17 = vshll.u32 %v13649_v24, %v6927_v15 }
 0x661   :  { %v6702_v32 = vsel %vm6700_vm10, %v6701_v6, %v7865_v22  ;;  %v6931_v0 = vshrl.u32 %v13648_v18, %v6928_v16  ;;  %v6934_v33 = vshrl.u32 %v13649_v24, %v6928_v16  ;;  %v6937_v44 = vshrl.u32 %v13650_v19, %v6928_v16 }
 0x662   :  { %v6699_v59 = vsel %vm6697_vm7, %v7863_v21, %v6698_v36  ;;  %v6788_v52 = vmul.f32 %v6787_v55, %v6785_v58  ;;  %v13352_v14 = vshrl.u32 %v6870_v50, 30  ;;  %v6794_v37 = vsel %vm13331_vm3, 0, %v6792_v31 }
 0x663   :  { %v6703_v34 = vsel %vm6696_vm4, %v6699_v59, %v6702_v32  ;;  %v6926_v49 = vshrl.u32 %v6925_v41, 5  ;;  %v6939_v18 = vshll.u32 %v13650_v19, %v6927_v15  ;;  %v6921_v24 = vor.u32 8388608, %v6920_v29 }
 0x664   :  { %v6704_v30 = vsel %vm6693_vm0, nan, %v6703_v34  ;;  %v6789_v9 = vxor.u32 2147483648, %v6788_v52  ;;  %v6872_v4 = vshll.u32 %v13352_v14, 30  ;;  %v6929_v26 = vshrl.u32 %v13654_v28, %v6928_v16 }
 0x665   :  { %7077 = vst [vmem:[#allocation5 + $0x1e0] sm:$0xff] %v6704_v30  ;;  %v6932_v2 = vor.u32 %v6931_v0, %v6930_v62  ;;  %v6940_v42 = vshrl.u32 %v13651_v27, %v6928_v16  ;;  %v6942_v12 = vshll.u32 %v13651_v27, %v6927_v15  ;;  %v6943_v53 = vshrl.u32 %v13652_v43, %v6928_v16 }
 0x666   :  { %v6790_v35 = vsel %vm6707_vm2, %v6789_v9, %v6788_v52  ;;  %v6873_v57 = vsub.s32 %v6869_v39, %v6872_v4  ;;  %v6935_v8 = vor.u32 %v6934_v33, %v6933_v47  ;;  %v6938_v19 = vor.u32 %v6937_v44, %v6936_v17 }
 0x667   :  { %v6793_v25 = vsel %vm13331_vm3, %v13819_v20, %v6790_v35  ;;  %v6941_v11 = vor.u32 %v6940_v42, %v6939_v18  ;;  %v6944_v28 = vor.u32 %v6943_v53, %v6942_v12  ;;  %vm6945_vm8 = vcmp.lt.s32.totalorder %v6926_v49, 1 }
 0x668   :  { %7866 = vcosq.f32 %v6793_v25  ;;  %v6875_v10 = vsub.s32 0, %v6873_v57  ;;  %vm6947_vm11 = vcmp.lt.s32.totalorder %v6926_v49, 3  ;;  %v6961_v13 = vshll.u32 %v6921_v24, 8 }
 0x669   :  { %7868 = vsinq.f32 %v6793_v25  ;;  %vm6946_vm9 = vcmp.lt.s32.totalorder %v6926_v49, 2  ;;  %vm6948_vm13 = vcmp.lt.s32.totalorder %v6926_v49, 4  ;;  %v6949_v27 = vsel %vm6945_vm8, %v6929_v26, %v6932_v2 }
 0x66a   :  { %v7349_v43 = vmin.u32 %v6875_v10, %v6873_v57  ;;  %v6950_v46 = vsel %vm6948_vm13, %v6938_v19, 2102212464  ;;  %v6953_v63 = vsel %vm6945_vm8, %v6932_v2, %v6935_v8  ;;  %v6954_v23 = vsel %vm6948_vm13, %v6941_v11, 920167782 }
 0x66b   :  { %v6951_v61 = vsel %vm6947_vm11, %v6935_v8, %v6950_v46  ;;  %v6955_v1 = vsel %vm6947_vm11, %v6938_v19, %v6954_v23  ;;  %v6957_v38 = vsel %vm6945_vm8, %v6935_v8, %v6938_v19  ;;  %v6958_v45 = vsel %vm6948_vm13, %v6944_v28, 1326507024 }
 0x66c   :  { %v6877_v40 = vclz %v7349_v43  ;;  %v6798_v41 = vadd.s32 3, %v6794_v37  ;;  %v6952_v21 = vsel %vm6946_vm9, %v6949_v27, %v6951_v61  ;;  %v6956_v3 = vsel %vm6946_vm9, %v6953_v63, %v6955_v1 }
 0x66d   :  { %v6959_v29 = vsel %vm6947_vm11, %v6941_v11, %v6958_v45  ;;  %v13376_v6 = vmul.u32.u64.low %v6961_v13, %v6956_v3  ;;  %v13377_v60 = vmul.u32.u64.high %v6961_v13, %v6956_v3, %v13376_v6  ;;  %v6865_v36 = vadd.s32 %v13321_v54, %v13318_v51 }
 0x66e   :  { %v7350_v15 = vadd.s32 4294967294, %v6877_v40  ;;  %v6960_v22 = vsel %vm6946_vm9, %v6957_v38, %v6959_v29  ;;  %v6799_v31 = vand.u32 3, %v6798_v41  ;;  %v6968_v62 = vmul.u32 %v6961_v13, %v6952_v21 }
 0x66f   :  { %v13379_v55 = vmul.u32.u64.low %v6961_v13, %v6960_v22  ;;  %v13380_v39 = vmul.u32.u64.high %v6961_v13, %v6960_v22, %v13379_v55  ;;  %v6971_v47 = vadd.s32 1, %v13377_v60  ;;  %vm6797_vm2 = vweird.f32 %v13819_v20 }
 0x670   :  { %vm7351_vm12 = vcmp.lt.s32.totalorder %v7350_v15, 0  ;;  %vm6804_vm15 = vcmp.eq.s32.totalorder %v6799_v31, 2  ;;  %vm6801_vm1 = vcmp.eq.s32.totalorder %v6799_v31, 0  ;;  %vm6800_vm0 = vcmp.lt.s32.totalorder %v6799_v31, 2 }
 0x671   :  { %v6880_v16 = vsel %vm7351_vm12, 0, %v7350_v15  ;;  %vm6970_vm14 = vc.u32 %v13380_v39, %v13376_v6  ;;  %vm6811_vm3 = vcmp.lt.s32.totalorder %v13822_v5, 0  ;;  %v6895_v35 = vsub.s32 4, %v13352_v14 }
 0x672   :  { %v6881_v32 = vsub.s32 32, %v6880_v16  ;;  %v6882_v58 = vshll.u32 %v6873_v57, %v6880_v16  ;;  %v6885_v50 = vsub.s32 4294967266, %v6880_v16  ;;  %v6972_v33 = vsel %vm6970_vm14, %v6971_v47, %v13377_v60 }
 0x673   :  { %v6973_v34 = vadd.s32 %v6972_v33, %v6968_v62  ;;  %vm6810_vm5 = vcmp.le.f32.partialorder %v6809_v7, 0.7853982  ;;  %v6896_v25 = vsel %vm6811_vm3, %v6895_v35, %v13352_v14  ;;  %v6969_v46 = vadd.s32 %v13376_v6, %v13380_v39 }
 0x674   :  { %v6883_v59 = vshrl.u32 %v6865_v36, %v6881_v32  ;;  %v6886_v0 = vadd.s32 127, %v6885_v50  ;;  %v6898_v13 = vsel %vm6810_vm5, 0, %v6896_v25  ;;  %vm6901_vm8 = vweird.f32 %v13822_v5 }
 0x675   :  { %v7867_v17 = vpop.eup %7866  ;;  %v6974_v37 = vadd.s32 536870912, %v6973_v34  ;;  %v6902_v43 = vadd.s32 3, %v6898_v13  ;;  %vm6915_vm11 = vcmp.lt.s32.totalorder %v13825_v56, 0  ;;  %vm6914_vm9 = vcmp.le.f32.partialorder %v6913_v48, 0.7853982 }
 0x676   :  { %v7869_v52 = vpop.eup %7868  ;;  %v6805_v51 = vxor.u32 2147483648, %v7867_v17  ;;  %v6884_v54 = vor.u32 %v6883_v59, %v6882_v58  ;;  %v6887_v44 = vshll.u32 %v6886_v0, 23 }
 0x677   :  { %v6802_v30 = vxor.u32 2147483648, %v7869_v52  ;;  %v6975_v24 = vshrl.u32 %v6974_v37, 30  ;;  %v6903_v1 = vand.u32 3, %v6902_v43 }
 0x678   :  { %v6806_v49 = vsel %vm6804_vm15, %v6805_v51, %v7869_v52  ;;  %v6888_v18 = vor.u32 4788187, %v6887_v44  ;;  %v6891_v9 = vcvt.s32.f32 %v6884_v54  ;;  %vm7005_vm15 = vweird.f32 %v13825_v56 }
 0x679   :  { %v6803_v4 = vsel %vm6801_vm1, %v7867_v17, %v6802_v30  ;;  %v6976_v12 = vshll.u32 %v6975_v24, 30  ;;  %vm6908_vm6 = vcmp.eq.s32.totalorder %v6903_v1, 2  ;;  %vm6905_vm7 = vcmp.eq.s32.totalorder %v6903_v1, 0 }
 0x67a   :  { %v6807_v26 = vsel %vm6800_vm0, %v6803_v4, %v6806_v49  ;;  %v6889_v2 = vand.u32 2147483647, %v6888_v18  ;;  %vm6904_vm10 = vcmp.lt.s32.totalorder %v6903_v1, 2  ;;  %v6999_v31 = vsub.s32 4, %v6975_v24 }
 0x67b   :  { %v6808_v42 = vsel %vm6797_vm2, nan, %v6807_v26  ;;  %v6977_v57 = vsub.s32 %v6973_v34, %v6976_v12 }
 0x67c   :  { %v6892_v53 = vmul.f32 %v6891_v9, %v6889_v2  ;;  %7078 = vst [vmem:[#allocation5 + $0x1e8] sm:$0xff] %v6808_v42  ;;  %v7000_v58 = vsel %vm6915_vm11, %v6999_v31, %v6975_v24 }
 0x67d   :  { %v6979_v8 = vsub.s32 0, %v6977_v57 }
 0x67e   :  { %v6893_v20 = vxor.u32 2147483648, %v6892_v53 }
 0x67f   :  { %v7353_v28 = vmin.u32 %v6979_v8, %v6977_v57 }
 0x680   :  { %v6894_v19 = vsel %vm6811_vm3, %v6893_v20, %v6892_v53 }
 0x681   :  { %v6897_v11 = vsel %vm6810_vm5, %v13822_v5, %v6894_v19  ;;  %v6981_v10 = vclz %v7353_v28  ;;  %v7002_v5 = vsel %vm6914_vm9, 0, %v7000_v58 }
 0x682   :  { %7870 = vcosq.f32 %v6897_v11  ;;  %v7006_v47 = vadd.s32 3, %v7002_v5 }
 0x683   :  { %7872 = vsinq.f32 %v6897_v11  ;;  %v7354_v27 = vadd.s32 4294967294, %v6981_v10 }
 0x684   :  { %v7007_v59 = vand.u32 3, %v7006_v47 }
 0x685   :  { %vm7355_vm4 = vcmp.lt.s32.totalorder %v7354_v27, 0 }
 0x686   :  { %v6984_v63 = vsel %vm7355_vm4, 0, %v7354_v27  ;;  %vm7012_vm13 = vcmp.eq.s32.totalorder %v7007_v59, 2  ;;  %vm7009_vm12 = vcmp.eq.s32.totalorder %v7007_v59, 0  ;;  %vm7008_vm14 = vcmp.lt.s32.totalorder %v7007_v59, 2 }
 0x687   :  { %v6985_v23 = vsub.s32 32, %v6984_v63  ;;  %v6986_v7 = vshll.u32 %v6977_v57, %v6984_v63  ;;  %v6989_v61 = vsub.s32 4294967266, %v6984_v63 }
 0x689   :  { %v6987_v38 = vshrl.u32 %v6969_v46, %v6985_v23  ;;  %v6990_v45 = vadd.s32 127, %v6989_v61 }
 0x68b   :  { %v6988_v14 = vor.u32 %v6987_v38, %v6986_v7  ;;  %v6991_v40 = vshll.u32 %v6990_v45, 23 }
 0x68d   :  { %v6992_v21 = vor.u32 4788187, %v6991_v40  ;;  %v6995_v3 = vcvt.s32.f32 %v6988_v14 }
 0x68f   :  { %v7871_v41 = vpop.eup %7870  ;;  %v6993_v6 = vand.u32 2147483647, %v6992_v21 }
 0x690   :  { %v7873_v29 = vpop.eup %7872  ;;  %v6909_v15 = vxor.u32 2147483648, %v7871_v41 }
 0x691   :  { %v6906_v22 = vxor.u32 2147483648, %v7873_v29  ;;  %v6996_v39 = vmul.f32 %v6995_v3, %v6993_v6 }
 0x692   :  { %v6910_v60 = vsel %vm6908_vm6, %v6909_v15, %v7873_v29 }
 0x693   :  { %v6907_v55 = vsel %vm6905_vm7, %v7871_v41, %v6906_v22  ;;  %v6997_v62 = vxor.u32 2147483648, %v6996_v39 }
 0x694   :  { %v6911_v36 = vsel %vm6904_vm10, %v6907_v55, %v6910_v60 }
 0x695   :  { %v6912_v16 = vsel %vm6901_vm8, nan, %v6911_v36  ;;  %v6998_v32 = vsel %vm6915_vm11, %v6997_v62, %v6996_v39 }
 0x696   :  { %7079 = vst [vmem:[#allocation5 + $0x1f0] sm:$0xff] %v6912_v16  ;;  %v7001_v50 = vsel %vm6914_vm9, %v13825_v56, %v6998_v32 }
 0x697   :  { %7874 = vcosq.f32 %v7001_v50 }
 0x698   :  { %7876 = vsinq.f32 %v7001_v50 }
 0x6a4   :  { %v7875_v0 = vpop.eup %7874 }
 0x6a5   :  { %v7877_v33 = vpop.eup %7876  ;;  %v7013_v17 = vxor.u32 2147483648, %v7875_v0 }
 0x6a6   :  { %v7010_v48 = vxor.u32 2147483648, %v7877_v33 }
 0x6a7   :  { %v7014_v34 = vsel %vm7012_vm13, %v7013_v17, %v7877_v33 }
 0x6a8   :  { %v7011_v52 = vsel %vm7009_vm12, %v7875_v0, %v7010_v48 }
 0x6a9   :  { %v7015_v51 = vsel %vm7008_vm14, %v7011_v52, %v7014_v34 }
 0x6aa   :  { %v7016_v54 = vsel %vm7005_vm15, nan, %v7015_v51 }
 0x6ab   :  { %7080 = vst [vmem:[#allocation5 + $0x1f8] sm:$0xff] %v7016_v54 }
 0x6ac   :  { %7909 = shalt.err (!%p7906_p9)
}
 0x6ad   :  { %s7930_s18 = smov 128   ;;  %s7931_s19 = smov 8  }
 0x6ae   :  { %7092 = dma.vmem_to_hbm [thread:$0]  %s7087_s16, 8192, %s13406_s2, [#allocation4], %s7930_s18, %s7930_s18, %s7931_s19  }
 0x6af   :  { %7920 = dma.done.wait [#allocation4], 8192  }
 0x6b0   :  { %7921 = vsyncadd [#allocation4], 4294959104 }
 0x6b1   :  { %7096 = vsyncpa [#allocation3], 1 }
 0x6b2   :  { %7097 = vsyncpa [#allocation4], 1 }

</bundles_post_ra>
